<compile_context>
chip_gen: v7x
topology: tpu7x:2x2x1
jax: 0.10.0
libtpu: 0.0.40
codegen_flags: <defaults>
</compile_context>

<pallas_src>
import jax
import jax.numpy as jnp
from jax.experimental import pallas as pl
from jax.experimental.pallas import tpu as pltpu

INPUT_SIZE = 2
HIDDEN_SIZE = 50
NUM_LAYERS = 2
OUTPUT_SIZE = 2
HP = 128                      # each gate padded to one full 128-lane block
_GATE_DEST = (0, 1, 3, 2)     # PyTorch gate order [i,f,g,o] -> padded slots [i,f,o,g]


def _lstm_kernel(x_ref, wih0_ref, b0_ref, wrec_ref, wih1_ref, b1_ref,
                 wfc_ref, bfc_ref, out_ref):
    """Whole 2-layer LSTM recurrence + input projection + FC head, one shot.

    x_ref    : (B, T, I)      raw batch-first input (I = 2)
    wih0_ref : (I, 4*HP)      layer-0 input weights, gate-padded
    b0_ref   : (1, 4*HP)      layer-0 bias (b_ih + b_hh), gate-padded
    wrec_ref : (2*HP, 8*HP)   block-diag [[whh0, 0], [0, whh1]]
    wih1_ref : (HP, 4*HP)     layer-1 input weights (from h1)
    b1_ref   : (1, 4*HP)      layer-1 bias
    wfc_ref  : (HP, HP)       FC head, zero-padded to a lane-dense slab
    bfc_ref  : (1, HP)
    out_ref  : (B, HP)        lane-padded FC output (real values in [:, :O])
    """
    B, T = x_ref.shape[0], x_ref.shape[1]

    # Hoist only the tiny per-step broadcasts out of the unrolled loop.
    w0r0 = jnp.broadcast_to(wih0_ref[0:1, :], (B, 4 * HP))
    w0r1 = jnp.broadcast_to(wih0_ref[1:2, :], (B, 4 * HP))
    b0b = jnp.broadcast_to(b0_ref[...], (B, 4 * HP))
    b1b = jnp.broadcast_to(b1_ref[...], (B, 4 * HP))

    def cell(gates, c):
        # gates layout [i | f | o | g]; single-EUP sigmoid = 0.5*tanh(0.5x)+0.5
        sig = 0.5 * jnp.tanh(0.5 * gates[:, : 3 * HP]) + 0.5
        g_g = jnp.tanh(gates[:, 3 * HP:])
        i_g = sig[:, 0 * HP:1 * HP]
        f_g = sig[:, 1 * HP:2 * HP]
        o_g = sig[:, 2 * HP:3 * HP]
        c_new = f_g * c + i_g * g_g
        h_new = o_g * jnp.tanh(c_new)
        return h_new, c_new

    zeros = jnp.zeros((B, HP), jnp.float32)
    h1, c1, h2, c2 = zeros, zeros, zeros, zeros
    hh = jnp.zeros((B, 2 * HP), jnp.float32)   # [h1 | h2] carried for the fused matmul

    # Static unroll over time; h/c state carried in vregs, weights streamed
    # from VMEM by each jnp.dot (no big SSA values live across the loop).
    for t in range(T):
        # Layer-0 input projection (I = 2): two broadcast FMAs, off the
        # cross-timestep critical path.
        x0 = x_ref[:, t, 0:1]                                 # (B, 1)
        x1 = x_ref[:, t, 1:2]                                 # (B, 1)
        xg = x0 * w0r0 + x1 * w0r1 + b0b                      # (B, 4*HP)

        if t == 0:
            # h0 = c0 = 0 -> recurrent contribution is exactly zero; skip it.
            gates0 = xg
            rec_l1 = jnp.zeros((B, 4 * HP), jnp.float32)
        else:
            # Both recurrent matmuls fused: one K=2*HP matmul off (t-1) state.
            rec = jnp.dot(hh, wrec_ref[...], preferred_element_type=jnp.float32)
            gates0 = xg + rec[:, : 4 * HP]
            rec_l1 = rec[:, 4 * HP:]

        h1, c1 = cell(gates0, c1)

        # Layer 1 (eval mode -> no inter-layer dropout).
        gates1 = (jnp.dot(h1, wih1_ref[...], preferred_element_type=jnp.float32)
                  + rec_l1 + b1b)
        h2, c2 = cell(gates1, c2)

        hh = jnp.concatenate([h1, h2], axis=1)                # (B, 2*HP)

    # FC head in-kernel; lane-padded (B, HP) store stays unmasked on lanes.
    fc = jnp.dot(h2, wfc_ref[...], preferred_element_type=jnp.float32)
    out_ref[...] = fc + jnp.broadcast_to(bfc_ref[...], (B, HP))


# ----------------------------- wrapper / packing -----------------------------

def _pad_gates(w, H=HIDDEN_SIZE):
    """(in_dim, 4H) PyTorch gate order [i|f|g|o] -> (in_dim, 4*HP) slots [i|f|o|g]."""
    out = jnp.zeros((w.shape[0], 4 * HP), jnp.float32)
    for src, dst in enumerate(_GATE_DEST):
        out = out.at[:, dst * HP: dst * HP + H].set(w[:, src * H:(src + 1) * H])
    return out


def _pad_rows(w):
    """Zero-pad the contraction (row) dim up to HP."""
    return jnp.pad(w, ((0, HP - w.shape[0]), (0, 0)))


def prepare_params(params):
    """One-time packing of PyTorch-layout params into the kernel layout."""
    H, O = HIDDEN_SIZE, OUTPUT_SIZE
    wih0_p = _pad_gates(params["wih0"])                      # (I, 4*HP)
    b0_p = _pad_gates(params["b0"])                          # (1, 4*HP)
    whh0_p = _pad_rows(_pad_gates(params["whh0"]))           # (HP, 4*HP)
    wih1_p = _pad_rows(_pad_gates(params["wih1"]))           # (HP, 4*HP)
    whh1_p = _pad_rows(_pad_gates(params["whh1"]))           # (HP, 4*HP)
    b1_p = _pad_gates(params["b1"])                          # (1, 4*HP)
    # Block-diagonal recurrent weight: [h1 | h2] @ wrec = [h1@whh0 | h2@whh1].
    wrec = jnp.zeros((2 * HP, 8 * HP), jnp.float32)
    wrec = wrec.at[:HP, : 4 * HP].set(whh0_p)
    wrec = wrec.at[HP:, 4 * HP:].set(whh1_p)
    wfc_p = jnp.zeros((HP, HP), jnp.float32).at[:H, :O].set(params["wfc"])
    bfc_p = jnp.zeros((1, HP), jnp.float32).at[:, :O].set(params["bfc"])
    return dict(wih0=wih0_p, b0=b0_p, wrec=wrec, wih1=wih1_p, b1=b1_p,
                wfc=wfc_p, bfc=bfc_p)


def lstm_model_forward(x, prepared):
    """x: (B, T, I) batch-first float32 -> (B, OUTPUT_SIZE)."""
    B = x.shape[0]
    n_in = 8
    out_pad = pl.pallas_call(
        _lstm_kernel,
        out_shape=jax.ShapeDtypeStruct((B, HP), jnp.float32),
        # Grid-less single invocation: every operand is one single-buffered
        # whole-array VMEM block (total working set ~1.4 MiB; fits v5e/v6e/v7x).
        in_specs=[pl.BlockSpec(memory_space=pltpu.MemorySpace.VMEM)] * n_in,
        out_specs=pl.BlockSpec(memory_space=pltpu.MemorySpace.VMEM),
    )(x.astype(jnp.float32), prepared["wih0"], prepared["b0"], prepared["wrec"],
      prepared["wih1"], prepared["b1"], prepared["wfc"], prepared["bfc"])
    # Lane-dense slab -> real outputs live in the first OUTPUT_SIZE lanes.
    return out_pad[:, :OUTPUT_SIZE]


# ------------------------------- init / reference -----------------------------

def init_params(key):
    """Deterministic init matching PyTorch shapes (uniform +-1/sqrt(H))."""
    H, I, O = HIDDEN_SIZE, INPUT_SIZE, OUTPUT_SIZE
    bound = 1.0 / jnp.sqrt(jnp.float32(H))
    ks = jax.random.split(key, 12)

    def u(k, shape):
        return jax.random.uniform(k, shape, jnp.float32, -bound, bound)

    # PyTorch stores weight_ih_l* as (4H, in); we keep the transposed (in, 4H)
    # form so the kernel does x @ W directly.  Gate order [i|f|g|o].
    wih0 = u(ks[0], (I, 4 * H))
    whh0 = u(ks[1], (H, 4 * H))
    b0 = u(ks[2], (1, 4 * H)) + u(ks[3], (1, 4 * H))   # bias_ih + bias_hh
    wih1 = u(ks[4], (H, 4 * H))
    whh1 = u(ks[5], (H, 4 * H))
    b1 = u(ks[6], (1, 4 * H)) + u(ks[7], (1, 4 * H))
    wfc = u(ks[8], (H, O))
    bfc = u(ks[9], (1, O))
    return dict(wih0=wih0, whh0=whh0, b0=b0,
                wih1=wih1, whh1=whh1, b1=b1,
                wfc=wfc, bfc=bfc)


def lstm_model_reference(x, params):
    """Pure-JAX reference of the same forward (for sanity checking)."""
    B, T, _ = x.shape
    H = HIDDEN_SIZE

    def cell(x_t, h, c, wih, whh, b):
        gates = x_t @ wih + h @ whh + b
        i_g = jax.nn.sigmoid(gates[:, 0 * H:1 * H])
        f_g = jax.nn.sigmoid(gates[:, 1 * H:2 * H])
        g_g = jnp.tanh(gates[:, 2 * H:3 * H])
        o_g = jax.nn.sigmoid(gates[:, 3 * H:4 * H])
        c_new = f_g * c + i_g * g_g
        return o_g * jnp.tanh(c_new), c_new

    h1 = c1 = h2 = c2 = jnp.zeros((B, H), jnp.float32)
    for t in range(T):
        h1, c1 = cell(x[:, t, :], h1, c1, params["wih0"], params["whh0"], params["b0"])
        h2, c2 = cell(h1, h2, c2, params["wih1"], params["whh1"], params["b1"])
    return h2 @ params["wfc"] + params["bfc"]


if __name__ == "__main__":
    key = jax.random.PRNGKey(0)
    k_param, k_x = jax.random.split(key)

    B, T = 2, 8
    params = init_params(k_param)
    prepared = prepare_params(params)          # one-time weight packing
    x = jax.random.normal(k_x, (B, T, INPUT_SIZE), jnp.float32)

    out = jax.jit(lstm_model_forward)(x, prepared)
    out = jax.block_until_ready(out)

    ref = lstm_model_reference(x, params)
    assert out.shape == (B, OUTPUT_SIZE)
    assert jnp.allclose(out, ref, atol=2e-3, rtol=2e-3), (
        f"max abs err = {jnp.max(jnp.abs(out - ref))}")

    print("KERNEL_OK")
</pallas_src>

<mosaic_0001>
module attributes {stable_mosaic.version = 11 : i64} {
  func.func @_lstm_kernel(%arg0: memref<2x8x2xf32, #tpu.memory_space<vmem>>, %arg1: memref<2x512xf32, #tpu.memory_space<vmem>>, %arg2: memref<1x512xf32, #tpu.memory_space<vmem>>, %arg3: memref<256x1024xf32, #tpu.memory_space<vmem>>, %arg4: memref<128x512xf32, #tpu.memory_space<vmem>>, %arg5: memref<1x512xf32, #tpu.memory_space<vmem>>, %arg6: memref<128x128xf32, #tpu.memory_space<vmem>>, %arg7: memref<1x128xf32, #tpu.memory_space<vmem>>, %arg8: memref<2x128xf32, #tpu.memory_space<vmem>>) attributes {dimension_semantics = [], scalar_prefetch = 0 : i64, scratch_operands = 0 : i64, tpu.core_type = #tpu.core_type<tc>} {
    %c0 = arith.constant 0 : index
    %c0_0 = arith.constant 0 : index
    %0 = vector.load %arg1[%c0, %c0_0] : memref<2x512xf32, #tpu.memory_space<vmem>>, vector<1x512xf32>
    %1 = vector.shape_cast %0 : vector<1x512xf32> to vector<1x512xf32>
    %2 = vector.broadcast %1 : vector<1x512xf32> to vector<2x512xf32>
    %c1 = arith.constant 1 : index
    %c0_1 = arith.constant 0 : index
    %3 = vector.load %arg1[%c1, %c0_1] : memref<2x512xf32, #tpu.memory_space<vmem>>, vector<1x512xf32>
    %4 = vector.shape_cast %3 : vector<1x512xf32> to vector<1x512xf32>
    %5 = vector.broadcast %4 : vector<1x512xf32> to vector<2x512xf32>
    %c0_2 = arith.constant 0 : index
    %c0_3 = arith.constant 0 : index
    %6 = vector.load %arg2[%c0_2, %c0_3] : memref<1x512xf32, #tpu.memory_space<vmem>>, vector<1x512xf32>
    %7 = vector.shape_cast %6 : vector<1x512xf32> to vector<1x512xf32>
    %8 = vector.broadcast %7 : vector<1x512xf32> to vector<2x512xf32>
    %c0_4 = arith.constant 0 : index
    %c0_5 = arith.constant 0 : index
    %9 = vector.load %arg5[%c0_4, %c0_5] : memref<1x512xf32, #tpu.memory_space<vmem>>, vector<1x512xf32>
    %10 = vector.shape_cast %9 : vector<1x512xf32> to vector<1x512xf32>
    %11 = vector.broadcast %10 : vector<1x512xf32> to vector<2x512xf32>
    %cst = arith.constant 0.000000e+00 : f32
    %12 = vector.broadcast %cst : f32 to vector<2x128xf32>
    %c0_6 = arith.constant 0 : index
    %c0_7 = arith.constant 0 : index
    %c0_8 = arith.constant 0 : index
    %13 = vector.load %arg0[%c0_6, %c0_7, %c0_8] : memref<2x8x2xf32, #tpu.memory_space<vmem>>, vector<2x1x1xf32>
    %14 = vector.shape_cast %13 : vector<2x1x1xf32> to vector<2x1xf32>
    %c0_9 = arith.constant 0 : index
    %c0_10 = arith.constant 0 : index
    %c1_11 = arith.constant 1 : index
    %15 = vector.load %arg0[%c0_9, %c0_10, %c1_11] : memref<2x8x2xf32, #tpu.memory_space<vmem>>, vector<2x1x1xf32>
    %16 = vector.shape_cast %15 : vector<2x1x1xf32> to vector<2x1xf32>
    %17 = vector.broadcast %14 : vector<2x1xf32> to vector<2x512xf32>
    %18 = arith.mulf %17, %2 : vector<2x512xf32>
    %19 = vector.broadcast %16 : vector<2x1xf32> to vector<2x512xf32>
    %20 = arith.mulf %19, %5 : vector<2x512xf32>
    %21 = arith.addf %18, %20 : vector<2x512xf32>
    %22 = arith.addf %21, %8 : vector<2x512xf32>
    %cst_12 = arith.constant 0.000000e+00 : f32
    %23 = vector.broadcast %cst_12 : f32 to vector<2x512xf32>
    %24 = vector.extract_strided_slice %22 {offsets = [0, 0], sizes = [2, 384], strides = [1, 1]} : vector<2x512xf32> to vector<2x384xf32>
    %cst_13 = arith.constant 5.000000e-01 : f32
    %25 = vector.broadcast %cst_13 : f32 to vector<2x384xf32>
    %26 = arith.mulf %25, %24 : vector<2x384xf32>
    %27 = math.tanh %26 : vector<2x384xf32>
    %cst_14 = arith.constant 5.000000e-01 : f32
    %28 = vector.broadcast %cst_14 : f32 to vector<2x384xf32>
    %29 = arith.mulf %28, %27 : vector<2x384xf32>
    %cst_15 = arith.constant 5.000000e-01 : f32
    %30 = vector.broadcast %cst_15 : f32 to vector<2x384xf32>
    %31 = arith.addf %29, %30 : vector<2x384xf32>
    %32 = vector.extract_strided_slice %22 {offsets = [0, 384], sizes = [2, 128], strides = [1, 1]} : vector<2x512xf32> to vector<2x128xf32>
    %33 = math.tanh %32 : vector<2x128xf32>
    %34 = vector.extract_strided_slice %31 {offsets = [0, 0], sizes = [2, 128], strides = [1, 1]} : vector<2x384xf32> to vector<2x128xf32>
    %35 = vector.extract_strided_slice %31 {offsets = [0, 128], sizes = [2, 128], strides = [1, 1]} : vector<2x384xf32> to vector<2x128xf32>
    %36 = vector.extract_strided_slice %31 {offsets = [0, 256], sizes = [2, 128], strides = [1, 1]} : vector<2x384xf32> to vector<2x128xf32>
    %37 = arith.mulf %35, %12 : vector<2x128xf32>
    %38 = arith.mulf %34, %33 : vector<2x128xf32>
    %39 = arith.addf %37, %38 : vector<2x128xf32>
    %40 = math.tanh %39 : vector<2x128xf32>
    %41 = arith.mulf %36, %40 : vector<2x128xf32>
    %c0_16 = arith.constant 0 : index
    %c0_17 = arith.constant 0 : index
    %42 = vector.load %arg4[%c0_16, %c0_17] : memref<128x512xf32, #tpu.memory_space<vmem>>, vector<128x512xf32>
    %cst_18 = arith.constant dense<0.000000e+00> : vector<2x512xf32>
    %43 = tpu.matmul %41, %42, %cst_18 {dimension_numbers = #tpu.dot_dimension_numbers<[1], [0], [0], [1], [0, 0, 1, 1], [], []>} : vector<2x128xf32>, vector<128x512xf32>, vector<2x512xf32> -> vector<2x512xf32>
    %44 = arith.addf %43, %23 : vector<2x512xf32>
    %45 = arith.addf %44, %11 : vector<2x512xf32>
    %46 = vector.extract_strided_slice %45 {offsets = [0, 0], sizes = [2, 384], strides = [1, 1]} : vector<2x512xf32> to vector<2x384xf32>
    %cst_19 = arith.constant 5.000000e-01 : f32
    %47 = vector.broadcast %cst_19 : f32 to vector<2x384xf32>
    %48 = arith.mulf %47, %46 : vector<2x384xf32>
    %49 = math.tanh %48 : vector<2x384xf32>
    %cst_20 = arith.constant 5.000000e-01 : f32
    %50 = vector.broadcast %cst_20 : f32 to vector<2x384xf32>
    %51 = arith.mulf %50, %49 : vector<2x384xf32>
    %cst_21 = arith.constant 5.000000e-01 : f32
    %52 = vector.broadcast %cst_21 : f32 to vector<2x384xf32>
    %53 = arith.addf %51, %52 : vector<2x384xf32>
    %54 = vector.extract_strided_slice %45 {offsets = [0, 384], sizes = [2, 128], strides = [1, 1]} : vector<2x512xf32> to vector<2x128xf32>
    %55 = math.tanh %54 : vector<2x128xf32>
    %56 = vector.extract_strided_slice %53 {offsets = [0, 0], sizes = [2, 128], strides = [1, 1]} : vector<2x384xf32> to vector<2x128xf32>
    %57 = vector.extract_strided_slice %53 {offsets = [0, 128], sizes = [2, 128], strides = [1, 1]} : vector<2x384xf32> to vector<2x128xf32>
    %58 = vector.extract_strided_slice %53 {offsets = [0, 256], sizes = [2, 128], strides = [1, 1]} : vector<2x384xf32> to vector<2x128xf32>
    %59 = arith.mulf %57, %12 : vector<2x128xf32>
    %60 = arith.mulf %56, %55 : vector<2x128xf32>
    %61 = arith.addf %59, %60 : vector<2x128xf32>
    %62 = math.tanh %61 : vector<2x128xf32>
    %63 = arith.mulf %58, %62 : vector<2x128xf32>
    %64 = tpu.concatenate %41, %63 in 1 : vector<2x128xf32>, vector<2x128xf32> -> vector<2x256xf32>
    %c0_22 = arith.constant 0 : index
    %c1_23 = arith.constant 1 : index
    %c0_24 = arith.constant 0 : index
    %65 = vector.load %arg0[%c0_22, %c1_23, %c0_24] : memref<2x8x2xf32, #tpu.memory_space<vmem>>, vector<2x1x1xf32>
    %66 = vector.shape_cast %65 : vector<2x1x1xf32> to vector<2x1xf32>
    %c0_25 = arith.constant 0 : index
    %c1_26 = arith.constant 1 : index
    %c1_27 = arith.constant 1 : index
    %67 = vector.load %arg0[%c0_25, %c1_26, %c1_27] : memref<2x8x2xf32, #tpu.memory_space<vmem>>, vector<2x1x1xf32>
    %68 = vector.shape_cast %67 : vector<2x1x1xf32> to vector<2x1xf32>
    %69 = vector.broadcast %66 : vector<2x1xf32> to vector<2x512xf32>
    %70 = arith.mulf %69, %2 : vector<2x512xf32>
    %71 = vector.broadcast %68 : vector<2x1xf32> to vector<2x512xf32>
    %72 = arith.mulf %71, %5 : vector<2x512xf32>
    %73 = arith.addf %70, %72 : vector<2x512xf32>
    %74 = arith.addf %73, %8 : vector<2x512xf32>
    %c0_28 = arith.constant 0 : index
    %c0_29 = arith.constant 0 : index
    %75 = vector.load %arg3[%c0_28, %c0_29] : memref<256x1024xf32, #tpu.memory_space<vmem>>, vector<256x1024xf32>
    %cst_30 = arith.constant dense<0.000000e+00> : vector<2x1024xf32>
    %76 = tpu.matmul %64, %75, %cst_30 {dimension_numbers = #tpu.dot_dimension_numbers<[1], [0], [0], [1], [0, 0, 1, 1], [], []>} : vector<2x256xf32>, vector<256x1024xf32>, vector<2x1024xf32> -> vector<2x1024xf32>
    %77 = vector.extract_strided_slice %76 {offsets = [0, 0], sizes = [2, 512], strides = [1, 1]} : vector<2x1024xf32> to vector<2x512xf32>
    %78 = arith.addf %74, %77 : vector<2x512xf32>
    %79 = vector.extract_strided_slice %76 {offsets = [0, 512], sizes = [2, 512], strides = [1, 1]} : vector<2x1024xf32> to vector<2x512xf32>
    %80 = vector.extract_strided_slice %78 {offsets = [0, 0], sizes = [2, 384], strides = [1, 1]} : vector<2x512xf32> to vector<2x384xf32>
    %cst_31 = arith.constant 5.000000e-01 : f32
    %81 = vector.broadcast %cst_31 : f32 to vector<2x384xf32>
    %82 = arith.mulf %81, %80 : vector<2x384xf32>
    %83 = math.tanh %82 : vector<2x384xf32>
    %cst_32 = arith.constant 5.000000e-01 : f32
    %84 = vector.broadcast %cst_32 : f32 to vector<2x384xf32>
    %85 = arith.mulf %84, %83 : vector<2x384xf32>
    %cst_33 = arith.constant 5.000000e-01 : f32
    %86 = vector.broadcast %cst_33 : f32 to vector<2x384xf32>
    %87 = arith.addf %85, %86 : vector<2x384xf32>
    %88 = vector.extract_strided_slice %78 {offsets = [0, 384], sizes = [2, 128], strides = [1, 1]} : vector<2x512xf32> to vector<2x128xf32>
    %89 = math.tanh %88 : vector<2x128xf32>
    %90 = vector.extract_strided_slice %87 {offsets = [0, 0], sizes = [2, 128], strides = [1, 1]} : vector<2x384xf32> to vector<2x128xf32>
    %91 = vector.extract_strided_slice %87 {offsets = [0, 128], sizes = [2, 128], strides = [1, 1]} : vector<2x384xf32> to vector<2x128xf32>
    %92 = vector.extract_strided_slice %87 {offsets = [0, 256], sizes = [2, 128], strides = [1, 1]} : vector<2x384xf32> to vector<2x128xf32>
    %93 = arith.mulf %91, %39 : vector<2x128xf32>
    %94 = arith.mulf %90, %89 : vector<2x128xf32>
    %95 = arith.addf %93, %94 : vector<2x128xf32>
    %96 = math.tanh %95 : vector<2x128xf32>
    %97 = arith.mulf %92, %96 : vector<2x128xf32>
    %c0_34 = arith.constant 0 : index
    %c0_35 = arith.constant 0 : index
    %98 = vector.load %arg4[%c0_34, %c0_35] : memref<128x512xf32, #tpu.memory_space<vmem>>, vector<128x512xf32>
    %cst_36 = arith.constant dense<0.000000e+00> : vector<2x512xf32>
    %99 = tpu.matmul %97, %98, %cst_36 {dimension_numbers = #tpu.dot_dimension_numbers<[1], [0], [0], [1], [0, 0, 1, 1], [], []>} : vector<2x128xf32>, vector<128x512xf32>, vector<2x512xf32> -> vector<2x512xf32>
    %100 = arith.addf %99, %79 : vector<2x512xf32>
    %101 = arith.addf %100, %11 : vector<2x512xf32>
    %102 = vector.extract_strided_slice %101 {offsets = [0, 0], sizes = [2, 384], strides = [1, 1]} : vector<2x512xf32> to vector<2x384xf32>
    %cst_37 = arith.constant 5.000000e-01 : f32
    %103 = vector.broadcast %cst_37 : f32 to vector<2x384xf32>
    %104 = arith.mulf %103, %102 : vector<2x384xf32>
    %105 = math.tanh %104 : vector<2x384xf32>
    %cst_38 = arith.constant 5.000000e-01 : f32
    %106 = vector.broadcast %cst_38 : f32 to vector<2x384xf32>
    %107 = arith.mulf %106, %105 : vector<2x384xf32>
    %cst_39 = arith.constant 5.000000e-01 : f32
    %108 = vector.broadcast %cst_39 : f32 to vector<2x384xf32>
    %109 = arith.addf %107, %108 : vector<2x384xf32>
    %110 = vector.extract_strided_slice %101 {offsets = [0, 384], sizes = [2, 128], strides = [1, 1]} : vector<2x512xf32> to vector<2x128xf32>
    %111 = math.tanh %110 : vector<2x128xf32>
    %112 = vector.extract_strided_slice %109 {offsets = [0, 0], sizes = [2, 128], strides = [1, 1]} : vector<2x384xf32> to vector<2x128xf32>
    %113 = vector.extract_strided_slice %109 {offsets = [0, 128], sizes = [2, 128], strides = [1, 1]} : vector<2x384xf32> to vector<2x128xf32>
    %114 = vector.extract_strided_slice %109 {offsets = [0, 256], sizes = [2, 128], strides = [1, 1]} : vector<2x384xf32> to vector<2x128xf32>
    %115 = arith.mulf %113, %61 : vector<2x128xf32>
    %116 = arith.mulf %112, %111 : vector<2x128xf32>
    %117 = arith.addf %115, %116 : vector<2x128xf32>
    %118 = math.tanh %117 : vector<2x128xf32>
    %119 = arith.mulf %114, %118 : vector<2x128xf32>
    %120 = tpu.concatenate %97, %119 in 1 : vector<2x128xf32>, vector<2x128xf32> -> vector<2x256xf32>
    %c0_40 = arith.constant 0 : index
    %c2 = arith.constant 2 : index
    %c0_41 = arith.constant 0 : index
    %121 = vector.load %arg0[%c0_40, %c2, %c0_41] : memref<2x8x2xf32, #tpu.memory_space<vmem>>, vector<2x1x1xf32>
    %122 = vector.shape_cast %121 : vector<2x1x1xf32> to vector<2x1xf32>
    %c0_42 = arith.constant 0 : index
    %c2_43 = arith.constant 2 : index
    %c1_44 = arith.constant 1 : index
    %123 = vector.load %arg0[%c0_42, %c2_43, %c1_44] : memref<2x8x2xf32, #tpu.memory_space<vmem>>, vector<2x1x1xf32>
    %124 = vector.shape_cast %123 : vector<2x1x1xf32> to vector<2x1xf32>
    %125 = vector.broadcast %122 : vector<2x1xf32> to vector<2x512xf32>
    %126 = arith.mulf %125, %2 : vector<2x512xf32>
    %127 = vector.broadcast %124 : vector<2x1xf32> to vector<2x512xf32>
    %128 = arith.mulf %127, %5 : vector<2x512xf32>
    %129 = arith.addf %126, %128 : vector<2x512xf32>
    %130 = arith.addf %129, %8 : vector<2x512xf32>
    %c0_45 = arith.constant 0 : index
    %c0_46 = arith.constant 0 : index
    %131 = vector.load %arg3[%c0_45, %c0_46] : memref<256x1024xf32, #tpu.memory_space<vmem>>, vector<256x1024xf32>
    %cst_47 = arith.constant dense<0.000000e+00> : vector<2x1024xf32>
    %132 = tpu.matmul %120, %131, %cst_47 {dimension_numbers = #tpu.dot_dimension_numbers<[1], [0], [0], [1], [0, 0, 1, 1], [], []>} : vector<2x256xf32>, vector<256x1024xf32>, vector<2x1024xf32> -> vector<2x1024xf32>
    %133 = vector.extract_strided_slice %132 {offsets = [0, 0], sizes = [2, 512], strides = [1, 1]} : vector<2x1024xf32> to vector<2x512xf32>
    %134 = arith.addf %130, %133 : vector<2x512xf32>
    %135 = vector.extract_strided_slice %132 {offsets = [0, 512], sizes = [2, 512], strides = [1, 1]} : vector<2x1024xf32> to vector<2x512xf32>
    %136 = vector.extract_strided_slice %134 {offsets = [0, 0], sizes = [2, 384], strides = [1, 1]} : vector<2x512xf32> to vector<2x384xf32>
    %cst_48 = arith.constant 5.000000e-01 : f32
    %137 = vector.broadcast %cst_48 : f32 to vector<2x384xf32>
    %138 = arith.mulf %137, %136 : vector<2x384xf32>
    %139 = math.tanh %138 : vector<2x384xf32>
    %cst_49 = arith.constant 5.000000e-01 : f32
    %140 = vector.broadcast %cst_49 : f32 to vector<2x384xf32>
    %141 = arith.mulf %140, %139 : vector<2x384xf32>
    %cst_50 = arith.constant 5.000000e-01 : f32
    %142 = vector.broadcast %cst_50 : f32 to vector<2x384xf32>
    %143 = arith.addf %141, %142 : vector<2x384xf32>
    %144 = vector.extract_strided_slice %134 {offsets = [0, 384], sizes = [2, 128], strides = [1, 1]} : vector<2x512xf32> to vector<2x128xf32>
    %145 = math.tanh %144 : vector<2x128xf32>
    %146 = vector.extract_strided_slice %143 {offsets = [0, 0], sizes = [2, 128], strides = [1, 1]} : vector<2x384xf32> to vector<2x128xf32>
    %147 = vector.extract_strided_slice %143 {offsets = [0, 128], sizes = [2, 128], strides = [1, 1]} : vector<2x384xf32> to vector<2x128xf32>
    %148 = vector.extract_strided_slice %143 {offsets = [0, 256], sizes = [2, 128], strides = [1, 1]} : vector<2x384xf32> to vector<2x128xf32>
    %149 = arith.mulf %147, %95 : vector<2x128xf32>
    %150 = arith.mulf %146, %145 : vector<2x128xf32>
    %151 = arith.addf %149, %150 : vector<2x128xf32>
    %152 = math.tanh %151 : vector<2x128xf32>
    %153 = arith.mulf %148, %152 : vector<2x128xf32>
    %c0_51 = arith.constant 0 : index
    %c0_52 = arith.constant 0 : index
    %154 = vector.load %arg4[%c0_51, %c0_52] : memref<128x512xf32, #tpu.memory_space<vmem>>, vector<128x512xf32>
    %cst_53 = arith.constant dense<0.000000e+00> : vector<2x512xf32>
    %155 = tpu.matmul %153, %154, %cst_53 {dimension_numbers = #tpu.dot_dimension_numbers<[1], [0], [0], [1], [0, 0, 1, 1], [], []>} : vector<2x128xf32>, vector<128x512xf32>, vector<2x512xf32> -> vector<2x512xf32>
    %156 = arith.addf %155, %135 : vector<2x512xf32>
    %157 = arith.addf %156, %11 : vector<2x512xf32>
    %158 = vector.extract_strided_slice %157 {offsets = [0, 0], sizes = [2, 384], strides = [1, 1]} : vector<2x512xf32> to vector<2x384xf32>
    %cst_54 = arith.constant 5.000000e-01 : f32
    %159 = vector.broadcast %cst_54 : f32 to vector<2x384xf32>
    %160 = arith.mulf %159, %158 : vector<2x384xf32>
    %161 = math.tanh %160 : vector<2x384xf32>
    %cst_55 = arith.constant 5.000000e-01 : f32
    %162 = vector.broadcast %cst_55 : f32 to vector<2x384xf32>
    %163 = arith.mulf %162, %161 : vector<2x384xf32>
    %cst_56 = arith.constant 5.000000e-01 : f32
    %164 = vector.broadcast %cst_56 : f32 to vector<2x384xf32>
    %165 = arith.addf %163, %164 : vector<2x384xf32>
    %166 = vector.extract_strided_slice %157 {offsets = [0, 384], sizes = [2, 128], strides = [1, 1]} : vector<2x512xf32> to vector<2x128xf32>
    %167 = math.tanh %166 : vector<2x128xf32>
    %168 = vector.extract_strided_slice %165 {offsets = [0, 0], sizes = [2, 128], strides = [1, 1]} : vector<2x384xf32> to vector<2x128xf32>
    %169 = vector.extract_strided_slice %165 {offsets = [0, 128], sizes = [2, 128], strides = [1, 1]} : vector<2x384xf32> to vector<2x128xf32>
    %170 = vector.extract_strided_slice %165 {offsets = [0, 256], sizes = [2, 128], strides = [1, 1]} : vector<2x384xf32> to vector<2x128xf32>
    %171 = arith.mulf %169, %117 : vector<2x128xf32>
    %172 = arith.mulf %168, %167 : vector<2x128xf32>
    %173 = arith.addf %171, %172 : vector<2x128xf32>
    %174 = math.tanh %173 : vector<2x128xf32>
    %175 = arith.mulf %170, %174 : vector<2x128xf32>
    %176 = tpu.concatenate %153, %175 in 1 : vector<2x128xf32>, vector<2x128xf32> -> vector<2x256xf32>
    %c0_57 = arith.constant 0 : index
    %c3 = arith.constant 3 : index
    %c0_58 = arith.constant 0 : index
    %177 = vector.load %arg0[%c0_57, %c3, %c0_58] : memref<2x8x2xf32, #tpu.memory_space<vmem>>, vector<2x1x1xf32>
    %178 = vector.shape_cast %177 : vector<2x1x1xf32> to vector<2x1xf32>
    %c0_59 = arith.constant 0 : index
    %c3_60 = arith.constant 3 : index
    %c1_61 = arith.constant 1 : index
    %179 = vector.load %arg0[%c0_59, %c3_60, %c1_61] : memref<2x8x2xf32, #tpu.memory_space<vmem>>, vector<2x1x1xf32>
    %180 = vector.shape_cast %179 : vector<2x1x1xf32> to vector<2x1xf32>
    %181 = vector.broadcast %178 : vector<2x1xf32> to vector<2x512xf32>
    %182 = arith.mulf %181, %2 : vector<2x512xf32>
    %183 = vector.broadcast %180 : vector<2x1xf32> to vector<2x512xf32>
    %184 = arith.mulf %183, %5 : vector<2x512xf32>
    %185 = arith.addf %182, %184 : vector<2x512xf32>
    %186 = arith.addf %185, %8 : vector<2x512xf32>
    %c0_62 = arith.constant 0 : index
    %c0_63 = arith.constant 0 : index
    %187 = vector.load %arg3[%c0_62, %c0_63] : memref<256x1024xf32, #tpu.memory_space<vmem>>, vector<256x1024xf32>
    %cst_64 = arith.constant dense<0.000000e+00> : vector<2x1024xf32>
    %188 = tpu.matmul %176, %187, %cst_64 {dimension_numbers = #tpu.dot_dimension_numbers<[1], [0], [0], [1], [0, 0, 1, 1], [], []>} : vector<2x256xf32>, vector<256x1024xf32>, vector<2x1024xf32> -> vector<2x1024xf32>
    %189 = vector.extract_strided_slice %188 {offsets = [0, 0], sizes = [2, 512], strides = [1, 1]} : vector<2x1024xf32> to vector<2x512xf32>
    %190 = arith.addf %186, %189 : vector<2x512xf32>
    %191 = vector.extract_strided_slice %188 {offsets = [0, 512], sizes = [2, 512], strides = [1, 1]} : vector<2x1024xf32> to vector<2x512xf32>
    %192 = vector.extract_strided_slice %190 {offsets = [0, 0], sizes = [2, 384], strides = [1, 1]} : vector<2x512xf32> to vector<2x384xf32>
    %cst_65 = arith.constant 5.000000e-01 : f32
    %193 = vector.broadcast %cst_65 : f32 to vector<2x384xf32>
    %194 = arith.mulf %193, %192 : vector<2x384xf32>
    %195 = math.tanh %194 : vector<2x384xf32>
    %cst_66 = arith.constant 5.000000e-01 : f32
    %196 = vector.broadcast %cst_66 : f32 to vector<2x384xf32>
    %197 = arith.mulf %196, %195 : vector<2x384xf32>
    %cst_67 = arith.constant 5.000000e-01 : f32
    %198 = vector.broadcast %cst_67 : f32 to vector<2x384xf32>
    %199 = arith.addf %197, %198 : vector<2x384xf32>
    %200 = vector.extract_strided_slice %190 {offsets = [0, 384], sizes = [2, 128], strides = [1, 1]} : vector<2x512xf32> to vector<2x128xf32>
    %201 = math.tanh %200 : vector<2x128xf32>
    %202 = vector.extract_strided_slice %199 {offsets = [0, 0], sizes = [2, 128], strides = [1, 1]} : vector<2x384xf32> to vector<2x128xf32>
    %203 = vector.extract_strided_slice %199 {offsets = [0, 128], sizes = [2, 128], strides = [1, 1]} : vector<2x384xf32> to vector<2x128xf32>
    %204 = vector.extract_strided_slice %199 {offsets = [0, 256], sizes = [2, 128], strides = [1, 1]} : vector<2x384xf32> to vector<2x128xf32>
    %205 = arith.mulf %203, %151 : vector<2x128xf32>
    %206 = arith.mulf %202, %201 : vector<2x128xf32>
    %207 = arith.addf %205, %206 : vector<2x128xf32>
    %208 = math.tanh %207 : vector<2x128xf32>
    %209 = arith.mulf %204, %208 : vector<2x128xf32>
    %c0_68 = arith.constant 0 : index
    %c0_69 = arith.constant 0 : index
    %210 = vector.load %arg4[%c0_68, %c0_69] : memref<128x512xf32, #tpu.memory_space<vmem>>, vector<128x512xf32>
    %cst_70 = arith.constant dense<0.000000e+00> : vector<2x512xf32>
    %211 = tpu.matmul %209, %210, %cst_70 {dimension_numbers = #tpu.dot_dimension_numbers<[1], [0], [0], [1], [0, 0, 1, 1], [], []>} : vector<2x128xf32>, vector<128x512xf32>, vector<2x512xf32> -> vector<2x512xf32>
    %212 = arith.addf %211, %191 : vector<2x512xf32>
    %213 = arith.addf %212, %11 : vector<2x512xf32>
    %214 = vector.extract_strided_slice %213 {offsets = [0, 0], sizes = [2, 384], strides = [1, 1]} : vector<2x512xf32> to vector<2x384xf32>
    %cst_71 = arith.constant 5.000000e-01 : f32
    %215 = vector.broadcast %cst_71 : f32 to vector<2x384xf32>
    %216 = arith.mulf %215, %214 : vector<2x384xf32>
    %217 = math.tanh %216 : vector<2x384xf32>
    %cst_72 = arith.constant 5.000000e-01 : f32
    %218 = vector.broadcast %cst_72 : f32 to vector<2x384xf32>
    %219 = arith.mulf %218, %217 : vector<2x384xf32>
    %cst_73 = arith.constant 5.000000e-01 : f32
    %220 = vector.broadcast %cst_73 : f32 to vector<2x384xf32>
    %221 = arith.addf %219, %220 : vector<2x384xf32>
    %222 = vector.extract_strided_slice %213 {offsets = [0, 384], sizes = [2, 128], strides = [1, 1]} : vector<2x512xf32> to vector<2x128xf32>
    %223 = math.tanh %222 : vector<2x128xf32>
    %224 = vector.extract_strided_slice %221 {offsets = [0, 0], sizes = [2, 128], strides = [1, 1]} : vector<2x384xf32> to vector<2x128xf32>
    %225 = vector.extract_strided_slice %221 {offsets = [0, 128], sizes = [2, 128], strides = [1, 1]} : vector<2x384xf32> to vector<2x128xf32>
    %226 = vector.extract_strided_slice %221 {offsets = [0, 256], sizes = [2, 128], strides = [1, 1]} : vector<2x384xf32> to vector<2x128xf32>
    %227 = arith.mulf %225, %173 : vector<2x128xf32>
    %228 = arith.mulf %224, %223 : vector<2x128xf32>
    %229 = arith.addf %227, %228 : vector<2x128xf32>
    %230 = math.tanh %229 : vector<2x128xf32>
    %231 = arith.mulf %226, %230 : vector<2x128xf32>
    %232 = tpu.concatenate %209, %231 in 1 : vector<2x128xf32>, vector<2x128xf32> -> vector<2x256xf32>
    %c0_74 = arith.constant 0 : index
    %c4 = arith.constant 4 : index
    %c0_75 = arith.constant 0 : index
    %233 = vector.load %arg0[%c0_74, %c4, %c0_75] : memref<2x8x2xf32, #tpu.memory_space<vmem>>, vector<2x1x1xf32>
    %234 = vector.shape_cast %233 : vector<2x1x1xf32> to vector<2x1xf32>
    %c0_76 = arith.constant 0 : index
    %c4_77 = arith.constant 4 : index
    %c1_78 = arith.constant 1 : index
    %235 = vector.load %arg0[%c0_76, %c4_77, %c1_78] : memref<2x8x2xf32, #tpu.memory_space<vmem>>, vector<2x1x1xf32>
    %236 = vector.shape_cast %235 : vector<2x1x1xf32> to vector<2x1xf32>
    %237 = vector.broadcast %234 : vector<2x1xf32> to vector<2x512xf32>
    %238 = arith.mulf %237, %2 : vector<2x512xf32>
    %239 = vector.broadcast %236 : vector<2x1xf32> to vector<2x512xf32>
    %240 = arith.mulf %239, %5 : vector<2x512xf32>
    %241 = arith.addf %238, %240 : vector<2x512xf32>
    %242 = arith.addf %241, %8 : vector<2x512xf32>
    %c0_79 = arith.constant 0 : index
    %c0_80 = arith.constant 0 : index
    %243 = vector.load %arg3[%c0_79, %c0_80] : memref<256x1024xf32, #tpu.memory_space<vmem>>, vector<256x1024xf32>
    %cst_81 = arith.constant dense<0.000000e+00> : vector<2x1024xf32>
    %244 = tpu.matmul %232, %243, %cst_81 {dimension_numbers = #tpu.dot_dimension_numbers<[1], [0], [0], [1], [0, 0, 1, 1], [], []>} : vector<2x256xf32>, vector<256x1024xf32>, vector<2x1024xf32> -> vector<2x1024xf32>
    %245 = vector.extract_strided_slice %244 {offsets = [0, 0], sizes = [2, 512], strides = [1, 1]} : vector<2x1024xf32> to vector<2x512xf32>
    %246 = arith.addf %242, %245 : vector<2x512xf32>
    %247 = vector.extract_strided_slice %244 {offsets = [0, 512], sizes = [2, 512], strides = [1, 1]} : vector<2x1024xf32> to vector<2x512xf32>
    %248 = vector.extract_strided_slice %246 {offsets = [0, 0], sizes = [2, 384], strides = [1, 1]} : vector<2x512xf32> to vector<2x384xf32>
    %cst_82 = arith.constant 5.000000e-01 : f32
    %249 = vector.broadcast %cst_82 : f32 to vector<2x384xf32>
    %250 = arith.mulf %249, %248 : vector<2x384xf32>
    %251 = math.tanh %250 : vector<2x384xf32>
    %cst_83 = arith.constant 5.000000e-01 : f32
    %252 = vector.broadcast %cst_83 : f32 to vector<2x384xf32>
    %253 = arith.mulf %252, %251 : vector<2x384xf32>
    %cst_84 = arith.constant 5.000000e-01 : f32
    %254 = vector.broadcast %cst_84 : f32 to vector<2x384xf32>
    %255 = arith.addf %253, %254 : vector<2x384xf32>
    %256 = vector.extract_strided_slice %246 {offsets = [0, 384], sizes = [2, 128], strides = [1, 1]} : vector<2x512xf32> to vector<2x128xf32>
    %257 = math.tanh %256 : vector<2x128xf32>
    %258 = vector.extract_strided_slice %255 {offsets = [0, 0], sizes = [2, 128], strides = [1, 1]} : vector<2x384xf32> to vector<2x128xf32>
    %259 = vector.extract_strided_slice %255 {offsets = [0, 128], sizes = [2, 128], strides = [1, 1]} : vector<2x384xf32> to vector<2x128xf32>
    %260 = vector.extract_strided_slice %255 {offsets = [0, 256], sizes = [2, 128], strides = [1, 1]} : vector<2x384xf32> to vector<2x128xf32>
    %261 = arith.mulf %259, %207 : vector<2x128xf32>
    %262 = arith.mulf %258, %257 : vector<2x128xf32>
    %263 = arith.addf %261, %262 : vector<2x128xf32>
    %264 = math.tanh %263 : vector<2x128xf32>
    %265 = arith.mulf %260, %264 : vector<2x128xf32>
    %c0_85 = arith.constant 0 : index
    %c0_86 = arith.constant 0 : index
    %266 = vector.load %arg4[%c0_85, %c0_86] : memref<128x512xf32, #tpu.memory_space<vmem>>, vector<128x512xf32>
    %cst_87 = arith.constant dense<0.000000e+00> : vector<2x512xf32>
    %267 = tpu.matmul %265, %266, %cst_87 {dimension_numbers = #tpu.dot_dimension_numbers<[1], [0], [0], [1], [0, 0, 1, 1], [], []>} : vector<2x128xf32>, vector<128x512xf32>, vector<2x512xf32> -> vector<2x512xf32>
    %268 = arith.addf %267, %247 : vector<2x512xf32>
    %269 = arith.addf %268, %11 : vector<2x512xf32>
    %270 = vector.extract_strided_slice %269 {offsets = [0, 0], sizes = [2, 384], strides = [1, 1]} : vector<2x512xf32> to vector<2x384xf32>
    %cst_88 = arith.constant 5.000000e-01 : f32
    %271 = vector.broadcast %cst_88 : f32 to vector<2x384xf32>
    %272 = arith.mulf %271, %270 : vector<2x384xf32>
    %273 = math.tanh %272 : vector<2x384xf32>
    %cst_89 = arith.constant 5.000000e-01 : f32
    %274 = vector.broadcast %cst_89 : f32 to vector<2x384xf32>
    %275 = arith.mulf %274, %273 : vector<2x384xf32>
    %cst_90 = arith.constant 5.000000e-01 : f32
    %276 = vector.broadcast %cst_90 : f32 to vector<2x384xf32>
    %277 = arith.addf %275, %276 : vector<2x384xf32>
    %278 = vector.extract_strided_slice %269 {offsets = [0, 384], sizes = [2, 128], strides = [1, 1]} : vector<2x512xf32> to vector<2x128xf32>
    %279 = math.tanh %278 : vector<2x128xf32>
    %280 = vector.extract_strided_slice %277 {offsets = [0, 0], sizes = [2, 128], strides = [1, 1]} : vector<2x384xf32> to vector<2x128xf32>
    %281 = vector.extract_strided_slice %277 {offsets = [0, 128], sizes = [2, 128], strides = [1, 1]} : vector<2x384xf32> to vector<2x128xf32>
    %282 = vector.extract_strided_slice %277 {offsets = [0, 256], sizes = [2, 128], strides = [1, 1]} : vector<2x384xf32> to vector<2x128xf32>
    %283 = arith.mulf %281, %229 : vector<2x128xf32>
    %284 = arith.mulf %280, %279 : vector<2x128xf32>
    %285 = arith.addf %283, %284 : vector<2x128xf32>
    %286 = math.tanh %285 : vector<2x128xf32>
    %287 = arith.mulf %282, %286 : vector<2x128xf32>
    %288 = tpu.concatenate %265, %287 in 1 : vector<2x128xf32>, vector<2x128xf32> -> vector<2x256xf32>
    %c0_91 = arith.constant 0 : index
    %c5 = arith.constant 5 : index
    %c0_92 = arith.constant 0 : index
    %289 = vector.load %arg0[%c0_91, %c5, %c0_92] : memref<2x8x2xf32, #tpu.memory_space<vmem>>, vector<2x1x1xf32>
    %290 = vector.shape_cast %289 : vector<2x1x1xf32> to vector<2x1xf32>
    %c0_93 = arith.constant 0 : index
    %c5_94 = arith.constant 5 : index
    %c1_95 = arith.constant 1 : index
    %291 = vector.load %arg0[%c0_93, %c5_94, %c1_95] : memref<2x8x2xf32, #tpu.memory_space<vmem>>, vector<2x1x1xf32>
    %292 = vector.shape_cast %291 : vector<2x1x1xf32> to vector<2x1xf32>
    %293 = vector.broadcast %290 : vector<2x1xf32> to vector<2x512xf32>
    %294 = arith.mulf %293, %2 : vector<2x512xf32>
    %295 = vector.broadcast %292 : vector<2x1xf32> to vector<2x512xf32>
    %296 = arith.mulf %295, %5 : vector<2x512xf32>
    %297 = arith.addf %294, %296 : vector<2x512xf32>
    %298 = arith.addf %297, %8 : vector<2x512xf32>
    %c0_96 = arith.constant 0 : index
    %c0_97 = arith.constant 0 : index
    %299 = vector.load %arg3[%c0_96, %c0_97] : memref<256x1024xf32, #tpu.memory_space<vmem>>, vector<256x1024xf32>
    %cst_98 = arith.constant dense<0.000000e+00> : vector<2x1024xf32>
    %300 = tpu.matmul %288, %299, %cst_98 {dimension_numbers = #tpu.dot_dimension_numbers<[1], [0], [0], [1], [0, 0, 1, 1], [], []>} : vector<2x256xf32>, vector<256x1024xf32>, vector<2x1024xf32> -> vector<2x1024xf32>
    %301 = vector.extract_strided_slice %300 {offsets = [0, 0], sizes = [2, 512], strides = [1, 1]} : vector<2x1024xf32> to vector<2x512xf32>
    %302 = arith.addf %298, %301 : vector<2x512xf32>
    %303 = vector.extract_strided_slice %300 {offsets = [0, 512], sizes = [2, 512], strides = [1, 1]} : vector<2x1024xf32> to vector<2x512xf32>
    %304 = vector.extract_strided_slice %302 {offsets = [0, 0], sizes = [2, 384], strides = [1, 1]} : vector<2x512xf32> to vector<2x384xf32>
    %cst_99 = arith.constant 5.000000e-01 : f32
    %305 = vector.broadcast %cst_99 : f32 to vector<2x384xf32>
    %306 = arith.mulf %305, %304 : vector<2x384xf32>
    %307 = math.tanh %306 : vector<2x384xf32>
    %cst_100 = arith.constant 5.000000e-01 : f32
    %308 = vector.broadcast %cst_100 : f32 to vector<2x384xf32>
    %309 = arith.mulf %308, %307 : vector<2x384xf32>
    %cst_101 = arith.constant 5.000000e-01 : f32
    %310 = vector.broadcast %cst_101 : f32 to vector<2x384xf32>
    %311 = arith.addf %309, %310 : vector<2x384xf32>
    %312 = vector.extract_strided_slice %302 {offsets = [0, 384], sizes = [2, 128], strides = [1, 1]} : vector<2x512xf32> to vector<2x128xf32>
    %313 = math.tanh %312 : vector<2x128xf32>
    %314 = vector.extract_strided_slice %311 {offsets = [0, 0], sizes = [2, 128], strides = [1, 1]} : vector<2x384xf32> to vector<2x128xf32>
    %315 = vector.extract_strided_slice %311 {offsets = [0, 128], sizes = [2, 128], strides = [1, 1]} : vector<2x384xf32> to vector<2x128xf32>
    %316 = vector.extract_strided_slice %311 {offsets = [0, 256], sizes = [2, 128], strides = [1, 1]} : vector<2x384xf32> to vector<2x128xf32>
    %317 = arith.mulf %315, %263 : vector<2x128xf32>
    %318 = arith.mulf %314, %313 : vector<2x128xf32>
    %319 = arith.addf %317, %318 : vector<2x128xf32>
    %320 = math.tanh %319 : vector<2x128xf32>
    %321 = arith.mulf %316, %320 : vector<2x128xf32>
    %c0_102 = arith.constant 0 : index
    %c0_103 = arith.constant 0 : index
    %322 = vector.load %arg4[%c0_102, %c0_103] : memref<128x512xf32, #tpu.memory_space<vmem>>, vector<128x512xf32>
    %cst_104 = arith.constant dense<0.000000e+00> : vector<2x512xf32>
    %323 = tpu.matmul %321, %322, %cst_104 {dimension_numbers = #tpu.dot_dimension_numbers<[1], [0], [0], [1], [0, 0, 1, 1], [], []>} : vector<2x128xf32>, vector<128x512xf32>, vector<2x512xf32> -> vector<2x512xf32>
    %324 = arith.addf %323, %303 : vector<2x512xf32>
    %325 = arith.addf %324, %11 : vector<2x512xf32>
    %326 = vector.extract_strided_slice %325 {offsets = [0, 0], sizes = [2, 384], strides = [1, 1]} : vector<2x512xf32> to vector<2x384xf32>
    %cst_105 = arith.constant 5.000000e-01 : f32
    %327 = vector.broadcast %cst_105 : f32 to vector<2x384xf32>
    %328 = arith.mulf %327, %326 : vector<2x384xf32>
    %329 = math.tanh %328 : vector<2x384xf32>
    %cst_106 = arith.constant 5.000000e-01 : f32
    %330 = vector.broadcast %cst_106 : f32 to vector<2x384xf32>
    %331 = arith.mulf %330, %329 : vector<2x384xf32>
    %cst_107 = arith.constant 5.000000e-01 : f32
    %332 = vector.broadcast %cst_107 : f32 to vector<2x384xf32>
    %333 = arith.addf %331, %332 : vector<2x384xf32>
    %334 = vector.extract_strided_slice %325 {offsets = [0, 384], sizes = [2, 128], strides = [1, 1]} : vector<2x512xf32> to vector<2x128xf32>
    %335 = math.tanh %334 : vector<2x128xf32>
    %336 = vector.extract_strided_slice %333 {offsets = [0, 0], sizes = [2, 128], strides = [1, 1]} : vector<2x384xf32> to vector<2x128xf32>
    %337 = vector.extract_strided_slice %333 {offsets = [0, 128], sizes = [2, 128], strides = [1, 1]} : vector<2x384xf32> to vector<2x128xf32>
    %338 = vector.extract_strided_slice %333 {offsets = [0, 256], sizes = [2, 128], strides = [1, 1]} : vector<2x384xf32> to vector<2x128xf32>
    %339 = arith.mulf %337, %285 : vector<2x128xf32>
    %340 = arith.mulf %336, %335 : vector<2x128xf32>
    %341 = arith.addf %339, %340 : vector<2x128xf32>
    %342 = math.tanh %341 : vector<2x128xf32>
    %343 = arith.mulf %338, %342 : vector<2x128xf32>
    %344 = tpu.concatenate %321, %343 in 1 : vector<2x128xf32>, vector<2x128xf32> -> vector<2x256xf32>
    %c0_108 = arith.constant 0 : index
    %c6 = arith.constant 6 : index
    %c0_109 = arith.constant 0 : index
    %345 = vector.load %arg0[%c0_108, %c6, %c0_109] : memref<2x8x2xf32, #tpu.memory_space<vmem>>, vector<2x1x1xf32>
    %346 = vector.shape_cast %345 : vector<2x1x1xf32> to vector<2x1xf32>
    %c0_110 = arith.constant 0 : index
    %c6_111 = arith.constant 6 : index
    %c1_112 = arith.constant 1 : index
    %347 = vector.load %arg0[%c0_110, %c6_111, %c1_112] : memref<2x8x2xf32, #tpu.memory_space<vmem>>, vector<2x1x1xf32>
    %348 = vector.shape_cast %347 : vector<2x1x1xf32> to vector<2x1xf32>
    %349 = vector.broadcast %346 : vector<2x1xf32> to vector<2x512xf32>
    %350 = arith.mulf %349, %2 : vector<2x512xf32>
    %351 = vector.broadcast %348 : vector<2x1xf32> to vector<2x512xf32>
    %352 = arith.mulf %351, %5 : vector<2x512xf32>
    %353 = arith.addf %350, %352 : vector<2x512xf32>
    %354 = arith.addf %353, %8 : vector<2x512xf32>
    %c0_113 = arith.constant 0 : index
    %c0_114 = arith.constant 0 : index
    %355 = vector.load %arg3[%c0_113, %c0_114] : memref<256x1024xf32, #tpu.memory_space<vmem>>, vector<256x1024xf32>
    %cst_115 = arith.constant dense<0.000000e+00> : vector<2x1024xf32>
    %356 = tpu.matmul %344, %355, %cst_115 {dimension_numbers = #tpu.dot_dimension_numbers<[1], [0], [0], [1], [0, 0, 1, 1], [], []>} : vector<2x256xf32>, vector<256x1024xf32>, vector<2x1024xf32> -> vector<2x1024xf32>
    %357 = vector.extract_strided_slice %356 {offsets = [0, 0], sizes = [2, 512], strides = [1, 1]} : vector<2x1024xf32> to vector<2x512xf32>
    %358 = arith.addf %354, %357 : vector<2x512xf32>
    %359 = vector.extract_strided_slice %356 {offsets = [0, 512], sizes = [2, 512], strides = [1, 1]} : vector<2x1024xf32> to vector<2x512xf32>
    %360 = vector.extract_strided_slice %358 {offsets = [0, 0], sizes = [2, 384], strides = [1, 1]} : vector<2x512xf32> to vector<2x384xf32>
    %cst_116 = arith.constant 5.000000e-01 : f32
    %361 = vector.broadcast %cst_116 : f32 to vector<2x384xf32>
    %362 = arith.mulf %361, %360 : vector<2x384xf32>
    %363 = math.tanh %362 : vector<2x384xf32>
    %cst_117 = arith.constant 5.000000e-01 : f32
    %364 = vector.broadcast %cst_117 : f32 to vector<2x384xf32>
    %365 = arith.mulf %364, %363 : vector<2x384xf32>
    %cst_118 = arith.constant 5.000000e-01 : f32
    %366 = vector.broadcast %cst_118 : f32 to vector<2x384xf32>
    %367 = arith.addf %365, %366 : vector<2x384xf32>
    %368 = vector.extract_strided_slice %358 {offsets = [0, 384], sizes = [2, 128], strides = [1, 1]} : vector<2x512xf32> to vector<2x128xf32>
    %369 = math.tanh %368 : vector<2x128xf32>
    %370 = vector.extract_strided_slice %367 {offsets = [0, 0], sizes = [2, 128], strides = [1, 1]} : vector<2x384xf32> to vector<2x128xf32>
    %371 = vector.extract_strided_slice %367 {offsets = [0, 128], sizes = [2, 128], strides = [1, 1]} : vector<2x384xf32> to vector<2x128xf32>
    %372 = vector.extract_strided_slice %367 {offsets = [0, 256], sizes = [2, 128], strides = [1, 1]} : vector<2x384xf32> to vector<2x128xf32>
    %373 = arith.mulf %371, %319 : vector<2x128xf32>
    %374 = arith.mulf %370, %369 : vector<2x128xf32>
    %375 = arith.addf %373, %374 : vector<2x128xf32>
    %376 = math.tanh %375 : vector<2x128xf32>
    %377 = arith.mulf %372, %376 : vector<2x128xf32>
    %c0_119 = arith.constant 0 : index
    %c0_120 = arith.constant 0 : index
    %378 = vector.load %arg4[%c0_119, %c0_120] : memref<128x512xf32, #tpu.memory_space<vmem>>, vector<128x512xf32>
    %cst_121 = arith.constant dense<0.000000e+00> : vector<2x512xf32>
    %379 = tpu.matmul %377, %378, %cst_121 {dimension_numbers = #tpu.dot_dimension_numbers<[1], [0], [0], [1], [0, 0, 1, 1], [], []>} : vector<2x128xf32>, vector<128x512xf32>, vector<2x512xf32> -> vector<2x512xf32>
    %380 = arith.addf %379, %359 : vector<2x512xf32>
    %381 = arith.addf %380, %11 : vector<2x512xf32>
    %382 = vector.extract_strided_slice %381 {offsets = [0, 0], sizes = [2, 384], strides = [1, 1]} : vector<2x512xf32> to vector<2x384xf32>
    %cst_122 = arith.constant 5.000000e-01 : f32
    %383 = vector.broadcast %cst_122 : f32 to vector<2x384xf32>
    %384 = arith.mulf %383, %382 : vector<2x384xf32>
    %385 = math.tanh %384 : vector<2x384xf32>
    %cst_123 = arith.constant 5.000000e-01 : f32
    %386 = vector.broadcast %cst_123 : f32 to vector<2x384xf32>
    %387 = arith.mulf %386, %385 : vector<2x384xf32>
    %cst_124 = arith.constant 5.000000e-01 : f32
    %388 = vector.broadcast %cst_124 : f32 to vector<2x384xf32>
    %389 = arith.addf %387, %388 : vector<2x384xf32>
    %390 = vector.extract_strided_slice %381 {offsets = [0, 384], sizes = [2, 128], strides = [1, 1]} : vector<2x512xf32> to vector<2x128xf32>
    %391 = math.tanh %390 : vector<2x128xf32>
    %392 = vector.extract_strided_slice %389 {offsets = [0, 0], sizes = [2, 128], strides = [1, 1]} : vector<2x384xf32> to vector<2x128xf32>
    %393 = vector.extract_strided_slice %389 {offsets = [0, 128], sizes = [2, 128], strides = [1, 1]} : vector<2x384xf32> to vector<2x128xf32>
    %394 = vector.extract_strided_slice %389 {offsets = [0, 256], sizes = [2, 128], strides = [1, 1]} : vector<2x384xf32> to vector<2x128xf32>
    %395 = arith.mulf %393, %341 : vector<2x128xf32>
    %396 = arith.mulf %392, %391 : vector<2x128xf32>
    %397 = arith.addf %395, %396 : vector<2x128xf32>
    %398 = math.tanh %397 : vector<2x128xf32>
    %399 = arith.mulf %394, %398 : vector<2x128xf32>
    %400 = tpu.concatenate %377, %399 in 1 : vector<2x128xf32>, vector<2x128xf32> -> vector<2x256xf32>
    %c0_125 = arith.constant 0 : index
    %c7 = arith.constant 7 : index
    %c0_126 = arith.constant 0 : index
    %401 = vector.load %arg0[%c0_125, %c7, %c0_126] : memref<2x8x2xf32, #tpu.memory_space<vmem>>, vector<2x1x1xf32>
    %402 = vector.shape_cast %401 : vector<2x1x1xf32> to vector<2x1xf32>
    %c0_127 = arith.constant 0 : index
    %c7_128 = arith.constant 7 : index
    %c1_129 = arith.constant 1 : index
    %403 = vector.load %arg0[%c0_127, %c7_128, %c1_129] : memref<2x8x2xf32, #tpu.memory_space<vmem>>, vector<2x1x1xf32>
    %404 = vector.shape_cast %403 : vector<2x1x1xf32> to vector<2x1xf32>
    %405 = vector.broadcast %402 : vector<2x1xf32> to vector<2x512xf32>
    %406 = arith.mulf %405, %2 : vector<2x512xf32>
    %407 = vector.broadcast %404 : vector<2x1xf32> to vector<2x512xf32>
    %408 = arith.mulf %407, %5 : vector<2x512xf32>
    %409 = arith.addf %406, %408 : vector<2x512xf32>
    %410 = arith.addf %409, %8 : vector<2x512xf32>
    %c0_130 = arith.constant 0 : index
    %c0_131 = arith.constant 0 : index
    %411 = vector.load %arg3[%c0_130, %c0_131] : memref<256x1024xf32, #tpu.memory_space<vmem>>, vector<256x1024xf32>
    %cst_132 = arith.constant dense<0.000000e+00> : vector<2x1024xf32>
    %412 = tpu.matmul %400, %411, %cst_132 {dimension_numbers = #tpu.dot_dimension_numbers<[1], [0], [0], [1], [0, 0, 1, 1], [], []>} : vector<2x256xf32>, vector<256x1024xf32>, vector<2x1024xf32> -> vector<2x1024xf32>
    %413 = vector.extract_strided_slice %412 {offsets = [0, 0], sizes = [2, 512], strides = [1, 1]} : vector<2x1024xf32> to vector<2x512xf32>
    %414 = arith.addf %410, %413 : vector<2x512xf32>
    %415 = vector.extract_strided_slice %412 {offsets = [0, 512], sizes = [2, 512], strides = [1, 1]} : vector<2x1024xf32> to vector<2x512xf32>
    %416 = vector.extract_strided_slice %414 {offsets = [0, 0], sizes = [2, 384], strides = [1, 1]} : vector<2x512xf32> to vector<2x384xf32>
    %cst_133 = arith.constant 5.000000e-01 : f32
    %417 = vector.broadcast %cst_133 : f32 to vector<2x384xf32>
    %418 = arith.mulf %417, %416 : vector<2x384xf32>
    %419 = math.tanh %418 : vector<2x384xf32>
    %cst_134 = arith.constant 5.000000e-01 : f32
    %420 = vector.broadcast %cst_134 : f32 to vector<2x384xf32>
    %421 = arith.mulf %420, %419 : vector<2x384xf32>
    %cst_135 = arith.constant 5.000000e-01 : f32
    %422 = vector.broadcast %cst_135 : f32 to vector<2x384xf32>
    %423 = arith.addf %421, %422 : vector<2x384xf32>
    %424 = vector.extract_strided_slice %414 {offsets = [0, 384], sizes = [2, 128], strides = [1, 1]} : vector<2x512xf32> to vector<2x128xf32>
    %425 = math.tanh %424 : vector<2x128xf32>
    %426 = vector.extract_strided_slice %423 {offsets = [0, 0], sizes = [2, 128], strides = [1, 1]} : vector<2x384xf32> to vector<2x128xf32>
    %427 = vector.extract_strided_slice %423 {offsets = [0, 128], sizes = [2, 128], strides = [1, 1]} : vector<2x384xf32> to vector<2x128xf32>
    %428 = vector.extract_strided_slice %423 {offsets = [0, 256], sizes = [2, 128], strides = [1, 1]} : vector<2x384xf32> to vector<2x128xf32>
    %429 = arith.mulf %427, %375 : vector<2x128xf32>
    %430 = arith.mulf %426, %425 : vector<2x128xf32>
    %431 = arith.addf %429, %430 : vector<2x128xf32>
    %432 = math.tanh %431 : vector<2x128xf32>
    %433 = arith.mulf %428, %432 : vector<2x128xf32>
    %c0_136 = arith.constant 0 : index
    %c0_137 = arith.constant 0 : index
    %434 = vector.load %arg4[%c0_136, %c0_137] : memref<128x512xf32, #tpu.memory_space<vmem>>, vector<128x512xf32>
    %cst_138 = arith.constant dense<0.000000e+00> : vector<2x512xf32>
    %435 = tpu.matmul %433, %434, %cst_138 {dimension_numbers = #tpu.dot_dimension_numbers<[1], [0], [0], [1], [0, 0, 1, 1], [], []>} : vector<2x128xf32>, vector<128x512xf32>, vector<2x512xf32> -> vector<2x512xf32>
    %436 = arith.addf %435, %415 : vector<2x512xf32>
    %437 = arith.addf %436, %11 : vector<2x512xf32>
    %438 = vector.extract_strided_slice %437 {offsets = [0, 0], sizes = [2, 384], strides = [1, 1]} : vector<2x512xf32> to vector<2x384xf32>
    %cst_139 = arith.constant 5.000000e-01 : f32
    %439 = vector.broadcast %cst_139 : f32 to vector<2x384xf32>
    %440 = arith.mulf %439, %438 : vector<2x384xf32>
    %441 = math.tanh %440 : vector<2x384xf32>
    %cst_140 = arith.constant 5.000000e-01 : f32
    %442 = vector.broadcast %cst_140 : f32 to vector<2x384xf32>
    %443 = arith.mulf %442, %441 : vector<2x384xf32>
    %cst_141 = arith.constant 5.000000e-01 : f32
    %444 = vector.broadcast %cst_141 : f32 to vector<2x384xf32>
    %445 = arith.addf %443, %444 : vector<2x384xf32>
    %446 = vector.extract_strided_slice %437 {offsets = [0, 384], sizes = [2, 128], strides = [1, 1]} : vector<2x512xf32> to vector<2x128xf32>
    %447 = math.tanh %446 : vector<2x128xf32>
    %448 = vector.extract_strided_slice %445 {offsets = [0, 0], sizes = [2, 128], strides = [1, 1]} : vector<2x384xf32> to vector<2x128xf32>
    %449 = vector.extract_strided_slice %445 {offsets = [0, 128], sizes = [2, 128], strides = [1, 1]} : vector<2x384xf32> to vector<2x128xf32>
    %450 = vector.extract_strided_slice %445 {offsets = [0, 256], sizes = [2, 128], strides = [1, 1]} : vector<2x384xf32> to vector<2x128xf32>
    %451 = arith.mulf %449, %397 : vector<2x128xf32>
    %452 = arith.mulf %448, %447 : vector<2x128xf32>
    %453 = arith.addf %451, %452 : vector<2x128xf32>
    %454 = math.tanh %453 : vector<2x128xf32>
    %455 = arith.mulf %450, %454 : vector<2x128xf32>
    %c0_142 = arith.constant 0 : index
    %c0_143 = arith.constant 0 : index
    %456 = vector.load %arg6[%c0_142, %c0_143] : memref<128x128xf32, #tpu.memory_space<vmem>>, vector<128x128xf32>
    %cst_144 = arith.constant dense<0.000000e+00> : vector<2x128xf32>
    %457 = tpu.matmul %455, %456, %cst_144 {dimension_numbers = #tpu.dot_dimension_numbers<[1], [0], [0], [1], [0, 0, 1, 1], [], []>} : vector<2x128xf32>, vector<128x128xf32>, vector<2x128xf32> -> vector<2x128xf32>
    %c0_145 = arith.constant 0 : index
    %c0_146 = arith.constant 0 : index
    %458 = vector.load %arg7[%c0_145, %c0_146] : memref<1x128xf32, #tpu.memory_space<vmem>>, vector<1x128xf32>
    %459 = vector.shape_cast %458 : vector<1x128xf32> to vector<1x128xf32>
    %460 = vector.broadcast %459 : vector<1x128xf32> to vector<2x128xf32>
    %461 = arith.addf %457, %460 : vector<2x128xf32>
    %c0_147 = arith.constant 0 : index
    %c0_148 = arith.constant 0 : index
    %462 = vector.load %arg8[%c0_147, %c0_148] : memref<2x128xf32, #tpu.memory_space<vmem>>, vector<2x128xf32>
    tpu.vector_store %arg8[%c0_147, %c0_148], %461 {strides = array<i32>} : memref<2x128xf32, #tpu.memory_space<vmem>>, vector<2x128xf32>,
    return
  }
}

</mosaic_0001>

<bundles_post_ra>
// kernel: lstm_model_forward.1
= control target key start
LH: loop header
LB: loop body
LE: loop exit
PB: predicated region body
PF: predicated region fallthrough
CT: control target
= control target key end

     0   :  { %13 = vsyncpa [#allocation3], 0  ;;  %s10020_s0 = inlined_call_operand.vmem [shape: f32[2,8,2], index: 0, kind: input, shape index: {}]   ;;  %s10021_s1 = inlined_call_operand.vmem [shape: f32[2,512], index: 1, kind: input, shape index: {}]   ;;  %s10022_s2 = inlined_call_operand.vmem [shape: f32[1,512], index: 2, kind: input, shape index: {}]   ;;  %s10023_s3 = inlined_call_operand.hbm [shape: f32[256,1024], index: 3, kind: input, shape index: {}]   ;;  %s10024_s4 = inlined_call_operand.hbm [shape: f32[128,512], index: 4, kind: input, shape index: {}]   ;;  %s10025_s5 = inlined_call_operand.vmem [shape: f32[1,512], index: 5, kind: input, shape index: {}]   ;;  %s10026_s6 = inlined_call_operand.hbm [shape: f32[128,128], index: 6, kind: input, shape index: {}]   ;;  %s10027_s7 = inlined_call_operand.vmem [shape: f32[1,128], index: 7, kind: input, shape index: {}]   ;;  %s10028_s8 = inlined_call_operand.hbm [shape: f32[2,128], index: 8, kind: output, shape index: {}]  }
   0x1   :  { %14 = vsyncpa [#allocation6], 0 }
   0x2   :  { %15 = vsyncpa [#allocation4], 0  ;;  %s7563_s27 = smov [#allocation5]   ;;  %s7469_s9 = scalar_lea.hbm %s10024_s4, 8192 }
   0x3   :  { %s39_s28 = sshll.u32 %s7563_s27, 4  ;;  %p7470_p0 = scmp.ne.s32.totalorder %s10024_s4, %s7469_s9  ;;  %s40_s28 = int_to_ptr.vmem [resolvable:$true] %s39_s28 }
   0x4   :  { %p7473_p1 = scmp.lt.u32.totalorder %s7469_s9, %s10024_s4 }
   0x6   :  { %p7475_p2 = pnand %p7473_p1, %p7470_p0 }
   0x8   :  { %7478 = shalt.err (!%p7475_p2)
}
   0x9   :  { %s7479_s14 = scalar_lea.vmem %s40_s28, 8192  ;;  %p7484_p4 = scmp.lt.s32.totalorder %s40_s28, %s40_s28 }
   0xa   :  { %p7480_p3 = scmp.ne.s32.totalorder %s40_s28, %s7479_s14  ;;  %p7485_p5 = scmp.lt.s32.totalorder %s7479_s14, %s7479_s14 }
   0xc   :  { %p7486_p6 = por %p7485_p5, %p7484_p4 }
   0xe   :  { %p7487_p7 = pnand %p7486_p6, %p7480_p3 }
  0x10   :  { %7490 = shalt.err (!%p7487_p7)
}
  0x11   :  { %s7564_s15 = smov 512   ;;  %s7565_s16 = smov 32  }
  0x12   :  { %45 = dma.hbm_to_vmem [thread:$0]  %s10024_s4, 8192, %s40_s28, [#allocation6], %s7564_s15, %s7564_s15, %s7565_s16  }
  0x13   :  { %s7566_s19 = smov [#allocation2]   ;;  %s7491_s23 = scalar_lea.hbm %s10023_s3, 32768 }
  0x14   :  { %s27_s20 = sshll.u32 %s7566_s19, 4  ;;  %p7492_p8 = scmp.ne.s32.totalorder %s10023_s3, %s7491_s23  ;;  %s28_s20 = int_to_ptr.vmem [resolvable:$true] %s27_s20 }
  0x15   :  { %p7495_p9 = scmp.lt.u32.totalorder %s7491_s23, %s10023_s3 }
  0x17   :  { %p7497_p10 = pnand %p7495_p9, %p7492_p8 }
  0x19   :  { %7500 = shalt.err (!%p7497_p10)
}
  0x1a   :  { %s7501_s29 = scalar_lea.vmem %s28_s20, 32768  ;;  %p7506_p12 = scmp.lt.s32.totalorder %s28_s20, %s28_s20 }
  0x1b   :  { %p7502_p11 = scmp.ne.s32.totalorder %s28_s20, %s7501_s29  ;;  %p7507_p13 = scmp.lt.s32.totalorder %s7501_s29, %s7501_s29 }
  0x1d   :  { %p7508_p0 = por %p7507_p13, %p7506_p12 }
  0x1f   :  { %p7509_p1 = pnand %p7508_p0, %p7502_p11 }
  0x21   :  { %7512 = shalt.err (!%p7509_p1)
}
  0x22   :  { %s7567_s4 = smov 1024   ;;  %s7568_s28 = smov 64  }
  0x23   :  { %33 = dma.hbm_to_vmem [thread:$0]  %s10023_s3, 32768, %s28_s20, [#allocation3], %s7567_s4, %s7567_s4, %s7568_s28  }
  0x24   :  { %s7569_s10 = smov [#allocation7]   ;;  %s7513_s14 = scalar_lea.hbm %s10026_s6, 2048 }
  0x25   :  { %s53_s11 = sshll.u32 %s7569_s10, 4  ;;  %p7514_p2 = scmp.ne.s32.totalorder %s10026_s6, %s7513_s14  ;;  %s54_s11 = int_to_ptr.vmem [resolvable:$true] %s53_s11 }
  0x26   :  { %p7517_p3 = scmp.lt.u32.totalorder %s7513_s14, %s10026_s6 }
  0x28   :  { %p7519_p4 = pnand %p7517_p3, %p7514_p2 }
  0x2a   :  { %7522 = shalt.err (!%p7519_p4)
}
  0x2b   :  { %s7523_s19 = scalar_lea.vmem %s54_s11, 2048  ;;  %p7528_p6 = scmp.lt.s32.totalorder %s54_s11, %s54_s11 }
  0x2c   :  { %p7524_p5 = scmp.ne.s32.totalorder %s54_s11, %s7523_s19  ;;  %p7529_p7 = scmp.lt.s32.totalorder %s7523_s19, %s7523_s19 }
  0x2e   :  { %p7530_p8 = por %p7529_p7, %p7528_p6 }
  0x30   :  { %p7531_p9 = pnand %p7530_p8, %p7524_p5 }
  0x32   :  { %7534 = shalt.err (!%p7531_p9)
}
  0x33   :  { %s7570_s3 = smov 128   ;;  %s7571_s20 = smov 8  }
  0x34   :  { %59 = dma.hbm_to_vmem [thread:$0]  %s10026_s6, 2048, %s54_s11, [#allocation6], %s7570_s3, %s7570_s3, %s7571_s20  }
  0x35   :  { %7557 = dma.done.wait [#allocation3], 32768  }
  0x36   :  { %7558 = vsyncadd [#allocation3], 4294934528 }
  0x37   :  { %7559 = dma.done.wait [#allocation6], 10240  }
  0x38   :  { %7560 = vsyncadd [#allocation6], 4294957056  ;;  %v7572_v0 = vmov 0   ;;  %v161_v1 = vld [vmem:[%s10020_s0 + $0x8] sm:$0x1]  ;;  %v7573_v3 = vmov 1  }
  0x39   :  { %7226 = vset.pattern.permute.xlu1 %v7572_v0  ;;  %7224 = vset.pattern.permute.xlu0 %v7572_v0  ;;  %v160_v2 = vld [vmem:[%s10020_s0] sm:$0x1]  ;;  %v479_v4 = vld [vmem:[%s10020_s0 + $0x9] sm:$0x1]  ;;  %v478_v5 = vld [vmem:[%s10020_s0 + $0x1] sm:$0x1] }
  0x3a   :  { %169 = vperm.xlu0 %7224, %v161_v1   ;;  %164 = vperm.xlu1 %7226, %v160_v2   ;;  %v1300_v6 = vld [vmem:[%s10020_s0 + $0xa] sm:$0x1]  ;;  %v1299_v7 = vld [vmem:[%s10020_s0 + $0x2] sm:$0x1]  ;;  %v251_v10 = vld [vmem:[#allocation5 + $0x18] sm:$0xff]  ;;  %vm315_vm0 = vcmask 1041409  }
  0x3b   :  { %v249_v8 = vld [vmem:[#allocation5 + $0x8] sm:$0xff]  ;;  %v255_v12 = vld [vmem:[#allocation5 + $0x38] sm:$0xff]  ;;  %v248_v13 = vld [vmem:[#allocation5] sm:$0xff]  ;;  %vm7576_vm1 = vmmov 0   ;;  %s7577_s12 = smov [#allocation8]  }
  0x3c   :  { %v253_v9 = vld [vmem:[#allocation5 + $0x28] sm:$0xff]  ;;  %v252_v14 = vld [vmem:[#allocation5 + $0x20] sm:$0xff]  ;;  %v7679_v15 = vpack.c.bf16 %v255_v12, %v251_v10  ;;  %v250_v17 = vld [vmem:[#allocation5 + $0x10] sm:$0xff]  ;;  %s4789_s13 = sshll.u32 %s7577_s12, 4  ;;  %s4790_s13 = int_to_ptr.vmem [resolvable:$true] %s4789_s13 }
  0x3d   :  { %v7677_v11 = vpack.c.bf16 %v253_v9, %v249_v8  ;;  %v7681_v16 = vpack.c.bf16 %v252_v14, %v248_v13  ;;  %v254_v18 = vld [vmem:[#allocation5 + $0x30] sm:$0xff]  ;;  %v1865_v19 = vld [vmem:[%s10020_s0 + $0xb] sm:$0x1]  ;;  %v259_v23 = vld [vmem:[#allocation5 + $0x58] sm:$0xff]  ;;  %s7535_s14 = scalar_lea.vmem %s4790_s13, 32  ;;  %p7540_p11 = scmp.lt.s32.totalorder %s4790_s13, %s4790_s13 }
  0x3e   :  { %7225 = vset.pattern.permute.xlu0 %v7573_v3  ;;  %7227 = vset.pattern.permute.xlu1 %v7573_v3  ;;  %10374 = vst [vmem:[#allocation13_spill] sm:$0xff] %v7679_v15  ;;  %v7687_v20 = vpack.c.bf16 %v254_v18, %v250_v17  ;;  %v257_v21 = vld [vmem:[#allocation5 + $0x48] sm:$0xff]  ;;  %v263_v25 = vld [vmem:[#allocation5 + $0x78] sm:$0xff]  ;;  %v256_v26 = vld [vmem:[#allocation5 + $0x40] sm:$0xff]  ;;  %p7536_p10 = scmp.ne.s32.totalorder %s4790_s13, %s7535_s14  ;;  %p7541_p12 = scmp.lt.s32.totalorder %s7535_s14, %s7535_s14 }
  0x3f   :  { %185 = vperm.xlu0 %7225, %v161_v1   ;;  %181 = vperm.xlu1 %7227, %v160_v2   ;;  %10373 = vst [vmem:[#allocation12_spill] sm:$0xff] %v7677_v11  ;;  %10375 = vst [vmem:[#allocation14_spill] sm:$0xff] %v7681_v16  ;;  %v261_v22 = vld [vmem:[#allocation5 + $0x68] sm:$0xff]  ;;  %v260_v27 = vld [vmem:[#allocation5 + $0x60] sm:$0xff]  ;;  %v7694_v28 = vpack.c.bf16 %v263_v25, %v259_v23 }
  0x40   :  { %4854 = vmatprep.subr.bf16.mxu0 %v7677_v11  ;;  %10376 = vst [vmem:[#allocation15_spill] sm:$0xff] %v7687_v20  ;;  %4886 = vmatprep.subr.bf16.mxu1 %v7679_v15  ;;  %v7692_v24 = vpack.c.bf16 %v261_v22, %v257_v21  ;;  %v7696_v29 = vpack.c.bf16 %v260_v27, %v256_v26  ;;  %v258_v30 = vld [vmem:[#allocation5 + $0x50] sm:$0xff]  ;;  %v1864_v32 = vld [vmem:[%s10020_s0 + $0x3] sm:$0x1]  ;;  %v265_v34 = vld [vmem:[#allocation5 + $0x88] sm:$0xff]  ;;  %p7542_p13 = por %p7541_p12, %p7540_p11 }
  0x41   :  { %4856 = vmatpush1.bf16.msra.mxu0 %v7681_v16  ;;  %4888 = vmatpush1.bf16.msra.mxu1 %v7687_v20  ;;  %10378 = vst [vmem:[#allocation17_spill] sm:$0xff] %v7694_v28  ;;  %v262_v31 = vld [vmem:[#allocation5 + $0x70] sm:$0xff]  ;;  %v269_v35 = vld [vmem:[#allocation5 + $0xa8] sm:$0xff]  ;;  %v267_v36 = vld [vmem:[#allocation5 + $0x98] sm:$0xff] }
  0x42   :  { %10377 = vst [vmem:[#allocation16_spill] sm:$0xff] %v7692_v24  ;;  %10379 = vst [vmem:[#allocation18_spill] sm:$0xff] %v7696_v29  ;;  %4858 = vmatprep.subr.bf16.mxu0 %v7692_v24  ;;  %v7702_v33 = vpack.c.bf16 %v262_v31, %v258_v30  ;;  %4890 = vmatprep.subr.bf16.mxu1 %v7694_v28  ;;  %v7707_v37 = vpack.c.bf16 %v269_v35, %v265_v34  ;;  %v271_v38 = vld [vmem:[#allocation5 + $0xb8] sm:$0xff]  ;;  %v264_v39 = vld [vmem:[#allocation5 + $0x80] sm:$0xff]  ;;  %p7543_p0 = pnand %p7542_p13, %p7536_p10 }
  0x43   :  { %503 = vperm.xlu0 %7225, %v479_v4   ;;  %7228 = vset.pattern.permute.xlu1 %v7572_v0  ;;  %v268_v40 = vld [vmem:[#allocation5 + $0xa0] sm:$0xff]  ;;  %v7709_v41 = vpack.c.bf16 %v271_v38, %v267_v36  ;;  %v266_v43 = vld [vmem:[#allocation5 + $0x90] sm:$0xff]  ;;  %v2430_v45 = vld [vmem:[%s10020_s0 + $0xc] sm:$0x1] }
  0x44   :  { %487 = vperm.xlu1 %7228, %v479_v4   ;;  %10380 = vst [vmem:[#allocation19_spill] sm:$0xff] %v7702_v33  ;;  %10381 = vst [vmem:[#allocation20_spill] sm:$0xff] %v7707_v37  ;;  %v7711_v42 = vpack.c.bf16 %v268_v40, %v264_v39  ;;  %v270_v44 = vld [vmem:[#allocation5 + $0xb0] sm:$0xff]  ;;  %v273_v47 = vld [vmem:[#allocation5 + $0xc8] sm:$0xff] }
  0x45   :  { %4860 = vmatpush1.bf16.msra.mxu0 %v7696_v29  ;;  %4892 = vmatpush1.bf16.msra.mxu1 %v7702_v33  ;;  %10382 = vst [vmem:[#allocation21_spill] sm:$0xff] %v7709_v41  ;;  %v7717_v46 = vpack.c.bf16 %v270_v44, %v266_v43  ;;  %v277_v48 = vld [vmem:[#allocation5 + $0xe8] sm:$0xff]  ;;  %v275_v49 = vld [vmem:[#allocation5 + $0xd8] sm:$0xff]  ;;  %v272_v52 = vld [vmem:[#allocation5 + $0xc0] sm:$0xff] }
  0x46   :  { %10383 = vst [vmem:[#allocation22_spill] sm:$0xff] %v7711_v42  ;;  %4862 = vmatprep.subr.bf16.mxu0 %v7707_v37  ;;  %4894 = vmatprep.subr.bf16.mxu1 %v7709_v41  ;;  %v7722_v50 = vpack.c.bf16 %v277_v48, %v273_v47  ;;  %v279_v51 = vld [vmem:[#allocation5 + $0xf8] sm:$0xff]  ;;  %v276_v53 = vld [vmem:[#allocation5 + $0xe0] sm:$0xff]  ;;  %v274_v56 = vld [vmem:[#allocation5 + $0xd0] sm:$0xff] }
  0x47   :  { %499 = vperm.xlu0 %7225, %v478_v5   ;;  %10384 = vst [vmem:[#allocation23_spill] sm:$0xff] %v7717_v46  ;;  %v7724_v54 = vpack.c.bf16 %v279_v51, %v275_v49  ;;  %v7726_v55 = vpack.c.bf16 %v276_v53, %v272_v52  ;;  %v278_v57 = vld [vmem:[#allocation5 + $0xf0] sm:$0xff]  ;;  %v2429_v58 = vld [vmem:[%s10020_s0 + $0x4] sm:$0x1]  ;;  %v281_v60 = vld [vmem:[#allocation5 + $0x108] sm:$0xff] }
  0x48   :  { %482 = vperm.xlu1 %7228, %v478_v5   ;;  %10385 = vst [vmem:[#allocation24_spill] sm:$0xff] %v7722_v50  ;;  %v7732_v59 = vpack.c.bf16 %v278_v57, %v274_v56  ;;  %v285_v61 = vld [vmem:[#allocation5 + $0x128] sm:$0xff]  ;;  %v283_v62 = vld [vmem:[#allocation5 + $0x118] sm:$0xff]  ;;  %v280_v1 = vld [vmem:[#allocation5 + $0x100] sm:$0xff] }
  0x49   :  { %4864 = vmatpush1.bf16.msra.mxu0 %v7711_v42  ;;  %4896 = vmatpush1.bf16.msra.mxu1 %v7717_v46  ;;  %10386 = vst [vmem:[#allocation25_spill] sm:$0xff] %v7724_v54  ;;  %10387 = vst [vmem:[#allocation26_spill] sm:$0xff] %v7726_v55  ;;  %v7737_v63 = vpack.c.bf16 %v285_v61, %v281_v60  ;;  %v287_v0 = vld [vmem:[#allocation5 + $0x138] sm:$0xff]  ;;  %v284_v2 = vld [vmem:[#allocation5 + $0x120] sm:$0xff] }
  0x4a   :  { %4866 = vmatprep.subr.bf16.mxu0 %v7722_v50  ;;  %10388 = vst [vmem:[#allocation27_spill] sm:$0xff] %v7732_v59  ;;  %4898 = vmatprep.subr.bf16.mxu1 %v7724_v54  ;;  %v2995_v3 = vld [vmem:[%s10020_s0 + $0xd] sm:$0x1]  ;;  %v7742_v4 = vpack.c.bf16 %v287_v0, %v283_v62  ;;  %v7744_v5 = vpack.c.bf16 %v284_v2, %v280_v1  ;;  %v291_v12 = vld [vmem:[#allocation5 + $0x158] sm:$0xff]  ;;  %v288_v18 = vld [vmem:[#allocation5 + $0x140] sm:$0xff]  ;;  %v10029_v0 = vmov 0.0  }
  0x4b   :  { %1324 = vperm.xlu0 %7225, %v1300_v6   ;;  %10389 = vst [vmem:[#allocation28_spill] sm:$0xff] %v7737_v63  ;;  %v289_v8 = vld [vmem:[#allocation5 + $0x148] sm:$0xff]  ;;  %v295_v13 = vld [vmem:[#allocation5 + $0x178] sm:$0xff]  ;;  %v290_v21 = vld [vmem:[#allocation5 + $0x150] sm:$0xff]  ;;  %382 = vmatprep.mubr.f32.mxu0 %v10029_v0 }
  0x4c   :  { %1308 = vperm.xlu1 %7228, %v1300_v6   ;;  %10390 = vst [vmem:[#allocation29_spill] sm:$0xff] %v7742_v4  ;;  %10391 = vst [vmem:[#allocation30_spill] sm:$0xff] %v7744_v5  ;;  %v282_v6 = vld [vmem:[#allocation5 + $0x110] sm:$0xff]  ;;  %v293_v10 = vld [vmem:[#allocation5 + $0x168] sm:$0xff]  ;;  %v7752_v17 = vpack.c.bf16 %v295_v13, %v291_v12  ;;  %453 = vmatprep.mubr.f32.mxu1 %v10029_v0 }
  0x4d   :  { %4868 = vmatpush1.bf16.msra.mxu0 %v7726_v55  ;;  %4900 = vmatpush1.bf16.msra.mxu1 %v7732_v59  ;;  %v7750_v14 = vpack.c.bf16 %v293_v10, %v289_v8  ;;  %v294_v23 = vld [vmem:[#allocation5 + $0x170] sm:$0xff]  ;;  %v297_v25 = vld [vmem:[#allocation5 + $0x188] sm:$0xff]  ;;  %v2994_v27 = vld [vmem:[%s10020_s0 + $0x5] sm:$0x1] }
  0x4e   :  { %4870 = vmatprep.subr.bf16.mxu0 %v7737_v63  ;;  %4902 = vmatprep.subr.bf16.mxu1 %v7742_v4  ;;  %10394 = vst [vmem:[#allocation33_spill] sm:$0xff] %v7752_v17  ;;  %v301_v26 = vld [vmem:[#allocation5 + $0x1a8] sm:$0xff]  ;;  %v7763_v30 = vpack.c.bf16 %v294_v23, %v290_v21  ;;  %v303_v34 = vld [vmem:[#allocation5 + $0x1b8] sm:$0xff]  ;;  %v296_v36 = vld [vmem:[#allocation5 + $0x180] sm:$0xff] }
  0x4f   :  { %1320 = vperm.xlu0 %7225, %v1299_v7   ;;  %10393 = vst [vmem:[#allocation32_spill] sm:$0xff] %v7750_v14  ;;  %v7765_v31 = vpack.c.bf16 %v301_v26, %v297_v25  ;;  %v300_v38 = vld [vmem:[#allocation5 + $0x1a0] sm:$0xff]  ;;  %v298_v39 = vld [vmem:[#allocation5 + $0x190] sm:$0xff]  ;;  %v305_v43 = vld [vmem:[#allocation5 + $0x1c8] sm:$0xff] }
  0x50   :  { %1303 = vperm.xlu1 %7228, %v1299_v7   ;;  %v286_v7 = vld [vmem:[#allocation5 + $0x130] sm:$0xff]  ;;  %10396 = vst [vmem:[#allocation35_spill] sm:$0xff] %v7763_v30  ;;  %v309_v44 = vld [vmem:[#allocation5 + $0x1e8] sm:$0xff]  ;;  %v307_v48 = vld [vmem:[#allocation5 + $0x1d8] sm:$0xff] }
  0x51   :  { %v7747_v9 = vpack.c.bf16 %v286_v7, %v282_v6  ;;  %4872 = vmatpush1.bf16.msra.mxu0 %v7744_v5  ;;  %10397 = vst [vmem:[#allocation36_spill] sm:$0xff] %v7765_v31  ;;  %v302_v40 = vld [vmem:[#allocation5 + $0x1b0] sm:$0xff]  ;;  %v311_v49 = vld [vmem:[#allocation5 + $0x1f8] sm:$0xff]  ;;  %v7777_v51 = vpack.c.bf16 %v309_v44, %v305_v43  ;;  %v304_v53 = vld [vmem:[#allocation5 + $0x1c0] sm:$0xff] }
  0x52   :  { %4874 = vmatprep.subr.bf16.mxu0 %v7750_v14  ;;  %v7773_v47 = vpack.c.bf16 %v302_v40, %v298_v39  ;;  %v7779_v52 = vpack.c.bf16 %v311_v49, %v307_v48  ;;  %v308_v56 = vld [vmem:[#allocation5 + $0x1e0] sm:$0xff]  ;;  %v306_v57 = vld [vmem:[#allocation5 + $0x1d0] sm:$0xff]  ;;  %v4125_v2 = vld [vmem:[%s10020_s0 + $0xf] sm:$0x1] }
  0x53   :  { %1889 = vperm.xlu0 %7225, %v1865_v19   ;;  %10392 = vst [vmem:[#allocation31_spill] sm:$0xff] %v7747_v9  ;;  %4904 = vmatpush1.bf16.msra.mxu1 %v7747_v9  ;;  %10401 = vst [vmem:[#allocation40_spill] sm:$0xff] %v7777_v51  ;;  %v310_v60 = vld [vmem:[#allocation5 + $0x1f0] sm:$0xff]  ;;  %v7786_v61 = vpack.c.bf16 %v308_v56, %v304_v53  ;;  %v3559_v1 = vld [vmem:[%s10020_s0 + $0x6] sm:$0x1] }
  0x54   :  { %1873 = vperm.xlu1 %7228, %v1865_v19   ;;  %v292_v19 = vld [vmem:[#allocation5 + $0x160] sm:$0xff]  ;;  %4906 = vmatprep.subr.bf16.mxu1 %v7752_v17  ;;  %10400 = vst [vmem:[#allocation39_spill] sm:$0xff] %v7773_v47  ;;  %10402 = vst [vmem:[#allocation41_spill] sm:$0xff] %v7779_v52  ;;  %v7788_v62 = vpack.c.bf16 %v310_v60, %v306_v57  ;;  %v531_v6 = vld [vmem:[#allocation2 + $0x8] sm:$0xff] }
  0x55   :  { %v7756_v22 = vpack.c.bf16 %v292_v19, %v288_v18  ;;  %10403 = vst [vmem:[#allocation42_spill] sm:$0xff] %v7786_v61  ;;  %v539_v7 = vld [vmem:[#allocation2 + $0x48] sm:$0xff]  ;;  %v533_v8 = vld [vmem:[#allocation2 + $0x18] sm:$0xff]  ;;  %v73_v18 = vlaneseq  ;;  %v71_v26 = vld [vmem:[%s10021_s1] ss:$2 sm:$0xf] }
  0x56   :  { %10404 = vst [vmem:[#allocation43_spill] sm:$0xff] %v7788_v62  ;;  %v7805_v10 = vpack.c.bf16 %v539_v7, %v531_v6  ;;  %v541_v12 = vld [vmem:[#allocation2 + $0x58] sm:$0xff]  ;;  %v116_v43 = vld [vmem:[%s10022_s2] sm:$0xf]  ;;  %v563_v63 = vld [vmem:[#allocation2 + $0x108] sm:$0xff] }
  0x57   :  { %1885 = vperm.xlu0 %7225, %v1864_v32   ;;  %10395 = vst [vmem:[#allocation34_spill] sm:$0xff] %v7756_v22  ;;  %4876 = vmatpush1.bf16.msra.mxu0 %v7756_v22  ;;  %v7807_v13 = vpack.c.bf16 %v541_v12, %v533_v8  ;;  %v74_v19 = vshrl.u32 %v73_v18, 7  ;;  %v571_v59 = vld [vmem:[#allocation2 + $0x148] sm:$0xff]  ;;  %v565_v55 = vld [vmem:[#allocation2 + $0x118] sm:$0xff]  ;;  %v562_v37 = vld [vmem:[#allocation2 + $0x100] sm:$0xff] }
  0x58   :  { %1868 = vperm.xlu1 %7228, %v1864_v32   ;;  %v299_v32 = vld [vmem:[#allocation5 + $0x198] sm:$0xff]  ;;  %4908 = vmatpush1.bf16.msra.mxu1 %v7763_v30  ;;  %10405 = vst [vmem:[#allocation44_spill] sm:$0xff] %v7805_v10  ;;  %v570_v33 = vld [vmem:[#allocation2 + $0x140] sm:$0xff]  ;;  %v564_v29 = vld [vmem:[#allocation2 + $0x110] sm:$0xff] }
  0x59   :  { %v7767_v35 = vpack.c.bf16 %v303_v34, %v299_v32  ;;  %4878 = vmatprep.subr.bf16.mxu0 %v7765_v31  ;;  %10406 = vst [vmem:[#allocation45_spill] sm:$0xff] %v7807_v13  ;;  %v7811_v21 = vsub.s32 0, %v74_v19  ;;  %v7813_v23 = vsub.s32 1, %v74_v19  ;;  %v7815_v25 = vsub.s32 3, %v74_v19  ;;  %v573_v54 = vld [vmem:[#allocation2 + $0x158] sm:$0xff]  ;;  %v572_v28 = vld [vmem:[#allocation2 + $0x150] sm:$0xff] }
  0x5a   :  { %v4799_v32 = vld [vmem:[%s10021_s1 + $0x1] ss:$2 sm:$0xf]  ;;  %v580_v11 = vld [vmem:[#allocation2 + $0x190] sm:$0xff] }
  0x5b   :  { %2454 = vperm.xlu0 %7225, %v2430_v45   ;;  %10398 = vst [vmem:[#allocation37_spill] sm:$0xff] %v7767_v35  ;;  %4910 = vmatprep.subr.bf16.mxu1 %v7767_v35  ;;  %10407 = vst [vmem:[#allocation46_spill] sm:$0xff] %v7811_v21  ;;  %v7829_v39 = vrot.slane %v71_v26, %v7813_v23  ;;  %v7832_v40 = vrot.slane %v71_v26, %v7815_v25 }
  0x5c   :  { %2438 = vperm.xlu1 %7228, %v2430_v45   ;;  %v7771_v45 = vpack.c.bf16 %v300_v38, %v296_v36  ;;  %4912 = vmatpush1.bf16.msra.mxu1 %v7773_v47  ;;  %10408 = vst [vmem:[#allocation47_spill] sm:$0xff] %v7813_v23  ;;  %10409 = vst [vmem:[#allocation48_spill] sm:$0xff] %v7815_v25  ;;  %v7826_v38 = vrot.slane %v71_v26, %v7811_v21 }
  0x5d   :  { %4914 = vmatprep.subr.bf16.mxu1 %v7779_v52  ;;  %v7838_v44 = vrot.slane %v4799_v32, %v7811_v21  ;;  %v7841_v48 = vrot.slane %v4799_v32, %v7813_v23  ;;  %v7844_v49 = vrot.slane %v4799_v32, %v7815_v25  ;;  %v7853_v57 = vrot.slane %v116_v43, %v7811_v21 }
  0x5e   :  { %10399 = vst [vmem:[#allocation38_spill] sm:$0xff] %v7771_v45  ;;  %4880 = vmatpush1.bf16.msra.mxu0 %v7771_v45  ;;  %v7859_v60 = vrot.slane %v116_v43, %v7815_v25 }
  0x5f   :  { %2450 = vperm.xlu0 %7225, %v2429_v58   ;;  %4882 = vmatprep.subr.bf16.mxu0 %v7777_v51  ;;  %10411 = vst [vmem:[#allocation50_spill] sm:$0xff] %v7853_v57 }
  0x60   :  { %2433 = vperm.xlu1 %7228, %v2429_v58   ;;  %v3560_v58 = vld [vmem:[%s10020_s0 + $0xe] sm:$0x1]  ;;  %4916 = vmatpush1.bf16.msra.mxu1 %v7788_v62  ;;  %10413 = vst [vmem:[#allocation52_spill] sm:$0xff] %v7859_v60 }
  0x61   :  { %4982 = vmatprep.subr.bf16.mxu1 %v7807_v13 }
  0x62   :  { %4884 = vmatpush1.bf16.msra.mxu0 %v7786_v61 }
  0x63   :  { %3019 = vperm.xlu0 %7225, %v2995_v3   ;;  %4918 = vmatprep.subr.bf16.mxu0 %v7805_v10 }
  0x64   :  { %3003 = vperm.xlu1 %7228, %v2995_v3   ;;  %v4124_v3 = vld [vmem:[%s10020_s0 + $0x7] sm:$0x1] }
  0x67   :  { %3015 = vperm.xlu0 %7225, %v2994_v27  }
  0x68   :  { %2998 = vperm.xlu1 %7228, %v2994_v27   ;;  %v7820_v27 = vsub.s32 2, %v74_v19 }
  0x6a   :  { %10410 = vst [vmem:[#allocation49_spill] sm:$0xff] %v7820_v27  ;;  %v7847_v53 = vrot.slane %v71_v26, %v7820_v27  ;;  %v7850_v56 = vrot.slane %v4799_v32, %v7820_v27 }
  0x6b   :  { %3584 = vperm.xlu0 %7225, %v3560_v58  }
  0x6c   :  { %3568 = vperm.xlu1 %7228, %v3560_v58   ;;  %v7856_v58 = vrot.slane %v116_v43, %v7813_v23 }
  0x6e   :  { %10412 = vst [vmem:[#allocation51_spill] sm:$0xff] %v7856_v58 }
  0x6f   :  { %3580 = vperm.xlu0 %7225, %v3559_v1  }
  0x70   :  { %3563 = vperm.xlu1 %7228, %v3559_v1  }
  0x73   :  { %4149 = vperm.xlu0 %7225, %v4125_v2  }
  0x74   :  { %4133 = vperm.xlu1 %7228, %v4125_v2  }
  0x77   :  { %4145 = vperm.xlu0 %7225, %v4124_v3  }
  0x78   :  { %4128 = vperm.xlu1 %7228, %v4124_v3  }
  0xb9   :  { %v170_v34 = vpop.permute.xlu0 %169  ;;  %v165_v36 = vpop.permute.xlu1 %164 }
  0xba   :  { %v176_v1 = vmul.f32 %v170_v34, %v7826_v38  ;;  %v177_v2 = vmul.f32 %v170_v34, %v7829_v39  ;;  %v179_v3 = vmul.f32 %v170_v34, %v7832_v40  ;;  %v172_v6 = vmul.f32 %v165_v36, %v7826_v38 }
  0xbb   :  { %v173_v12 = vmul.f32 %v165_v36, %v7829_v39  ;;  %v175_v32 = vmul.f32 %v165_v36, %v7832_v40 }
  0xbe   :  { %v186_v7 = vpop.permute.xlu0 %185  ;;  %v182_v8 = vpop.permute.xlu1 %181 }
  0xbf   :  { %v192_v18 = vmul.f32 %v186_v7, %v7838_v44  ;;  %v193_v19 = vmul.f32 %v186_v7, %v7841_v48  ;;  %v195_v26 = vmul.f32 %v186_v7, %v7844_v49  ;;  %v188_v0 = vmul.f32 %v182_v8, %v7838_v44 }
  0xc0   :  { %v189_v13 = vmul.f32 %v182_v8, %v7841_v48  ;;  %v191_v10 = vmul.f32 %v182_v8, %v7844_v49  ;;  %v194_v51 = vmul.f32 %v186_v7, %v7850_v56  ;;  %v190_v14 = vmul.f32 %v182_v8, %v7850_v56 }
  0xc1   :  { %v200_v62 = vadd.f32 %v192_v18, %v176_v1  ;;  %v201_v61 = vadd.f32 %v193_v19, %v177_v2  ;;  %v203_v52 = vadd.f32 %v195_v26, %v179_v3  ;;  %v196_v47 = vadd.f32 %v188_v0, %v172_v6  ;;  %v532_v18 = vld [vmem:[#allocation2 + $0x10] sm:$0xff]  ;;  %v547_v26 = vld [vmem:[#allocation2 + $0x88] sm:$0xff] }
  0xc2   :  { %v197_v45 = vadd.f32 %v189_v13, %v173_v12  ;;  %v199_v35 = vadd.f32 %v191_v10, %v175_v32  ;;  %v7874_v31 = vpop.permute.xlu0 %503  ;;  %v178_v1 = vmul.f32 %v170_v34, %v7847_v53  ;;  %v174_v10 = vmul.f32 %v165_v36, %v7847_v53  ;;  %v540_v19 = vld [vmem:[#allocation2 + $0x50] sm:$0xff]  ;;  %v555_v32 = vld [vmem:[#allocation2 + $0xc8] sm:$0xff] }
  0xc3   :  { %v208_v30 = vadd.f32 %v200_v62, %v7853_v57  ;;  %v209_v22 = vadd.f32 %v201_v61, %v7856_v58  ;;  %v211_v17 = vadd.f32 %v203_v52, %v7859_v60  ;;  %v7880_v9 = vpop.permute.xlu1 %487  ;;  %v204_v2 = vadd.f32 %v196_v47, %v7853_v57  ;;  %v538_v47 = vld [vmem:[#allocation2 + $0x40] sm:$0xff] }
  0xc4   :  { %v205_v0 = vadd.f32 %v197_v45, %v7856_v58  ;;  %v207_v62 = vadd.f32 %v199_v35, %v7859_v60  ;;  %v7888_v61 = vrot.slane %v116_v43, %v7820_v27  ;;  %v202_v7 = vadd.f32 %v194_v51, %v178_v1  ;;  %v554_v60 = vld [vmem:[#allocation2 + $0xc0] sm:$0xff]  ;;  %v548_v58 = vld [vmem:[#allocation2 + $0x90] sm:$0xff] }
  0xc5   :  { %v215_v13 = vmul.f32 0.5, %v208_v30  ;;  %v216_v3 = vmul.f32 0.5, %v209_v22  ;;  %7229 = vtanh.f32 %v211_v17  ;;  %v212_v52 = vmul.f32 0.5, %v204_v2  ;;  %v530_v17 = vld [vmem:[#allocation2] sm:$0xff] }
  0xc6   :  { %10414 = vst [vmem:[#allocation53_spill] sm:$0xff] %v7888_v61  ;;  %v500_v6 = vpop.permute.xlu0 %499  ;;  %v198_v8 = vadd.f32 %v190_v14, %v174_v10  ;;  %v213_v34 = vmul.f32 0.5, %v205_v0  ;;  %v510_v30 = vmul.f32 %v7874_v31, %v7838_v44  ;;  %v494_v22 = vmul.f32 %v7880_v9, %v7826_v38 }
  0xc7   :  { %7231 = vtanh.f32 %v215_v13  ;;  %v483_v12 = vpop.permute.xlu1 %482  ;;  %v506_v35 = vmul.f32 %v500_v6, %v7838_v44  ;;  %v210_v51 = vadd.f32 %v202_v7, %v7888_v61  ;;  %v511_v1 = vmul.f32 %v7874_v31, %v7841_v48  ;;  %v549_v13 = vld [vmem:[#allocation2 + $0x98] sm:$0xff] }
  0xc8   :  { %7233 = vtanh.f32 %v216_v3  ;;  %v206_v14 = vadd.f32 %v198_v8, %v7888_v61  ;;  %v490_v36 = vmul.f32 %v483_v12, %v7826_v38  ;;  %v512_v2 = vmul.f32 %v7874_v31, %v7850_v56  ;;  %v557_v3 = vld [vmem:[#allocation2 + $0xd8] sm:$0xff]  ;;  %v556_v61 = vld [vmem:[#allocation2 + $0xd0] sm:$0xff] }
  0xc9   :  { %7235 = vtanh.f32 %v207_v62  ;;  %v495_v0 = vmul.f32 %v7880_v9, %v7829_v39  ;;  %v496_v10 = vmul.f32 %v7880_v9, %v7847_v53  ;;  %v546_v62 = vld [vmem:[#allocation2 + $0x80] sm:$0xff]  ;;  %v508_v7 = vmul.f32 %v500_v6, %v7850_v56 }
  0xca   :  { %7237 = vtanh.f32 %v212_v52  ;;  %v7895_v45 = vpop.permute.xlu0 %1324  ;;  %v507_v52 = vmul.f32 %v500_v6, %v7841_v48  ;;  %v509_v8 = vmul.f32 %v500_v6, %v7844_v49  ;;  %v491_v57 = vmul.f32 %v483_v12, %v7829_v39 }
  0xcb   :  { %7239 = vtanh.f32 %v213_v34  ;;  %v7900_v43 = vpop.permute.xlu1 %1308  ;;  %v492_v34 = vmul.f32 %v483_v12, %v7847_v53  ;;  %v493_v5 = vmul.f32 %v483_v12, %v7832_v40  ;;  %v7918_v50 = vadd.f32 %v506_v35, %v490_v36  ;;  %v579_v35 = vld [vmem:[#allocation2 + $0x188] sm:$0xff] }
  0xcc   :  { %v7920_v46 = vadd.f32 %v510_v30, %v494_v22  ;;  %v217_v6 = vmul.f32 0.5, %v210_v51  ;;  %v7924_v41 = vpack.c.bf16 %v538_v47, %v530_v17  ;;  %v214_v24 = vmul.f32 0.5, %v206_v14  ;;  %v587_v30 = vld [vmem:[#allocation2 + $0x1c8] sm:$0xff]  ;;  %v581_v22 = vld [vmem:[#allocation2 + $0x198] sm:$0xff]  ;;  %v578_v47 = vld [vmem:[#allocation2 + $0x180] sm:$0xff] }
  0xcd   :  { %10415 = vst [vmem:[#allocation54_spill] sm:$0xff] %v7918_v50  ;;  %v7926_v20 = vpack.c.bf16 %v540_v19, %v532_v18  ;;  %v7928_v16 = vpack.c.bf16 %v555_v32, %v547_v26  ;;  %v7930_v15 = vpack.c.bf16 %v557_v3, %v549_v13  ;;  %v589_v51 = vld [vmem:[#allocation2 + $0x1d8] sm:$0xff]  ;;  %v7934_v17 = vpack.c.bf16 %v556_v61, %v548_v58  ;;  %v586_v50 = vld [vmem:[#allocation2 + $0x1c0] sm:$0xff]  ;;  %v588_v32 = vld [vmem:[#allocation2 + $0x1d0] sm:$0xff] }
  0xce   :  { %v7916_v4 = vpop.permute.xlu0 %1320  ;;  %10416 = vst [vmem:[#allocation55_spill] sm:$0xff] %v7920_v46  ;;  %10417 = vst [vmem:[#allocation56_spill] sm:$0xff] %v7924_v41  ;;  %v7932_v46 = vpack.c.bf16 %v554_v60, %v546_v62  ;;  %v7936_v27 = vadd.f32 %v508_v7, %v492_v34  ;;  %v7938_v14 = vadd.f32 %v512_v2, %v496_v10  ;;  %v595_v13 = vld [vmem:[#allocation2 + $0x208] sm:$0xff]  ;;  %7241 = vtanh.f32 %v217_v6  ;;  %v597_v34 = vld [vmem:[#allocation2 + $0x218] sm:$0xff] }
  0xcf   :  { %v7922_v42 = vpop.permute.xlu1 %1303  ;;  %v7230_v12 = vpop.eup %7229  ;;  %10418 = vst [vmem:[#allocation57_spill] sm:$0xff] %v7926_v20  ;;  %10419 = vst [vmem:[#allocation58_spill] sm:$0xff] %v7928_v16  ;;  %v603_v3 = vld [vmem:[#allocation2 + $0x248] sm:$0xff]  ;;  %v7942_v25 = vadd.f32 %v507_v52, %v491_v57  ;;  %v7944_v60 = vadd.f32 %v511_v1, %v495_v0  ;;  %v7946_v58 = vadd.f32 %v509_v8, %v493_v5  ;;  %7243 = vtanh.f32 %v214_v24  ;;  %v602_v5 = vld [vmem:[#allocation2 + $0x240] sm:$0xff] }
  0xd0   :  { %10420 = vst [vmem:[#allocation59_spill] sm:$0xff] %v7932_v46  ;;  %10421 = vst [vmem:[#allocation60_spill] sm:$0xff] %v7934_v17  ;;  %v7950_v2 = vpack.c.bf16 %v571_v59, %v563_v63  ;;  %v7952_v10 = vpack.c.bf16 %v573_v54, %v565_v55  ;;  %v7954_v57 = vpack.c.bf16 %v570_v33, %v562_v37  ;;  %v596_v0 = vld [vmem:[#allocation2 + $0x210] sm:$0xff]  ;;  %v611_v55 = vld [vmem:[#allocation2 + $0x288] sm:$0xff] }
  0xd1   :  { %v7232_v36 = vpop.eup %7231  ;;  %10422 = vst [vmem:[#allocation61_spill] sm:$0xff] %v7936_v27  ;;  %10423 = vst [vmem:[#allocation62_spill] sm:$0xff] %v7938_v14  ;;  %v594_v14 = vld [vmem:[#allocation2 + $0x200] sm:$0xff]  ;;  %v7956_v1 = vpack.c.bf16 %v572_v28, %v564_v29  ;;  %v604_v52 = vld [vmem:[#allocation2 + $0x250] sm:$0xff]  ;;  %v7958_v59 = vpack.c.bf16 %v587_v30, %v579_v35  ;;  %v7960_v54 = vpack.c.bf16 %v589_v51, %v581_v22 }
  0xd2   :  { %v7234_v18 = vpop.eup %7233  ;;  %v227_v19 = vmul.f32 0.5, %v7232_v36  ;;  %v7940_v26 = vpop.permute.xlu0 %1889  ;;  %10424 = vst [vmem:[#allocation63_spill] sm:$0xff] %v7942_v25  ;;  %10425 = vst [vmem:[#allocation64_spill] sm:$0xff] %v7944_v60  ;;  %v605_v36 = vld [vmem:[#allocation2 + $0x258] sm:$0xff]  ;;  %v619_v63 = vld [vmem:[#allocation2 + $0x2c8] sm:$0xff]  ;;  %v7964_v33 = vpack.c.bf16 %v586_v50, %v578_v47  ;;  %v7966_v28 = vpack.c.bf16 %v588_v32, %v580_v11  ;;  %v7970_v30 = vpack.c.bf16 %v603_v3, %v595_v13 }
  0xd3   :  { %10426 = vst [vmem:[#allocation65_spill] sm:$0xff] %v7946_v58  ;;  %v7236_v61 = vpop.eup %7235  ;;  %v228_v62 = vmul.f32 0.5, %v7234_v18  ;;  %v7948_v7 = vpop.permute.xlu1 %1873  ;;  %10427 = vst [vmem:[#allocation66_spill] sm:$0xff] %v7950_v2  ;;  %v613_v58 = vld [vmem:[#allocation2 + $0x298] sm:$0xff]  ;;  %v610_v37 = vld [vmem:[#allocation2 + $0x280] sm:$0xff]  ;;  %v7972_v22 = vpack.c.bf16 %v605_v36, %v597_v34  ;;  %v7976_v50 = vpack.c.bf16 %v604_v52, %v596_v0  ;;  %v7978_v11 = vpack.c.bf16 %v619_v63, %v611_v55 }
  0xd4   :  { %10428 = vst [vmem:[#allocation67_spill] sm:$0xff] %v7952_v10  ;;  %v7238_v27 = vpop.eup %7237  ;;  %v233_v23 = vadd.f32 0.5, %v227_v19  ;;  %10429 = vst [vmem:[#allocation68_spill] sm:$0xff] %v7954_v57  ;;  %v621_v29 = vld [vmem:[#allocation2 + $0x2d8] sm:$0xff]  ;;  %v618_v25 = vld [vmem:[#allocation2 + $0x2c0] sm:$0xff]  ;;  %v513_v3 = vmul.f32 %v7874_v31, %v7844_v49  ;;  %v497_v34 = vmul.f32 %v7880_v9, %v7832_v40  ;;  %v1315_v9 = vmul.f32 %v7900_v43, %v7826_v38 }
  0xd5   :  { %10430 = vst [vmem:[#allocation69_spill] sm:$0xff] %v7956_v1  ;;  %v7240_v8 = vpop.eup %7239  ;;  %v234_v6 = vadd.f32 0.5, %v228_v62  ;;  %v224_v18 = vmul.f32 0.5, %v7238_v27  ;;  %10431 = vst [vmem:[#allocation70_spill] sm:$0xff] %v7958_v59  ;;  %v612_v51 = vld [vmem:[#allocation2 + $0x290] sm:$0xff]  ;;  %v627_v31 = vld [vmem:[#allocation2 + $0x308] sm:$0xff]  ;;  %v1316_v0 = vmul.f32 %v7900_v43, %v7829_v39  ;;  %v1317_v52 = vmul.f32 %v7900_v43, %v7847_v53 }
  0xd6   :  { %10432 = vst [vmem:[#allocation71_spill] sm:$0xff] %v7960_v54  ;;  %v241_v60 = vmul.f32 %v7230_v12, %v233_v23  ;;  %v225_v19 = vmul.f32 0.5, %v7240_v8  ;;  %v7962_v24 = vpop.permute.xlu0 %1885  ;;  %10433 = vst [vmem:[#allocation72_spill] sm:$0xff] %v7964_v33  ;;  %v620_v23 = vld [vmem:[#allocation2 + $0x2d0] sm:$0xff]  ;;  %v7974_v8 = vpack.c.bf16 %v602_v5, %v594_v14  ;;  %v635_v55 = vld [vmem:[#allocation2 + $0x348] sm:$0xff]  ;;  %v1334_v21 = vmul.f32 %v7895_v45, %v7844_v49 }
  0xd7   :  { %10434 = vst [vmem:[#allocation73_spill] sm:$0xff] %v7966_v28  ;;  %v239_v62 = vmul.f32 0.0, %v234_v6  ;;  %v230_v27 = vadd.f32 0.5, %v224_v18  ;;  %v7968_v35 = vpop.permute.xlu1 %1868  ;;  %10435 = vst [vmem:[#allocation74_spill] sm:$0xff] %v7970_v30  ;;  %v7982_v6 = vpack.c.bf16 %v621_v29, %v613_v58  ;;  %v7984_v18 = vpack.c.bf16 %v618_v25, %v610_v37  ;;  %v629_v63 = vld [vmem:[#allocation2 + $0x318] sm:$0xff] }
  0xd8   :  { %10436 = vst [vmem:[#allocation75_spill] sm:$0xff] %v7972_v22  ;;  %v231_v12 = vadd.f32 0.5, %v225_v19  ;;  %10437 = vst [vmem:[#allocation76_spill] sm:$0xff] %v7974_v8  ;;  %v7992_v36 = vpack.c.bf16 %v620_v23, %v612_v51  ;;  %v1332_v25 = vmul.f32 %v7895_v45, %v7841_v48  ;;  %v1333_v58 = vmul.f32 %v7895_v45, %v7850_v56  ;;  %v637_v19 = vld [vmem:[#allocation2 + $0x358] sm:$0xff]  ;;  %v7242_v29 = vpop.eup %7241 }
  0xd9   :  { %10438 = vst [vmem:[#allocation77_spill] sm:$0xff] %v7976_v50  ;;  %10439 = vst [vmem:[#allocation78_spill] sm:$0xff] %v7978_v11  ;;  %v7980_v47 = vadd.f32 %v241_v60, %v239_v62  ;;  %v240_v32 = vmul.f32 %v7236_v61, %v230_v27  ;;  %v1331_v60 = vmul.f32 %v7895_v45, %v7838_v44  ;;  %v7244_v23 = vpop.eup %7243  ;;  %v229_v11 = vmul.f32 0.5, %v7242_v29 }
  0xda   :  { %10441 = vst [vmem:[#allocation80_spill] sm:$0xff] %v7982_v6  ;;  %10442 = vst [vmem:[#allocation81_spill] sm:$0xff] %v7984_v18  ;;  %v238_v13 = vmul.f32 0.0, %v231_v12  ;;  %v7990_v14 = vpop.permute.xlu0 %2454  ;;  %v1327_v37 = vmul.f32 %v7916_v4, %v7838_v44  ;;  %v1328_v62 = vmul.f32 %v7916_v4, %v7841_v48  ;;  %v1329_v27 = vmul.f32 %v7916_v4, %v7850_v56 }
  0xdb   :  { %10440 = vst [vmem:[#allocation79_spill] sm:$0xff] %v7980_v47  ;;  %10443 = vst [vmem:[#allocation82_spill] sm:$0xff] %v7992_v36  ;;  %7245 = vtanh.f32 %v7980_v47  ;;  %v8001_v61 = vpop.permute.xlu1 %2438  ;;  %v1311_v51 = vmul.f32 %v7922_v42, %v7826_v38  ;;  %v1312_v12 = vmul.f32 %v7922_v42, %v7829_v39  ;;  %v8026_v47 = vadd.f32 %v513_v3, %v497_v34 }
  0xdc   :  { %v8003_v5 = vadd.f32 %v240_v32, %v238_v13  ;;  %v1313_v32 = vmul.f32 %v7922_v42, %v7847_v53  ;;  %v1318_v36 = vmul.f32 %v7900_v43, %v7832_v40  ;;  %v8034_v6 = vpack.c.bf16 %v635_v55, %v627_v31 }
  0xdd   :  { %10445 = vst [vmem:[#allocation84_spill] sm:$0xff] %v8026_v47  ;;  %v1330_v50 = vmul.f32 %v7916_v4, %v7844_v49  ;;  %v1314_v3 = vmul.f32 %v7922_v42, %v7832_v40  ;;  %v1896_v34 = vmul.f32 %v7940_v26, %v7838_v44  ;;  %v226_v45 = vmul.f32 0.5, %v7244_v23 }
  0xde   :  { %10444 = vst [vmem:[#allocation83_spill] sm:$0xff] %v8003_v5  ;;  %7247 = vtanh.f32 %v8003_v5  ;;  %v8024_v13 = vpop.permute.xlu0 %2450  ;;  %10446 = vst [vmem:[#allocation85_spill] sm:$0xff] %v8034_v6  ;;  %v8036_v5 = vpack.c.bf16 %v637_v19, %v629_v63  ;;  %v8046_v43 = vmul.f32 %v7940_v26, %v7841_v48  ;;  %v8048_v31 = vadd.f32 %v1327_v37, %v1311_v51 }
  0xdf   :  { %v8032_v18 = vpop.permute.xlu1 %2433  ;;  %v8050_v55 = vadd.f32 %v1331_v60, %v1315_v9  ;;  %v8052_v19 = vadd.f32 %v1329_v27, %v1313_v32  ;;  %v8054_v4 = vadd.f32 %v1333_v58, %v1317_v52  ;;  %v8056_v29 = vadd.f32 %v1328_v62, %v1312_v12 }
  0xe0   :  { %10447 = vst [vmem:[#allocation86_spill] sm:$0xff] %v8036_v5  ;;  %10448 = vst [vmem:[#allocation87_spill] sm:$0xff] %v8048_v31  ;;  %v8058_v42 = vadd.f32 %v1332_v25, %v1316_v0  ;;  %v1898_v23 = vmul.f32 %v7940_v26, %v7850_v56  ;;  %v8064_v47 = vmul.f32 %v7940_v26, %v7844_v49  ;;  %v235_v52 = vadd.f32 0.5, %v229_v11 }
  0xe1   :  { %10449 = vst [vmem:[#allocation88_spill] sm:$0xff] %v8050_v55  ;;  %10450 = vst [vmem:[#allocation89_spill] sm:$0xff] %v8052_v19  ;;  %v1880_v60 = vmul.f32 %v7948_v7, %v7826_v38  ;;  %v8070_v9 = vmul.f32 %v7948_v7, %v7829_v39  ;;  %v1882_v25 = vmul.f32 %v7948_v7, %v7847_v53  ;;  %v232_v62 = vadd.f32 0.5, %v226_v45 }
  0xe2   :  { %v3020_v63 = vpop.permute.xlu0 %3019  ;;  %10451 = vst [vmem:[#allocation90_spill] sm:$0xff] %v8054_v4  ;;  %10452 = vst [vmem:[#allocation91_spill] sm:$0xff] %v8056_v29  ;;  %v8076_v0 = vmul.f32 %v7948_v7, %v7832_v40  ;;  %v1892_v26 = vmul.f32 %v7962_v24, %v7838_v44  ;;  %v1893_v27 = vmul.f32 %v7962_v24, %v7841_v48 }
  0xe3   :  { %10453 = vst [vmem:[#allocation92_spill] sm:$0xff] %v8058_v42  ;;  %v3004_v58 = vpop.permute.xlu1 %3003  ;;  %v1894_v51 = vmul.f32 %v7962_v24, %v7850_v56  ;;  %v1895_v11 = vmul.f32 %v7962_v24, %v7844_v49  ;;  %v1876_v12 = vmul.f32 %v7968_v35, %v7826_v38  ;;  %v1878_v7 = vmul.f32 %v7968_v35, %v7847_v53 }
  0xe4   :  { %v8090_v29 = vadd.f32 %v1330_v50, %v1314_v3  ;;  %v1877_v45 = vmul.f32 %v7968_v35, %v7829_v39  ;;  %v1879_v4 = vmul.f32 %v7968_v35, %v7832_v40  ;;  %v2461_v19 = vmul.f32 %v7990_v14, %v7838_v44 }
  0xe5   :  { %v7246_v37 = vpop.eup %7245  ;;  %v8100_v24 = vmul.f32 %v7990_v14, %v7841_v48  ;;  %v8108_v50 = vmul.f32 %v7990_v14, %v7844_v49  ;;  %v2445_v35 = vmul.f32 %v8001_v61, %v7826_v38  ;;  %v8114_v3 = vmul.f32 %v8001_v61, %v7829_v39 }
  0xe6   :  { %v3016_v32 = vpop.permute.xlu0 %3015  ;;  %v247_v42 = vmul.f32 %v7246_v37, %v235_v52  ;;  %10454 = vst [vmem:[#allocation93_spill] sm:$0xff] %v8090_v29  ;;  %v8104_v52 = vmul.f32 %v7990_v14, %v7850_v56  ;;  %v8118_v37 = vmul.f32 %v8001_v61, %v7847_v53  ;;  %v8120_v6 = vadd.f32 %v1334_v21, %v1318_v36 }
  0xe7   :  { %v2999_v55 = vpop.permute.xlu1 %2998  ;;  %10455 = vst [vmem:[#allocation94_spill] sm:$0xff] %v8108_v50  ;;  %v8122_v22 = vadd.f32 %v1892_v26, %v1876_v12  ;;  %v8124_v14 = vadd.f32 %v1896_v34, %v1880_v60  ;;  %v8126_v50 = vadd.f32 %v1894_v51, %v1878_v7  ;;  %v8128_v30 = vadd.f32 %v1898_v23, %v1882_v25 }
  0xe8   :  { %v7248_v31 = vpop.eup %7247  ;;  %v314_v5 = vrot.slane %v247_v42, 7  ;;  %10456 = vst [vmem:[#allocation95_spill] sm:$0xff] %v8120_v6  ;;  %v8132_v28 = vmul.f32 %v8001_v61, %v7832_v40  ;;  %v2457_v33 = vmul.f32 %v8024_v13, %v7838_v44  ;;  %v8138_v21 = vmul.f32 %v8024_v13, %v7841_v48 }
  0xe9   :  { %v246_v29 = vmul.f32 %v7248_v31, %v232_v62  ;;  %10457 = vst [vmem:[#allocation96_spill] sm:$0xff] %v8122_v22  ;;  %10458 = vst [vmem:[#allocation97_spill] sm:$0xff] %v8124_v14  ;;  %v2459_v36 = vmul.f32 %v8024_v13, %v7850_v56  ;;  %v8144_v31 = vmul.f32 %v8024_v13, %v7844_v49 }
  0xea   :  { %v3585_v8 = vpop.permute.xlu0 %3584  ;;  %10459 = vst [vmem:[#allocation98_spill] sm:$0xff] %v8126_v50  ;;  %10460 = vst [vmem:[#allocation99_spill] sm:$0xff] %v8128_v30  ;;  %v2441_v42 = vmul.f32 %v8032_v18, %v7826_v38  ;;  %v8150_v61 = vmul.f32 %v8032_v18, %v7829_v39  ;;  %v2443_v60 = vmul.f32 %v8032_v18, %v7847_v53 }
  0xeb   :  { %v3569_v34 = vpop.permute.xlu1 %3568  ;;  %v8153_v23 = vsel %vm315_vm0, %v314_v5, %v246_v29  ;;  %v8159_v25 = vmul.f32 %v8032_v18, %v7832_v40  ;;  %v8162_v13 = vmul.f32 %v3020_v63, %v7838_v44  ;;  %v8167_v26 = vmul.f32 %v3020_v63, %v7841_v48 }
  0xec   :  { %383 = vmatmul.mubr.f32.vlgmr.msra.gmra.mrb[0].mxu0 %v8153_v23  ;;  %454 = vmatmul.mubr.f32.vlgmr.msra.gmra.mrb[0].mxu1 %v8153_v23  ;;  %v8170_v5 = vmul.f32 %v3020_v63, %v7850_v56  ;;  %v8173_v29 = vmul.f32 %v3020_v63, %v7844_v49  ;;  %v8178_v18 = vmul.f32 %v3004_v58, %v7826_v38 }
  0xed   :  { %4920 = vmatpush1.bf16.msra.mxu0 %v7924_v41  ;;  %4984 = vmatpush1.bf16.msra.mxu1 %v7926_v20  ;;  %v8181_v51 = vmul.f32 %v3004_v58, %v7829_v39  ;;  %v8184_v12 = vmul.f32 %v3004_v58, %v7847_v53  ;;  %v8187_v7 = vmul.f32 %v3004_v58, %v7832_v40 }
  0xee   :  { %v3581_v62 = vpop.permute.xlu0 %3580  ;;  %4922 = vmatprep.subr.bf16.mxu0 %v7928_v16  ;;  %v8193_v63 = vmul.f32 %v3016_v32, %v7838_v44  ;;  %v8196_v50 = vmul.f32 %v3016_v32, %v7841_v48  ;;  %v8199_v14 = vmul.f32 %v3016_v32, %v7850_v56  ;;  %v8202_v22 = vmul.f32 %v3016_v32, %v7844_v49 }
  0xef   :  { %v8189_v30 = vpop.permute.xlu1 %3563  ;;  %4986 = vmatprep.subr.bf16.mxu1 %v7930_v15  ;;  %v8205_v58 = vadd.f32 %v1893_v27, %v1877_v45  ;;  %v8209_v6 = vadd.f32 %v8046_v43, %v8070_v9  ;;  %v8211_v16 = vadd.f32 %v1895_v11, %v1879_v4  ;;  %v8215_v20 = vadd.f32 %v8064_v47, %v8076_v0 }
  0xf0   :  { %v8221_v32 = vadd.f32 %v2457_v33, %v2441_v42  ;;  %v8223_v27 = vadd.f32 %v2461_v19, %v2445_v35  ;;  %v8225_v45 = vadd.f32 %v2459_v36, %v2443_v60  ;;  %v3006_v43 = vmul.f32 %v2999_v55, %v7826_v38 }
  0xf1   :  { %10461 = vst [vmem:[#allocation100_spill] sm:$0xff] %v8205_v58  ;;  %10462 = vst [vmem:[#allocation101_spill] sm:$0xff] %v8209_v6  ;;  %4924 = vmatpush1.bf16.msra.mxu0 %v7932_v46  ;;  %4988 = vmatpush1.bf16.msra.mxu1 %v7934_v17  ;;  %v3007_v4 = vmul.f32 %v2999_v55, %v7829_v39  ;;  %v3008_v9 = vmul.f32 %v2999_v55, %v7847_v53 }
  0xf2   :  { %10463 = vst [vmem:[#allocation102_spill] sm:$0xff] %v8211_v16  ;;  %10464 = vst [vmem:[#allocation103_spill] sm:$0xff] %v8215_v20  ;;  %v8217_v41 = vpop.permute.xlu0 %4149  ;;  %v8231_v47 = vmul.f32 %v2999_v55, %v7832_v40  ;;  %4926 = vmatprep.subr.bf16.mxu0 %v7950_v2  ;;  %v8237_v33 = vmul.f32 %v3585_v8, %v7838_v44  ;;  %v8240_v19 = vmul.f32 %v3585_v8, %v7841_v48 }
  0xf3   :  { %10465 = vst [vmem:[#allocation104_spill] sm:$0xff] %v8221_v32  ;;  %10466 = vst [vmem:[#allocation105_spill] sm:$0xff] %v8223_v27  ;;  %v8233_v0 = vpop.permute.xlu1 %4133  ;;  %v8243_v11 = vmul.f32 %v3585_v8, %v7850_v56  ;;  %v8246_v35 = vmul.f32 %v3585_v8, %v7844_v49  ;;  %4990 = vmatprep.subr.bf16.mxu1 %v7952_v10  ;;  %v3575_v55 = vmul.f32 %v3569_v34, %v7826_v38 }
  0xf4   :  { %10467 = vst [vmem:[#allocation106_spill] sm:$0xff] %v8225_v45  ;;  %v8251_v36 = vmul.f32 %v3569_v34, %v7829_v39  ;;  %v3577_v42 = vmul.f32 %v3569_v34, %v7847_v53  ;;  %v8255_v60 = vmul.f32 %v3569_v34, %v7832_v40  ;;  %v3587_v45 = vmul.f32 %v3581_v62, %v7838_v44 }
  0xf5   :  { %v3588_v27 = vmul.f32 %v3581_v62, %v7841_v48  ;;  %4928 = vmatpush1.bf16.msra.mxu0 %v7954_v57  ;;  %4992 = vmatpush1.bf16.msra.mxu1 %v7956_v1  ;;  %v8263_v8 = vadd.f32 %v8104_v52, %v8118_v37  ;;  %v3589_v37 = vmul.f32 %v3581_v62, %v7850_v56 }
  0xf6   :  { %v4146_v32 = vpop.permute.xlu0 %4145  ;;  %4930 = vmatprep.subr.bf16.mxu0 %v7958_v59  ;;  %4994 = vmatprep.subr.bf16.mxu1 %v7960_v54  ;;  %v8283_v59 = vadd.f32 %v8100_v24, %v8114_v3  ;;  %v10475_v54 = vld [vmem:[#allocation72_spill] sm:$0xff]  ;;  %v10477_v24 = vld [vmem:[#allocation74_spill] sm:$0xff]  ;;  %v8317_v3 = vadd.f32 %v8199_v14, %v3008_v9  ;;  %v4156_v14 = vmul.f32 %v8217_v41, %v7838_v44 }
  0xf7   :  { %10468 = vst [vmem:[#allocation107_spill] sm:$0xff] %v8263_v8  ;;  %v4152_v20 = vmul.f32 %v4146_v32, %v7838_v44  ;;  %v4153_v16 = vmul.f32 %v4146_v32, %v7841_v48  ;;  %v4154_v34 = vmul.f32 %v4146_v32, %v7850_v56  ;;  %v4155_v6 = vmul.f32 %v4146_v32, %v7844_v49  ;;  %v4129_v58 = vpop.permute.xlu1 %4128  ;;  %v10490_v44 = vld [vmem:[#allocation78_spill] sm:$0xff] }
  0xf8   :  { %v4136_v10 = vmul.f32 %v4129_v58, %v7826_v38  ;;  %v4137_v57 = vmul.f32 %v4129_v58, %v7829_v39  ;;  %v4138_v1 = vmul.f32 %v4129_v58, %v7847_v53  ;;  %v4139_v52 = vmul.f32 %v4129_v58, %v7832_v40  ;;  %10470 = vst [vmem:[#allocation109_spill] sm:$0xff] %v8283_v59  ;;  %v636_v9 = vld [vmem:[#allocation2 + $0x350] sm:$0xff] }
  0xf9   :  { %v3590_v8 = vmul.f32 %v3581_v62, %v7844_v49  ;;  %v8279_v32 = vadd.f32 %v8138_v21, %v8150_v61  ;;  %4932 = vmatpush1.bf16.msra.mxu0 %v10475_v54  ;;  %v3571_v62 = vmul.f32 %v8189_v30, %v7826_v38  ;;  %v3572_v21 = vmul.f32 %v8189_v30, %v7829_v39  ;;  %v10476_v61 = vld [vmem:[#allocation73_spill] sm:$0xff] }
  0xfa   :  { %v8285_v2 = vadd.f32 %v4152_v20, %v4136_v10  ;;  %v8287_v17 = vadd.f32 %v4153_v16, %v4137_v57  ;;  %v8289_v46 = vadd.f32 %v4154_v34, %v4138_v1  ;;  %v8291_v58 = vadd.f32 %v4155_v6, %v4139_v52  ;;  %4996 = vmatpush1.bf16.msra.mxu1 %v10476_v61  ;;  %v10479_v20 = vld [vmem:[#allocation75_spill] sm:$0xff]  ;;  %v10480_v10 = vld [vmem:[#allocation94_spill] sm:$0xff] }
  0xfb   :  { %10469 = vst [vmem:[#allocation108_spill] sm:$0xff] %v8279_v32  ;;  %4934 = vmatprep.subr.bf16.mxu0 %v10477_v24  ;;  %v8302_v16 = vadd.f32 %v8144_v31, %v8159_v25  ;;  %4998 = vmatprep.subr.bf16.mxu1 %v10479_v20  ;;  %v8307_v57 = vadd.f32 %v10480_v10, %v8132_v28  ;;  %10484 = vst [vmem:[#allocation94_spill] sm:$0xff] %v8317_v3 }
  0xfc   :  { %10471 = vst [vmem:[#allocation110_spill] sm:$0xff] %v8285_v2  ;;  %10472 = vst [vmem:[#allocation111_spill] sm:$0xff] %v8287_v17  ;;  %v8310_v1 = vadd.f32 %v8193_v63, %v3006_v43  ;;  %v8314_v6 = vadd.f32 %v8162_v13, %v8178_v18  ;;  %v3573_v31 = vmul.f32 %v8189_v30, %v7847_v53  ;;  %v626_v43 = vld [vmem:[#allocation2 + $0x300] sm:$0xff]  ;;  %v707_v17 = vld [vmem:[#allocation2 + $0x588] sm:$0xff] }
  0xfd   :  { %10473 = vst [vmem:[#allocation112_spill] sm:$0xff] %v8289_v46  ;;  %10474 = vst [vmem:[#allocation113_spill] sm:$0xff] %v8291_v58  ;;  %v8323_v25 = vadd.f32 %v8170_v5, %v8184_v12  ;;  %v8326_v28 = vadd.f32 %v8196_v50, %v3007_v4  ;;  %v8330_v63 = vadd.f32 %v8167_v26, %v8181_v51  ;;  %v10488_v12 = vld [vmem:[#allocation76_spill] sm:$0xff]  ;;  %v10489_v51 = vld [vmem:[#allocation77_spill] sm:$0xff] }
  0xfe   :  { %10478 = vst [vmem:[#allocation72_spill] sm:$0xff] %v8302_v16  ;;  %10481 = vst [vmem:[#allocation73_spill] sm:$0xff] %v8307_v57  ;;  %v3574_v13 = vmul.f32 %v8189_v30, %v7832_v40  ;;  %v4157_v18 = vmul.f32 %v8217_v41, %v7841_v48  ;;  %v4158_v5 = vmul.f32 %v8217_v41, %v7850_v56  ;;  %4936 = vmatpush1.bf16.msra.mxu0 %v10488_v12  ;;  %v634_v48 = vld [vmem:[#allocation2 + $0x340] sm:$0xff]  ;;  %v628_v56 = vld [vmem:[#allocation2 + $0x310] sm:$0xff] }
  0xff   :  { %10482 = vst [vmem:[#allocation74_spill] sm:$0xff] %v8310_v1  ;;  %10483 = vst [vmem:[#allocation75_spill] sm:$0xff] %v8314_v6  ;;  %v4140_v50 = vmul.f32 %v8233_v0, %v7826_v38  ;;  %v4141_v26 = vmul.f32 %v8233_v0, %v7829_v39  ;;  %v4142_v30 = vmul.f32 %v8233_v0, %v7847_v53  ;;  %5000 = vmatpush1.bf16.msra.mxu1 %v10489_v51  ;;  %v10491_v4 = vld [vmem:[#allocation80_spill] sm:$0xff]  ;;  %v772_v57 = vld [vmem:[#allocation2 + $0x790] sm:$0xff] }
 0x100   :  { %10485 = vst [vmem:[#allocation114_spill] sm:$0xff] %v8323_v25  ;;  %10486 = vst [vmem:[#allocation115_spill] sm:$0xff] %v8326_v28  ;;  %4938 = vmatprep.subr.bf16.mxu0 %v10490_v44  ;;  %5002 = vmatprep.subr.bf16.mxu1 %v10491_v4  ;;  %v8352_v34 = vadd.f32 %v8202_v22, %v8231_v47  ;;  %v8356_v38 = vadd.f32 %v8173_v29, %v8187_v7  ;;  %v10500_v47 = vld [vmem:[#allocation81_spill] sm:$0xff]  ;;  %v765_v28 = vld [vmem:[#allocation2 + $0x758] sm:$0xff] }
 0x101   :  { %10487 = vst [vmem:[#allocation116_spill] sm:$0xff] %v8330_v63  ;;  %v8358_v39 = vadd.f32 %v3587_v45, %v3571_v62  ;;  %v8361_v53 = vadd.f32 %v8237_v33, %v3575_v55  ;;  %v8363_v52 = vadd.f32 %v3589_v37, %v3573_v31  ;;  %v8366_v10 = vadd.f32 %v8243_v11, %v3577_v42  ;;  %v10501_v33 = vld [vmem:[#allocation82_spill] sm:$0xff]  ;;  %v10502_v11 = vld [vmem:[#allocation85_spill] sm:$0xff]  ;;  %v778_v1 = vld [vmem:[#allocation2 + $0x7c0] sm:$0xff] }
 0x102   :  { %10492 = vst [vmem:[#allocation76_spill] sm:$0xff] %v8352_v34  ;;  %10493 = vst [vmem:[#allocation77_spill] sm:$0xff] %v8356_v38  ;;  %v8368_v58 = vadd.f32 %v3588_v27, %v3572_v21  ;;  %v8372_v22 = vadd.f32 %v8240_v19, %v8251_v36  ;;  %4940 = vmatpush1.bf16.msra.mxu0 %v10500_v47  ;;  %v8375_v29 = vpack.c.bf16 %v634_v48, %v626_v43  ;;  %v10503_v55 = vld [vmem:[#allocation86_spill] sm:$0xff]  ;;  %v651_v37 = vld [vmem:[#allocation2 + $0x3c8] sm:$0xff] }
 0x103   :  { %10494 = vst [vmem:[#allocation78_spill] sm:$0xff] %v8358_v39  ;;  %10495 = vst [vmem:[#allocation80_spill] sm:$0xff] %v8361_v53  ;;  %v4159_v7 = vmul.f32 %v8217_v41, %v7844_v49  ;;  %v4143_v45 = vmul.f32 %v8233_v0, %v7832_v40  ;;  %5004 = vmatpush1.bf16.msra.mxu1 %v10501_v33  ;;  %4942 = vmatprep.subr.bf16.mxu0 %v10502_v11  ;;  %v643_v0 = vld [vmem:[#allocation2 + $0x388] sm:$0xff]  ;;  %v653_v21 = vld [vmem:[#allocation2 + $0x3d8] sm:$0xff] }
 0x104   :  { %10496 = vst [vmem:[#allocation117_spill] sm:$0xff] %v8363_v52  ;;  %10497 = vst [vmem:[#allocation118_spill] sm:$0xff] %v8366_v10  ;;  %v8383_v27 = vpack.c.bf16 %v636_v9, %v628_v56  ;;  %5006 = vmatprep.subr.bf16.mxu1 %v10503_v55  ;;  %v8386_v19 = vadd.f32 %v3590_v8, %v3574_v13  ;;  %v8390_v36 = vadd.f32 %v8246_v35, %v8255_v60  ;;  %v645_v8 = vld [vmem:[#allocation2 + $0x398] sm:$0xff]  ;;  %v642_v35 = vld [vmem:[#allocation2 + $0x380] sm:$0xff] }
 0x105   :  { %10498 = vst [vmem:[#allocation119_spill] sm:$0xff] %v8368_v58  ;;  %10499 = vst [vmem:[#allocation120_spill] sm:$0xff] %v8372_v22  ;;  %v8392_v42 = vadd.f32 %v4156_v14, %v4140_v50  ;;  %v8394_v41 = vadd.f32 %v4158_v5, %v4142_v30  ;;  %v8396_v49 = vadd.f32 %v4157_v18, %v4141_v26  ;;  %v650_v60 = vld [vmem:[#allocation2 + $0x3c0] sm:$0xff]  ;;  %v644_v14 = vld [vmem:[#allocation2 + $0x390] sm:$0xff] }
 0x106   :  { %10504 = vst [vmem:[#allocation81_spill] sm:$0xff] %v8386_v19  ;;  %10505 = vst [vmem:[#allocation82_spill] sm:$0xff] %v8390_v36  ;;  %4944 = vmatpush1.bf16.msra.mxu0 %v8375_v29  ;;  %v8400_v40 = vadd.f32 %v4159_v7, %v4143_v45  ;;  %v8402_v62 = vpack.c.bf16 %v651_v37, %v643_v0  ;;  %v8404_v31 = vpack.c.bf16 %v653_v21, %v645_v8  ;;  %v652_v18 = vld [vmem:[#allocation2 + $0x3d0] sm:$0xff]  ;;  %v659_v50 = vld [vmem:[#allocation2 + $0x408] sm:$0xff] }
 0x107   :  { %10506 = vst [vmem:[#allocation85_spill] sm:$0xff] %v8392_v42  ;;  %10507 = vst [vmem:[#allocation86_spill] sm:$0xff] %v8394_v41  ;;  %5008 = vmatpush1.bf16.msra.mxu1 %v8383_v27  ;;  %v8406_v13 = vpack.c.bf16 %v650_v60, %v642_v35  ;;  %v8409_v5 = vpack.c.bf16 %v652_v18, %v644_v14  ;;  %v667_v26 = vld [vmem:[#allocation2 + $0x448] sm:$0xff]  ;;  %v661_v30 = vld [vmem:[#allocation2 + $0x418] sm:$0xff] }
 0x108   :  { %10508 = vst [vmem:[#allocation121_spill] sm:$0xff] %v8396_v49  ;;  %10509 = vst [vmem:[#allocation122_spill] sm:$0xff] %v8400_v40  ;;  %4946 = vmatprep.subr.bf16.mxu0 %v8402_v62  ;;  %5010 = vmatprep.subr.bf16.mxu1 %v8404_v31  ;;  %v8414_v43 = vpack.c.bf16 %v667_v26, %v659_v50  ;;  %v669_v48 = vld [vmem:[#allocation2 + $0x458] sm:$0xff]  ;;  %v658_v56 = vld [vmem:[#allocation2 + $0x400] sm:$0xff] }
 0x109   :  { %v666_v9 = vld [vmem:[#allocation2 + $0x440] sm:$0xff]  ;;  %v8416_v7 = vpack.c.bf16 %v669_v48, %v661_v30  ;;  %v660_v0 = vld [vmem:[#allocation2 + $0x410] sm:$0xff]  ;;  %v675_v21 = vld [vmem:[#allocation2 + $0x488] sm:$0xff] }
 0x10a   :  { %4948 = vmatpush1.bf16.msra.mxu0 %v8406_v13  ;;  %v8418_v45 = vpack.c.bf16 %v666_v9, %v658_v56  ;;  %v668_v37 = vld [vmem:[#allocation2 + $0x450] sm:$0xff]  ;;  %v683_v35 = vld [vmem:[#allocation2 + $0x4c8] sm:$0xff]  ;;  %v677_v60 = vld [vmem:[#allocation2 + $0x498] sm:$0xff] }
 0x10b   :  { %5012 = vmatpush1.bf16.msra.mxu1 %v8409_v5  ;;  %4950 = vmatprep.subr.bf16.mxu0 %v8414_v43  ;;  %v8421_v8 = vpack.c.bf16 %v668_v37, %v660_v0  ;;  %v8426_v14 = vpack.c.bf16 %v683_v35, %v675_v21  ;;  %v685_v18 = vld [vmem:[#allocation2 + $0x4d8] sm:$0xff]  ;;  %v674_v50 = vld [vmem:[#allocation2 + $0x480] sm:$0xff]  ;;  %v676_v56 = vld [vmem:[#allocation2 + $0x490] sm:$0xff] }
 0x10c   :  { %10510 = vst [vmem:[#allocation123_spill] sm:$0xff] %v8418_v45  ;;  %5014 = vmatprep.subr.bf16.mxu1 %v8416_v7  ;;  %v682_v26 = vld [vmem:[#allocation2 + $0x4c0] sm:$0xff]  ;;  %v8428_v30 = vpack.c.bf16 %v685_v18, %v677_v60  ;;  %v684_v9 = vld [vmem:[#allocation2 + $0x4d0] sm:$0xff]  ;;  %v691_v37 = vld [vmem:[#allocation2 + $0x508] sm:$0xff] }
 0x10d   :  { %10511 = vst [vmem:[#allocation124_spill] sm:$0xff] %v8421_v8  ;;  %10512 = vst [vmem:[#allocation125_spill] sm:$0xff] %v8426_v14  ;;  %v8430_v48 = vpack.c.bf16 %v682_v26, %v674_v50  ;;  %v8433_v0 = vpack.c.bf16 %v684_v9, %v676_v56  ;;  %v699_v21 = vld [vmem:[#allocation2 + $0x548] sm:$0xff]  ;;  %v693_v35 = vld [vmem:[#allocation2 + $0x518] sm:$0xff] }
 0x10e   :  { %4952 = vmatpush1.bf16.msra.mxu0 %v8418_v45  ;;  %10513 = vst [vmem:[#allocation126_spill] sm:$0xff] %v8428_v30  ;;  %v8438_v40 = vpack.c.bf16 %v699_v21, %v691_v37  ;;  %v701_v60 = vld [vmem:[#allocation2 + $0x558] sm:$0xff]  ;;  %v690_v18 = vld [vmem:[#allocation2 + $0x500] sm:$0xff]  ;;  %v692_v56 = vld [vmem:[#allocation2 + $0x510] sm:$0xff] }
 0x10f   :  { %5016 = vmatpush1.bf16.msra.mxu1 %v8421_v8  ;;  %10514 = vst [vmem:[#allocation127_spill] sm:$0xff] %v8430_v48  ;;  %4954 = vmatprep.subr.bf16.mxu0 %v8426_v14  ;;  %10515 = vst [vmem:[#allocation128_spill] sm:$0xff] %v8433_v0  ;;  %v698_v50 = vld [vmem:[#allocation2 + $0x540] sm:$0xff]  ;;  %v8440_v26 = vpack.c.bf16 %v701_v60, %v693_v35  ;;  %v700_v9 = vld [vmem:[#allocation2 + $0x550] sm:$0xff] }
 0x110   :  { %5018 = vmatprep.subr.bf16.mxu1 %v8428_v30  ;;  %10516 = vst [vmem:[#allocation129_spill] sm:$0xff] %v8438_v40  ;;  %v8442_v49 = vpack.c.bf16 %v698_v50, %v690_v18  ;;  %v8445_v41 = vpack.c.bf16 %v700_v9, %v692_v56  ;;  %v715_v37 = vld [vmem:[#allocation2 + $0x5c8] sm:$0xff]  ;;  %v709_v21 = vld [vmem:[#allocation2 + $0x598] sm:$0xff]  ;;  %v706_v60 = vld [vmem:[#allocation2 + $0x580] sm:$0xff] }
 0x111   :  { %10517 = vst [vmem:[#allocation130_spill] sm:$0xff] %v8440_v26  ;;  %v8450_v46 = vpack.c.bf16 %v715_v37, %v707_v17  ;;  %v717_v35 = vld [vmem:[#allocation2 + $0x5d8] sm:$0xff]  ;;  %v714_v18 = vld [vmem:[#allocation2 + $0x5c0] sm:$0xff]  ;;  %v708_v56 = vld [vmem:[#allocation2 + $0x590] sm:$0xff] }
 0x112   :  { %4956 = vmatpush1.bf16.msra.mxu0 %v8430_v48  ;;  %10518 = vst [vmem:[#allocation131_spill] sm:$0xff] %v8442_v49  ;;  %10519 = vst [vmem:[#allocation132_spill] sm:$0xff] %v8445_v41  ;;  %v8452_v50 = vpack.c.bf16 %v717_v35, %v709_v21  ;;  %v8454_v42 = vpack.c.bf16 %v714_v18, %v706_v60  ;;  %v716_v9 = vld [vmem:[#allocation2 + $0x5d0] sm:$0xff]  ;;  %v723_v36 = vld [vmem:[#allocation2 + $0x608] sm:$0xff] }
 0x113   :  { %5020 = vmatpush1.bf16.msra.mxu1 %v8433_v0  ;;  %4958 = vmatprep.subr.bf16.mxu0 %v8438_v40  ;;  %10520 = vst [vmem:[#allocation133_spill] sm:$0xff] %v8450_v46  ;;  %v8457_v2 = vpack.c.bf16 %v716_v9, %v708_v56  ;;  %v731_v17 = vld [vmem:[#allocation2 + $0x648] sm:$0xff]  ;;  %v725_v37 = vld [vmem:[#allocation2 + $0x618] sm:$0xff]  ;;  %v722_v35 = vld [vmem:[#allocation2 + $0x600] sm:$0xff] }
 0x114   :  { %5022 = vmatprep.subr.bf16.mxu1 %v8440_v26  ;;  %10521 = vst [vmem:[#allocation134_spill] sm:$0xff] %v8452_v50  ;;  %10522 = vst [vmem:[#allocation135_spill] sm:$0xff] %v8454_v42  ;;  %v8462_v19 = vpack.c.bf16 %v731_v17, %v723_v36  ;;  %v733_v21 = vld [vmem:[#allocation2 + $0x658] sm:$0xff]  ;;  %v730_v60 = vld [vmem:[#allocation2 + $0x640] sm:$0xff] }
 0x115   :  { %10523 = vst [vmem:[#allocation136_spill] sm:$0xff] %v8457_v2  ;;  %v8464_v18 = vpack.c.bf16 %v733_v21, %v725_v37  ;;  %v8466_v22 = vpack.c.bf16 %v730_v60, %v722_v35  ;;  %v724_v56 = vld [vmem:[#allocation2 + $0x610] sm:$0xff]  ;;  %v739_v10 = vld [vmem:[#allocation2 + $0x688] sm:$0xff]  ;;  %v741_v17 = vld [vmem:[#allocation2 + $0x698] sm:$0xff] }
 0x116   :  { %4960 = vmatpush1.bf16.msra.mxu0 %v8442_v49  ;;  %10524 = vst [vmem:[#allocation137_spill] sm:$0xff] %v8462_v19  ;;  %v732_v9 = vld [vmem:[#allocation2 + $0x650] sm:$0xff]  ;;  %v747_v36 = vld [vmem:[#allocation2 + $0x6c8] sm:$0xff]  ;;  %v749_v37 = vld [vmem:[#allocation2 + $0x6d8] sm:$0xff] }
 0x117   :  { %5024 = vmatpush1.bf16.msra.mxu1 %v8445_v41  ;;  %4962 = vmatprep.subr.bf16.mxu0 %v8450_v46  ;;  %10525 = vst [vmem:[#allocation138_spill] sm:$0xff] %v8464_v18  ;;  %10526 = vst [vmem:[#allocation139_spill] sm:$0xff] %v8466_v22  ;;  %v8469_v58 = vpack.c.bf16 %v732_v9, %v724_v56  ;;  %v8474_v52 = vpack.c.bf16 %v747_v36, %v739_v10  ;;  %v738_v21 = vld [vmem:[#allocation2 + $0x680] sm:$0xff]  ;;  %v740_v56 = vld [vmem:[#allocation2 + $0x690] sm:$0xff] }
 0x118   :  { %5026 = vmatprep.subr.bf16.mxu1 %v8452_v50  ;;  %v746_v35 = vld [vmem:[#allocation2 + $0x6c0] sm:$0xff]  ;;  %v8476_v60 = vpack.c.bf16 %v749_v37, %v741_v17  ;;  %v748_v9 = vld [vmem:[#allocation2 + $0x6d0] sm:$0xff]  ;;  %v755_v39 = vld [vmem:[#allocation2 + $0x708] sm:$0xff] }
 0x119   :  { %10527 = vst [vmem:[#allocation140_spill] sm:$0xff] %v8469_v58  ;;  %10528 = vst [vmem:[#allocation141_spill] sm:$0xff] %v8474_v52  ;;  %v8478_v53 = vpack.c.bf16 %v746_v35, %v738_v21  ;;  %v8481_v38 = vpack.c.bf16 %v748_v9, %v740_v56  ;;  %v763_v34 = vld [vmem:[#allocation2 + $0x748] sm:$0xff]  ;;  %v757_v63 = vld [vmem:[#allocation2 + $0x718] sm:$0xff] }
 0x11a   :  { %4964 = vmatpush1.bf16.msra.mxu0 %v8454_v42  ;;  %10529 = vst [vmem:[#allocation142_spill] sm:$0xff] %v8476_v60  ;;  %v8485_v10 = vpack.c.bf16 %v763_v34, %v755_v39  ;;  %v8487_v36 = vpack.c.bf16 %v765_v28, %v757_v63  ;;  %v754_v17 = vld [vmem:[#allocation2 + $0x700] sm:$0xff]  ;;  %v756_v21 = vld [vmem:[#allocation2 + $0x710] sm:$0xff]  ;;  %v771_v9 = vld [vmem:[#allocation2 + $0x788] sm:$0xff] }
 0x11b   :  { %5028 = vmatpush1.bf16.msra.mxu1 %v8457_v2  ;;  %4966 = vmatprep.subr.bf16.mxu0 %v8462_v19  ;;  %10530 = vst [vmem:[#allocation143_spill] sm:$0xff] %v8478_v53  ;;  %10531 = vst [vmem:[#allocation144_spill] sm:$0xff] %v8481_v38  ;;  %v762_v37 = vld [vmem:[#allocation2 + $0x740] sm:$0xff]  ;;  %v764_v56 = vld [vmem:[#allocation2 + $0x750] sm:$0xff] }
 0x11c   :  { %5030 = vmatprep.subr.bf16.mxu1 %v8464_v18  ;;  %10532 = vst [vmem:[#allocation145_spill] sm:$0xff] %v8485_v10  ;;  %10533 = vst [vmem:[#allocation146_spill] sm:$0xff] %v8487_v36  ;;  %v8490_v35 = vpack.c.bf16 %v762_v37, %v754_v17  ;;  %v779_v25 = vld [vmem:[#allocation2 + $0x7c8] sm:$0xff]  ;;  %v8494_v3 = vpack.c.bf16 %v764_v56, %v756_v21  ;;  %v773_v28 = vld [vmem:[#allocation2 + $0x798] sm:$0xff] }
 0x11d   :  { %v8496_v34 = vpack.c.bf16 %v779_v25, %v771_v9  ;;  %v781_v63 = vld [vmem:[#allocation2 + $0x7d8] sm:$0xff]  ;;  %v770_v39 = vld [vmem:[#allocation2 + $0x780] sm:$0xff]  ;;  %v780_v17 = vld [vmem:[#allocation2 + $0x7d0] sm:$0xff] }
 0x11e   :  { %4968 = vmatpush1.bf16.msra.mxu0 %v8466_v22  ;;  %10534 = vst [vmem:[#allocation147_spill] sm:$0xff] %v8490_v35  ;;  %10535 = vst [vmem:[#allocation148_spill] sm:$0xff] %v8494_v3  ;;  %v8498_v6 = vpack.c.bf16 %v781_v63, %v773_v28  ;;  %v8501_v37 = vpack.c.bf16 %v778_v1, %v770_v39  ;;  %v8505_v21 = vpack.c.bf16 %v780_v17, %v772_v57  ;;  %v535_v25 = vld [vmem:[#allocation2 + $0x28] sm:$0xff]  ;;  %v537_v9 = vld [vmem:[#allocation2 + $0x38] sm:$0xff] }
 0x11f   :  { %5032 = vmatpush1.bf16.msra.mxu1 %v8469_v58  ;;  %4970 = vmatprep.subr.bf16.mxu0 %v8474_v52  ;;  %10536 = vst [vmem:[#allocation149_spill] sm:$0xff] %v8496_v34  ;;  %v543_v56 = vld [vmem:[#allocation2 + $0x68] sm:$0xff]  ;;  %v545_v63 = vld [vmem:[#allocation2 + $0x78] sm:$0xff]  ;;  %v138_v57 = vld [vmem:[%s10025_s5] sm:$0xf] }
 0x120   :  { %5034 = vmatprep.subr.bf16.mxu1 %v8476_v60  ;;  %10537 = vst [vmem:[#allocation150_spill] sm:$0xff] %v8498_v6  ;;  %10538 = vst [vmem:[#allocation151_spill] sm:$0xff] %v8501_v37  ;;  %v8510_v28 = vpack.c.bf16 %v543_v56, %v535_v25  ;;  %v8512_v1 = vpack.c.bf16 %v545_v63, %v537_v9  ;;  %v10542_v39 = vld [vmem:[#allocation46_spill] sm:$0xff]  ;;  %v10544_v16 = vld [vmem:[#allocation47_spill] sm:$0xff] }
 0x121   :  { %10539 = vst [vmem:[#allocation152_spill] sm:$0xff] %v8505_v21  ;;  %v8520_v17 = vrot.slane %v138_v57, %v10542_v39  ;;  %v8523_v59 = vrot.slane %v138_v57, %v10544_v16  ;;  %v10546_v63 = vld [vmem:[#allocation48_spill] sm:$0xff]  ;;  %v577_v60 = vld [vmem:[#allocation2 + $0x178] sm:$0xff] }
 0x122   :  { %4972 = vmatpush1.bf16.msra.mxu0 %v8478_v53  ;;  %10540 = vst [vmem:[#allocation153_spill] sm:$0xff] %v8510_v28  ;;  %10541 = vst [vmem:[#allocation154_spill] sm:$0xff] %v8512_v1  ;;  %v569_v53 = vld [vmem:[#allocation2 + $0x138] sm:$0xff] }
 0x123   :  { %5036 = vmatpush1.bf16.msra.mxu1 %v8481_v38  ;;  %4974 = vmatprep.subr.bf16.mxu0 %v8485_v10  ;;  %10543 = vst [vmem:[#allocation46_spill] sm:$0xff] %v8520_v17  ;;  %10545 = vst [vmem:[#allocation47_spill] sm:$0xff] %v8523_v59  ;;  %v575_v38 = vld [vmem:[#allocation2 + $0x168] sm:$0xff] }
 0x124   :  { %5038 = vmatprep.subr.bf16.mxu1 %v8487_v36 }
 0x126   :  { %4976 = vmatpush1.bf16.msra.mxu0 %v8490_v35 }
 0x127   :  { %5040 = vmatpush1.bf16.msra.mxu1 %v8494_v3  ;;  %4978 = vmatprep.subr.bf16.mxu0 %v8496_v34  ;;  %v10548_v34 = vld [vmem:[#allocation49_spill] sm:$0xff] }
 0x128   :  { %5042 = vmatprep.subr.bf16.mxu1 %v8498_v6  ;;  %v8532_v3 = vrot.slane %v138_v57, %v10548_v34 }
 0x12a   :  { %4980 = vmatpush1.bf16.msra.mxu0 %v8501_v37  ;;  %10549 = vst [vmem:[#allocation49_spill] sm:$0xff] %v8532_v3 }
 0x12b   :  { %5044 = vmatpush1.bf16.msra.mxu1 %v8505_v21  ;;  %5046 = vmatprep.subr.bf16.mxu0 %v8510_v28  ;;  %v8527_v21 = vrot.slane %v138_v57, %v10546_v63  ;;  %v542_v57 = vld [vmem:[#allocation2 + $0x60] sm:$0xff] }
 0x12c   :  { %5110 = vmatprep.subr.bf16.mxu1 %v8512_v1 }
 0x12d   :  { %10547 = vst [vmem:[#allocation48_spill] sm:$0xff] %v8527_v21 }
 0x1bf   :  { %v384_v32 = vpop.f32.mrb[0].mxu0  ;;  %v455_v25 = vpop.f32.mrb[0].mxu1 }
 0x1c0   :  { %v385_v56 = vadd.f32 %v384_v32, %v8520_v17  ;;  %v386_v9 = vpop.f32.mrb[1].mxu0  ;;  %v457_v28 = vpop.f32.mrb[1].mxu1  ;;  %v456_v16 = vadd.f32 %v455_v25, %v8532_v3  ;;  %v536_v25 = vld [vmem:[#allocation2 + $0x30] sm:$0xff] }
 0x1c1   :  { %v387_v1 = vadd.f32 %v386_v9, %v8523_v59  ;;  %v458_v39 = vadd.f32 %v457_v28, %v8527_v21  ;;  %v534_v28 = vld [vmem:[#allocation2 + $0x20] sm:$0xff] }
 0x1c2   :  { %v460_v37 = vmul.f32 0.5, %v385_v56  ;;  %v462_v32 = vmul.f32 0.5, %v456_v16 }
 0x1c3   :  { %v461_v6 = vmul.f32 0.5, %v387_v1 }
 0x1c4   :  { %7249 = vtanh.f32 %v460_v37 }
 0x1c5   :  { %7251 = vtanh.f32 %v461_v6 }
 0x1c6   :  { %7253 = vtanh.f32 %v458_v39  ;;  %v544_v39 = vld [vmem:[#allocation2 + $0x70] sm:$0xff] }
 0x1c7   :  { %7255 = vtanh.f32 %v462_v32  ;;  %v553_v32 = vld [vmem:[#allocation2 + $0xb8] sm:$0xff] }
 0x1ce   :  { %v7250_v17 = vpop.eup %7249 }
 0x1cf   :  { %v466_v35 = vmul.f32 0.5, %v7250_v17  ;;  %v7252_v63 = vpop.eup %7251  ;;  %v551_v17 = vld [vmem:[#allocation2 + $0xa8] sm:$0xff] }
 0x1d0   :  { %v467_v10 = vmul.f32 0.5, %v7252_v63  ;;  %v7254_v9 = vpop.eup %7253  ;;  %v561_v63 = vld [vmem:[#allocation2 + $0xf8] sm:$0xff] }
 0x1d1   :  { %v469_v36 = vadd.f32 0.5, %v466_v35  ;;  %v7256_v34 = vpop.eup %7255  ;;  %v559_v35 = vld [vmem:[#allocation2 + $0xe8] sm:$0xff] }
 0x1d2   :  { %v470_v56 = vadd.f32 0.5, %v467_v10  ;;  %v468_v6 = vmul.f32 0.5, %v7256_v34  ;;  %v8538_v10 = vpack.c.bf16 %v542_v57, %v534_v28  ;;  %v567_v34 = vld [vmem:[#allocation2 + $0x128] sm:$0xff]  ;;  %v566_v57 = vld [vmem:[#allocation2 + $0x120] sm:$0xff] }
 0x1d3   :  { %v474_v1 = vmul.f32 %v7254_v9, %v469_v36  ;;  %v8540_v36 = vpack.c.bf16 %v544_v39, %v536_v25  ;;  %v550_v9 = vld [vmem:[#allocation2 + $0xa0] sm:$0xff]  ;;  %v8554_v39 = vpack.c.bf16 %v575_v38, %v567_v34  ;;  %v584_v34 = vld [vmem:[#allocation2 + $0x1b0] sm:$0xff] }
 0x1d4   :  { %v473_v37 = vmul.f32 0.0, %v470_v56  ;;  %v471_v16 = vadd.f32 0.5, %v468_v6  ;;  %10551 = vst [vmem:[#allocation156_spill] sm:$0xff] %v8538_v10  ;;  %v558_v56 = vld [vmem:[#allocation2 + $0xe0] sm:$0xff]  ;;  %v8544_v6 = vpack.c.bf16 %v561_v63, %v553_v32  ;;  %v583_v32 = vld [vmem:[#allocation2 + $0x1a8] sm:$0xff] }
 0x1d5   :  { %10552 = vst [vmem:[#allocation157_spill] sm:$0xff] %v8540_v36  ;;  %v574_v25 = vld [vmem:[#allocation2 + $0x160] sm:$0xff]  ;;  %10557 = vst [vmem:[#allocation162_spill] sm:$0xff] %v8554_v39  ;;  %v591_v63 = vld [vmem:[#allocation2 + $0x1e8] sm:$0xff] }
 0x1d6   :  { %v8535_v59 = vadd.f32 %v474_v1, %v473_v37  ;;  %v552_v1 = vld [vmem:[#allocation2 + $0xb0] sm:$0xff]  ;;  %10554 = vst [vmem:[#allocation159_spill] sm:$0xff] %v8544_v6 }
 0x1d7   :  { %v560_v37 = vld [vmem:[#allocation2 + $0xf0] sm:$0xff] }
 0x1d8   :  { %10550 = vst [vmem:[#allocation155_spill] sm:$0xff] %v8535_v59  ;;  %7257 = vtanh.f32 %v8535_v59  ;;  %v8542_v59 = vpack.c.bf16 %v559_v35, %v551_v17  ;;  %v8552_v28 = vpack.c.bf16 %v560_v37, %v552_v1  ;;  %v568_v17 = vld [vmem:[#allocation2 + $0x130] sm:$0xff]  ;;  %v8562_v1 = vpack.c.bf16 %v574_v25, %v566_v57 }
 0x1d9   :  { %v576_v35 = vld [vmem:[#allocation2 + $0x170] sm:$0xff] }
 0x1da   :  { %10553 = vst [vmem:[#allocation158_spill] sm:$0xff] %v8542_v59  ;;  %10556 = vst [vmem:[#allocation161_spill] sm:$0xff] %v8552_v28  ;;  %v8564_v38 = vpack.c.bf16 %v576_v35, %v568_v17  ;;  %v598_v17 = vld [vmem:[#allocation2 + $0x220] sm:$0xff] }
 0x1db   :  { %10559 = vst [vmem:[#allocation164_spill] sm:$0xff] %v8562_v1  ;;  %v606_v35 = vld [vmem:[#allocation2 + $0x260] sm:$0xff] }
 0x1dc   :  { %10560 = vst [vmem:[#allocation165_spill] sm:$0xff] %v8564_v38 }
 0x1e2   :  { %v7258_v3 = vpop.eup %7257 }
 0x1e3   :  { %v477_v21 = vmul.f32 %v7258_v3, %v471_v16  ;;  %v8550_v3 = vpack.c.bf16 %v558_v56, %v550_v9  ;;  %v8556_v16 = vpack.c.bf16 %v577_v60, %v569_v53  ;;  %v585_v9 = vld [vmem:[#allocation2 + $0x1b8] sm:$0xff]  ;;  %v582_v53 = vld [vmem:[#allocation2 + $0x1a0] sm:$0xff] }
 0x1e4   :  { %v593_v56 = vld [vmem:[#allocation2 + $0x1f8] sm:$0xff]  ;;  %v590_v60 = vld [vmem:[#allocation2 + $0x1e0] sm:$0xff] }
 0x1e5   :  { %850 = vmatprep.mubr.f32.mxu0 %v477_v21  ;;  %921 = vmatprep.mubr.f32.mxu1 %v477_v21  ;;  %10555 = vst [vmem:[#allocation160_spill] sm:$0xff] %v8550_v3  ;;  %10558 = vst [vmem:[#allocation163_spill] sm:$0xff] %v8556_v16  ;;  %v8570_v37 = vpack.c.bf16 %v593_v56, %v585_v9  ;;  %v8574_v57 = vpack.c.bf16 %v590_v60, %v582_v53  ;;  %v600_v9 = vld [vmem:[#allocation2 + $0x230] sm:$0xff]  ;;  %v614_v60 = vld [vmem:[#allocation2 + $0x2a0] sm:$0xff] }
 0x1e6   :  { %851 = vmatmul.mubr.f32.vlgmr.msra.gmra.mrb[2].mxu0 %v8153_v23  ;;  %922 = vmatmul.mubr.f32.vlgmr.msra.gmra.mrb[2].mxu1 %v8153_v23  ;;  %v608_v56 = vld [vmem:[#allocation2 + $0x270] sm:$0xff] }
 0x1e7   :  { %5048 = vmatpush1.bf16.msra.mxu0 %v8538_v10  ;;  %5112 = vmatpush1.bf16.msra.mxu1 %v8540_v36  ;;  %10562 = vst [vmem:[#allocation167_spill] sm:$0xff] %v8570_v37  ;;  %v601_v36 = vld [vmem:[#allocation2 + $0x238] sm:$0xff]  ;;  %10563 = vst [vmem:[#allocation168_spill] sm:$0xff] %v8574_v57  ;;  %v8588_v53 = vpack.c.bf16 %v608_v56, %v600_v9  ;;  %v630_v9 = vld [vmem:[#allocation2 + $0x320] sm:$0xff] }
 0x1e8   :  { %992 = vmatprep.mubr.f32.mxu0 %v477_v21  ;;  %1063 = vmatprep.mubr.f32.mxu1 %v477_v21  ;;  %v8568_v21 = vpack.c.bf16 %v591_v63, %v583_v32  ;;  %v638_v56 = vld [vmem:[#allocation2 + $0x360] sm:$0xff] }
 0x1e9   :  { %5050 = vmatprep.subr.bf16.mxu0 %v8542_v59  ;;  %5114 = vmatprep.subr.bf16.mxu1 %v8544_v6  ;;  %v592_v6 = vld [vmem:[#allocation2 + $0x1f0] sm:$0xff]  ;;  %v599_v59 = vld [vmem:[#allocation2 + $0x228] sm:$0xff]  ;;  %10568 = vst [vmem:[#allocation173_spill] sm:$0xff] %v8588_v53 }
 0x1ea   :  { %10561 = vst [vmem:[#allocation166_spill] sm:$0xff] %v8568_v21  ;;  %v8576_v25 = vpack.c.bf16 %v592_v6, %v584_v34  ;;  %v8586_v6 = vpack.c.bf16 %v606_v35, %v598_v17  ;;  %v622_v34 = vld [vmem:[#allocation2 + $0x2e0] sm:$0xff] }
 0x1eb   :  { %5052 = vmatpush1.bf16.msra.mxu0 %v8550_v3  ;;  %5116 = vmatpush1.bf16.msra.mxu1 %v8552_v28  ;;  %v607_v3 = vld [vmem:[#allocation2 + $0x268] sm:$0xff]  ;;  %v609_v28 = vld [vmem:[#allocation2 + $0x278] sm:$0xff]  ;;  %v8598_v17 = vpack.c.bf16 %v622_v34, %v614_v60  ;;  %v8610_v60 = vpack.c.bf16 %v638_v56, %v630_v9 }
 0x1ec   :  { %5054 = vmatprep.subr.bf16.mxu0 %v8554_v39  ;;  %5118 = vmatprep.subr.bf16.mxu1 %v8556_v16  ;;  %10564 = vst [vmem:[#allocation169_spill] sm:$0xff] %v8576_v25  ;;  %v8580_v32 = vpack.c.bf16 %v607_v3, %v599_v59  ;;  %v8582_v63 = vpack.c.bf16 %v609_v28, %v601_v36  ;;  %v615_v16 = vld [vmem:[#allocation2 + $0x2a8] sm:$0xff]  ;;  %v617_v39 = vld [vmem:[#allocation2 + $0x2b8] sm:$0xff]  ;;  %10567 = vst [vmem:[#allocation172_spill] sm:$0xff] %v8586_v6 }
 0x1ed   :  { %v616_v3 = vld [vmem:[#allocation2 + $0x2b0] sm:$0xff]  ;;  %10571 = vst [vmem:[#allocation176_spill] sm:$0xff] %v8598_v17  ;;  %10575 = vst [vmem:[#allocation180_spill] sm:$0xff] %v8610_v60 }
 0x1ee   :  { %10565 = vst [vmem:[#allocation170_spill] sm:$0xff] %v8580_v32  ;;  %10566 = vst [vmem:[#allocation171_spill] sm:$0xff] %v8582_v63  ;;  %v624_v28 = vld [vmem:[#allocation2 + $0x2f0] sm:$0xff] }
 0x1ef   :  { %5056 = vmatpush1.bf16.msra.mxu0 %v8562_v1  ;;  %5120 = vmatpush1.bf16.msra.mxu1 %v8564_v38  ;;  %v623_v1 = vld [vmem:[#allocation2 + $0x2e8] sm:$0xff]  ;;  %v625_v38 = vld [vmem:[#allocation2 + $0x2f8] sm:$0xff]  ;;  %v8600_v35 = vpack.c.bf16 %v624_v28, %v616_v3  ;;  %v646_v3 = vld [vmem:[#allocation2 + $0x3a0] sm:$0xff] }
 0x1f0   :  { %5058 = vmatprep.subr.bf16.mxu0 %v8568_v21  ;;  %5122 = vmatprep.subr.bf16.mxu1 %v8570_v37  ;;  %v8592_v59 = vpack.c.bf16 %v623_v1, %v615_v16  ;;  %v8594_v36 = vpack.c.bf16 %v625_v38, %v617_v39  ;;  %v631_v37 = vld [vmem:[#allocation2 + $0x328] sm:$0xff]  ;;  %v633_v21 = vld [vmem:[#allocation2 + $0x338] sm:$0xff]  ;;  %v632_v1 = vld [vmem:[#allocation2 + $0x330] sm:$0xff] }
 0x1f1   :  { %10572 = vst [vmem:[#allocation177_spill] sm:$0xff] %v8600_v35  ;;  %v640_v38 = vld [vmem:[#allocation2 + $0x370] sm:$0xff]  ;;  %v654_v28 = vld [vmem:[#allocation2 + $0x3e0] sm:$0xff] }
 0x1f2   :  { %10569 = vst [vmem:[#allocation174_spill] sm:$0xff] %v8592_v59  ;;  %10570 = vst [vmem:[#allocation175_spill] sm:$0xff] %v8594_v36  ;;  %v8612_v34 = vpack.c.bf16 %v640_v38, %v632_v1  ;;  %v8622_v9 = vpack.c.bf16 %v654_v28, %v646_v3  ;;  %v662_v1 = vld [vmem:[#allocation2 + $0x420] sm:$0xff] }
 0x1f3   :  { %5060 = vmatpush1.bf16.msra.mxu0 %v8574_v57  ;;  %5124 = vmatpush1.bf16.msra.mxu1 %v8576_v25  ;;  %v639_v57 = vld [vmem:[#allocation2 + $0x368] sm:$0xff]  ;;  %v641_v25 = vld [vmem:[#allocation2 + $0x378] sm:$0xff]  ;;  %v670_v38 = vld [vmem:[#allocation2 + $0x460] sm:$0xff] }
 0x1f4   :  { %5062 = vmatprep.subr.bf16.mxu0 %v8580_v32  ;;  %5126 = vmatprep.subr.bf16.mxu1 %v8582_v63  ;;  %v8604_v39 = vpack.c.bf16 %v639_v57, %v631_v37  ;;  %v8606_v16 = vpack.c.bf16 %v641_v25, %v633_v21  ;;  %v647_v63 = vld [vmem:[#allocation2 + $0x3a8] sm:$0xff]  ;;  %v649_v32 = vld [vmem:[#allocation2 + $0x3b8] sm:$0xff]  ;;  %10576 = vst [vmem:[#allocation181_spill] sm:$0xff] %v8612_v34  ;;  %v648_v57 = vld [vmem:[#allocation2 + $0x3b0] sm:$0xff] }
 0x1f5   :  { %v656_v25 = vld [vmem:[#allocation2 + $0x3f0] sm:$0xff]  ;;  %10579 = vst [vmem:[#allocation184_spill] sm:$0xff] %v8622_v9  ;;  %v8634_v3 = vpack.c.bf16 %v670_v38, %v662_v1 }
 0x1f6   :  { %10573 = vst [vmem:[#allocation178_spill] sm:$0xff] %v8604_v39  ;;  %10574 = vst [vmem:[#allocation179_spill] sm:$0xff] %v8606_v16  ;;  %v8624_v56 = vpack.c.bf16 %v656_v25, %v648_v57  ;;  %v678_v57 = vld [vmem:[#allocation2 + $0x4a0] sm:$0xff] }
 0x1f7   :  { %5064 = vmatpush1.bf16.msra.mxu0 %v8586_v6  ;;  %5128 = vmatpush1.bf16.msra.mxu1 %v8588_v53  ;;  %v655_v6 = vld [vmem:[#allocation2 + $0x3e8] sm:$0xff]  ;;  %v657_v53 = vld [vmem:[#allocation2 + $0x3f8] sm:$0xff]  ;;  %10583 = vst [vmem:[#allocation188_spill] sm:$0xff] %v8634_v3  ;;  %v686_v25 = vld [vmem:[#allocation2 + $0x4e0] sm:$0xff] }
 0x1f8   :  { %5066 = vmatprep.subr.bf16.mxu0 %v8592_v59  ;;  %5130 = vmatprep.subr.bf16.mxu1 %v8594_v36  ;;  %v8616_v21 = vpack.c.bf16 %v655_v6, %v647_v63  ;;  %v8618_v37 = vpack.c.bf16 %v657_v53, %v649_v32  ;;  %v663_v36 = vld [vmem:[#allocation2 + $0x428] sm:$0xff]  ;;  %v665_v59 = vld [vmem:[#allocation2 + $0x438] sm:$0xff]  ;;  %10580 = vst [vmem:[#allocation185_spill] sm:$0xff] %v8624_v56  ;;  %v664_v6 = vld [vmem:[#allocation2 + $0x430] sm:$0xff] }
 0x1f9   :  { %v672_v53 = vld [vmem:[#allocation2 + $0x470] sm:$0xff]  ;;  %v8646_v1 = vpack.c.bf16 %v686_v25, %v678_v57 }
 0x1fa   :  { %10577 = vst [vmem:[#allocation182_spill] sm:$0xff] %v8616_v21  ;;  %10578 = vst [vmem:[#allocation183_spill] sm:$0xff] %v8618_v37  ;;  %v8636_v28 = vpack.c.bf16 %v672_v53, %v664_v6  ;;  %v694_v6 = vld [vmem:[#allocation2 + $0x520] sm:$0xff] }
 0x1fb   :  { %5068 = vmatpush1.bf16.msra.mxu0 %v8598_v17  ;;  %5132 = vmatpush1.bf16.msra.mxu1 %v8600_v35  ;;  %v671_v17 = vld [vmem:[#allocation2 + $0x468] sm:$0xff]  ;;  %v673_v35 = vld [vmem:[#allocation2 + $0x478] sm:$0xff]  ;;  %10587 = vst [vmem:[#allocation192_spill] sm:$0xff] %v8646_v1  ;;  %v702_v53 = vld [vmem:[#allocation2 + $0x560] sm:$0xff] }
 0x1fc   :  { %5070 = vmatprep.subr.bf16.mxu0 %v8604_v39  ;;  %5134 = vmatprep.subr.bf16.mxu1 %v8606_v16  ;;  %v8628_v32 = vpack.c.bf16 %v671_v17, %v663_v36  ;;  %v8630_v63 = vpack.c.bf16 %v673_v35, %v665_v59  ;;  %v679_v16 = vld [vmem:[#allocation2 + $0x4a8] sm:$0xff]  ;;  %v681_v39 = vld [vmem:[#allocation2 + $0x4b8] sm:$0xff]  ;;  %10584 = vst [vmem:[#allocation189_spill] sm:$0xff] %v8636_v28  ;;  %v680_v17 = vld [vmem:[#allocation2 + $0x4b0] sm:$0xff] }
 0x1fd   :  { %v688_v35 = vld [vmem:[#allocation2 + $0x4f0] sm:$0xff]  ;;  %v8658_v57 = vpack.c.bf16 %v702_v53, %v694_v6 }
 0x1fe   :  { %10581 = vst [vmem:[#allocation186_spill] sm:$0xff] %v8628_v32  ;;  %10582 = vst [vmem:[#allocation187_spill] sm:$0xff] %v8630_v63  ;;  %v8648_v38 = vpack.c.bf16 %v688_v35, %v680_v17  ;;  %v710_v17 = vld [vmem:[#allocation2 + $0x5a0] sm:$0xff] }
 0x1ff   :  { %5072 = vmatpush1.bf16.msra.mxu0 %v8610_v60  ;;  %5136 = vmatpush1.bf16.msra.mxu1 %v8612_v34  ;;  %v687_v60 = vld [vmem:[#allocation2 + $0x4e8] sm:$0xff]  ;;  %v689_v34 = vld [vmem:[#allocation2 + $0x4f8] sm:$0xff]  ;;  %10591 = vst [vmem:[#allocation196_spill] sm:$0xff] %v8658_v57  ;;  %v718_v35 = vld [vmem:[#allocation2 + $0x5e0] sm:$0xff] }
 0x200   :  { %5074 = vmatprep.subr.bf16.mxu0 %v8616_v21  ;;  %5138 = vmatprep.subr.bf16.mxu1 %v8618_v37  ;;  %v8640_v59 = vpack.c.bf16 %v687_v60, %v679_v16  ;;  %v8642_v36 = vpack.c.bf16 %v689_v34, %v681_v39  ;;  %v695_v37 = vld [vmem:[#allocation2 + $0x528] sm:$0xff]  ;;  %v697_v21 = vld [vmem:[#allocation2 + $0x538] sm:$0xff]  ;;  %10588 = vst [vmem:[#allocation193_spill] sm:$0xff] %v8648_v38  ;;  %v696_v60 = vld [vmem:[#allocation2 + $0x530] sm:$0xff] }
 0x201   :  { %v704_v34 = vld [vmem:[#allocation2 + $0x570] sm:$0xff]  ;;  %v8670_v6 = vpack.c.bf16 %v718_v35, %v710_v17 }
 0x202   :  { %10585 = vst [vmem:[#allocation190_spill] sm:$0xff] %v8640_v59  ;;  %10586 = vst [vmem:[#allocation191_spill] sm:$0xff] %v8642_v36  ;;  %v8660_v25 = vpack.c.bf16 %v704_v34, %v696_v60  ;;  %v726_v60 = vld [vmem:[#allocation2 + $0x620] sm:$0xff] }
 0x203   :  { %5076 = vmatpush1.bf16.msra.mxu0 %v8622_v9  ;;  %5140 = vmatpush1.bf16.msra.mxu1 %v8624_v56  ;;  %v703_v9 = vld [vmem:[#allocation2 + $0x568] sm:$0xff]  ;;  %v705_v56 = vld [vmem:[#allocation2 + $0x578] sm:$0xff]  ;;  %10595 = vst [vmem:[#allocation200_spill] sm:$0xff] %v8670_v6  ;;  %v734_v34 = vld [vmem:[#allocation2 + $0x660] sm:$0xff] }
 0x204   :  { %5078 = vmatprep.subr.bf16.mxu0 %v8628_v32  ;;  %5142 = vmatprep.subr.bf16.mxu1 %v8630_v63  ;;  %v8652_v39 = vpack.c.bf16 %v703_v9, %v695_v37  ;;  %v8654_v16 = vpack.c.bf16 %v705_v56, %v697_v21  ;;  %v711_v63 = vld [vmem:[#allocation2 + $0x5a8] sm:$0xff]  ;;  %v713_v32 = vld [vmem:[#allocation2 + $0x5b8] sm:$0xff]  ;;  %10592 = vst [vmem:[#allocation197_spill] sm:$0xff] %v8660_v25  ;;  %v712_v9 = vld [vmem:[#allocation2 + $0x5b0] sm:$0xff] }
 0x205   :  { %v720_v56 = vld [vmem:[#allocation2 + $0x5f0] sm:$0xff]  ;;  %v8682_v17 = vpack.c.bf16 %v734_v34, %v726_v60 }
 0x206   :  { %10589 = vst [vmem:[#allocation194_spill] sm:$0xff] %v8652_v39  ;;  %10590 = vst [vmem:[#allocation195_spill] sm:$0xff] %v8654_v16  ;;  %v8672_v53 = vpack.c.bf16 %v720_v56, %v712_v9  ;;  %v742_v9 = vld [vmem:[#allocation2 + $0x6a0] sm:$0xff] }
 0x207   :  { %5080 = vmatpush1.bf16.msra.mxu0 %v8634_v3  ;;  %5144 = vmatpush1.bf16.msra.mxu1 %v8636_v28  ;;  %v719_v3 = vld [vmem:[#allocation2 + $0x5e8] sm:$0xff]  ;;  %v721_v28 = vld [vmem:[#allocation2 + $0x5f8] sm:$0xff]  ;;  %10599 = vst [vmem:[#allocation204_spill] sm:$0xff] %v8682_v17  ;;  %v750_v56 = vld [vmem:[#allocation2 + $0x6e0] sm:$0xff] }
 0x208   :  { %5082 = vmatprep.subr.bf16.mxu0 %v8640_v59  ;;  %5146 = vmatprep.subr.bf16.mxu1 %v8642_v36  ;;  %v8664_v21 = vpack.c.bf16 %v719_v3, %v711_v63  ;;  %v8666_v37 = vpack.c.bf16 %v721_v28, %v713_v32  ;;  %v727_v36 = vld [vmem:[#allocation2 + $0x628] sm:$0xff]  ;;  %v729_v59 = vld [vmem:[#allocation2 + $0x638] sm:$0xff]  ;;  %10596 = vst [vmem:[#allocation201_spill] sm:$0xff] %v8672_v53  ;;  %v728_v3 = vld [vmem:[#allocation2 + $0x630] sm:$0xff] }
 0x209   :  { %v736_v28 = vld [vmem:[#allocation2 + $0x670] sm:$0xff]  ;;  %v8694_v60 = vpack.c.bf16 %v750_v56, %v742_v9 }
 0x20a   :  { %10593 = vst [vmem:[#allocation198_spill] sm:$0xff] %v8664_v21  ;;  %10594 = vst [vmem:[#allocation199_spill] sm:$0xff] %v8666_v37  ;;  %v8684_v35 = vpack.c.bf16 %v736_v28, %v728_v3  ;;  %v758_v3 = vld [vmem:[#allocation2 + $0x720] sm:$0xff] }
 0x20b   :  { %5084 = vmatpush1.bf16.msra.mxu0 %v8646_v1  ;;  %5148 = vmatpush1.bf16.msra.mxu1 %v8648_v38  ;;  %v735_v1 = vld [vmem:[#allocation2 + $0x668] sm:$0xff]  ;;  %v737_v38 = vld [vmem:[#allocation2 + $0x678] sm:$0xff]  ;;  %10603 = vst [vmem:[#allocation208_spill] sm:$0xff] %v8694_v60  ;;  %v766_v28 = vld [vmem:[#allocation2 + $0x760] sm:$0xff] }
 0x20c   :  { %5086 = vmatprep.subr.bf16.mxu0 %v8652_v39  ;;  %5150 = vmatprep.subr.bf16.mxu1 %v8654_v16  ;;  %v8676_v32 = vpack.c.bf16 %v735_v1, %v727_v36  ;;  %v8678_v63 = vpack.c.bf16 %v737_v38, %v729_v59  ;;  %v743_v16 = vld [vmem:[#allocation2 + $0x6a8] sm:$0xff]  ;;  %v745_v39 = vld [vmem:[#allocation2 + $0x6b8] sm:$0xff]  ;;  %10600 = vst [vmem:[#allocation205_spill] sm:$0xff] %v8684_v35  ;;  %v744_v1 = vld [vmem:[#allocation2 + $0x6b0] sm:$0xff] }
 0x20d   :  { %v752_v38 = vld [vmem:[#allocation2 + $0x6f0] sm:$0xff]  ;;  %v8706_v9 = vpack.c.bf16 %v766_v28, %v758_v3 }
 0x20e   :  { %10597 = vst [vmem:[#allocation202_spill] sm:$0xff] %v8676_v32  ;;  %10598 = vst [vmem:[#allocation203_spill] sm:$0xff] %v8678_v63  ;;  %v8696_v34 = vpack.c.bf16 %v752_v38, %v744_v1  ;;  %v774_v1 = vld [vmem:[#allocation2 + $0x7a0] sm:$0xff]  ;;  %v784_v38 = vld [vmem:[#allocation2 + $0x7f0] sm:$0xff] }
 0x20f   :  { %5088 = vmatpush1.bf16.msra.mxu0 %v8658_v57  ;;  %5152 = vmatpush1.bf16.msra.mxu1 %v8660_v25  ;;  %v751_v57 = vld [vmem:[#allocation2 + $0x6e8] sm:$0xff]  ;;  %v753_v25 = vld [vmem:[#allocation2 + $0x6f8] sm:$0xff]  ;;  %10607 = vst [vmem:[#allocation212_spill] sm:$0xff] %v8706_v9 }
 0x210   :  { %5090 = vmatprep.subr.bf16.mxu0 %v8664_v21  ;;  %5154 = vmatprep.subr.bf16.mxu1 %v8666_v37  ;;  %v8688_v59 = vpack.c.bf16 %v751_v57, %v743_v16  ;;  %v8690_v36 = vpack.c.bf16 %v753_v25, %v745_v39  ;;  %v759_v37 = vld [vmem:[#allocation2 + $0x728] sm:$0xff]  ;;  %v761_v21 = vld [vmem:[#allocation2 + $0x738] sm:$0xff]  ;;  %10604 = vst [vmem:[#allocation209_spill] sm:$0xff] %v8696_v34  ;;  %v760_v57 = vld [vmem:[#allocation2 + $0x730] sm:$0xff] }
 0x211   :  { %v768_v25 = vld [vmem:[#allocation2 + $0x770] sm:$0xff] }
 0x212   :  { %10601 = vst [vmem:[#allocation206_spill] sm:$0xff] %v8688_v59  ;;  %10602 = vst [vmem:[#allocation207_spill] sm:$0xff] %v8690_v36  ;;  %v8708_v56 = vpack.c.bf16 %v768_v25, %v760_v57  ;;  %v10617_v57 = vld [vmem:[#allocation16_spill] sm:$0xff]  ;;  %v10618_v25 = vld [vmem:[#allocation17_spill] sm:$0xff] }
 0x213   :  { %5092 = vmatpush1.bf16.msra.mxu0 %v8670_v6  ;;  %5156 = vmatpush1.bf16.msra.mxu1 %v8672_v53  ;;  %v767_v6 = vld [vmem:[#allocation2 + $0x768] sm:$0xff]  ;;  %v769_v53 = vld [vmem:[#allocation2 + $0x778] sm:$0xff] }
 0x214   :  { %5094 = vmatprep.subr.bf16.mxu0 %v8676_v32  ;;  %5158 = vmatprep.subr.bf16.mxu1 %v8678_v63  ;;  %v8700_v39 = vpack.c.bf16 %v767_v6, %v759_v37  ;;  %v8702_v16 = vpack.c.bf16 %v769_v53, %v761_v21  ;;  %v775_v63 = vld [vmem:[#allocation2 + $0x7a8] sm:$0xff]  ;;  %v777_v32 = vld [vmem:[#allocation2 + $0x7b8] sm:$0xff]  ;;  %10608 = vst [vmem:[#allocation213_spill] sm:$0xff] %v8708_v56  ;;  %v782_v6 = vld [vmem:[#allocation2 + $0x7e0] sm:$0xff] }
 0x215   :  { %v776_v53 = vld [vmem:[#allocation2 + $0x7b0] sm:$0xff]  ;;  %v8718_v3 = vpack.c.bf16 %v782_v6, %v774_v1  ;;  %v10619_v1 = vmov 0.0  }
 0x216   :  { %10605 = vst [vmem:[#allocation210_spill] sm:$0xff] %v8700_v39  ;;  %10606 = vst [vmem:[#allocation211_spill] sm:$0xff] %v8702_v16  ;;  %v8720_v28 = vpack.c.bf16 %v784_v38, %v776_v53  ;;  %v10620_v6 = vld [vmem:[#allocation18_spill] sm:$0xff]  ;;  %v10621_v53 = vld [vmem:[#allocation19_spill] sm:$0xff] }
 0x217   :  { %5096 = vmatpush1.bf16.msra.mxu0 %v8682_v17  ;;  %5160 = vmatpush1.bf16.msra.mxu1 %v8684_v35  ;;  %v783_v17 = vld [vmem:[#allocation2 + $0x7e8] sm:$0xff]  ;;  %v785_v35 = vld [vmem:[#allocation2 + $0x7f8] sm:$0xff]  ;;  %10611 = vst [vmem:[#allocation216_spill] sm:$0xff] %v8718_v3 }
 0x218   :  { %5098 = vmatprep.subr.bf16.mxu0 %v8688_v59  ;;  %5162 = vmatprep.subr.bf16.mxu1 %v8690_v36  ;;  %v8712_v21 = vpack.c.bf16 %v783_v17, %v775_v63  ;;  %v8714_v37 = vpack.c.bf16 %v785_v35, %v777_v32  ;;  %10612 = vst [vmem:[#allocation217_spill] sm:$0xff] %v8720_v28  ;;  %v10613_v32 = vld [vmem:[#allocation12_spill] sm:$0xff]  ;;  %v10614_v63 = vld [vmem:[#allocation13_spill] sm:$0xff]  ;;  %v10615_v17 = vld [vmem:[#allocation14_spill] sm:$0xff] }
 0x219   :  { %v10616_v35 = vld [vmem:[#allocation15_spill] sm:$0xff]  ;;  %v10622_v38 = vld [vmem:[#allocation20_spill] sm:$0xff] }
 0x21a   :  { %10609 = vst [vmem:[#allocation214_spill] sm:$0xff] %v8712_v21  ;;  %10610 = vst [vmem:[#allocation215_spill] sm:$0xff] %v8714_v37 }
 0x21b   :  { %5100 = vmatpush1.bf16.msra.mxu0 %v8694_v60  ;;  %5164 = vmatpush1.bf16.msra.mxu1 %v8696_v34  ;;  %v10659_v34 = vld [vmem:[#allocation84_spill] sm:$0xff] }
 0x21c   :  { %5102 = vmatprep.subr.bf16.mxu0 %v8700_v39  ;;  %5166 = vmatprep.subr.bf16.mxu1 %v8702_v16  ;;  %v10657_v16 = vld [vmem:[#allocation52_spill] sm:$0xff]  ;;  %v10658_v39 = vld [vmem:[#allocation65_spill] sm:$0xff] }
 0x21f   :  { %5104 = vmatpush1.bf16.msra.mxu0 %v8706_v9  ;;  %5168 = vmatpush1.bf16.msra.mxu1 %v8708_v56  ;;  %v10654_v56 = vld [vmem:[#allocation51_spill] sm:$0xff] }
 0x220   :  { %5106 = vmatprep.subr.bf16.mxu0 %v8712_v21  ;;  %5170 = vmatprep.subr.bf16.mxu1 %v8714_v37 }
 0x223   :  { %5108 = vmatpush1.bf16.msra.mxu0 %v8718_v3  ;;  %5172 = vmatpush1.bf16.msra.mxu1 %v8720_v28  ;;  %v10651_v3 = vld [vmem:[#allocation53_spill] sm:$0xff] }
 0x224   :  { %5174 = vmatprep.subr.bf16.mxu0 %v10613_v32  ;;  %5206 = vmatprep.subr.bf16.mxu1 %v10614_v63  ;;  %v10623_v63 = vld [vmem:[#allocation21_spill] sm:$0xff]  ;;  %v10629_v32 = vld [vmem:[#allocation27_spill] sm:$0xff] }
 0x226   :  { %993 = vmatmul.mubr.f32.vlgmr.msra.gmra.mrb[4].mxu0 %v8153_v23  ;;  %1064 = vmatmul.mubr.f32.vlgmr.msra.gmra.mrb[4].mxu1 %v8153_v23  ;;  %v10624_v23 = vld [vmem:[#allocation22_spill] sm:$0xff] }
 0x227   :  { %5176 = vmatpush1.bf16.msra.mxu0 %v10615_v17  ;;  %5208 = vmatpush1.bf16.msra.mxu1 %v10616_v35  ;;  %v10625_v17 = vld [vmem:[#allocation23_spill] sm:$0xff]  ;;  %v10626_v35 = vld [vmem:[#allocation24_spill] sm:$0xff] }
 0x228   :  { %5178 = vmatprep.subr.bf16.mxu0 %v10617_v57  ;;  %5210 = vmatprep.subr.bf16.mxu1 %v10618_v25  ;;  %v10627_v57 = vld [vmem:[#allocation25_spill] sm:$0xff]  ;;  %v10628_v25 = vld [vmem:[#allocation26_spill] sm:$0xff] }
 0x229   :  { %1199 = vmatprep.mubr.f32.mxu0 %v10619_v1  ;;  %1270 = vmatprep.mubr.f32.mxu1 %v10619_v1  ;;  %v10630_v1 = vld [vmem:[#allocation28_spill] sm:$0xff] }
 0x22b   :  { %5180 = vmatpush1.bf16.msra.mxu0 %v10620_v6  ;;  %5212 = vmatpush1.bf16.msra.mxu1 %v10621_v53  ;;  %v10631_v6 = vld [vmem:[#allocation29_spill] sm:$0xff]  ;;  %v10632_v53 = vld [vmem:[#allocation30_spill] sm:$0xff] }
 0x22c   :  { %5182 = vmatprep.subr.bf16.mxu0 %v10622_v38  ;;  %5214 = vmatprep.subr.bf16.mxu1 %v10623_v63  ;;  %v10633_v38 = vld [vmem:[#allocation31_spill] sm:$0xff]  ;;  %v10634_v63 = vld [vmem:[#allocation32_spill] sm:$0xff] }
 0x22f   :  { %5184 = vmatpush1.bf16.msra.mxu0 %v10624_v23  ;;  %5216 = vmatpush1.bf16.msra.mxu1 %v10625_v17  ;;  %v10635_v23 = vld [vmem:[#allocation33_spill] sm:$0xff]  ;;  %v10636_v17 = vld [vmem:[#allocation34_spill] sm:$0xff] }
 0x230   :  { %5186 = vmatprep.subr.bf16.mxu0 %v10626_v35  ;;  %5218 = vmatprep.subr.bf16.mxu1 %v10627_v57  ;;  %v10637_v35 = vld [vmem:[#allocation35_spill] sm:$0xff]  ;;  %v10638_v57 = vld [vmem:[#allocation36_spill] sm:$0xff] }
 0x233   :  { %5188 = vmatpush1.bf16.msra.mxu0 %v10628_v25  ;;  %5220 = vmatpush1.bf16.msra.mxu1 %v10629_v32  ;;  %v10639_v25 = vld [vmem:[#allocation37_spill] sm:$0xff]  ;;  %v10640_v32 = vld [vmem:[#allocation38_spill] sm:$0xff] }
 0x234   :  { %5190 = vmatprep.subr.bf16.mxu0 %v10630_v1  ;;  %5222 = vmatprep.subr.bf16.mxu1 %v10631_v6  ;;  %v10641_v1 = vld [vmem:[#allocation39_spill] sm:$0xff]  ;;  %v10642_v6 = vld [vmem:[#allocation40_spill] sm:$0xff] }
 0x237   :  { %5192 = vmatpush1.bf16.msra.mxu0 %v10632_v53  ;;  %5224 = vmatpush1.bf16.msra.mxu1 %v10633_v38  ;;  %v10643_v53 = vld [vmem:[#allocation41_spill] sm:$0xff]  ;;  %v10644_v38 = vld [vmem:[#allocation42_spill] sm:$0xff] }
 0x238   :  { %5194 = vmatprep.subr.bf16.mxu0 %v10634_v63  ;;  %5226 = vmatprep.subr.bf16.mxu1 %v10635_v23  ;;  %v10645_v63 = vld [vmem:[#allocation43_spill] sm:$0xff]  ;;  %v10646_v23 = vld [vmem:[#allocation44_spill] sm:$0xff] }
 0x23b   :  { %5196 = vmatpush1.bf16.msra.mxu0 %v10636_v17  ;;  %5228 = vmatpush1.bf16.msra.mxu1 %v10637_v35  ;;  %v10647_v17 = vld [vmem:[#allocation45_spill] sm:$0xff]  ;;  %v10648_v35 = vld [vmem:[#allocation50_spill] sm:$0xff] }
 0x23c   :  { %5198 = vmatprep.subr.bf16.mxu0 %v10638_v57  ;;  %5230 = vmatprep.subr.bf16.mxu1 %v10639_v25  ;;  %v10649_v57 = vld [vmem:[#allocation54_spill] sm:$0xff]  ;;  %v10650_v25 = vld [vmem:[#allocation55_spill] sm:$0xff] }
 0x23d   :  { %v522_v28 = vadd.f32 %v10649_v57, %v10648_v35  ;;  %v525_v57 = vadd.f32 %v10658_v39, %v10657_v16 }
 0x23f   :  { %5200 = vmatpush1.bf16.msra.mxu0 %v10640_v32  ;;  %5232 = vmatpush1.bf16.msra.mxu1 %v10641_v1  ;;  %v526_v32 = vadd.f32 %v10650_v25, %v10648_v35  ;;  %v10652_v1 = vld [vmem:[#allocation61_spill] sm:$0xff]  ;;  %v529_v25 = vadd.f32 %v10659_v34, %v10657_v16 }
 0x240   :  { %5202 = vmatprep.subr.bf16.mxu0 %v10642_v6  ;;  %5234 = vmatprep.subr.bf16.mxu1 %v10643_v53  ;;  %v524_v37 = vadd.f32 %v10652_v1, %v10651_v3  ;;  %v10653_v6 = vld [vmem:[#allocation62_spill] sm:$0xff] }
 0x241   :  { %v528_v53 = vadd.f32 %v10653_v6, %v10651_v3 }
 0x243   :  { %5204 = vmatpush1.bf16.msra.mxu0 %v10644_v38  ;;  %5236 = vmatpush1.bf16.msra.mxu1 %v10645_v63  ;;  %v10655_v63 = vld [vmem:[#allocation63_spill] sm:$0xff] }
 0x244   :  { %5238 = vmatprep.subr.bf16.mxu0 %v10646_v23  ;;  %5302 = vmatprep.subr.bf16.mxu1 %v10647_v17  ;;  %v523_v9 = vadd.f32 %v10655_v63, %v10654_v56  ;;  %v10656_v23 = vld [vmem:[#allocation64_spill] sm:$0xff] }
 0x245   :  { %v527_v17 = vadd.f32 %v10656_v23, %v10654_v56 }
 0x2b9   :  { %v852_v21 = vpop.f32.mrb[2].mxu0  ;;  %v923_v38 = vpop.f32.mrb[2].mxu1 }
 0x2ba   :  { %v1074_v35 = vrot.slane %v852_v21, 1  ;;  %v1086_v60 = vadd.f32 %v852_v21, %v522_v28  ;;  %v1076_v1 = vrot.slane %v923_v38, 1  ;;  %v1088_v36 = vadd.f32 %v923_v38, %v524_v37  ;;  %v854_v59 = vpop.f32.mrb[3].mxu0  ;;  %v925_v6 = vpop.f32.mrb[3].mxu1 }
 0x2bb   :  { %v1075_v3 = vrot.slane %v854_v59, 1  ;;  %v1087_v10 = vadd.f32 %v854_v59, %v523_v9  ;;  %v1077_v52 = vrot.slane %v925_v6, 1  ;;  %v1089_v58 = vadd.f32 %v925_v6, %v525_v57  ;;  %v10661_v57 = vld [vmem:[#allocation79_spill] sm:$0xff] }
 0x2bc   :  { %v1090_v63 = vadd.f32 %v1074_v35, %v526_v32  ;;  %v1094_v22 = vmul.f32 0.5, %v1086_v60  ;;  %v1092_v18 = vadd.f32 %v1076_v1, %v528_v53  ;;  %v1096_v35 = vmul.f32 0.5, %v1088_v36 }
 0x2bd   :  { %v1091_v23 = vadd.f32 %v1075_v3, %v527_v17  ;;  %v1093_v56 = vadd.f32 %v1077_v52, %v529_v25  ;;  %v1095_v39 = vmul.f32 0.5, %v1087_v10 }
 0x2be   :  { %v1097_v19 = vmul.f32 0.5, %v1090_v63  ;;  %7259 = vtanh.f32 %v1094_v22  ;;  %v1099_v59 = vmul.f32 0.5, %v1092_v18 }
 0x2bf   :  { %v1098_v2 = vmul.f32 0.5, %v1091_v23 }
 0x2c0   :  { %7261 = vtanh.f32 %v1097_v19 }
 0x2c1   :  { %7263 = vtanh.f32 %v1089_v58 }
 0x2c2   :  { %7265 = vtanh.f32 %v1095_v39 }
 0x2c3   :  { %7267 = vtanh.f32 %v1098_v2 }
 0x2c4   :  { %7269 = vtanh.f32 %v1093_v56  ;;  %v10660_v56 = vld [vmem:[#allocation83_spill] sm:$0xff] }
 0x2c5   :  { %7271 = vtanh.f32 %v1099_v59 }
 0x2c6   :  { %7273 = vtanh.f32 %v1096_v35  ;;  %v10663_v35 = vld [vmem:[#allocation57_spill] sm:$0xff] }
 0x2c8   :  { %v7260_v34 = vpop.eup %7259 }
 0x2c9   :  { %v1106_v21 = vmul.f32 0.5, %v7260_v34 }
 0x2ca   :  { %v7262_v37 = vpop.eup %7261 }
 0x2cb   :  { %v7264_v9 = vpop.eup %7263  ;;  %v1109_v28 = vmul.f32 0.5, %v7262_v37  ;;  %v1112_v32 = vadd.f32 0.5, %v1106_v21 }
 0x2cc   :  { %v7266_v60 = vpop.eup %7265 }
 0x2cd   :  { %v7268_v3 = vpop.eup %7267  ;;  %v1115_v52 = vadd.f32 0.5, %v1109_v28  ;;  %v1107_v17 = vmul.f32 0.5, %v7266_v60  ;;  %v1122_v22 = vmul.f32 %v7264_v9, %v1112_v32  ;;  %v10662_v60 = vld [vmem:[#allocation56_spill] sm:$0xff] }
 0x2ce   :  { %v7270_v10 = vpop.eup %7269  ;;  %v1110_v19 = vmul.f32 0.5, %v7268_v3  ;;  %v10664_v3 = vld [vmem:[#allocation58_spill] sm:$0xff] }
 0x2cf   :  { %v1113_v58 = vadd.f32 0.5, %v1107_v17  ;;  %v1123_v53 = vmul.f32 %v7270_v10, %v1115_v52  ;;  %v7272_v36 = vpop.eup %7271  ;;  %v10665_v52 = vld [vmem:[#allocation59_spill] sm:$0xff]  ;;  %v10666_v17 = vld [vmem:[#allocation60_spill] sm:$0xff] }
 0x2d0   :  { %v1116_v2 = vadd.f32 0.5, %v1110_v19  ;;  %v7274_v6 = vpop.eup %7273  ;;  %v1111_v63 = vmul.f32 0.5, %v7272_v36  ;;  %v10668_v10 = vld [vmem:[#allocation67_spill] sm:$0xff]  ;;  %v10669_v19 = vld [vmem:[#allocation68_spill] sm:$0xff] }
 0x2d1   :  { %v1120_v38 = vmul.f32 %v1113_v58, %v10660_v56  ;;  %v1108_v23 = vmul.f32 0.5, %v7274_v6  ;;  %v10670_v58 = vld [vmem:[#allocation69_spill] sm:$0xff]  ;;  %v10673_v56 = vld [vmem:[#allocation136_spill] sm:$0xff] }
 0x2d2   :  { %v1121_v18 = vmul.f32 %v1116_v2, %v10661_v57  ;;  %v1117_v34 = vadd.f32 0.5, %v1111_v63  ;;  %v10672_v2 = vld [vmem:[#allocation71_spill] sm:$0xff]  ;;  %v10675_v57 = vld [vmem:[#allocation138_spill] sm:$0xff]  ;;  %v10677_v36 = vld [vmem:[#allocation140_spill] sm:$0xff] }
 0x2d3   :  { %v8782_v25 = vadd.f32 %v1122_v22, %v1120_v38  ;;  %v1114_v37 = vadd.f32 0.5, %v1108_v23  ;;  %v10667_v22 = vld [vmem:[#allocation66_spill] sm:$0xff]  ;;  %v10674_v38 = vld [vmem:[#allocation137_spill] sm:$0xff]  ;;  %v10680_v23 = vld [vmem:[#allocation143_spill] sm:$0xff] }
 0x2d4   :  { %v8784_v1 = vadd.f32 %v1123_v53, %v1121_v18  ;;  %v10671_v53 = vld [vmem:[#allocation70_spill] sm:$0xff]  ;;  %v10676_v18 = vld [vmem:[#allocation139_spill] sm:$0xff]  ;;  %v10678_v6 = vld [vmem:[#allocation141_spill] sm:$0xff] }
 0x2d5   :  { %7275 = vtanh.f32 %v8782_v25  ;;  %v10679_v63 = vld [vmem:[#allocation142_spill] sm:$0xff] }
 0x2d6   :  { %7277 = vtanh.f32 %v8784_v1 }
 0x2df   :  { %v7276_v39 = vpop.eup %7275 }
 0x2e0   :  { %v7278_v21 = vpop.eup %7277  ;;  %v1128_v9 = vmul.f32 %v7276_v39, %v1114_v37  ;;  %v10681_v39 = vld [vmem:[#allocation144_spill] sm:$0xff]  ;;  %v10684_v37 = vld [vmem:[#allocation147_spill] sm:$0xff] }
 0x2e1   :  { %v1129_v59 = vmul.f32 %v7278_v21, %v1117_v34  ;;  %v10682_v34 = vld [vmem:[#allocation145_spill] sm:$0xff]  ;;  %v10683_v21 = vld [vmem:[#allocation146_spill] sm:$0xff] }
 0x2e3   :  { %v1132_v28 = vrot.slane %v1129_v59, 7  ;;  %v10685_v59 = vld [vmem:[#allocation148_spill] sm:$0xff] }
 0x2e5   :  { %v8789_v32 = vsel %vm315_vm0, %v1132_v28, %v1128_v9  ;;  %v10686_v9 = vld [vmem:[#allocation149_spill] sm:$0xff]  ;;  %v10687_v28 = vld [vmem:[#allocation150_spill] sm:$0xff] }
 0x2e6   :  { %1200 = vmatmul.mubr.f32.vlgmr.msra.gmra.mrb[4].mxu0 %v8789_v32  ;;  %1271 = vmatmul.mubr.f32.vlgmr.msra.gmra.mrb[4].mxu1 %v8789_v32 }
 0x2e7   :  { %5240 = vmatpush1.bf16.msra.mxu0 %v10662_v60  ;;  %5304 = vmatpush1.bf16.msra.mxu1 %v10663_v35 }
 0x2e8   :  { %5242 = vmatprep.subr.bf16.mxu0 %v10664_v3  ;;  %5306 = vmatprep.subr.bf16.mxu1 %v7930_v15 }
 0x2eb   :  { %5244 = vmatpush1.bf16.msra.mxu0 %v10665_v52  ;;  %5308 = vmatpush1.bf16.msra.mxu1 %v10666_v17 }
 0x2ec   :  { %5246 = vmatprep.subr.bf16.mxu0 %v10667_v22  ;;  %5310 = vmatprep.subr.bf16.mxu1 %v10668_v10 }
 0x2ef   :  { %5248 = vmatpush1.bf16.msra.mxu0 %v10669_v19  ;;  %5312 = vmatpush1.bf16.msra.mxu1 %v10670_v58 }
 0x2f0   :  { %5250 = vmatprep.subr.bf16.mxu0 %v10671_v53  ;;  %5314 = vmatprep.subr.bf16.mxu1 %v10672_v2 }
 0x2f3   :  { %5252 = vmatpush1.bf16.msra.mxu0 %v10475_v54  ;;  %5316 = vmatpush1.bf16.msra.mxu1 %v10476_v61 }
 0x2f4   :  { %5254 = vmatprep.subr.bf16.mxu0 %v10477_v24  ;;  %5318 = vmatprep.subr.bf16.mxu1 %v10479_v20 }
 0x2f7   :  { %5256 = vmatpush1.bf16.msra.mxu0 %v10488_v12  ;;  %5320 = vmatpush1.bf16.msra.mxu1 %v10489_v51 }
 0x2f8   :  { %5258 = vmatprep.subr.bf16.mxu0 %v10490_v44  ;;  %5322 = vmatprep.subr.bf16.mxu1 %v10491_v4 }
 0x2fb   :  { %5260 = vmatpush1.bf16.msra.mxu0 %v10500_v47  ;;  %5324 = vmatpush1.bf16.msra.mxu1 %v10501_v33 }
 0x2fc   :  { %5262 = vmatprep.subr.bf16.mxu0 %v10502_v11  ;;  %5326 = vmatprep.subr.bf16.mxu1 %v10503_v55 }
 0x2ff   :  { %5264 = vmatpush1.bf16.msra.mxu0 %v8375_v29  ;;  %5328 = vmatpush1.bf16.msra.mxu1 %v8383_v27 }
 0x300   :  { %5266 = vmatprep.subr.bf16.mxu0 %v8402_v62  ;;  %5330 = vmatprep.subr.bf16.mxu1 %v8404_v31 }
 0x303   :  { %5268 = vmatpush1.bf16.msra.mxu0 %v8406_v13  ;;  %5332 = vmatpush1.bf16.msra.mxu1 %v8409_v5 }
 0x304   :  { %5270 = vmatprep.subr.bf16.mxu0 %v8414_v43  ;;  %5334 = vmatprep.subr.bf16.mxu1 %v8416_v7 }
 0x307   :  { %5272 = vmatpush1.bf16.msra.mxu0 %v8418_v45  ;;  %5336 = vmatpush1.bf16.msra.mxu1 %v8421_v8 }
 0x308   :  { %5274 = vmatprep.subr.bf16.mxu0 %v8426_v14  ;;  %5338 = vmatprep.subr.bf16.mxu1 %v8428_v30 }
 0x30b   :  { %5276 = vmatpush1.bf16.msra.mxu0 %v8430_v48  ;;  %5340 = vmatpush1.bf16.msra.mxu1 %v8433_v0 }
 0x30c   :  { %5278 = vmatprep.subr.bf16.mxu0 %v8438_v40  ;;  %5342 = vmatprep.subr.bf16.mxu1 %v8440_v26 }
 0x30f   :  { %5280 = vmatpush1.bf16.msra.mxu0 %v8442_v49  ;;  %5344 = vmatpush1.bf16.msra.mxu1 %v8445_v41 }
 0x310   :  { %5282 = vmatprep.subr.bf16.mxu0 %v8450_v46  ;;  %5346 = vmatprep.subr.bf16.mxu1 %v8452_v50 }
 0x313   :  { %5284 = vmatpush1.bf16.msra.mxu0 %v8454_v42  ;;  %5348 = vmatpush1.bf16.msra.mxu1 %v10673_v56 }
 0x314   :  { %5286 = vmatprep.subr.bf16.mxu0 %v10674_v38  ;;  %5350 = vmatprep.subr.bf16.mxu1 %v10675_v57  ;;  %v10693_v38 = vld [vmem:[#allocation47_spill] sm:$0xff] }
 0x317   :  { %5288 = vmatpush1.bf16.msra.mxu0 %v10676_v18  ;;  %5352 = vmatpush1.bf16.msra.mxu1 %v10677_v36  ;;  %v10688_v36 = vld [vmem:[#allocation151_spill] sm:$0xff]  ;;  %v10692_v18 = vld [vmem:[#allocation46_spill] sm:$0xff] }
 0x318   :  { %5290 = vmatprep.subr.bf16.mxu0 %v10678_v6  ;;  %5354 = vmatprep.subr.bf16.mxu1 %v10679_v63  ;;  %v10689_v6 = vld [vmem:[#allocation152_spill] sm:$0xff]  ;;  %v10690_v63 = vld [vmem:[#allocation153_spill] sm:$0xff] }
 0x31b   :  { %5292 = vmatpush1.bf16.msra.mxu0 %v10680_v23  ;;  %5356 = vmatpush1.bf16.msra.mxu1 %v10681_v39  ;;  %v10691_v23 = vld [vmem:[#allocation154_spill] sm:$0xff] }
 0x31c   :  { %5294 = vmatprep.subr.bf16.mxu0 %v10682_v34  ;;  %5358 = vmatprep.subr.bf16.mxu1 %v10683_v21 }
 0x31f   :  { %5296 = vmatpush1.bf16.msra.mxu0 %v10684_v37  ;;  %5360 = vmatpush1.bf16.msra.mxu1 %v10685_v59 }
 0x320   :  { %5298 = vmatprep.subr.bf16.mxu0 %v10686_v9  ;;  %5362 = vmatprep.subr.bf16.mxu1 %v10687_v28  ;;  %v10694_v28 = vld [vmem:[#allocation48_spill] sm:$0xff] }
 0x323   :  { %5300 = vmatpush1.bf16.msra.mxu0 %v10688_v36  ;;  %5364 = vmatpush1.bf16.msra.mxu1 %v10689_v6  ;;  %v10695_v6 = vld [vmem:[#allocation49_spill] sm:$0xff] }
 0x324   :  { %5366 = vmatprep.subr.bf16.mxu0 %v10690_v63  ;;  %5430 = vmatprep.subr.bf16.mxu1 %v10691_v23 }
 0x3b9   :  { %v1201_v39 = vpop.f32.mrb[4].mxu0  ;;  %v1272_v34 = vpop.f32.mrb[4].mxu1 }
 0x3ba   :  { %v1277_v21 = vadd.f32 %v1201_v39, %v10692_v18  ;;  %v1203_v57 = vpop.f32.mrb[5].mxu0  ;;  %v1274_v37 = vpop.f32.mrb[5].mxu1  ;;  %v1279_v36 = vadd.f32 %v1272_v34, %v10695_v6 }
 0x3bb   :  { %v1278_v59 = vadd.f32 %v1203_v57, %v10693_v38  ;;  %v1280_v42 = vadd.f32 %v1274_v37, %v10694_v28  ;;  %v10696_v57 = vld [vmem:[#allocation155_spill] sm:$0xff] }
 0x3bc   :  { %v1281_v56 = vmul.f32 0.5, %v1277_v21  ;;  %v1283_v63 = vmul.f32 0.5, %v1279_v36 }
 0x3bd   :  { %v1282_v9 = vmul.f32 0.5, %v1278_v59 }
 0x3be   :  { %7279 = vtanh.f32 %v1281_v56 }
 0x3bf   :  { %7281 = vtanh.f32 %v1282_v9  ;;  %v10706_v9 = vld [vmem:[#allocation164_spill] sm:$0xff] }
 0x3c0   :  { %7283 = vtanh.f32 %v1280_v42 }
 0x3c1   :  { %7285 = vtanh.f32 %v1283_v63  ;;  %v10704_v63 = vld [vmem:[#allocation162_spill] sm:$0xff] }
 0x3c8   :  { %v7280_v50 = vpop.eup %7279 }
 0x3c9   :  { %v1287_v23 = vmul.f32 0.5, %v7280_v50  ;;  %v7282_v46 = vpop.eup %7281  ;;  %v10702_v50 = vld [vmem:[#allocation160_spill] sm:$0xff] }
 0x3ca   :  { %v1288_v39 = vmul.f32 0.5, %v7282_v46  ;;  %v7284_v18 = vpop.eup %7283  ;;  %v10698_v46 = vld [vmem:[#allocation156_spill] sm:$0xff] }
 0x3cb   :  { %v1290_v41 = vadd.f32 0.5, %v1287_v23  ;;  %v7286_v56 = vpop.eup %7285  ;;  %v10705_v23 = vld [vmem:[#allocation163_spill] sm:$0xff] }
 0x3cc   :  { %v1291_v49 = vadd.f32 0.5, %v1288_v39  ;;  %v1289_v42 = vmul.f32 0.5, %v7286_v56  ;;  %v10707_v39 = vld [vmem:[#allocation165_spill] sm:$0xff]  ;;  %v10710_v56 = vld [vmem:[#allocation168_spill] sm:$0xff] }
 0x3cd   :  { %v1295_v26 = vmul.f32 %v7284_v18, %v1290_v41  ;;  %v10699_v41 = vld [vmem:[#allocation157_spill] sm:$0xff] }
 0x3ce   :  { %v1294_v21 = vmul.f32 %v1291_v49, %v10696_v57  ;;  %v1292_v37 = vadd.f32 0.5, %v1289_v42  ;;  %v10700_v49 = vld [vmem:[#allocation158_spill] sm:$0xff]  ;;  %v10703_v18 = vld [vmem:[#allocation161_spill] sm:$0xff] }
 0x3cf   :  { %v10708_v57 = vld [vmem:[#allocation166_spill] sm:$0xff]  ;;  %v10711_v42 = vld [vmem:[#allocation169_spill] sm:$0xff] }
 0x3d0   :  { %v8862_v59 = vadd.f32 %v1295_v26, %v1294_v21  ;;  %v10701_v26 = vld [vmem:[#allocation159_spill] sm:$0xff] }
 0x3d1   :  { %v10709_v21 = vld [vmem:[#allocation167_spill] sm:$0xff] }
 0x3d2   :  { %10697 = vst [vmem:[#allocation54_spill] sm:$0xff] %v8862_v59  ;;  %7287 = vtanh.f32 %v8862_v59  ;;  %v10805_v59 = vld [vmem:[#allocation95_spill] sm:$0xff] }
 0x3dc   :  { %v7288_v34 = vpop.eup %7287 }
 0x3dd   :  { %v1298_v36 = vmul.f32 %v7288_v34, %v1292_v37  ;;  %v10712_v37 = vld [vmem:[#allocation170_spill] sm:$0xff]  ;;  %v10713_v34 = vld [vmem:[#allocation171_spill] sm:$0xff] }
 0x3df   :  { %1415 = vmatprep.mubr.f32.mxu0 %v1298_v36  ;;  %1486 = vmatprep.mubr.f32.mxu1 %v1298_v36 }
 0x3e0   :  { %1416 = vmatmul.mubr.f32.vlgmr.msra.gmra.mrb[6].mxu0 %v8789_v32  ;;  %1487 = vmatmul.mubr.f32.vlgmr.msra.gmra.mrb[6].mxu1 %v8789_v32 }
 0x3e1   :  { %5368 = vmatpush1.bf16.msra.mxu0 %v10698_v46  ;;  %5432 = vmatpush1.bf16.msra.mxu1 %v10699_v41  ;;  %v10804_v46 = vld [vmem:[#allocation93_spill] sm:$0xff] }
 0x3e2   :  { %1557 = vmatprep.mubr.f32.mxu0 %v1298_v36  ;;  %1628 = vmatprep.mubr.f32.mxu1 %v1298_v36  ;;  %v10714_v36 = vld [vmem:[#allocation172_spill] sm:$0xff] }
 0x3e3   :  { %5370 = vmatprep.subr.bf16.mxu0 %v10700_v49  ;;  %5434 = vmatprep.subr.bf16.mxu1 %v10701_v26  ;;  %v10801_v49 = vld [vmem:[#allocation51_spill] sm:$0xff] }
 0x3e5   :  { %5372 = vmatpush1.bf16.msra.mxu0 %v10702_v50  ;;  %5436 = vmatpush1.bf16.msra.mxu1 %v10703_v18  ;;  %v10798_v18 = vld [vmem:[#allocation53_spill] sm:$0xff] }
 0x3e6   :  { %5374 = vmatprep.subr.bf16.mxu0 %v10704_v63  ;;  %5438 = vmatprep.subr.bf16.mxu1 %v10705_v23  ;;  %v10715_v63 = vld [vmem:[#allocation173_spill] sm:$0xff]  ;;  %v10716_v23 = vld [vmem:[#allocation174_spill] sm:$0xff] }
 0x3e9   :  { %5376 = vmatpush1.bf16.msra.mxu0 %v10706_v9  ;;  %5440 = vmatpush1.bf16.msra.mxu1 %v10707_v39  ;;  %v10717_v9 = vld [vmem:[#allocation175_spill] sm:$0xff]  ;;  %v10718_v39 = vld [vmem:[#allocation176_spill] sm:$0xff] }
 0x3ea   :  { %5378 = vmatprep.subr.bf16.mxu0 %v10708_v57  ;;  %5442 = vmatprep.subr.bf16.mxu1 %v10709_v21  ;;  %v10719_v57 = vld [vmem:[#allocation177_spill] sm:$0xff]  ;;  %v10720_v21 = vld [vmem:[#allocation178_spill] sm:$0xff] }
 0x3ed   :  { %5380 = vmatpush1.bf16.msra.mxu0 %v10710_v56  ;;  %5444 = vmatpush1.bf16.msra.mxu1 %v10711_v42  ;;  %v10721_v56 = vld [vmem:[#allocation179_spill] sm:$0xff]  ;;  %v10722_v42 = vld [vmem:[#allocation180_spill] sm:$0xff] }
 0x3ee   :  { %5382 = vmatprep.subr.bf16.mxu0 %v10712_v37  ;;  %5446 = vmatprep.subr.bf16.mxu1 %v10713_v34  ;;  %v10723_v37 = vld [vmem:[#allocation181_spill] sm:$0xff]  ;;  %v10724_v34 = vld [vmem:[#allocation182_spill] sm:$0xff] }
 0x3f1   :  { %5384 = vmatpush1.bf16.msra.mxu0 %v10714_v36  ;;  %5448 = vmatpush1.bf16.msra.mxu1 %v10715_v63  ;;  %v10725_v36 = vld [vmem:[#allocation183_spill] sm:$0xff]  ;;  %v10726_v63 = vld [vmem:[#allocation184_spill] sm:$0xff] }
 0x3f2   :  { %5386 = vmatprep.subr.bf16.mxu0 %v10716_v23  ;;  %5450 = vmatprep.subr.bf16.mxu1 %v10717_v9  ;;  %v10727_v23 = vld [vmem:[#allocation185_spill] sm:$0xff]  ;;  %v10728_v9 = vld [vmem:[#allocation186_spill] sm:$0xff] }
 0x3f5   :  { %5388 = vmatpush1.bf16.msra.mxu0 %v10718_v39  ;;  %5452 = vmatpush1.bf16.msra.mxu1 %v10719_v57  ;;  %v10729_v39 = vld [vmem:[#allocation187_spill] sm:$0xff]  ;;  %v10730_v57 = vld [vmem:[#allocation188_spill] sm:$0xff] }
 0x3f6   :  { %5390 = vmatprep.subr.bf16.mxu0 %v10720_v21  ;;  %5454 = vmatprep.subr.bf16.mxu1 %v10721_v56  ;;  %v10731_v21 = vld [vmem:[#allocation189_spill] sm:$0xff]  ;;  %v10732_v56 = vld [vmem:[#allocation190_spill] sm:$0xff] }
 0x3f9   :  { %5392 = vmatpush1.bf16.msra.mxu0 %v10722_v42  ;;  %5456 = vmatpush1.bf16.msra.mxu1 %v10723_v37  ;;  %v10733_v42 = vld [vmem:[#allocation191_spill] sm:$0xff]  ;;  %v10734_v37 = vld [vmem:[#allocation192_spill] sm:$0xff] }
 0x3fa   :  { %5394 = vmatprep.subr.bf16.mxu0 %v10724_v34  ;;  %5458 = vmatprep.subr.bf16.mxu1 %v10725_v36  ;;  %v10735_v34 = vld [vmem:[#allocation193_spill] sm:$0xff]  ;;  %v10736_v36 = vld [vmem:[#allocation194_spill] sm:$0xff] }
 0x3fd   :  { %5396 = vmatpush1.bf16.msra.mxu0 %v10726_v63  ;;  %5460 = vmatpush1.bf16.msra.mxu1 %v10727_v23  ;;  %v10737_v63 = vld [vmem:[#allocation195_spill] sm:$0xff]  ;;  %v10738_v23 = vld [vmem:[#allocation196_spill] sm:$0xff] }
 0x3fe   :  { %5398 = vmatprep.subr.bf16.mxu0 %v10728_v9  ;;  %5462 = vmatprep.subr.bf16.mxu1 %v10729_v39  ;;  %v10739_v9 = vld [vmem:[#allocation197_spill] sm:$0xff]  ;;  %v10740_v39 = vld [vmem:[#allocation198_spill] sm:$0xff] }
 0x401   :  { %5400 = vmatpush1.bf16.msra.mxu0 %v10730_v57  ;;  %5464 = vmatpush1.bf16.msra.mxu1 %v10731_v21  ;;  %v10741_v57 = vld [vmem:[#allocation199_spill] sm:$0xff]  ;;  %v10742_v21 = vld [vmem:[#allocation200_spill] sm:$0xff] }
 0x402   :  { %5402 = vmatprep.subr.bf16.mxu0 %v10732_v56  ;;  %5466 = vmatprep.subr.bf16.mxu1 %v10733_v42  ;;  %v10743_v56 = vld [vmem:[#allocation201_spill] sm:$0xff]  ;;  %v10744_v42 = vld [vmem:[#allocation202_spill] sm:$0xff] }
 0x405   :  { %5404 = vmatpush1.bf16.msra.mxu0 %v10734_v37  ;;  %5468 = vmatpush1.bf16.msra.mxu1 %v10735_v34  ;;  %v10745_v37 = vld [vmem:[#allocation203_spill] sm:$0xff]  ;;  %v10746_v34 = vld [vmem:[#allocation204_spill] sm:$0xff] }
 0x406   :  { %5406 = vmatprep.subr.bf16.mxu0 %v10736_v36  ;;  %5470 = vmatprep.subr.bf16.mxu1 %v10737_v63  ;;  %v10747_v36 = vld [vmem:[#allocation205_spill] sm:$0xff]  ;;  %v10748_v63 = vld [vmem:[#allocation206_spill] sm:$0xff] }
 0x409   :  { %5408 = vmatpush1.bf16.msra.mxu0 %v10738_v23  ;;  %5472 = vmatpush1.bf16.msra.mxu1 %v10739_v9  ;;  %v10749_v23 = vld [vmem:[#allocation207_spill] sm:$0xff]  ;;  %v10750_v9 = vld [vmem:[#allocation208_spill] sm:$0xff] }
 0x40a   :  { %5410 = vmatprep.subr.bf16.mxu0 %v10740_v39  ;;  %5474 = vmatprep.subr.bf16.mxu1 %v10741_v57  ;;  %v10751_v39 = vld [vmem:[#allocation209_spill] sm:$0xff]  ;;  %v10752_v57 = vld [vmem:[#allocation210_spill] sm:$0xff] }
 0x40d   :  { %5412 = vmatpush1.bf16.msra.mxu0 %v10742_v21  ;;  %5476 = vmatpush1.bf16.msra.mxu1 %v10743_v56  ;;  %v10753_v21 = vld [vmem:[#allocation211_spill] sm:$0xff]  ;;  %v10754_v56 = vld [vmem:[#allocation212_spill] sm:$0xff] }
 0x40e   :  { %5414 = vmatprep.subr.bf16.mxu0 %v10744_v42  ;;  %5478 = vmatprep.subr.bf16.mxu1 %v10745_v37  ;;  %v10755_v42 = vld [vmem:[#allocation213_spill] sm:$0xff]  ;;  %v10756_v37 = vld [vmem:[#allocation214_spill] sm:$0xff] }
 0x411   :  { %5416 = vmatpush1.bf16.msra.mxu0 %v10746_v34  ;;  %5480 = vmatpush1.bf16.msra.mxu1 %v10747_v36  ;;  %v10757_v34 = vld [vmem:[#allocation215_spill] sm:$0xff]  ;;  %v10758_v36 = vld [vmem:[#allocation216_spill] sm:$0xff] }
 0x412   :  { %5418 = vmatprep.subr.bf16.mxu0 %v10748_v63  ;;  %5482 = vmatprep.subr.bf16.mxu1 %v10749_v23  ;;  %v10759_v63 = vld [vmem:[#allocation217_spill] sm:$0xff]  ;;  %v10760_v23 = vld [vmem:[#allocation12_spill] sm:$0xff] }
 0x415   :  { %5420 = vmatpush1.bf16.msra.mxu0 %v10750_v9  ;;  %5484 = vmatpush1.bf16.msra.mxu1 %v10751_v39  ;;  %v10761_v9 = vld [vmem:[#allocation13_spill] sm:$0xff] }
 0x416   :  { %5422 = vmatprep.subr.bf16.mxu0 %v10752_v57  ;;  %5486 = vmatprep.subr.bf16.mxu1 %v10753_v21  ;;  %v10762_v21 = vld [vmem:[#allocation14_spill] sm:$0xff]  ;;  %v10776_v57 = vld [vmem:[#allocation27_spill] sm:$0xff] }
 0x419   :  { %5424 = vmatpush1.bf16.msra.mxu0 %v10754_v56  ;;  %5488 = vmatpush1.bf16.msra.mxu1 %v10755_v42  ;;  %v10763_v56 = vld [vmem:[#allocation15_spill] sm:$0xff]  ;;  %v10764_v42 = vld [vmem:[#allocation16_spill] sm:$0xff] }
 0x41a   :  { %5426 = vmatprep.subr.bf16.mxu0 %v10756_v37  ;;  %5490 = vmatprep.subr.bf16.mxu1 %v10757_v34  ;;  %v10765_v37 = vld [vmem:[#allocation17_spill] sm:$0xff]  ;;  %v10766_v34 = vmov 0.0  }
 0x41d   :  { %5428 = vmatpush1.bf16.msra.mxu0 %v10758_v36  ;;  %5492 = vmatpush1.bf16.msra.mxu1 %v10759_v63  ;;  %v10767_v63 = vld [vmem:[#allocation18_spill] sm:$0xff]  ;;  %v10770_v36 = vld [vmem:[#allocation21_spill] sm:$0xff] }
 0x41e   :  { %5494 = vmatprep.subr.bf16.mxu0 %v10760_v23  ;;  %5526 = vmatprep.subr.bf16.mxu1 %v10761_v9  ;;  %v10768_v23 = vld [vmem:[#allocation19_spill] sm:$0xff]  ;;  %v10769_v9 = vld [vmem:[#allocation20_spill] sm:$0xff] }
 0x420   :  { %1558 = vmatmul.mubr.f32.vlgmr.msra.gmra.mrb[8].mxu0 %v8789_v32  ;;  %1629 = vmatmul.mubr.f32.vlgmr.msra.gmra.mrb[8].mxu1 %v8789_v32  ;;  %v10771_v32 = vld [vmem:[#allocation22_spill] sm:$0xff] }
 0x421   :  { %5496 = vmatpush1.bf16.msra.mxu0 %v10762_v21  ;;  %5528 = vmatpush1.bf16.msra.mxu1 %v10763_v56  ;;  %v10772_v21 = vld [vmem:[#allocation23_spill] sm:$0xff]  ;;  %v10773_v56 = vld [vmem:[#allocation24_spill] sm:$0xff] }
 0x422   :  { %5498 = vmatprep.subr.bf16.mxu0 %v10764_v42  ;;  %5530 = vmatprep.subr.bf16.mxu1 %v10765_v37  ;;  %v10774_v42 = vld [vmem:[#allocation25_spill] sm:$0xff]  ;;  %v10775_v37 = vld [vmem:[#allocation26_spill] sm:$0xff] }
 0x423   :  { %1764 = vmatprep.mubr.f32.mxu0 %v10766_v34  ;;  %1835 = vmatprep.mubr.f32.mxu1 %v10766_v34  ;;  %v10777_v34 = vld [vmem:[#allocation28_spill] sm:$0xff] }
 0x425   :  { %5500 = vmatpush1.bf16.msra.mxu0 %v10767_v63  ;;  %5532 = vmatpush1.bf16.msra.mxu1 %v10768_v23  ;;  %v10778_v63 = vld [vmem:[#allocation29_spill] sm:$0xff]  ;;  %v10779_v23 = vld [vmem:[#allocation30_spill] sm:$0xff] }
 0x426   :  { %5502 = vmatprep.subr.bf16.mxu0 %v10769_v9  ;;  %5534 = vmatprep.subr.bf16.mxu1 %v10770_v36  ;;  %v10780_v9 = vld [vmem:[#allocation31_spill] sm:$0xff]  ;;  %v10781_v36 = vld [vmem:[#allocation32_spill] sm:$0xff] }
 0x429   :  { %5504 = vmatpush1.bf16.msra.mxu0 %v10771_v32  ;;  %5536 = vmatpush1.bf16.msra.mxu1 %v10772_v21  ;;  %v10782_v32 = vld [vmem:[#allocation33_spill] sm:$0xff]  ;;  %v10783_v21 = vld [vmem:[#allocation34_spill] sm:$0xff] }
 0x42a   :  { %5506 = vmatprep.subr.bf16.mxu0 %v10773_v56  ;;  %5538 = vmatprep.subr.bf16.mxu1 %v10774_v42  ;;  %v10784_v56 = vld [vmem:[#allocation35_spill] sm:$0xff]  ;;  %v10785_v42 = vld [vmem:[#allocation36_spill] sm:$0xff] }
 0x42d   :  { %5508 = vmatpush1.bf16.msra.mxu0 %v10775_v37  ;;  %5540 = vmatpush1.bf16.msra.mxu1 %v10776_v57  ;;  %v10786_v37 = vld [vmem:[#allocation37_spill] sm:$0xff]  ;;  %v10787_v57 = vld [vmem:[#allocation38_spill] sm:$0xff] }
 0x42e   :  { %5510 = vmatprep.subr.bf16.mxu0 %v10777_v34  ;;  %5542 = vmatprep.subr.bf16.mxu1 %v10778_v63  ;;  %v10788_v34 = vld [vmem:[#allocation39_spill] sm:$0xff]  ;;  %v10789_v63 = vld [vmem:[#allocation40_spill] sm:$0xff] }
 0x431   :  { %5512 = vmatpush1.bf16.msra.mxu0 %v10779_v23  ;;  %5544 = vmatpush1.bf16.msra.mxu1 %v10780_v9  ;;  %v10790_v23 = vld [vmem:[#allocation41_spill] sm:$0xff]  ;;  %v10791_v9 = vld [vmem:[#allocation42_spill] sm:$0xff] }
 0x432   :  { %5514 = vmatprep.subr.bf16.mxu0 %v10781_v36  ;;  %5546 = vmatprep.subr.bf16.mxu1 %v10782_v32  ;;  %v10792_v36 = vld [vmem:[#allocation43_spill] sm:$0xff]  ;;  %v10793_v32 = vld [vmem:[#allocation44_spill] sm:$0xff] }
 0x435   :  { %5516 = vmatpush1.bf16.msra.mxu0 %v10783_v21  ;;  %5548 = vmatpush1.bf16.msra.mxu1 %v10784_v56  ;;  %v10794_v21 = vld [vmem:[#allocation45_spill] sm:$0xff]  ;;  %v10795_v56 = vld [vmem:[#allocation50_spill] sm:$0xff] }
 0x436   :  { %5518 = vmatprep.subr.bf16.mxu0 %v10785_v42  ;;  %5550 = vmatprep.subr.bf16.mxu1 %v10786_v37  ;;  %v10796_v42 = vld [vmem:[#allocation87_spill] sm:$0xff]  ;;  %v10797_v37 = vld [vmem:[#allocation88_spill] sm:$0xff] }
 0x437   :  { %v1343_v39 = vadd.f32 %v10796_v42, %v10795_v56  ;;  %v1346_v42 = vadd.f32 %v10804_v46, %v10657_v16 }
 0x439   :  { %5520 = vmatpush1.bf16.msra.mxu0 %v10787_v57  ;;  %5552 = vmatpush1.bf16.msra.mxu1 %v10788_v34  ;;  %v1347_v57 = vadd.f32 %v10797_v37, %v10795_v56  ;;  %v10799_v34 = vld [vmem:[#allocation89_spill] sm:$0xff]  ;;  %v1350_v37 = vadd.f32 %v10805_v59, %v10657_v16 }
 0x43a   :  { %5522 = vmatprep.subr.bf16.mxu0 %v10789_v63  ;;  %5554 = vmatprep.subr.bf16.mxu1 %v10790_v23  ;;  %v1345_v50 = vadd.f32 %v10799_v34, %v10798_v18  ;;  %v10800_v63 = vld [vmem:[#allocation90_spill] sm:$0xff] }
 0x43b   :  { %v1349_v23 = vadd.f32 %v10800_v63, %v10798_v18 }
 0x43d   :  { %5524 = vmatpush1.bf16.msra.mxu0 %v10791_v9  ;;  %5556 = vmatpush1.bf16.msra.mxu1 %v10792_v36  ;;  %v10802_v36 = vld [vmem:[#allocation91_spill] sm:$0xff] }
 0x43e   :  { %5558 = vmatprep.subr.bf16.mxu0 %v10793_v32  ;;  %5622 = vmatprep.subr.bf16.mxu1 %v10794_v21  ;;  %v1344_v41 = vadd.f32 %v10802_v36, %v10801_v49  ;;  %v10803_v32 = vld [vmem:[#allocation92_spill] sm:$0xff] }
 0x43f   :  { %v1348_v21 = vadd.f32 %v10803_v32, %v10801_v49 }
 0x4b3   :  { %v1417_v26 = vpop.f32.mrb[6].mxu0  ;;  %v1488_v9 = vpop.f32.mrb[6].mxu1 }
 0x4b4   :  { %v1639_v56 = vrot.slane %v1417_v26, 1  ;;  %v1651_v6 = vadd.f32 %v1417_v26, %v1343_v39  ;;  %v1641_v34 = vrot.slane %v1488_v9, 1  ;;  %v1653_v28 = vadd.f32 %v1488_v9, %v1345_v50  ;;  %v1419_v38 = vpop.f32.mrb[7].mxu0  ;;  %v1490_v63 = vpop.f32.mrb[7].mxu1 }
 0x4b5   :  { %v1640_v18 = vrot.slane %v1419_v38, 1  ;;  %v1652_v40 = vadd.f32 %v1419_v38, %v1344_v41  ;;  %v1642_v0 = vrot.slane %v1490_v63, 1  ;;  %v1654_v48 = vadd.f32 %v1490_v63, %v1346_v42 }
 0x4b6   :  { %v1655_v36 = vadd.f32 %v1639_v56, %v1347_v57  ;;  %v1659_v30 = vmul.f32 0.5, %v1651_v6  ;;  %v1657_v14 = vadd.f32 %v1641_v34, %v1349_v23  ;;  %v1661_v23 = vmul.f32 0.5, %v1653_v28 }
 0x4b7   :  { %v1656_v32 = vadd.f32 %v1640_v18, %v1348_v21  ;;  %v1658_v49 = vadd.f32 %v1642_v0, %v1350_v37  ;;  %v1660_v46 = vmul.f32 0.5, %v1652_v40 }
 0x4b8   :  { %v1662_v8 = vmul.f32 0.5, %v1655_v36  ;;  %7289 = vtanh.f32 %v1659_v30  ;;  %v1664_v38 = vmul.f32 0.5, %v1657_v14 }
 0x4b9   :  { %v1663_v45 = vmul.f32 0.5, %v1656_v32 }
 0x4ba   :  { %7291 = vtanh.f32 %v1662_v8 }
 0x4bb   :  { %7293 = vtanh.f32 %v1654_v48 }
 0x4bc   :  { %7295 = vtanh.f32 %v1660_v46 }
 0x4bd   :  { %7297 = vtanh.f32 %v1663_v45 }
 0x4be   :  { %7299 = vtanh.f32 %v1658_v49 }
 0x4bf   :  { %7301 = vtanh.f32 %v1664_v38  ;;  %v10806_v38 = vld [vmem:[#allocation123_spill] sm:$0xff] }
 0x4c0   :  { %7303 = vtanh.f32 %v1661_v23  ;;  %v10811_v23 = vld [vmem:[#allocation128_spill] sm:$0xff] }
 0x4c2   :  { %v7290_v59 = vpop.eup %7289 }
 0x4c3   :  { %v1671_v26 = vmul.f32 0.5, %v7290_v59 }
 0x4c4   :  { %v7292_v50 = vpop.eup %7291 }
 0x4c5   :  { %v7294_v41 = vpop.eup %7293  ;;  %v1674_v9 = vmul.f32 0.5, %v7292_v50  ;;  %v1677_v39 = vadd.f32 0.5, %v1671_v26 }
 0x4c6   :  { %v7296_v6 = vpop.eup %7295 }
 0x4c7   :  { %v7298_v18 = vpop.eup %7297  ;;  %v1680_v0 = vadd.f32 0.5, %v1674_v9  ;;  %v1672_v57 = vmul.f32 0.5, %v7296_v6  ;;  %v1687_v30 = vmul.f32 %v7294_v41, %v1677_v39  ;;  %v10807_v41 = vld [vmem:[#allocation124_spill] sm:$0xff]  ;;  %v10808_v9 = vld [vmem:[#allocation125_spill] sm:$0xff]  ;;  %v10809_v39 = vld [vmem:[#allocation126_spill] sm:$0xff] }
 0x4c8   :  { %v7300_v40 = vpop.eup %7299  ;;  %v1675_v8 = vmul.f32 0.5, %v7298_v18  ;;  %v10810_v6 = vld [vmem:[#allocation127_spill] sm:$0xff]  ;;  %v10812_v18 = vld [vmem:[#allocation129_spill] sm:$0xff] }
 0x4c9   :  { %v1678_v48 = vadd.f32 0.5, %v1672_v57  ;;  %v1688_v21 = vmul.f32 %v7300_v40, %v1680_v0  ;;  %v7302_v28 = vpop.eup %7301  ;;  %v10813_v0 = vld [vmem:[#allocation130_spill] sm:$0xff]  ;;  %v10814_v57 = vld [vmem:[#allocation131_spill] sm:$0xff]  ;;  %v10816_v40 = vld [vmem:[#allocation133_spill] sm:$0xff] }
 0x4ca   :  { %v1681_v45 = vadd.f32 0.5, %v1675_v8  ;;  %v7304_v37 = vpop.eup %7303  ;;  %v1676_v34 = vmul.f32 0.5, %v7302_v28  ;;  %v10817_v8 = vld [vmem:[#allocation134_spill] sm:$0xff]  ;;  %v10823_v28 = vld [vmem:[#allocation140_spill] sm:$0xff] }
 0x4cb   :  { %v1685_v49 = vmul.f32 %v1678_v48, %v8782_v25  ;;  %v1673_v63 = vmul.f32 0.5, %v7304_v37  ;;  %v10818_v48 = vld [vmem:[#allocation135_spill] sm:$0xff]  ;;  %v10824_v37 = vld [vmem:[#allocation141_spill] sm:$0xff] }
 0x4cc   :  { %v1686_v14 = vmul.f32 %v1681_v45, %v8784_v1  ;;  %v1682_v32 = vadd.f32 0.5, %v1676_v34  ;;  %v10820_v45 = vld [vmem:[#allocation137_spill] sm:$0xff]  ;;  %v10825_v34 = vld [vmem:[#allocation142_spill] sm:$0xff] }
 0x4cd   :  { %v8985_v56 = vadd.f32 %v1687_v30, %v1685_v49  ;;  %v1679_v59 = vadd.f32 0.5, %v1673_v63  ;;  %v10815_v30 = vld [vmem:[#allocation132_spill] sm:$0xff]  ;;  %v10821_v49 = vld [vmem:[#allocation138_spill] sm:$0xff]  ;;  %v10826_v63 = vld [vmem:[#allocation143_spill] sm:$0xff] }
 0x4ce   :  { %v8987_v42 = vadd.f32 %v1688_v21, %v1686_v14  ;;  %v10819_v21 = vld [vmem:[#allocation136_spill] sm:$0xff]  ;;  %v10822_v14 = vld [vmem:[#allocation139_spill] sm:$0xff] }
 0x4cf   :  { %7305 = vtanh.f32 %v8985_v56 }
 0x4d0   :  { %7307 = vtanh.f32 %v8987_v42 }
 0x4d9   :  { %v7306_v36 = vpop.eup %7305 }
 0x4da   :  { %v7308_v46 = vpop.eup %7307  ;;  %v1693_v25 = vmul.f32 %v7306_v36, %v1679_v59  ;;  %v10827_v36 = vld [vmem:[#allocation144_spill] sm:$0xff]  ;;  %v10830_v59 = vld [vmem:[#allocation147_spill] sm:$0xff] }
 0x4db   :  { %v1694_v26 = vmul.f32 %v7308_v46, %v1682_v32  ;;  %v10828_v32 = vld [vmem:[#allocation145_spill] sm:$0xff]  ;;  %v10829_v46 = vld [vmem:[#allocation146_spill] sm:$0xff] }
 0x4dd   :  { %v1697_v50 = vrot.slane %v1694_v26, 7  ;;  %v10831_v26 = vld [vmem:[#allocation148_spill] sm:$0xff] }
 0x4df   :  { %v8992_v1 = vsel %vm315_vm0, %v1697_v50, %v1693_v25  ;;  %v10832_v25 = vld [vmem:[#allocation149_spill] sm:$0xff]  ;;  %v10833_v50 = vld [vmem:[#allocation150_spill] sm:$0xff] }
 0x4e0   :  { %1765 = vmatmul.mubr.f32.vlgmr.msra.gmra.mrb[8].mxu0 %v8992_v1  ;;  %1836 = vmatmul.mubr.f32.vlgmr.msra.gmra.mrb[8].mxu1 %v8992_v1 }
 0x4e1   :  { %5560 = vmatpush1.bf16.msra.mxu0 %v10662_v60  ;;  %5624 = vmatpush1.bf16.msra.mxu1 %v10663_v35 }
 0x4e2   :  { %5562 = vmatprep.subr.bf16.mxu0 %v10664_v3  ;;  %5626 = vmatprep.subr.bf16.mxu1 %v7930_v15 }
 0x4e5   :  { %5564 = vmatpush1.bf16.msra.mxu0 %v10665_v52  ;;  %5628 = vmatpush1.bf16.msra.mxu1 %v10666_v17 }
 0x4e6   :  { %5566 = vmatprep.subr.bf16.mxu0 %v10667_v22  ;;  %5630 = vmatprep.subr.bf16.mxu1 %v10668_v10 }
 0x4e9   :  { %5568 = vmatpush1.bf16.msra.mxu0 %v10669_v19  ;;  %5632 = vmatpush1.bf16.msra.mxu1 %v10670_v58 }
 0x4ea   :  { %5570 = vmatprep.subr.bf16.mxu0 %v10671_v53  ;;  %5634 = vmatprep.subr.bf16.mxu1 %v10672_v2 }
 0x4ed   :  { %5572 = vmatpush1.bf16.msra.mxu0 %v10475_v54  ;;  %5636 = vmatpush1.bf16.msra.mxu1 %v10476_v61 }
 0x4ee   :  { %5574 = vmatprep.subr.bf16.mxu0 %v10477_v24  ;;  %5638 = vmatprep.subr.bf16.mxu1 %v10479_v20 }
 0x4f1   :  { %5576 = vmatpush1.bf16.msra.mxu0 %v10488_v12  ;;  %5640 = vmatpush1.bf16.msra.mxu1 %v10489_v51 }
 0x4f2   :  { %5578 = vmatprep.subr.bf16.mxu0 %v10490_v44  ;;  %5642 = vmatprep.subr.bf16.mxu1 %v10491_v4 }
 0x4f5   :  { %5580 = vmatpush1.bf16.msra.mxu0 %v10500_v47  ;;  %5644 = vmatpush1.bf16.msra.mxu1 %v10501_v33 }
 0x4f6   :  { %5582 = vmatprep.subr.bf16.mxu0 %v10502_v11  ;;  %5646 = vmatprep.subr.bf16.mxu1 %v10503_v55 }
 0x4f9   :  { %5584 = vmatpush1.bf16.msra.mxu0 %v8375_v29  ;;  %5648 = vmatpush1.bf16.msra.mxu1 %v8383_v27 }
 0x4fa   :  { %5586 = vmatprep.subr.bf16.mxu0 %v8402_v62  ;;  %5650 = vmatprep.subr.bf16.mxu1 %v8404_v31 }
 0x4fd   :  { %5588 = vmatpush1.bf16.msra.mxu0 %v8406_v13  ;;  %5652 = vmatpush1.bf16.msra.mxu1 %v8409_v5 }
 0x4fe   :  { %5590 = vmatprep.subr.bf16.mxu0 %v8414_v43  ;;  %5654 = vmatprep.subr.bf16.mxu1 %v8416_v7 }
 0x501   :  { %5592 = vmatpush1.bf16.msra.mxu0 %v10806_v38  ;;  %5656 = vmatpush1.bf16.msra.mxu1 %v10807_v41 }
 0x502   :  { %5594 = vmatprep.subr.bf16.mxu0 %v10808_v9  ;;  %5658 = vmatprep.subr.bf16.mxu1 %v10809_v39 }
 0x505   :  { %5596 = vmatpush1.bf16.msra.mxu0 %v10810_v6  ;;  %5660 = vmatpush1.bf16.msra.mxu1 %v10811_v23 }
 0x506   :  { %5598 = vmatprep.subr.bf16.mxu0 %v10812_v18  ;;  %5662 = vmatprep.subr.bf16.mxu1 %v10813_v0 }
 0x509   :  { %5600 = vmatpush1.bf16.msra.mxu0 %v10814_v57  ;;  %5664 = vmatpush1.bf16.msra.mxu1 %v10815_v30 }
 0x50a   :  { %5602 = vmatprep.subr.bf16.mxu0 %v10816_v40  ;;  %5666 = vmatprep.subr.bf16.mxu1 %v10817_v8 }
 0x50d   :  { %5604 = vmatpush1.bf16.msra.mxu0 %v10818_v48  ;;  %5668 = vmatpush1.bf16.msra.mxu1 %v10819_v21 }
 0x50e   :  { %5606 = vmatprep.subr.bf16.mxu0 %v10820_v45  ;;  %5670 = vmatprep.subr.bf16.mxu1 %v10821_v49  ;;  %v10839_v45 = vld [vmem:[#allocation47_spill] sm:$0xff] }
 0x511   :  { %5608 = vmatpush1.bf16.msra.mxu0 %v10822_v14  ;;  %5672 = vmatpush1.bf16.msra.mxu1 %v10823_v28  ;;  %v10834_v28 = vld [vmem:[#allocation151_spill] sm:$0xff]  ;;  %v10838_v14 = vld [vmem:[#allocation46_spill] sm:$0xff] }
 0x512   :  { %5610 = vmatprep.subr.bf16.mxu0 %v10824_v37  ;;  %5674 = vmatprep.subr.bf16.mxu1 %v10825_v34  ;;  %v10835_v37 = vld [vmem:[#allocation152_spill] sm:$0xff]  ;;  %v10836_v34 = vld [vmem:[#allocation153_spill] sm:$0xff] }
 0x515   :  { %5612 = vmatpush1.bf16.msra.mxu0 %v10826_v63  ;;  %5676 = vmatpush1.bf16.msra.mxu1 %v10827_v36  ;;  %v10837_v63 = vld [vmem:[#allocation154_spill] sm:$0xff] }
 0x516   :  { %5614 = vmatprep.subr.bf16.mxu0 %v10828_v32  ;;  %5678 = vmatprep.subr.bf16.mxu1 %v10829_v46 }
 0x519   :  { %5616 = vmatpush1.bf16.msra.mxu0 %v10830_v59  ;;  %5680 = vmatpush1.bf16.msra.mxu1 %v10831_v26 }
 0x51a   :  { %5618 = vmatprep.subr.bf16.mxu0 %v10832_v25  ;;  %5682 = vmatprep.subr.bf16.mxu1 %v10833_v50  ;;  %v10840_v50 = vld [vmem:[#allocation48_spill] sm:$0xff] }
 0x51d   :  { %5620 = vmatpush1.bf16.msra.mxu0 %v10834_v28  ;;  %5684 = vmatpush1.bf16.msra.mxu1 %v10835_v37  ;;  %v10841_v37 = vld [vmem:[#allocation49_spill] sm:$0xff] }
 0x51e   :  { %5686 = vmatprep.subr.bf16.mxu0 %v10836_v34  ;;  %5750 = vmatprep.subr.bf16.mxu1 %v10837_v63 }
 0x5b3   :  { %v1766_v36 = vpop.f32.mrb[8].mxu0  ;;  %v1837_v32 = vpop.f32.mrb[8].mxu1 }
 0x5b4   :  { %v1842_v46 = vadd.f32 %v1766_v36, %v10838_v14  ;;  %v1768_v49 = vpop.f32.mrb[9].mxu0  ;;  %v1839_v59 = vpop.f32.mrb[9].mxu1  ;;  %v1844_v28 = vadd.f32 %v1837_v32, %v10841_v37 }
 0x5b5   :  { %v1843_v26 = vadd.f32 %v1768_v49, %v10839_v45  ;;  %v1845_v48 = vadd.f32 %v1839_v59, %v10840_v50  ;;  %v10842_v49 = vld [vmem:[#allocation54_spill] sm:$0xff] }
 0x5b6   :  { %v1846_v21 = vmul.f32 0.5, %v1842_v46  ;;  %v1848_v34 = vmul.f32 0.5, %v1844_v28 }
 0x5b7   :  { %v1847_v25 = vmul.f32 0.5, %v1843_v26 }
 0x5b8   :  { %7309 = vtanh.f32 %v1846_v21 }
 0x5b9   :  { %7311 = vtanh.f32 %v1847_v25  ;;  %v10852_v25 = vld [vmem:[#allocation164_spill] sm:$0xff] }
 0x5ba   :  { %7313 = vtanh.f32 %v1845_v48 }
 0x5bb   :  { %7315 = vtanh.f32 %v1848_v34  ;;  %v10850_v34 = vld [vmem:[#allocation162_spill] sm:$0xff] }
 0x5c2   :  { %v7310_v8 = vpop.eup %7309 }
 0x5c3   :  { %v1852_v63 = vmul.f32 0.5, %v7310_v8  ;;  %v7312_v40 = vpop.eup %7311  ;;  %v10848_v8 = vld [vmem:[#allocation160_spill] sm:$0xff] }
 0x5c4   :  { %v1853_v36 = vmul.f32 0.5, %v7312_v40  ;;  %v7314_v14 = vpop.eup %7313  ;;  %v10844_v40 = vld [vmem:[#allocation156_spill] sm:$0xff] }
 0x5c5   :  { %v1855_v30 = vadd.f32 0.5, %v1852_v63  ;;  %v7316_v21 = vpop.eup %7315  ;;  %v10851_v63 = vld [vmem:[#allocation163_spill] sm:$0xff] }
 0x5c6   :  { %v1856_v57 = vadd.f32 0.5, %v1853_v36  ;;  %v1854_v48 = vmul.f32 0.5, %v7316_v21  ;;  %v10853_v36 = vld [vmem:[#allocation165_spill] sm:$0xff]  ;;  %v10856_v21 = vld [vmem:[#allocation168_spill] sm:$0xff] }
 0x5c7   :  { %v1860_v0 = vmul.f32 %v7314_v14, %v1855_v30  ;;  %v10845_v30 = vld [vmem:[#allocation157_spill] sm:$0xff] }
 0x5c8   :  { %v1859_v46 = vmul.f32 %v1856_v57, %v10842_v49  ;;  %v1857_v59 = vadd.f32 0.5, %v1854_v48  ;;  %v10847_v57 = vld [vmem:[#allocation159_spill] sm:$0xff]  ;;  %v10849_v14 = vld [vmem:[#allocation161_spill] sm:$0xff]  ;;  %v10854_v49 = vld [vmem:[#allocation166_spill] sm:$0xff] }
 0x5c9   :  { %v10857_v48 = vld [vmem:[#allocation169_spill] sm:$0xff] }
 0x5ca   :  { %v9065_v26 = vadd.f32 %v1860_v0, %v1859_v46  ;;  %v10846_v0 = vld [vmem:[#allocation158_spill] sm:$0xff]  ;;  %v10855_v46 = vld [vmem:[#allocation167_spill] sm:$0xff] }
 0x5cc   :  { %10843 = vst [vmem:[#allocation55_spill] sm:$0xff] %v9065_v26  ;;  %7317 = vtanh.f32 %v9065_v26  ;;  %v10951_v26 = vld [vmem:[#allocation103_spill] sm:$0xff] }
 0x5d6   :  { %v7318_v32 = vpop.eup %7317 }
 0x5d7   :  { %v1863_v28 = vmul.f32 %v7318_v32, %v1857_v59  ;;  %v10858_v59 = vld [vmem:[#allocation170_spill] sm:$0xff]  ;;  %v10859_v32 = vld [vmem:[#allocation171_spill] sm:$0xff] }
 0x5d9   :  { %1980 = vmatprep.mubr.f32.mxu0 %v1863_v28  ;;  %2051 = vmatprep.mubr.f32.mxu1 %v1863_v28 }
 0x5da   :  { %1981 = vmatmul.mubr.f32.vlgmr.msra.gmra.mrb[10].mxu0 %v8992_v1  ;;  %2052 = vmatmul.mubr.f32.vlgmr.msra.gmra.mrb[10].mxu1 %v8992_v1 }
 0x5db   :  { %5688 = vmatpush1.bf16.msra.mxu0 %v10844_v40  ;;  %5752 = vmatpush1.bf16.msra.mxu1 %v10845_v30  ;;  %v10950_v40 = vld [vmem:[#allocation102_spill] sm:$0xff] }
 0x5dc   :  { %2122 = vmatprep.mubr.f32.mxu0 %v1863_v28  ;;  %2193 = vmatprep.mubr.f32.mxu1 %v1863_v28  ;;  %v10860_v28 = vld [vmem:[#allocation172_spill] sm:$0xff] }
 0x5dd   :  { %5690 = vmatprep.subr.bf16.mxu0 %v10846_v0  ;;  %5754 = vmatprep.subr.bf16.mxu1 %v10847_v57  ;;  %v10947_v0 = vld [vmem:[#allocation51_spill] sm:$0xff] }
 0x5df   :  { %5692 = vmatpush1.bf16.msra.mxu0 %v10848_v8  ;;  %5756 = vmatpush1.bf16.msra.mxu1 %v10849_v14  ;;  %v10944_v14 = vld [vmem:[#allocation53_spill] sm:$0xff] }
 0x5e0   :  { %5694 = vmatprep.subr.bf16.mxu0 %v10850_v34  ;;  %5758 = vmatprep.subr.bf16.mxu1 %v10851_v63  ;;  %v10861_v34 = vld [vmem:[#allocation173_spill] sm:$0xff]  ;;  %v10862_v63 = vld [vmem:[#allocation174_spill] sm:$0xff] }
 0x5e3   :  { %5696 = vmatpush1.bf16.msra.mxu0 %v10852_v25  ;;  %5760 = vmatpush1.bf16.msra.mxu1 %v10853_v36  ;;  %v10863_v25 = vld [vmem:[#allocation175_spill] sm:$0xff]  ;;  %v10864_v36 = vld [vmem:[#allocation176_spill] sm:$0xff] }
 0x5e4   :  { %5698 = vmatprep.subr.bf16.mxu0 %v10854_v49  ;;  %5762 = vmatprep.subr.bf16.mxu1 %v10855_v46  ;;  %v10865_v49 = vld [vmem:[#allocation177_spill] sm:$0xff]  ;;  %v10866_v46 = vld [vmem:[#allocation178_spill] sm:$0xff] }
 0x5e7   :  { %5700 = vmatpush1.bf16.msra.mxu0 %v10856_v21  ;;  %5764 = vmatpush1.bf16.msra.mxu1 %v10857_v48  ;;  %v10867_v21 = vld [vmem:[#allocation179_spill] sm:$0xff]  ;;  %v10868_v48 = vld [vmem:[#allocation180_spill] sm:$0xff] }
 0x5e8   :  { %5702 = vmatprep.subr.bf16.mxu0 %v10858_v59  ;;  %5766 = vmatprep.subr.bf16.mxu1 %v10859_v32  ;;  %v10869_v59 = vld [vmem:[#allocation181_spill] sm:$0xff]  ;;  %v10870_v32 = vld [vmem:[#allocation182_spill] sm:$0xff] }
 0x5eb   :  { %5704 = vmatpush1.bf16.msra.mxu0 %v10860_v28  ;;  %5768 = vmatpush1.bf16.msra.mxu1 %v10861_v34  ;;  %v10871_v28 = vld [vmem:[#allocation183_spill] sm:$0xff]  ;;  %v10872_v34 = vld [vmem:[#allocation184_spill] sm:$0xff] }
 0x5ec   :  { %5706 = vmatprep.subr.bf16.mxu0 %v10862_v63  ;;  %5770 = vmatprep.subr.bf16.mxu1 %v10863_v25  ;;  %v10873_v63 = vld [vmem:[#allocation185_spill] sm:$0xff]  ;;  %v10874_v25 = vld [vmem:[#allocation186_spill] sm:$0xff] }
 0x5ef   :  { %5708 = vmatpush1.bf16.msra.mxu0 %v10864_v36  ;;  %5772 = vmatpush1.bf16.msra.mxu1 %v10865_v49  ;;  %v10875_v36 = vld [vmem:[#allocation187_spill] sm:$0xff]  ;;  %v10876_v49 = vld [vmem:[#allocation188_spill] sm:$0xff] }
 0x5f0   :  { %5710 = vmatprep.subr.bf16.mxu0 %v10866_v46  ;;  %5774 = vmatprep.subr.bf16.mxu1 %v10867_v21  ;;  %v10877_v46 = vld [vmem:[#allocation189_spill] sm:$0xff]  ;;  %v10878_v21 = vld [vmem:[#allocation190_spill] sm:$0xff] }
 0x5f3   :  { %5712 = vmatpush1.bf16.msra.mxu0 %v10868_v48  ;;  %5776 = vmatpush1.bf16.msra.mxu1 %v10869_v59  ;;  %v10879_v48 = vld [vmem:[#allocation191_spill] sm:$0xff]  ;;  %v10880_v59 = vld [vmem:[#allocation192_spill] sm:$0xff] }
 0x5f4   :  { %5714 = vmatprep.subr.bf16.mxu0 %v10870_v32  ;;  %5778 = vmatprep.subr.bf16.mxu1 %v10871_v28  ;;  %v10881_v32 = vld [vmem:[#allocation193_spill] sm:$0xff]  ;;  %v10882_v28 = vld [vmem:[#allocation194_spill] sm:$0xff] }
 0x5f7   :  { %5716 = vmatpush1.bf16.msra.mxu0 %v10872_v34  ;;  %5780 = vmatpush1.bf16.msra.mxu1 %v10873_v63  ;;  %v10883_v34 = vld [vmem:[#allocation195_spill] sm:$0xff]  ;;  %v10884_v63 = vld [vmem:[#allocation196_spill] sm:$0xff] }
 0x5f8   :  { %5718 = vmatprep.subr.bf16.mxu0 %v10874_v25  ;;  %5782 = vmatprep.subr.bf16.mxu1 %v10875_v36  ;;  %v10885_v25 = vld [vmem:[#allocation197_spill] sm:$0xff]  ;;  %v10886_v36 = vld [vmem:[#allocation198_spill] sm:$0xff] }
 0x5fb   :  { %5720 = vmatpush1.bf16.msra.mxu0 %v10876_v49  ;;  %5784 = vmatpush1.bf16.msra.mxu1 %v10877_v46  ;;  %v10887_v49 = vld [vmem:[#allocation199_spill] sm:$0xff]  ;;  %v10888_v46 = vld [vmem:[#allocation200_spill] sm:$0xff] }
 0x5fc   :  { %5722 = vmatprep.subr.bf16.mxu0 %v10878_v21  ;;  %5786 = vmatprep.subr.bf16.mxu1 %v10879_v48  ;;  %v10889_v21 = vld [vmem:[#allocation201_spill] sm:$0xff]  ;;  %v10890_v48 = vld [vmem:[#allocation202_spill] sm:$0xff] }
 0x5ff   :  { %5724 = vmatpush1.bf16.msra.mxu0 %v10880_v59  ;;  %5788 = vmatpush1.bf16.msra.mxu1 %v10881_v32  ;;  %v10891_v59 = vld [vmem:[#allocation203_spill] sm:$0xff]  ;;  %v10892_v32 = vld [vmem:[#allocation204_spill] sm:$0xff] }
 0x600   :  { %5726 = vmatprep.subr.bf16.mxu0 %v10882_v28  ;;  %5790 = vmatprep.subr.bf16.mxu1 %v10883_v34  ;;  %v10893_v28 = vld [vmem:[#allocation205_spill] sm:$0xff]  ;;  %v10894_v34 = vld [vmem:[#allocation206_spill] sm:$0xff] }
 0x603   :  { %5728 = vmatpush1.bf16.msra.mxu0 %v10884_v63  ;;  %5792 = vmatpush1.bf16.msra.mxu1 %v10885_v25  ;;  %v10895_v63 = vld [vmem:[#allocation207_spill] sm:$0xff]  ;;  %v10896_v25 = vld [vmem:[#allocation208_spill] sm:$0xff] }
 0x604   :  { %5730 = vmatprep.subr.bf16.mxu0 %v10886_v36  ;;  %5794 = vmatprep.subr.bf16.mxu1 %v10887_v49  ;;  %v10897_v36 = vld [vmem:[#allocation209_spill] sm:$0xff]  ;;  %v10898_v49 = vld [vmem:[#allocation210_spill] sm:$0xff] }
 0x607   :  { %5732 = vmatpush1.bf16.msra.mxu0 %v10888_v46  ;;  %5796 = vmatpush1.bf16.msra.mxu1 %v10889_v21  ;;  %v10899_v46 = vld [vmem:[#allocation211_spill] sm:$0xff]  ;;  %v10900_v21 = vld [vmem:[#allocation212_spill] sm:$0xff] }
 0x608   :  { %5734 = vmatprep.subr.bf16.mxu0 %v10890_v48  ;;  %5798 = vmatprep.subr.bf16.mxu1 %v10891_v59  ;;  %v10901_v48 = vld [vmem:[#allocation213_spill] sm:$0xff]  ;;  %v10902_v59 = vld [vmem:[#allocation214_spill] sm:$0xff] }
 0x60b   :  { %5736 = vmatpush1.bf16.msra.mxu0 %v10892_v32  ;;  %5800 = vmatpush1.bf16.msra.mxu1 %v10893_v28  ;;  %v10903_v32 = vld [vmem:[#allocation215_spill] sm:$0xff]  ;;  %v10904_v28 = vld [vmem:[#allocation216_spill] sm:$0xff] }
 0x60c   :  { %5738 = vmatprep.subr.bf16.mxu0 %v10894_v34  ;;  %5802 = vmatprep.subr.bf16.mxu1 %v10895_v63  ;;  %v10905_v34 = vld [vmem:[#allocation217_spill] sm:$0xff]  ;;  %v10906_v63 = vld [vmem:[#allocation12_spill] sm:$0xff] }
 0x60f   :  { %5740 = vmatpush1.bf16.msra.mxu0 %v10896_v25  ;;  %5804 = vmatpush1.bf16.msra.mxu1 %v10897_v36  ;;  %v10907_v25 = vld [vmem:[#allocation13_spill] sm:$0xff] }
 0x610   :  { %5742 = vmatprep.subr.bf16.mxu0 %v10898_v49  ;;  %5806 = vmatprep.subr.bf16.mxu1 %v10899_v46  ;;  %v10908_v46 = vld [vmem:[#allocation14_spill] sm:$0xff]  ;;  %v10922_v49 = vld [vmem:[#allocation27_spill] sm:$0xff] }
 0x613   :  { %5744 = vmatpush1.bf16.msra.mxu0 %v10900_v21  ;;  %5808 = vmatpush1.bf16.msra.mxu1 %v10901_v48  ;;  %v10909_v21 = vld [vmem:[#allocation15_spill] sm:$0xff]  ;;  %v10910_v48 = vld [vmem:[#allocation16_spill] sm:$0xff] }
 0x614   :  { %5746 = vmatprep.subr.bf16.mxu0 %v10902_v59  ;;  %5810 = vmatprep.subr.bf16.mxu1 %v10903_v32  ;;  %v10911_v59 = vld [vmem:[#allocation17_spill] sm:$0xff]  ;;  %v10912_v32 = vmov 0.0  }
 0x617   :  { %5748 = vmatpush1.bf16.msra.mxu0 %v10904_v28  ;;  %5812 = vmatpush1.bf16.msra.mxu1 %v10905_v34  ;;  %v10913_v34 = vld [vmem:[#allocation18_spill] sm:$0xff]  ;;  %v10916_v28 = vld [vmem:[#allocation21_spill] sm:$0xff] }
 0x618   :  { %5814 = vmatprep.subr.bf16.mxu0 %v10906_v63  ;;  %5846 = vmatprep.subr.bf16.mxu1 %v10907_v25  ;;  %v10914_v63 = vld [vmem:[#allocation19_spill] sm:$0xff]  ;;  %v10915_v25 = vld [vmem:[#allocation20_spill] sm:$0xff] }
 0x61a   :  { %2123 = vmatmul.mubr.f32.vlgmr.msra.gmra.mrb[12].mxu0 %v8992_v1  ;;  %2194 = vmatmul.mubr.f32.vlgmr.msra.gmra.mrb[12].mxu1 %v8992_v1  ;;  %v10917_v1 = vld [vmem:[#allocation22_spill] sm:$0xff] }
 0x61b   :  { %5816 = vmatpush1.bf16.msra.mxu0 %v10908_v46  ;;  %5848 = vmatpush1.bf16.msra.mxu1 %v10909_v21  ;;  %v10918_v46 = vld [vmem:[#allocation23_spill] sm:$0xff]  ;;  %v10919_v21 = vld [vmem:[#allocation24_spill] sm:$0xff] }
 0x61c   :  { %5818 = vmatprep.subr.bf16.mxu0 %v10910_v48  ;;  %5850 = vmatprep.subr.bf16.mxu1 %v10911_v59  ;;  %v10920_v48 = vld [vmem:[#allocation25_spill] sm:$0xff]  ;;  %v10921_v59 = vld [vmem:[#allocation26_spill] sm:$0xff] }
 0x61d   :  { %2329 = vmatprep.mubr.f32.mxu0 %v10912_v32  ;;  %2400 = vmatprep.mubr.f32.mxu1 %v10912_v32  ;;  %v10923_v32 = vld [vmem:[#allocation28_spill] sm:$0xff] }
 0x61f   :  { %5820 = vmatpush1.bf16.msra.mxu0 %v10913_v34  ;;  %5852 = vmatpush1.bf16.msra.mxu1 %v10914_v63  ;;  %v10924_v34 = vld [vmem:[#allocation29_spill] sm:$0xff]  ;;  %v10925_v63 = vld [vmem:[#allocation30_spill] sm:$0xff] }
 0x620   :  { %5822 = vmatprep.subr.bf16.mxu0 %v10915_v25  ;;  %5854 = vmatprep.subr.bf16.mxu1 %v10916_v28  ;;  %v10926_v25 = vld [vmem:[#allocation31_spill] sm:$0xff]  ;;  %v10927_v28 = vld [vmem:[#allocation32_spill] sm:$0xff] }
 0x623   :  { %5824 = vmatpush1.bf16.msra.mxu0 %v10917_v1  ;;  %5856 = vmatpush1.bf16.msra.mxu1 %v10918_v46  ;;  %v10928_v1 = vld [vmem:[#allocation33_spill] sm:$0xff]  ;;  %v10929_v46 = vld [vmem:[#allocation34_spill] sm:$0xff] }
 0x624   :  { %5826 = vmatprep.subr.bf16.mxu0 %v10919_v21  ;;  %5858 = vmatprep.subr.bf16.mxu1 %v10920_v48  ;;  %v10930_v21 = vld [vmem:[#allocation35_spill] sm:$0xff]  ;;  %v10931_v48 = vld [vmem:[#allocation36_spill] sm:$0xff] }
 0x627   :  { %5828 = vmatpush1.bf16.msra.mxu0 %v10921_v59  ;;  %5860 = vmatpush1.bf16.msra.mxu1 %v10922_v49  ;;  %v10932_v59 = vld [vmem:[#allocation37_spill] sm:$0xff]  ;;  %v10933_v49 = vld [vmem:[#allocation38_spill] sm:$0xff] }
 0x628   :  { %5830 = vmatprep.subr.bf16.mxu0 %v10923_v32  ;;  %5862 = vmatprep.subr.bf16.mxu1 %v10924_v34  ;;  %v10934_v32 = vld [vmem:[#allocation39_spill] sm:$0xff]  ;;  %v10935_v34 = vld [vmem:[#allocation40_spill] sm:$0xff] }
 0x62b   :  { %5832 = vmatpush1.bf16.msra.mxu0 %v10925_v63  ;;  %5864 = vmatpush1.bf16.msra.mxu1 %v10926_v25  ;;  %v10936_v63 = vld [vmem:[#allocation41_spill] sm:$0xff]  ;;  %v10937_v25 = vld [vmem:[#allocation42_spill] sm:$0xff] }
 0x62c   :  { %5834 = vmatprep.subr.bf16.mxu0 %v10927_v28  ;;  %5866 = vmatprep.subr.bf16.mxu1 %v10928_v1  ;;  %v10938_v28 = vld [vmem:[#allocation43_spill] sm:$0xff]  ;;  %v10939_v1 = vld [vmem:[#allocation44_spill] sm:$0xff] }
 0x62f   :  { %5836 = vmatpush1.bf16.msra.mxu0 %v10929_v46  ;;  %5868 = vmatpush1.bf16.msra.mxu1 %v10930_v21  ;;  %v10940_v46 = vld [vmem:[#allocation45_spill] sm:$0xff]  ;;  %v10941_v21 = vld [vmem:[#allocation50_spill] sm:$0xff] }
 0x630   :  { %5838 = vmatprep.subr.bf16.mxu0 %v10931_v48  ;;  %5870 = vmatprep.subr.bf16.mxu1 %v10932_v59  ;;  %v10942_v48 = vld [vmem:[#allocation96_spill] sm:$0xff]  ;;  %v10943_v59 = vld [vmem:[#allocation97_spill] sm:$0xff] }
 0x631   :  { %v1908_v36 = vadd.f32 %v10942_v48, %v10941_v21  ;;  %v1911_v48 = vadd.f32 %v10950_v40, %v10657_v16 }
 0x633   :  { %5840 = vmatpush1.bf16.msra.mxu0 %v10933_v49  ;;  %5872 = vmatpush1.bf16.msra.mxu1 %v10934_v32  ;;  %v1912_v49 = vadd.f32 %v10943_v59, %v10941_v21  ;;  %v10945_v32 = vld [vmem:[#allocation98_spill] sm:$0xff]  ;;  %v1915_v59 = vadd.f32 %v10951_v26, %v10657_v16 }
 0x634   :  { %5842 = vmatprep.subr.bf16.mxu0 %v10935_v34  ;;  %5874 = vmatprep.subr.bf16.mxu1 %v10936_v63  ;;  %v1910_v8 = vadd.f32 %v10945_v32, %v10944_v14  ;;  %v10946_v34 = vld [vmem:[#allocation99_spill] sm:$0xff] }
 0x635   :  { %v1914_v63 = vadd.f32 %v10946_v34, %v10944_v14 }
 0x637   :  { %5844 = vmatpush1.bf16.msra.mxu0 %v10937_v25  ;;  %5876 = vmatpush1.bf16.msra.mxu1 %v10938_v28  ;;  %v10948_v28 = vld [vmem:[#allocation100_spill] sm:$0xff] }
 0x638   :  { %5878 = vmatprep.subr.bf16.mxu0 %v10939_v1  ;;  %5942 = vmatprep.subr.bf16.mxu1 %v10940_v46  ;;  %v1909_v30 = vadd.f32 %v10948_v28, %v10947_v0  ;;  %v10949_v1 = vld [vmem:[#allocation101_spill] sm:$0xff] }
 0x639   :  { %v1913_v46 = vadd.f32 %v10949_v1, %v10947_v0 }
 0x6ad   :  { %v1982_v57 = vpop.f32.mrb[10].mxu0  ;;  %v2053_v25 = vpop.f32.mrb[10].mxu1 }
 0x6ae   :  { %v2204_v21 = vrot.slane %v1982_v57, 1  ;;  %v2216_v37 = vadd.f32 %v1982_v57, %v1908_v36  ;;  %v2206_v32 = vrot.slane %v2053_v25, 1  ;;  %v2218_v50 = vadd.f32 %v2053_v25, %v1910_v8  ;;  %v1984_v45 = vpop.f32.mrb[11].mxu0  ;;  %v2055_v34 = vpop.f32.mrb[11].mxu1 }
 0x6af   :  { %v2205_v14 = vrot.slane %v1984_v45, 1  ;;  %v2217_v18 = vadd.f32 %v1984_v45, %v1909_v30  ;;  %v2207_v23 = vrot.slane %v2055_v34, 1  ;;  %v2219_v6 = vadd.f32 %v2055_v34, %v1911_v48 }
 0x6b0   :  { %v2220_v28 = vadd.f32 %v2204_v21, %v1912_v49  ;;  %v2224_v39 = vmul.f32 0.5, %v2216_v37  ;;  %v2222_v9 = vadd.f32 %v2206_v32, %v1914_v63  ;;  %v2226_v63 = vmul.f32 0.5, %v2218_v50 }
 0x6b1   :  { %v2221_v1 = vadd.f32 %v2205_v14, %v1913_v46  ;;  %v2223_v0 = vadd.f32 %v2207_v23, %v1915_v59  ;;  %v2225_v40 = vmul.f32 0.5, %v2217_v18 }
 0x6b2   :  { %v2227_v41 = vmul.f32 0.5, %v2220_v28  ;;  %7319 = vtanh.f32 %v2224_v39  ;;  %v2229_v45 = vmul.f32 0.5, %v2222_v9 }
 0x6b3   :  { %v2228_v38 = vmul.f32 0.5, %v2221_v1 }
 0x6b4   :  { %7321 = vtanh.f32 %v2227_v41 }
 0x6b5   :  { %7323 = vtanh.f32 %v2219_v6 }
 0x6b6   :  { %7325 = vtanh.f32 %v2225_v40 }
 0x6b7   :  { %7327 = vtanh.f32 %v2228_v38 }
 0x6b8   :  { %7329 = vtanh.f32 %v2223_v0 }
 0x6b9   :  { %7331 = vtanh.f32 %v2229_v45  ;;  %v10952_v45 = vld [vmem:[#allocation123_spill] sm:$0xff] }
 0x6ba   :  { %7333 = vtanh.f32 %v2226_v63  ;;  %v10957_v63 = vld [vmem:[#allocation128_spill] sm:$0xff] }
 0x6bc   :  { %v7320_v26 = vpop.eup %7319 }
 0x6bd   :  { %v2236_v57 = vmul.f32 0.5, %v7320_v26 }
 0x6be   :  { %v7322_v8 = vpop.eup %7321 }
 0x6bf   :  { %v7324_v30 = vpop.eup %7323  ;;  %v2239_v25 = vmul.f32 0.5, %v7322_v8  ;;  %v2242_v36 = vadd.f32 0.5, %v2236_v57 }
 0x6c0   :  { %v7326_v37 = vpop.eup %7325 }
 0x6c1   :  { %v7328_v14 = vpop.eup %7327  ;;  %v2245_v23 = vadd.f32 0.5, %v2239_v25  ;;  %v2237_v49 = vmul.f32 0.5, %v7326_v37  ;;  %v2252_v39 = vmul.f32 %v7324_v30, %v2242_v36  ;;  %v10953_v30 = vld [vmem:[#allocation124_spill] sm:$0xff]  ;;  %v10954_v25 = vld [vmem:[#allocation125_spill] sm:$0xff]  ;;  %v10955_v36 = vld [vmem:[#allocation126_spill] sm:$0xff] }
 0x6c2   :  { %v7330_v18 = vpop.eup %7329  ;;  %v2240_v41 = vmul.f32 0.5, %v7328_v14  ;;  %v10956_v37 = vld [vmem:[#allocation127_spill] sm:$0xff]  ;;  %v10958_v14 = vld [vmem:[#allocation129_spill] sm:$0xff] }
 0x6c3   :  { %v2243_v6 = vadd.f32 0.5, %v2237_v49  ;;  %v2253_v46 = vmul.f32 %v7330_v18, %v2245_v23  ;;  %v7332_v50 = vpop.eup %7331  ;;  %v10959_v23 = vld [vmem:[#allocation130_spill] sm:$0xff]  ;;  %v10960_v49 = vld [vmem:[#allocation131_spill] sm:$0xff]  ;;  %v10962_v18 = vld [vmem:[#allocation133_spill] sm:$0xff] }
 0x6c4   :  { %v2246_v38 = vadd.f32 0.5, %v2240_v41  ;;  %v7334_v59 = vpop.eup %7333  ;;  %v2241_v32 = vmul.f32 0.5, %v7332_v50  ;;  %v10963_v41 = vld [vmem:[#allocation134_spill] sm:$0xff]  ;;  %v10969_v50 = vld [vmem:[#allocation140_spill] sm:$0xff] }
 0x6c5   :  { %v2250_v0 = vmul.f32 %v2243_v6, %v8985_v56  ;;  %v2238_v34 = vmul.f32 0.5, %v7334_v59  ;;  %v10964_v6 = vld [vmem:[#allocation135_spill] sm:$0xff]  ;;  %v10970_v59 = vld [vmem:[#allocation141_spill] sm:$0xff] }
 0x6c6   :  { %v2251_v9 = vmul.f32 %v2246_v38, %v8987_v42  ;;  %v2247_v1 = vadd.f32 0.5, %v2241_v32  ;;  %v10966_v38 = vld [vmem:[#allocation137_spill] sm:$0xff]  ;;  %v10971_v32 = vld [vmem:[#allocation142_spill] sm:$0xff] }
 0x6c7   :  { %v9188_v21 = vadd.f32 %v2252_v39, %v2250_v0  ;;  %v2244_v26 = vadd.f32 0.5, %v2238_v34  ;;  %v10961_v39 = vld [vmem:[#allocation132_spill] sm:$0xff]  ;;  %v10967_v0 = vld [vmem:[#allocation138_spill] sm:$0xff]  ;;  %v10972_v34 = vld [vmem:[#allocation143_spill] sm:$0xff] }
 0x6c8   :  { %v9190_v48 = vadd.f32 %v2253_v46, %v2251_v9  ;;  %v10965_v46 = vld [vmem:[#allocation136_spill] sm:$0xff]  ;;  %v10968_v9 = vld [vmem:[#allocation139_spill] sm:$0xff] }
 0x6c9   :  { %7335 = vtanh.f32 %v9188_v21 }
 0x6ca   :  { %7337 = vtanh.f32 %v9190_v48 }
 0x6d3   :  { %v7336_v28 = vpop.eup %7335 }
 0x6d4   :  { %v7338_v40 = vpop.eup %7337  ;;  %v2258_v56 = vmul.f32 %v7336_v28, %v2244_v26  ;;  %v10973_v28 = vld [vmem:[#allocation144_spill] sm:$0xff]  ;;  %v10976_v26 = vld [vmem:[#allocation147_spill] sm:$0xff] }
 0x6d5   :  { %v2259_v57 = vmul.f32 %v7338_v40, %v2247_v1  ;;  %v10974_v1 = vld [vmem:[#allocation145_spill] sm:$0xff]  ;;  %v10975_v40 = vld [vmem:[#allocation146_spill] sm:$0xff] }
 0x6d7   :  { %v2262_v8 = vrot.slane %v2259_v57, 7  ;;  %v10977_v57 = vld [vmem:[#allocation148_spill] sm:$0xff] }
 0x6d9   :  { %v9195_v42 = vsel %vm315_vm0, %v2262_v8, %v2258_v56  ;;  %v10978_v56 = vld [vmem:[#allocation149_spill] sm:$0xff]  ;;  %v10979_v8 = vld [vmem:[#allocation150_spill] sm:$0xff] }
 0x6da   :  { %2330 = vmatmul.mubr.f32.vlgmr.msra.gmra.mrb[12].mxu0 %v9195_v42  ;;  %2401 = vmatmul.mubr.f32.vlgmr.msra.gmra.mrb[12].mxu1 %v9195_v42 }
 0x6db   :  { %5880 = vmatpush1.bf16.msra.mxu0 %v10662_v60  ;;  %5944 = vmatpush1.bf16.msra.mxu1 %v10663_v35 }
 0x6dc   :  { %5882 = vmatprep.subr.bf16.mxu0 %v10664_v3  ;;  %5946 = vmatprep.subr.bf16.mxu1 %v7930_v15 }
 0x6df   :  { %5884 = vmatpush1.bf16.msra.mxu0 %v10665_v52  ;;  %5948 = vmatpush1.bf16.msra.mxu1 %v10666_v17 }
 0x6e0   :  { %5886 = vmatprep.subr.bf16.mxu0 %v10667_v22  ;;  %5950 = vmatprep.subr.bf16.mxu1 %v10668_v10 }
 0x6e3   :  { %5888 = vmatpush1.bf16.msra.mxu0 %v10669_v19  ;;  %5952 = vmatpush1.bf16.msra.mxu1 %v10670_v58 }
 0x6e4   :  { %5890 = vmatprep.subr.bf16.mxu0 %v10671_v53  ;;  %5954 = vmatprep.subr.bf16.mxu1 %v10672_v2 }
 0x6e7   :  { %5892 = vmatpush1.bf16.msra.mxu0 %v10475_v54  ;;  %5956 = vmatpush1.bf16.msra.mxu1 %v10476_v61 }
 0x6e8   :  { %5894 = vmatprep.subr.bf16.mxu0 %v10477_v24  ;;  %5958 = vmatprep.subr.bf16.mxu1 %v10479_v20 }
 0x6eb   :  { %5896 = vmatpush1.bf16.msra.mxu0 %v10488_v12  ;;  %5960 = vmatpush1.bf16.msra.mxu1 %v10489_v51 }
 0x6ec   :  { %5898 = vmatprep.subr.bf16.mxu0 %v10490_v44  ;;  %5962 = vmatprep.subr.bf16.mxu1 %v10491_v4 }
 0x6ef   :  { %5900 = vmatpush1.bf16.msra.mxu0 %v10500_v47  ;;  %5964 = vmatpush1.bf16.msra.mxu1 %v10501_v33 }
 0x6f0   :  { %5902 = vmatprep.subr.bf16.mxu0 %v10502_v11  ;;  %5966 = vmatprep.subr.bf16.mxu1 %v10503_v55 }
 0x6f3   :  { %5904 = vmatpush1.bf16.msra.mxu0 %v8375_v29  ;;  %5968 = vmatpush1.bf16.msra.mxu1 %v8383_v27 }
 0x6f4   :  { %5906 = vmatprep.subr.bf16.mxu0 %v8402_v62  ;;  %5970 = vmatprep.subr.bf16.mxu1 %v8404_v31 }
 0x6f7   :  { %5908 = vmatpush1.bf16.msra.mxu0 %v8406_v13  ;;  %5972 = vmatpush1.bf16.msra.mxu1 %v8409_v5 }
 0x6f8   :  { %5910 = vmatprep.subr.bf16.mxu0 %v8414_v43  ;;  %5974 = vmatprep.subr.bf16.mxu1 %v8416_v7 }
 0x6fb   :  { %5912 = vmatpush1.bf16.msra.mxu0 %v10952_v45  ;;  %5976 = vmatpush1.bf16.msra.mxu1 %v10953_v30 }
 0x6fc   :  { %5914 = vmatprep.subr.bf16.mxu0 %v10954_v25  ;;  %5978 = vmatprep.subr.bf16.mxu1 %v10955_v36 }
 0x6ff   :  { %5916 = vmatpush1.bf16.msra.mxu0 %v10956_v37  ;;  %5980 = vmatpush1.bf16.msra.mxu1 %v10957_v63 }
 0x700   :  { %5918 = vmatprep.subr.bf16.mxu0 %v10958_v14  ;;  %5982 = vmatprep.subr.bf16.mxu1 %v10959_v23 }
 0x703   :  { %5920 = vmatpush1.bf16.msra.mxu0 %v10960_v49  ;;  %5984 = vmatpush1.bf16.msra.mxu1 %v10961_v39 }
 0x704   :  { %5922 = vmatprep.subr.bf16.mxu0 %v10962_v18  ;;  %5986 = vmatprep.subr.bf16.mxu1 %v10963_v41 }
 0x707   :  { %5924 = vmatpush1.bf16.msra.mxu0 %v10964_v6  ;;  %5988 = vmatpush1.bf16.msra.mxu1 %v10965_v46 }
 0x708   :  { %5926 = vmatprep.subr.bf16.mxu0 %v10966_v38  ;;  %5990 = vmatprep.subr.bf16.mxu1 %v10967_v0  ;;  %v10985_v38 = vld [vmem:[#allocation47_spill] sm:$0xff] }
 0x70b   :  { %5928 = vmatpush1.bf16.msra.mxu0 %v10968_v9  ;;  %5992 = vmatpush1.bf16.msra.mxu1 %v10969_v50  ;;  %v10980_v50 = vld [vmem:[#allocation151_spill] sm:$0xff]  ;;  %v10984_v9 = vld [vmem:[#allocation46_spill] sm:$0xff] }
 0x70c   :  { %5930 = vmatprep.subr.bf16.mxu0 %v10970_v59  ;;  %5994 = vmatprep.subr.bf16.mxu1 %v10971_v32  ;;  %v10981_v59 = vld [vmem:[#allocation152_spill] sm:$0xff]  ;;  %v10982_v32 = vld [vmem:[#allocation153_spill] sm:$0xff] }
 0x70f   :  { %5932 = vmatpush1.bf16.msra.mxu0 %v10972_v34  ;;  %5996 = vmatpush1.bf16.msra.mxu1 %v10973_v28  ;;  %v10983_v34 = vld [vmem:[#allocation154_spill] sm:$0xff] }
 0x710   :  { %5934 = vmatprep.subr.bf16.mxu0 %v10974_v1  ;;  %5998 = vmatprep.subr.bf16.mxu1 %v10975_v40 }
 0x713   :  { %5936 = vmatpush1.bf16.msra.mxu0 %v10976_v26  ;;  %6000 = vmatpush1.bf16.msra.mxu1 %v10977_v57 }
 0x714   :  { %5938 = vmatprep.subr.bf16.mxu0 %v10978_v56  ;;  %6002 = vmatprep.subr.bf16.mxu1 %v10979_v8  ;;  %v10986_v8 = vld [vmem:[#allocation48_spill] sm:$0xff] }
 0x717   :  { %5940 = vmatpush1.bf16.msra.mxu0 %v10980_v50  ;;  %6004 = vmatpush1.bf16.msra.mxu1 %v10981_v59  ;;  %v10987_v59 = vld [vmem:[#allocation49_spill] sm:$0xff] }
 0x718   :  { %6006 = vmatprep.subr.bf16.mxu0 %v10982_v32  ;;  %6070 = vmatprep.subr.bf16.mxu1 %v10983_v34 }
 0x7ad   :  { %v2331_v28 = vpop.f32.mrb[12].mxu0  ;;  %v2402_v1 = vpop.f32.mrb[12].mxu1 }
 0x7ae   :  { %v2407_v40 = vadd.f32 %v2331_v28, %v10984_v9  ;;  %v2333_v0 = vpop.f32.mrb[13].mxu0  ;;  %v2404_v26 = vpop.f32.mrb[13].mxu1  ;;  %v2409_v50 = vadd.f32 %v2402_v1, %v10987_v59 }
 0x7af   :  { %v2408_v57 = vadd.f32 %v2333_v0, %v10985_v38  ;;  %v2410_v6 = vadd.f32 %v2404_v26, %v10986_v8  ;;  %v10988_v0 = vld [vmem:[#allocation55_spill] sm:$0xff] }
 0x7b0   :  { %v2411_v46 = vmul.f32 0.5, %v2407_v40  ;;  %v2413_v32 = vmul.f32 0.5, %v2409_v50 }
 0x7b1   :  { %v2412_v56 = vmul.f32 0.5, %v2408_v57 }
 0x7b2   :  { %7339 = vtanh.f32 %v2411_v46 }
 0x7b3   :  { %7341 = vtanh.f32 %v2412_v56  ;;  %v10998_v56 = vld [vmem:[#allocation164_spill] sm:$0xff] }
 0x7b4   :  { %7343 = vtanh.f32 %v2410_v6 }
 0x7b5   :  { %7345 = vtanh.f32 %v2413_v32  ;;  %v10996_v32 = vld [vmem:[#allocation162_spill] sm:$0xff] }
 0x7bc   :  { %v7340_v41 = vpop.eup %7339 }
 0x7bd   :  { %v2417_v34 = vmul.f32 0.5, %v7340_v41  ;;  %v7342_v18 = vpop.eup %7341  ;;  %v10994_v41 = vld [vmem:[#allocation160_spill] sm:$0xff] }
 0x7be   :  { %v2418_v28 = vmul.f32 0.5, %v7342_v18  ;;  %v7344_v9 = vpop.eup %7343  ;;  %v10990_v18 = vld [vmem:[#allocation156_spill] sm:$0xff] }
 0x7bf   :  { %v2420_v39 = vadd.f32 0.5, %v2417_v34  ;;  %v7346_v46 = vpop.eup %7345  ;;  %v10997_v34 = vld [vmem:[#allocation163_spill] sm:$0xff] }
 0x7c0   :  { %v2421_v49 = vadd.f32 0.5, %v2418_v28  ;;  %v2419_v6 = vmul.f32 0.5, %v7346_v46  ;;  %v10999_v28 = vld [vmem:[#allocation165_spill] sm:$0xff]  ;;  %v11002_v46 = vld [vmem:[#allocation168_spill] sm:$0xff] }
 0x7c1   :  { %v2425_v23 = vmul.f32 %v7344_v9, %v2420_v39  ;;  %v10991_v39 = vld [vmem:[#allocation157_spill] sm:$0xff] }
 0x7c2   :  { %v2424_v40 = vmul.f32 %v2421_v49, %v10988_v0  ;;  %v2422_v26 = vadd.f32 0.5, %v2419_v6  ;;  %v10993_v49 = vld [vmem:[#allocation159_spill] sm:$0xff]  ;;  %v10995_v9 = vld [vmem:[#allocation161_spill] sm:$0xff]  ;;  %v11000_v0 = vld [vmem:[#allocation166_spill] sm:$0xff] }
 0x7c3   :  { %v11003_v6 = vld [vmem:[#allocation169_spill] sm:$0xff] }
 0x7c4   :  { %v9268_v57 = vadd.f32 %v2425_v23, %v2424_v40  ;;  %v10992_v23 = vld [vmem:[#allocation158_spill] sm:$0xff]  ;;  %v11001_v40 = vld [vmem:[#allocation167_spill] sm:$0xff] }
 0x7c6   :  { %10989 = vst [vmem:[#allocation61_spill] sm:$0xff] %v9268_v57  ;;  %7347 = vtanh.f32 %v9268_v57  ;;  %v11097_v57 = vld [vmem:[#allocation73_spill] sm:$0xff] }
 0x7d0   :  { %v7348_v1 = vpop.eup %7347 }
 0x7d1   :  { %v2428_v50 = vmul.f32 %v7348_v1, %v2422_v26  ;;  %v11004_v26 = vld [vmem:[#allocation170_spill] sm:$0xff]  ;;  %v11005_v1 = vld [vmem:[#allocation171_spill] sm:$0xff] }
 0x7d3   :  { %2545 = vmatprep.mubr.f32.mxu0 %v2428_v50  ;;  %2616 = vmatprep.mubr.f32.mxu1 %v2428_v50 }
 0x7d4   :  { %2546 = vmatmul.mubr.f32.vlgmr.msra.gmra.mrb[14].mxu0 %v9195_v42  ;;  %2617 = vmatmul.mubr.f32.vlgmr.msra.gmra.mrb[14].mxu1 %v9195_v42 }
 0x7d5   :  { %6008 = vmatpush1.bf16.msra.mxu0 %v10990_v18  ;;  %6072 = vmatpush1.bf16.msra.mxu1 %v10991_v39  ;;  %v11096_v18 = vld [vmem:[#allocation72_spill] sm:$0xff] }
 0x7d6   :  { %2687 = vmatprep.mubr.f32.mxu0 %v2428_v50  ;;  %2758 = vmatprep.mubr.f32.mxu1 %v2428_v50  ;;  %v11006_v50 = vld [vmem:[#allocation172_spill] sm:$0xff] }
 0x7d7   :  { %6010 = vmatprep.subr.bf16.mxu0 %v10992_v23  ;;  %6074 = vmatprep.subr.bf16.mxu1 %v10993_v49  ;;  %v11093_v23 = vld [vmem:[#allocation51_spill] sm:$0xff] }
 0x7d9   :  { %6012 = vmatpush1.bf16.msra.mxu0 %v10994_v41  ;;  %6076 = vmatpush1.bf16.msra.mxu1 %v10995_v9  ;;  %v11090_v9 = vld [vmem:[#allocation53_spill] sm:$0xff] }
 0x7da   :  { %6014 = vmatprep.subr.bf16.mxu0 %v10996_v32  ;;  %6078 = vmatprep.subr.bf16.mxu1 %v10997_v34  ;;  %v11007_v32 = vld [vmem:[#allocation173_spill] sm:$0xff]  ;;  %v11008_v34 = vld [vmem:[#allocation174_spill] sm:$0xff] }
 0x7dd   :  { %6016 = vmatpush1.bf16.msra.mxu0 %v10998_v56  ;;  %6080 = vmatpush1.bf16.msra.mxu1 %v10999_v28  ;;  %v11009_v56 = vld [vmem:[#allocation175_spill] sm:$0xff]  ;;  %v11010_v28 = vld [vmem:[#allocation176_spill] sm:$0xff] }
 0x7de   :  { %6018 = vmatprep.subr.bf16.mxu0 %v11000_v0  ;;  %6082 = vmatprep.subr.bf16.mxu1 %v11001_v40  ;;  %v11011_v0 = vld [vmem:[#allocation177_spill] sm:$0xff]  ;;  %v11012_v40 = vld [vmem:[#allocation178_spill] sm:$0xff] }
 0x7e1   :  { %6020 = vmatpush1.bf16.msra.mxu0 %v11002_v46  ;;  %6084 = vmatpush1.bf16.msra.mxu1 %v11003_v6  ;;  %v11013_v46 = vld [vmem:[#allocation179_spill] sm:$0xff]  ;;  %v11014_v6 = vld [vmem:[#allocation180_spill] sm:$0xff] }
 0x7e2   :  { %6022 = vmatprep.subr.bf16.mxu0 %v11004_v26  ;;  %6086 = vmatprep.subr.bf16.mxu1 %v11005_v1  ;;  %v11015_v26 = vld [vmem:[#allocation181_spill] sm:$0xff]  ;;  %v11016_v1 = vld [vmem:[#allocation182_spill] sm:$0xff] }
 0x7e5   :  { %6024 = vmatpush1.bf16.msra.mxu0 %v11006_v50  ;;  %6088 = vmatpush1.bf16.msra.mxu1 %v11007_v32  ;;  %v11017_v50 = vld [vmem:[#allocation183_spill] sm:$0xff]  ;;  %v11018_v32 = vld [vmem:[#allocation184_spill] sm:$0xff] }
 0x7e6   :  { %6026 = vmatprep.subr.bf16.mxu0 %v11008_v34  ;;  %6090 = vmatprep.subr.bf16.mxu1 %v11009_v56  ;;  %v11019_v34 = vld [vmem:[#allocation185_spill] sm:$0xff]  ;;  %v11020_v56 = vld [vmem:[#allocation186_spill] sm:$0xff] }
 0x7e9   :  { %6028 = vmatpush1.bf16.msra.mxu0 %v11010_v28  ;;  %6092 = vmatpush1.bf16.msra.mxu1 %v11011_v0  ;;  %v11021_v28 = vld [vmem:[#allocation187_spill] sm:$0xff]  ;;  %v11022_v0 = vld [vmem:[#allocation188_spill] sm:$0xff] }
 0x7ea   :  { %6030 = vmatprep.subr.bf16.mxu0 %v11012_v40  ;;  %6094 = vmatprep.subr.bf16.mxu1 %v11013_v46  ;;  %v11023_v40 = vld [vmem:[#allocation189_spill] sm:$0xff]  ;;  %v11024_v46 = vld [vmem:[#allocation190_spill] sm:$0xff] }
 0x7ed   :  { %6032 = vmatpush1.bf16.msra.mxu0 %v11014_v6  ;;  %6096 = vmatpush1.bf16.msra.mxu1 %v11015_v26  ;;  %v11025_v6 = vld [vmem:[#allocation191_spill] sm:$0xff]  ;;  %v11026_v26 = vld [vmem:[#allocation192_spill] sm:$0xff] }
 0x7ee   :  { %6034 = vmatprep.subr.bf16.mxu0 %v11016_v1  ;;  %6098 = vmatprep.subr.bf16.mxu1 %v11017_v50  ;;  %v11027_v1 = vld [vmem:[#allocation193_spill] sm:$0xff]  ;;  %v11028_v50 = vld [vmem:[#allocation194_spill] sm:$0xff] }
 0x7f1   :  { %6036 = vmatpush1.bf16.msra.mxu0 %v11018_v32  ;;  %6100 = vmatpush1.bf16.msra.mxu1 %v11019_v34  ;;  %v11029_v32 = vld [vmem:[#allocation195_spill] sm:$0xff]  ;;  %v11030_v34 = vld [vmem:[#allocation196_spill] sm:$0xff] }
 0x7f2   :  { %6038 = vmatprep.subr.bf16.mxu0 %v11020_v56  ;;  %6102 = vmatprep.subr.bf16.mxu1 %v11021_v28  ;;  %v11031_v56 = vld [vmem:[#allocation197_spill] sm:$0xff]  ;;  %v11032_v28 = vld [vmem:[#allocation198_spill] sm:$0xff] }
 0x7f5   :  { %6040 = vmatpush1.bf16.msra.mxu0 %v11022_v0  ;;  %6104 = vmatpush1.bf16.msra.mxu1 %v11023_v40  ;;  %v11033_v0 = vld [vmem:[#allocation199_spill] sm:$0xff]  ;;  %v11034_v40 = vld [vmem:[#allocation200_spill] sm:$0xff] }
 0x7f6   :  { %6042 = vmatprep.subr.bf16.mxu0 %v11024_v46  ;;  %6106 = vmatprep.subr.bf16.mxu1 %v11025_v6  ;;  %v11035_v46 = vld [vmem:[#allocation201_spill] sm:$0xff]  ;;  %v11036_v6 = vld [vmem:[#allocation202_spill] sm:$0xff] }
 0x7f9   :  { %6044 = vmatpush1.bf16.msra.mxu0 %v11026_v26  ;;  %6108 = vmatpush1.bf16.msra.mxu1 %v11027_v1  ;;  %v11037_v26 = vld [vmem:[#allocation203_spill] sm:$0xff]  ;;  %v11038_v1 = vld [vmem:[#allocation204_spill] sm:$0xff] }
 0x7fa   :  { %6046 = vmatprep.subr.bf16.mxu0 %v11028_v50  ;;  %6110 = vmatprep.subr.bf16.mxu1 %v11029_v32  ;;  %v11039_v50 = vld [vmem:[#allocation205_spill] sm:$0xff]  ;;  %v11040_v32 = vld [vmem:[#allocation206_spill] sm:$0xff] }
 0x7fd   :  { %6048 = vmatpush1.bf16.msra.mxu0 %v11030_v34  ;;  %6112 = vmatpush1.bf16.msra.mxu1 %v11031_v56  ;;  %v11041_v34 = vld [vmem:[#allocation207_spill] sm:$0xff]  ;;  %v11042_v56 = vld [vmem:[#allocation208_spill] sm:$0xff] }
 0x7fe   :  { %6050 = vmatprep.subr.bf16.mxu0 %v11032_v28  ;;  %6114 = vmatprep.subr.bf16.mxu1 %v11033_v0  ;;  %v11043_v28 = vld [vmem:[#allocation209_spill] sm:$0xff]  ;;  %v11044_v0 = vld [vmem:[#allocation210_spill] sm:$0xff] }
 0x801   :  { %6052 = vmatpush1.bf16.msra.mxu0 %v11034_v40  ;;  %6116 = vmatpush1.bf16.msra.mxu1 %v11035_v46  ;;  %v11045_v40 = vld [vmem:[#allocation211_spill] sm:$0xff]  ;;  %v11046_v46 = vld [vmem:[#allocation212_spill] sm:$0xff] }
 0x802   :  { %6054 = vmatprep.subr.bf16.mxu0 %v11036_v6  ;;  %6118 = vmatprep.subr.bf16.mxu1 %v11037_v26  ;;  %v11047_v6 = vld [vmem:[#allocation213_spill] sm:$0xff]  ;;  %v11048_v26 = vld [vmem:[#allocation214_spill] sm:$0xff] }
 0x805   :  { %6056 = vmatpush1.bf16.msra.mxu0 %v11038_v1  ;;  %6120 = vmatpush1.bf16.msra.mxu1 %v11039_v50  ;;  %v11049_v1 = vld [vmem:[#allocation215_spill] sm:$0xff]  ;;  %v11050_v50 = vld [vmem:[#allocation216_spill] sm:$0xff] }
 0x806   :  { %6058 = vmatprep.subr.bf16.mxu0 %v11040_v32  ;;  %6122 = vmatprep.subr.bf16.mxu1 %v11041_v34  ;;  %v11051_v32 = vld [vmem:[#allocation217_spill] sm:$0xff]  ;;  %v11052_v34 = vld [vmem:[#allocation12_spill] sm:$0xff] }
 0x809   :  { %6060 = vmatpush1.bf16.msra.mxu0 %v11042_v56  ;;  %6124 = vmatpush1.bf16.msra.mxu1 %v11043_v28  ;;  %v11053_v56 = vld [vmem:[#allocation13_spill] sm:$0xff] }
 0x80a   :  { %6062 = vmatprep.subr.bf16.mxu0 %v11044_v0  ;;  %6126 = vmatprep.subr.bf16.mxu1 %v11045_v40  ;;  %v11054_v40 = vld [vmem:[#allocation14_spill] sm:$0xff]  ;;  %v11068_v0 = vld [vmem:[#allocation27_spill] sm:$0xff] }
 0x80d   :  { %6064 = vmatpush1.bf16.msra.mxu0 %v11046_v46  ;;  %6128 = vmatpush1.bf16.msra.mxu1 %v11047_v6  ;;  %v11055_v46 = vld [vmem:[#allocation15_spill] sm:$0xff]  ;;  %v11056_v6 = vld [vmem:[#allocation16_spill] sm:$0xff] }
 0x80e   :  { %6066 = vmatprep.subr.bf16.mxu0 %v11048_v26  ;;  %6130 = vmatprep.subr.bf16.mxu1 %v11049_v1  ;;  %v11057_v26 = vld [vmem:[#allocation17_spill] sm:$0xff]  ;;  %v11058_v1 = vmov 0.0  }
 0x811   :  { %6068 = vmatpush1.bf16.msra.mxu0 %v11050_v50  ;;  %6132 = vmatpush1.bf16.msra.mxu1 %v11051_v32  ;;  %v11059_v32 = vld [vmem:[#allocation18_spill] sm:$0xff]  ;;  %v11062_v50 = vld [vmem:[#allocation21_spill] sm:$0xff] }
 0x812   :  { %6134 = vmatprep.subr.bf16.mxu0 %v11052_v34  ;;  %6166 = vmatprep.subr.bf16.mxu1 %v11053_v56  ;;  %v11060_v34 = vld [vmem:[#allocation19_spill] sm:$0xff]  ;;  %v11061_v56 = vld [vmem:[#allocation20_spill] sm:$0xff] }
 0x814   :  { %2688 = vmatmul.mubr.f32.vlgmr.msra.gmra.mrb[16].mxu0 %v9195_v42  ;;  %2759 = vmatmul.mubr.f32.vlgmr.msra.gmra.mrb[16].mxu1 %v9195_v42  ;;  %v11063_v42 = vld [vmem:[#allocation22_spill] sm:$0xff] }
 0x815   :  { %6136 = vmatpush1.bf16.msra.mxu0 %v11054_v40  ;;  %6168 = vmatpush1.bf16.msra.mxu1 %v11055_v46  ;;  %v11064_v40 = vld [vmem:[#allocation23_spill] sm:$0xff]  ;;  %v11065_v46 = vld [vmem:[#allocation24_spill] sm:$0xff] }
 0x816   :  { %6138 = vmatprep.subr.bf16.mxu0 %v11056_v6  ;;  %6170 = vmatprep.subr.bf16.mxu1 %v11057_v26  ;;  %v11066_v6 = vld [vmem:[#allocation25_spill] sm:$0xff]  ;;  %v11067_v26 = vld [vmem:[#allocation26_spill] sm:$0xff] }
 0x817   :  { %2894 = vmatprep.mubr.f32.mxu0 %v11058_v1  ;;  %2965 = vmatprep.mubr.f32.mxu1 %v11058_v1  ;;  %v11069_v1 = vld [vmem:[#allocation28_spill] sm:$0xff] }
 0x819   :  { %6140 = vmatpush1.bf16.msra.mxu0 %v11059_v32  ;;  %6172 = vmatpush1.bf16.msra.mxu1 %v11060_v34  ;;  %v11070_v32 = vld [vmem:[#allocation29_spill] sm:$0xff]  ;;  %v11071_v34 = vld [vmem:[#allocation30_spill] sm:$0xff] }
 0x81a   :  { %6142 = vmatprep.subr.bf16.mxu0 %v11061_v56  ;;  %6174 = vmatprep.subr.bf16.mxu1 %v11062_v50  ;;  %v11072_v56 = vld [vmem:[#allocation31_spill] sm:$0xff]  ;;  %v11073_v50 = vld [vmem:[#allocation32_spill] sm:$0xff] }
 0x81d   :  { %6144 = vmatpush1.bf16.msra.mxu0 %v11063_v42  ;;  %6176 = vmatpush1.bf16.msra.mxu1 %v11064_v40  ;;  %v11074_v42 = vld [vmem:[#allocation33_spill] sm:$0xff]  ;;  %v11075_v40 = vld [vmem:[#allocation34_spill] sm:$0xff] }
 0x81e   :  { %6146 = vmatprep.subr.bf16.mxu0 %v11065_v46  ;;  %6178 = vmatprep.subr.bf16.mxu1 %v11066_v6  ;;  %v11076_v46 = vld [vmem:[#allocation35_spill] sm:$0xff]  ;;  %v11077_v6 = vld [vmem:[#allocation36_spill] sm:$0xff] }
 0x821   :  { %6148 = vmatpush1.bf16.msra.mxu0 %v11067_v26  ;;  %6180 = vmatpush1.bf16.msra.mxu1 %v11068_v0  ;;  %v11078_v26 = vld [vmem:[#allocation37_spill] sm:$0xff]  ;;  %v11079_v0 = vld [vmem:[#allocation38_spill] sm:$0xff] }
 0x822   :  { %6150 = vmatprep.subr.bf16.mxu0 %v11069_v1  ;;  %6182 = vmatprep.subr.bf16.mxu1 %v11070_v32  ;;  %v11080_v1 = vld [vmem:[#allocation39_spill] sm:$0xff]  ;;  %v11081_v32 = vld [vmem:[#allocation40_spill] sm:$0xff] }
 0x825   :  { %6152 = vmatpush1.bf16.msra.mxu0 %v11071_v34  ;;  %6184 = vmatpush1.bf16.msra.mxu1 %v11072_v56  ;;  %v11082_v34 = vld [vmem:[#allocation41_spill] sm:$0xff]  ;;  %v11083_v56 = vld [vmem:[#allocation42_spill] sm:$0xff] }
 0x826   :  { %6154 = vmatprep.subr.bf16.mxu0 %v11073_v50  ;;  %6186 = vmatprep.subr.bf16.mxu1 %v11074_v42  ;;  %v11084_v50 = vld [vmem:[#allocation43_spill] sm:$0xff]  ;;  %v11085_v42 = vld [vmem:[#allocation44_spill] sm:$0xff] }
 0x829   :  { %6156 = vmatpush1.bf16.msra.mxu0 %v11075_v40  ;;  %6188 = vmatpush1.bf16.msra.mxu1 %v11076_v46  ;;  %v11086_v40 = vld [vmem:[#allocation45_spill] sm:$0xff]  ;;  %v11087_v46 = vld [vmem:[#allocation50_spill] sm:$0xff] }
 0x82a   :  { %6158 = vmatprep.subr.bf16.mxu0 %v11077_v6  ;;  %6190 = vmatprep.subr.bf16.mxu1 %v11078_v26  ;;  %v11088_v6 = vld [vmem:[#allocation104_spill] sm:$0xff]  ;;  %v11089_v26 = vld [vmem:[#allocation105_spill] sm:$0xff] }
 0x82b   :  { %v2473_v28 = vadd.f32 %v11088_v6, %v11087_v46  ;;  %v2476_v6 = vadd.f32 %v11096_v18, %v10657_v16 }
 0x82d   :  { %6160 = vmatpush1.bf16.msra.mxu0 %v11079_v0  ;;  %6192 = vmatpush1.bf16.msra.mxu1 %v11080_v1  ;;  %v2477_v0 = vadd.f32 %v11089_v26, %v11087_v46  ;;  %v11091_v1 = vld [vmem:[#allocation106_spill] sm:$0xff]  ;;  %v2480_v26 = vadd.f32 %v11097_v57, %v10657_v16 }
 0x82e   :  { %6162 = vmatprep.subr.bf16.mxu0 %v11081_v32  ;;  %6194 = vmatprep.subr.bf16.mxu1 %v11082_v34  ;;  %v2475_v41 = vadd.f32 %v11091_v1, %v11090_v9  ;;  %v11092_v32 = vld [vmem:[#allocation107_spill] sm:$0xff] }
 0x82f   :  { %v2479_v34 = vadd.f32 %v11092_v32, %v11090_v9 }
 0x831   :  { %6164 = vmatpush1.bf16.msra.mxu0 %v11083_v56  ;;  %6196 = vmatpush1.bf16.msra.mxu1 %v11084_v50  ;;  %v11094_v50 = vld [vmem:[#allocation108_spill] sm:$0xff] }
 0x832   :  { %6198 = vmatprep.subr.bf16.mxu0 %v11085_v42  ;;  %6262 = vmatprep.subr.bf16.mxu1 %v11086_v40  ;;  %v2474_v39 = vadd.f32 %v11094_v50, %v11093_v23  ;;  %v11095_v42 = vld [vmem:[#allocation109_spill] sm:$0xff] }
 0x833   :  { %v2478_v40 = vadd.f32 %v11095_v42, %v11093_v23 }
 0x8a7   :  { %v2547_v49 = vpop.f32.mrb[14].mxu0  ;;  %v2618_v56 = vpop.f32.mrb[14].mxu1 }
 0x8a8   :  { %v2769_v46 = vrot.slane %v2547_v49, 1  ;;  %v2781_v59 = vadd.f32 %v2547_v49, %v2473_v28  ;;  %v2771_v1 = vrot.slane %v2618_v56, 1  ;;  %v2783_v8 = vadd.f32 %v2618_v56, %v2475_v41  ;;  %v2549_v38 = vpop.f32.mrb[15].mxu0  ;;  %v2620_v32 = vpop.f32.mrb[15].mxu1 }
 0x8a9   :  { %v2770_v9 = vrot.slane %v2549_v38, 1  ;;  %v2782_v14 = vadd.f32 %v2549_v38, %v2474_v39  ;;  %v2772_v63 = vrot.slane %v2620_v32, 1  ;;  %v2784_v37 = vadd.f32 %v2620_v32, %v2476_v6 }
 0x8aa   :  { %v2785_v50 = vadd.f32 %v2769_v46, %v2477_v0  ;;  %v2789_v36 = vmul.f32 0.5, %v2781_v59  ;;  %v2787_v25 = vadd.f32 %v2771_v1, %v2479_v34  ;;  %v2791_v34 = vmul.f32 0.5, %v2783_v8 }
 0x8ab   :  { %v2786_v42 = vadd.f32 %v2770_v9, %v2478_v40  ;;  %v2788_v23 = vadd.f32 %v2772_v63, %v2480_v26  ;;  %v2790_v18 = vmul.f32 0.5, %v2782_v14 }
 0x8ac   :  { %v2792_v30 = vmul.f32 0.5, %v2785_v50  ;;  %7349 = vtanh.f32 %v2789_v36  ;;  %v2794_v38 = vmul.f32 0.5, %v2787_v25 }
 0x8ad   :  { %v2793_v45 = vmul.f32 0.5, %v2786_v42 }
 0x8ae   :  { %7351 = vtanh.f32 %v2792_v30 }
 0x8af   :  { %7353 = vtanh.f32 %v2784_v37 }
 0x8b0   :  { %7355 = vtanh.f32 %v2790_v18 }
 0x8b1   :  { %7357 = vtanh.f32 %v2793_v45 }
 0x8b2   :  { %7359 = vtanh.f32 %v2788_v23 }
 0x8b3   :  { %7361 = vtanh.f32 %v2794_v38  ;;  %v11098_v38 = vld [vmem:[#allocation123_spill] sm:$0xff] }
 0x8b4   :  { %7363 = vtanh.f32 %v2791_v34  ;;  %v11103_v34 = vld [vmem:[#allocation128_spill] sm:$0xff] }
 0x8b6   :  { %v7350_v57 = vpop.eup %7349 }
 0x8b7   :  { %v2801_v49 = vmul.f32 0.5, %v7350_v57 }
 0x8b8   :  { %v7352_v41 = vpop.eup %7351 }
 0x8b9   :  { %v7354_v39 = vpop.eup %7353  ;;  %v2804_v56 = vmul.f32 0.5, %v7352_v41  ;;  %v2807_v28 = vadd.f32 0.5, %v2801_v49 }
 0x8ba   :  { %v7356_v59 = vpop.eup %7355 }
 0x8bb   :  { %v7358_v9 = vpop.eup %7357  ;;  %v2810_v63 = vadd.f32 0.5, %v2804_v56  ;;  %v2802_v0 = vmul.f32 0.5, %v7356_v59  ;;  %v2817_v36 = vmul.f32 %v7354_v39, %v2807_v28  ;;  %v11099_v39 = vld [vmem:[#allocation124_spill] sm:$0xff]  ;;  %v11100_v56 = vld [vmem:[#allocation125_spill] sm:$0xff]  ;;  %v11101_v28 = vld [vmem:[#allocation126_spill] sm:$0xff] }
 0x8bc   :  { %v7360_v14 = vpop.eup %7359  ;;  %v2805_v30 = vmul.f32 0.5, %v7358_v9  ;;  %v11102_v59 = vld [vmem:[#allocation127_spill] sm:$0xff]  ;;  %v11104_v9 = vld [vmem:[#allocation129_spill] sm:$0xff] }
 0x8bd   :  { %v2808_v37 = vadd.f32 0.5, %v2802_v0  ;;  %v2818_v40 = vmul.f32 %v7360_v14, %v2810_v63  ;;  %v7362_v8 = vpop.eup %7361  ;;  %v11105_v63 = vld [vmem:[#allocation130_spill] sm:$0xff]  ;;  %v11106_v0 = vld [vmem:[#allocation131_spill] sm:$0xff]  ;;  %v11108_v14 = vld [vmem:[#allocation133_spill] sm:$0xff] }
 0x8be   :  { %v2811_v45 = vadd.f32 0.5, %v2805_v30  ;;  %v7364_v26 = vpop.eup %7363  ;;  %v2806_v1 = vmul.f32 0.5, %v7362_v8  ;;  %v11109_v30 = vld [vmem:[#allocation134_spill] sm:$0xff]  ;;  %v11115_v8 = vld [vmem:[#allocation140_spill] sm:$0xff] }
 0x8bf   :  { %v2815_v23 = vmul.f32 %v2808_v37, %v9188_v21  ;;  %v2803_v32 = vmul.f32 0.5, %v7364_v26  ;;  %v11110_v37 = vld [vmem:[#allocation135_spill] sm:$0xff]  ;;  %v11116_v26 = vld [vmem:[#allocation141_spill] sm:$0xff] }
 0x8c0   :  { %v2816_v25 = vmul.f32 %v2811_v45, %v9190_v48  ;;  %v2812_v42 = vadd.f32 0.5, %v2806_v1  ;;  %v11112_v45 = vld [vmem:[#allocation137_spill] sm:$0xff]  ;;  %v11117_v1 = vld [vmem:[#allocation142_spill] sm:$0xff] }
 0x8c1   :  { %v9391_v46 = vadd.f32 %v2817_v36, %v2815_v23  ;;  %v2809_v57 = vadd.f32 0.5, %v2803_v32  ;;  %v11107_v36 = vld [vmem:[#allocation132_spill] sm:$0xff]  ;;  %v11113_v23 = vld [vmem:[#allocation138_spill] sm:$0xff]  ;;  %v11118_v32 = vld [vmem:[#allocation143_spill] sm:$0xff] }
 0x8c2   :  { %v9393_v6 = vadd.f32 %v2818_v40, %v2816_v25  ;;  %v11111_v40 = vld [vmem:[#allocation136_spill] sm:$0xff]  ;;  %v11114_v25 = vld [vmem:[#allocation139_spill] sm:$0xff] }
 0x8c3   :  { %7365 = vtanh.f32 %v9391_v46 }
 0x8c4   :  { %7367 = vtanh.f32 %v9393_v6 }
 0x8cd   :  { %v7366_v50 = vpop.eup %7365 }
 0x8ce   :  { %v7368_v18 = vpop.eup %7367  ;;  %v2823_v21 = vmul.f32 %v7366_v50, %v2809_v57  ;;  %v11119_v50 = vld [vmem:[#allocation144_spill] sm:$0xff]  ;;  %v11122_v57 = vld [vmem:[#allocation147_spill] sm:$0xff] }
 0x8cf   :  { %v2824_v49 = vmul.f32 %v7368_v18, %v2812_v42  ;;  %v11120_v42 = vld [vmem:[#allocation145_spill] sm:$0xff]  ;;  %v11121_v18 = vld [vmem:[#allocation146_spill] sm:$0xff] }
 0x8d1   :  { %v2827_v41 = vrot.slane %v2824_v49, 7  ;;  %v11123_v49 = vld [vmem:[#allocation148_spill] sm:$0xff] }
 0x8d3   :  { %v9398_v48 = vsel %vm315_vm0, %v2827_v41, %v2823_v21  ;;  %v11124_v21 = vld [vmem:[#allocation149_spill] sm:$0xff]  ;;  %v11125_v41 = vld [vmem:[#allocation150_spill] sm:$0xff] }
 0x8d4   :  { %2895 = vmatmul.mubr.f32.vlgmr.msra.gmra.mrb[16].mxu0 %v9398_v48  ;;  %2966 = vmatmul.mubr.f32.vlgmr.msra.gmra.mrb[16].mxu1 %v9398_v48 }
 0x8d5   :  { %6200 = vmatpush1.bf16.msra.mxu0 %v10662_v60  ;;  %6264 = vmatpush1.bf16.msra.mxu1 %v10663_v35 }
 0x8d6   :  { %6202 = vmatprep.subr.bf16.mxu0 %v10664_v3  ;;  %6266 = vmatprep.subr.bf16.mxu1 %v7930_v15 }
 0x8d9   :  { %6204 = vmatpush1.bf16.msra.mxu0 %v10665_v52  ;;  %6268 = vmatpush1.bf16.msra.mxu1 %v10666_v17 }
 0x8da   :  { %6206 = vmatprep.subr.bf16.mxu0 %v10667_v22  ;;  %6270 = vmatprep.subr.bf16.mxu1 %v10668_v10 }
 0x8dd   :  { %6208 = vmatpush1.bf16.msra.mxu0 %v10669_v19  ;;  %6272 = vmatpush1.bf16.msra.mxu1 %v10670_v58 }
 0x8de   :  { %6210 = vmatprep.subr.bf16.mxu0 %v10671_v53  ;;  %6274 = vmatprep.subr.bf16.mxu1 %v10672_v2 }
 0x8e1   :  { %6212 = vmatpush1.bf16.msra.mxu0 %v10475_v54  ;;  %6276 = vmatpush1.bf16.msra.mxu1 %v10476_v61 }
 0x8e2   :  { %6214 = vmatprep.subr.bf16.mxu0 %v10477_v24  ;;  %6278 = vmatprep.subr.bf16.mxu1 %v10479_v20 }
 0x8e5   :  { %6216 = vmatpush1.bf16.msra.mxu0 %v10488_v12  ;;  %6280 = vmatpush1.bf16.msra.mxu1 %v10489_v51 }
 0x8e6   :  { %6218 = vmatprep.subr.bf16.mxu0 %v10490_v44  ;;  %6282 = vmatprep.subr.bf16.mxu1 %v10491_v4 }
 0x8e9   :  { %6220 = vmatpush1.bf16.msra.mxu0 %v10500_v47  ;;  %6284 = vmatpush1.bf16.msra.mxu1 %v10501_v33 }
 0x8ea   :  { %6222 = vmatprep.subr.bf16.mxu0 %v10502_v11  ;;  %6286 = vmatprep.subr.bf16.mxu1 %v10503_v55 }
 0x8ed   :  { %6224 = vmatpush1.bf16.msra.mxu0 %v8375_v29  ;;  %6288 = vmatpush1.bf16.msra.mxu1 %v8383_v27 }
 0x8ee   :  { %6226 = vmatprep.subr.bf16.mxu0 %v8402_v62  ;;  %6290 = vmatprep.subr.bf16.mxu1 %v8404_v31 }
 0x8f1   :  { %6228 = vmatpush1.bf16.msra.mxu0 %v8406_v13  ;;  %6292 = vmatpush1.bf16.msra.mxu1 %v8409_v5 }
 0x8f2   :  { %6230 = vmatprep.subr.bf16.mxu0 %v8414_v43  ;;  %6294 = vmatprep.subr.bf16.mxu1 %v8416_v7 }
 0x8f5   :  { %6232 = vmatpush1.bf16.msra.mxu0 %v11098_v38  ;;  %6296 = vmatpush1.bf16.msra.mxu1 %v11099_v39 }
 0x8f6   :  { %6234 = vmatprep.subr.bf16.mxu0 %v11100_v56  ;;  %6298 = vmatprep.subr.bf16.mxu1 %v11101_v28 }
 0x8f9   :  { %6236 = vmatpush1.bf16.msra.mxu0 %v11102_v59  ;;  %6300 = vmatpush1.bf16.msra.mxu1 %v11103_v34 }
 0x8fa   :  { %6238 = vmatprep.subr.bf16.mxu0 %v11104_v9  ;;  %6302 = vmatprep.subr.bf16.mxu1 %v11105_v63 }
 0x8fd   :  { %6240 = vmatpush1.bf16.msra.mxu0 %v11106_v0  ;;  %6304 = vmatpush1.bf16.msra.mxu1 %v11107_v36 }
 0x8fe   :  { %6242 = vmatprep.subr.bf16.mxu0 %v11108_v14  ;;  %6306 = vmatprep.subr.bf16.mxu1 %v11109_v30 }
 0x901   :  { %6244 = vmatpush1.bf16.msra.mxu0 %v11110_v37  ;;  %6308 = vmatpush1.bf16.msra.mxu1 %v11111_v40 }
 0x902   :  { %6246 = vmatprep.subr.bf16.mxu0 %v11112_v45  ;;  %6310 = vmatprep.subr.bf16.mxu1 %v11113_v23  ;;  %v11131_v45 = vld [vmem:[#allocation47_spill] sm:$0xff] }
 0x905   :  { %6248 = vmatpush1.bf16.msra.mxu0 %v11114_v25  ;;  %6312 = vmatpush1.bf16.msra.mxu1 %v11115_v8  ;;  %v11126_v8 = vld [vmem:[#allocation151_spill] sm:$0xff]  ;;  %v11130_v25 = vld [vmem:[#allocation46_spill] sm:$0xff] }
 0x906   :  { %6250 = vmatprep.subr.bf16.mxu0 %v11116_v26  ;;  %6314 = vmatprep.subr.bf16.mxu1 %v11117_v1  ;;  %v11127_v26 = vld [vmem:[#allocation152_spill] sm:$0xff]  ;;  %v11128_v1 = vld [vmem:[#allocation153_spill] sm:$0xff] }
 0x909   :  { %6252 = vmatpush1.bf16.msra.mxu0 %v11118_v32  ;;  %6316 = vmatpush1.bf16.msra.mxu1 %v11119_v50  ;;  %v11129_v32 = vld [vmem:[#allocation154_spill] sm:$0xff] }
 0x90a   :  { %6254 = vmatprep.subr.bf16.mxu0 %v11120_v42  ;;  %6318 = vmatprep.subr.bf16.mxu1 %v11121_v18 }
 0x90d   :  { %6256 = vmatpush1.bf16.msra.mxu0 %v11122_v57  ;;  %6320 = vmatpush1.bf16.msra.mxu1 %v11123_v49 }
 0x90e   :  { %6258 = vmatprep.subr.bf16.mxu0 %v11124_v21  ;;  %6322 = vmatprep.subr.bf16.mxu1 %v11125_v41  ;;  %v11132_v41 = vld [vmem:[#allocation48_spill] sm:$0xff] }
 0x911   :  { %6260 = vmatpush1.bf16.msra.mxu0 %v11126_v8  ;;  %6324 = vmatpush1.bf16.msra.mxu1 %v11127_v26  ;;  %v11133_v26 = vld [vmem:[#allocation49_spill] sm:$0xff] }
 0x912   :  { %6326 = vmatprep.subr.bf16.mxu0 %v11128_v1  ;;  %6390 = vmatprep.subr.bf16.mxu1 %v11129_v32 }
 0x9a7   :  { %v2896_v50 = vpop.f32.mrb[16].mxu0  ;;  %v2967_v42 = vpop.f32.mrb[16].mxu1 }
 0x9a8   :  { %v2972_v18 = vadd.f32 %v2896_v50, %v11130_v25  ;;  %v2898_v23 = vpop.f32.mrb[17].mxu0  ;;  %v2969_v57 = vpop.f32.mrb[17].mxu1  ;;  %v2974_v8 = vadd.f32 %v2967_v42, %v11133_v26 }
 0x9a9   :  { %v2973_v49 = vadd.f32 %v2898_v23, %v11131_v45  ;;  %v2975_v37 = vadd.f32 %v2969_v57, %v11132_v41  ;;  %v11134_v23 = vld [vmem:[#allocation61_spill] sm:$0xff] }
 0x9aa   :  { %v2976_v40 = vmul.f32 0.5, %v2972_v18  ;;  %v2978_v1 = vmul.f32 0.5, %v2974_v8 }
 0x9ab   :  { %v2977_v21 = vmul.f32 0.5, %v2973_v49 }
 0x9ac   :  { %7369 = vtanh.f32 %v2976_v40 }
 0x9ad   :  { %7371 = vtanh.f32 %v2977_v21  ;;  %v11144_v21 = vld [vmem:[#allocation164_spill] sm:$0xff] }
 0x9ae   :  { %7373 = vtanh.f32 %v2975_v37 }
 0x9af   :  { %7375 = vtanh.f32 %v2978_v1  ;;  %v11142_v1 = vld [vmem:[#allocation162_spill] sm:$0xff] }
 0x9b6   :  { %v7370_v30 = vpop.eup %7369 }
 0x9b7   :  { %v2982_v32 = vmul.f32 0.5, %v7370_v30  ;;  %v7372_v14 = vpop.eup %7371  ;;  %v11140_v30 = vld [vmem:[#allocation160_spill] sm:$0xff] }
 0x9b8   :  { %v2983_v50 = vmul.f32 0.5, %v7372_v14  ;;  %v7374_v25 = vpop.eup %7373  ;;  %v11136_v14 = vld [vmem:[#allocation156_spill] sm:$0xff] }
 0x9b9   :  { %v2985_v36 = vadd.f32 0.5, %v2982_v32  ;;  %v7376_v40 = vpop.eup %7375  ;;  %v11143_v32 = vld [vmem:[#allocation163_spill] sm:$0xff] }
 0x9ba   :  { %v2986_v0 = vadd.f32 0.5, %v2983_v50  ;;  %v2984_v37 = vmul.f32 0.5, %v7376_v40  ;;  %v11145_v50 = vld [vmem:[#allocation165_spill] sm:$0xff]  ;;  %v11148_v40 = vld [vmem:[#allocation168_spill] sm:$0xff] }
 0x9bb   :  { %v2990_v63 = vmul.f32 %v7374_v25, %v2985_v36  ;;  %v11137_v36 = vld [vmem:[#allocation157_spill] sm:$0xff] }
 0x9bc   :  { %v2989_v18 = vmul.f32 %v2986_v0, %v11134_v23  ;;  %v2987_v57 = vadd.f32 0.5, %v2984_v37  ;;  %v11139_v0 = vld [vmem:[#allocation159_spill] sm:$0xff]  ;;  %v11141_v25 = vld [vmem:[#allocation161_spill] sm:$0xff]  ;;  %v11146_v23 = vld [vmem:[#allocation166_spill] sm:$0xff] }
 0x9bd   :  { %v11149_v37 = vld [vmem:[#allocation169_spill] sm:$0xff] }
 0x9be   :  { %v9471_v49 = vadd.f32 %v2990_v63, %v2989_v18  ;;  %v11138_v63 = vld [vmem:[#allocation158_spill] sm:$0xff]  ;;  %v11147_v18 = vld [vmem:[#allocation167_spill] sm:$0xff] }
 0x9c0   :  { %11135 = vst [vmem:[#allocation62_spill] sm:$0xff] %v9471_v49  ;;  %7377 = vtanh.f32 %v9471_v49  ;;  %v11243_v49 = vld [vmem:[#allocation77_spill] sm:$0xff] }
 0x9ca   :  { %v7378_v42 = vpop.eup %7377 }
 0x9cb   :  { %v2993_v8 = vmul.f32 %v7378_v42, %v2987_v57  ;;  %v11150_v57 = vld [vmem:[#allocation170_spill] sm:$0xff]  ;;  %v11151_v42 = vld [vmem:[#allocation171_spill] sm:$0xff] }
 0x9cd   :  { %3110 = vmatprep.mubr.f32.mxu0 %v2993_v8  ;;  %3181 = vmatprep.mubr.f32.mxu1 %v2993_v8 }
 0x9ce   :  { %3111 = vmatmul.mubr.f32.vlgmr.msra.gmra.mrb[18].mxu0 %v9398_v48  ;;  %3182 = vmatmul.mubr.f32.vlgmr.msra.gmra.mrb[18].mxu1 %v9398_v48 }
 0x9cf   :  { %6328 = vmatpush1.bf16.msra.mxu0 %v11136_v14  ;;  %6392 = vmatpush1.bf16.msra.mxu1 %v11137_v36  ;;  %v11242_v14 = vld [vmem:[#allocation76_spill] sm:$0xff] }
 0x9d0   :  { %3252 = vmatprep.mubr.f32.mxu0 %v2993_v8  ;;  %3323 = vmatprep.mubr.f32.mxu1 %v2993_v8  ;;  %v11152_v8 = vld [vmem:[#allocation172_spill] sm:$0xff] }
 0x9d1   :  { %6330 = vmatprep.subr.bf16.mxu0 %v11138_v63  ;;  %6394 = vmatprep.subr.bf16.mxu1 %v11139_v0  ;;  %v11239_v63 = vld [vmem:[#allocation51_spill] sm:$0xff] }
 0x9d3   :  { %6332 = vmatpush1.bf16.msra.mxu0 %v11140_v30  ;;  %6396 = vmatpush1.bf16.msra.mxu1 %v11141_v25  ;;  %v11236_v25 = vld [vmem:[#allocation53_spill] sm:$0xff] }
 0x9d4   :  { %6334 = vmatprep.subr.bf16.mxu0 %v11142_v1  ;;  %6398 = vmatprep.subr.bf16.mxu1 %v11143_v32  ;;  %v11153_v1 = vld [vmem:[#allocation173_spill] sm:$0xff]  ;;  %v11154_v32 = vld [vmem:[#allocation174_spill] sm:$0xff] }
 0x9d7   :  { %6336 = vmatpush1.bf16.msra.mxu0 %v11144_v21  ;;  %6400 = vmatpush1.bf16.msra.mxu1 %v11145_v50  ;;  %v11155_v21 = vld [vmem:[#allocation175_spill] sm:$0xff]  ;;  %v11156_v50 = vld [vmem:[#allocation176_spill] sm:$0xff] }
 0x9d8   :  { %6338 = vmatprep.subr.bf16.mxu0 %v11146_v23  ;;  %6402 = vmatprep.subr.bf16.mxu1 %v11147_v18  ;;  %v11157_v23 = vld [vmem:[#allocation177_spill] sm:$0xff]  ;;  %v11158_v18 = vld [vmem:[#allocation178_spill] sm:$0xff] }
 0x9db   :  { %6340 = vmatpush1.bf16.msra.mxu0 %v11148_v40  ;;  %6404 = vmatpush1.bf16.msra.mxu1 %v11149_v37  ;;  %v11159_v40 = vld [vmem:[#allocation179_spill] sm:$0xff]  ;;  %v11160_v37 = vld [vmem:[#allocation180_spill] sm:$0xff] }
 0x9dc   :  { %6342 = vmatprep.subr.bf16.mxu0 %v11150_v57  ;;  %6406 = vmatprep.subr.bf16.mxu1 %v11151_v42  ;;  %v11161_v57 = vld [vmem:[#allocation181_spill] sm:$0xff]  ;;  %v11162_v42 = vld [vmem:[#allocation182_spill] sm:$0xff] }
 0x9df   :  { %6344 = vmatpush1.bf16.msra.mxu0 %v11152_v8  ;;  %6408 = vmatpush1.bf16.msra.mxu1 %v11153_v1  ;;  %v11163_v8 = vld [vmem:[#allocation183_spill] sm:$0xff]  ;;  %v11164_v1 = vld [vmem:[#allocation184_spill] sm:$0xff] }
 0x9e0   :  { %6346 = vmatprep.subr.bf16.mxu0 %v11154_v32  ;;  %6410 = vmatprep.subr.bf16.mxu1 %v11155_v21  ;;  %v11165_v32 = vld [vmem:[#allocation185_spill] sm:$0xff]  ;;  %v11166_v21 = vld [vmem:[#allocation186_spill] sm:$0xff] }
 0x9e3   :  { %6348 = vmatpush1.bf16.msra.mxu0 %v11156_v50  ;;  %6412 = vmatpush1.bf16.msra.mxu1 %v11157_v23  ;;  %v11167_v50 = vld [vmem:[#allocation187_spill] sm:$0xff]  ;;  %v11168_v23 = vld [vmem:[#allocation188_spill] sm:$0xff] }
 0x9e4   :  { %6350 = vmatprep.subr.bf16.mxu0 %v11158_v18  ;;  %6414 = vmatprep.subr.bf16.mxu1 %v11159_v40  ;;  %v11169_v18 = vld [vmem:[#allocation189_spill] sm:$0xff]  ;;  %v11170_v40 = vld [vmem:[#allocation190_spill] sm:$0xff] }
 0x9e7   :  { %6352 = vmatpush1.bf16.msra.mxu0 %v11160_v37  ;;  %6416 = vmatpush1.bf16.msra.mxu1 %v11161_v57  ;;  %v11171_v37 = vld [vmem:[#allocation191_spill] sm:$0xff]  ;;  %v11172_v57 = vld [vmem:[#allocation192_spill] sm:$0xff] }
 0x9e8   :  { %6354 = vmatprep.subr.bf16.mxu0 %v11162_v42  ;;  %6418 = vmatprep.subr.bf16.mxu1 %v11163_v8  ;;  %v11173_v42 = vld [vmem:[#allocation193_spill] sm:$0xff]  ;;  %v11174_v8 = vld [vmem:[#allocation194_spill] sm:$0xff] }
 0x9eb   :  { %6356 = vmatpush1.bf16.msra.mxu0 %v11164_v1  ;;  %6420 = vmatpush1.bf16.msra.mxu1 %v11165_v32  ;;  %v11175_v1 = vld [vmem:[#allocation195_spill] sm:$0xff]  ;;  %v11176_v32 = vld [vmem:[#allocation196_spill] sm:$0xff] }
 0x9ec   :  { %6358 = vmatprep.subr.bf16.mxu0 %v11166_v21  ;;  %6422 = vmatprep.subr.bf16.mxu1 %v11167_v50  ;;  %v11177_v21 = vld [vmem:[#allocation197_spill] sm:$0xff]  ;;  %v11178_v50 = vld [vmem:[#allocation198_spill] sm:$0xff] }
 0x9ef   :  { %6360 = vmatpush1.bf16.msra.mxu0 %v11168_v23  ;;  %6424 = vmatpush1.bf16.msra.mxu1 %v11169_v18  ;;  %v11179_v23 = vld [vmem:[#allocation199_spill] sm:$0xff]  ;;  %v11180_v18 = vld [vmem:[#allocation200_spill] sm:$0xff] }
 0x9f0   :  { %6362 = vmatprep.subr.bf16.mxu0 %v11170_v40  ;;  %6426 = vmatprep.subr.bf16.mxu1 %v11171_v37  ;;  %v11181_v40 = vld [vmem:[#allocation201_spill] sm:$0xff]  ;;  %v11182_v37 = vld [vmem:[#allocation202_spill] sm:$0xff] }
 0x9f3   :  { %6364 = vmatpush1.bf16.msra.mxu0 %v11172_v57  ;;  %6428 = vmatpush1.bf16.msra.mxu1 %v11173_v42  ;;  %v11183_v57 = vld [vmem:[#allocation203_spill] sm:$0xff]  ;;  %v11184_v42 = vld [vmem:[#allocation204_spill] sm:$0xff] }
 0x9f4   :  { %6366 = vmatprep.subr.bf16.mxu0 %v11174_v8  ;;  %6430 = vmatprep.subr.bf16.mxu1 %v11175_v1  ;;  %v11185_v8 = vld [vmem:[#allocation205_spill] sm:$0xff]  ;;  %v11186_v1 = vld [vmem:[#allocation206_spill] sm:$0xff] }
 0x9f7   :  { %6368 = vmatpush1.bf16.msra.mxu0 %v11176_v32  ;;  %6432 = vmatpush1.bf16.msra.mxu1 %v11177_v21  ;;  %v11187_v32 = vld [vmem:[#allocation207_spill] sm:$0xff]  ;;  %v11188_v21 = vld [vmem:[#allocation208_spill] sm:$0xff] }
 0x9f8   :  { %6370 = vmatprep.subr.bf16.mxu0 %v11178_v50  ;;  %6434 = vmatprep.subr.bf16.mxu1 %v11179_v23  ;;  %v11189_v50 = vld [vmem:[#allocation209_spill] sm:$0xff]  ;;  %v11190_v23 = vld [vmem:[#allocation210_spill] sm:$0xff] }
 0x9fb   :  { %6372 = vmatpush1.bf16.msra.mxu0 %v11180_v18  ;;  %6436 = vmatpush1.bf16.msra.mxu1 %v11181_v40  ;;  %v11191_v18 = vld [vmem:[#allocation211_spill] sm:$0xff]  ;;  %v11192_v40 = vld [vmem:[#allocation212_spill] sm:$0xff] }
 0x9fc   :  { %6374 = vmatprep.subr.bf16.mxu0 %v11182_v37  ;;  %6438 = vmatprep.subr.bf16.mxu1 %v11183_v57  ;;  %v11193_v37 = vld [vmem:[#allocation213_spill] sm:$0xff]  ;;  %v11194_v57 = vld [vmem:[#allocation214_spill] sm:$0xff] }
 0x9ff   :  { %6376 = vmatpush1.bf16.msra.mxu0 %v11184_v42  ;;  %6440 = vmatpush1.bf16.msra.mxu1 %v11185_v8  ;;  %v11195_v42 = vld [vmem:[#allocation215_spill] sm:$0xff]  ;;  %v11196_v8 = vld [vmem:[#allocation216_spill] sm:$0xff] }
 0xa00   :  { %6378 = vmatprep.subr.bf16.mxu0 %v11186_v1  ;;  %6442 = vmatprep.subr.bf16.mxu1 %v11187_v32  ;;  %v11197_v1 = vld [vmem:[#allocation217_spill] sm:$0xff]  ;;  %v11198_v32 = vld [vmem:[#allocation12_spill] sm:$0xff] }
 0xa03   :  { %6380 = vmatpush1.bf16.msra.mxu0 %v11188_v21  ;;  %6444 = vmatpush1.bf16.msra.mxu1 %v11189_v50  ;;  %v11199_v21 = vld [vmem:[#allocation13_spill] sm:$0xff] }
 0xa04   :  { %6382 = vmatprep.subr.bf16.mxu0 %v11190_v23  ;;  %6446 = vmatprep.subr.bf16.mxu1 %v11191_v18  ;;  %v11200_v18 = vld [vmem:[#allocation14_spill] sm:$0xff]  ;;  %v11214_v23 = vld [vmem:[#allocation27_spill] sm:$0xff] }
 0xa07   :  { %6384 = vmatpush1.bf16.msra.mxu0 %v11192_v40  ;;  %6448 = vmatpush1.bf16.msra.mxu1 %v11193_v37  ;;  %v11201_v40 = vld [vmem:[#allocation15_spill] sm:$0xff]  ;;  %v11202_v37 = vld [vmem:[#allocation16_spill] sm:$0xff] }
 0xa08   :  { %6386 = vmatprep.subr.bf16.mxu0 %v11194_v57  ;;  %6450 = vmatprep.subr.bf16.mxu1 %v11195_v42  ;;  %v11203_v57 = vld [vmem:[#allocation17_spill] sm:$0xff]  ;;  %v11204_v42 = vmov 0.0  }
 0xa0b   :  { %6388 = vmatpush1.bf16.msra.mxu0 %v11196_v8  ;;  %6452 = vmatpush1.bf16.msra.mxu1 %v11197_v1  ;;  %v11205_v1 = vld [vmem:[#allocation18_spill] sm:$0xff]  ;;  %v11208_v8 = vld [vmem:[#allocation21_spill] sm:$0xff] }
 0xa0c   :  { %6454 = vmatprep.subr.bf16.mxu0 %v11198_v32  ;;  %6486 = vmatprep.subr.bf16.mxu1 %v11199_v21  ;;  %v11206_v32 = vld [vmem:[#allocation19_spill] sm:$0xff]  ;;  %v11207_v21 = vld [vmem:[#allocation20_spill] sm:$0xff] }
 0xa0e   :  { %3253 = vmatmul.mubr.f32.vlgmr.msra.gmra.mrb[20].mxu0 %v9398_v48  ;;  %3324 = vmatmul.mubr.f32.vlgmr.msra.gmra.mrb[20].mxu1 %v9398_v48  ;;  %v11209_v48 = vld [vmem:[#allocation22_spill] sm:$0xff] }
 0xa0f   :  { %6456 = vmatpush1.bf16.msra.mxu0 %v11200_v18  ;;  %6488 = vmatpush1.bf16.msra.mxu1 %v11201_v40  ;;  %v11210_v18 = vld [vmem:[#allocation23_spill] sm:$0xff]  ;;  %v11211_v40 = vld [vmem:[#allocation24_spill] sm:$0xff] }
 0xa10   :  { %6458 = vmatprep.subr.bf16.mxu0 %v11202_v37  ;;  %6490 = vmatprep.subr.bf16.mxu1 %v11203_v57  ;;  %v11212_v37 = vld [vmem:[#allocation25_spill] sm:$0xff]  ;;  %v11213_v57 = vld [vmem:[#allocation26_spill] sm:$0xff] }
 0xa11   :  { %3459 = vmatprep.mubr.f32.mxu0 %v11204_v42  ;;  %3530 = vmatprep.mubr.f32.mxu1 %v11204_v42  ;;  %v11215_v42 = vld [vmem:[#allocation28_spill] sm:$0xff] }
 0xa13   :  { %6460 = vmatpush1.bf16.msra.mxu0 %v11205_v1  ;;  %6492 = vmatpush1.bf16.msra.mxu1 %v11206_v32  ;;  %v11216_v1 = vld [vmem:[#allocation29_spill] sm:$0xff]  ;;  %v11217_v32 = vld [vmem:[#allocation30_spill] sm:$0xff] }
 0xa14   :  { %6462 = vmatprep.subr.bf16.mxu0 %v11207_v21  ;;  %6494 = vmatprep.subr.bf16.mxu1 %v11208_v8  ;;  %v11218_v21 = vld [vmem:[#allocation31_spill] sm:$0xff]  ;;  %v11219_v8 = vld [vmem:[#allocation32_spill] sm:$0xff] }
 0xa17   :  { %6464 = vmatpush1.bf16.msra.mxu0 %v11209_v48  ;;  %6496 = vmatpush1.bf16.msra.mxu1 %v11210_v18  ;;  %v11220_v48 = vld [vmem:[#allocation33_spill] sm:$0xff]  ;;  %v11221_v18 = vld [vmem:[#allocation34_spill] sm:$0xff] }
 0xa18   :  { %6466 = vmatprep.subr.bf16.mxu0 %v11211_v40  ;;  %6498 = vmatprep.subr.bf16.mxu1 %v11212_v37  ;;  %v11222_v40 = vld [vmem:[#allocation35_spill] sm:$0xff]  ;;  %v11223_v37 = vld [vmem:[#allocation36_spill] sm:$0xff] }
 0xa1b   :  { %6468 = vmatpush1.bf16.msra.mxu0 %v11213_v57  ;;  %6500 = vmatpush1.bf16.msra.mxu1 %v11214_v23  ;;  %v11224_v57 = vld [vmem:[#allocation37_spill] sm:$0xff]  ;;  %v11225_v23 = vld [vmem:[#allocation38_spill] sm:$0xff] }
 0xa1c   :  { %6470 = vmatprep.subr.bf16.mxu0 %v11215_v42  ;;  %6502 = vmatprep.subr.bf16.mxu1 %v11216_v1  ;;  %v11226_v42 = vld [vmem:[#allocation39_spill] sm:$0xff]  ;;  %v11227_v1 = vld [vmem:[#allocation40_spill] sm:$0xff] }
 0xa1f   :  { %6472 = vmatpush1.bf16.msra.mxu0 %v11217_v32  ;;  %6504 = vmatpush1.bf16.msra.mxu1 %v11218_v21  ;;  %v11228_v32 = vld [vmem:[#allocation41_spill] sm:$0xff]  ;;  %v11229_v21 = vld [vmem:[#allocation42_spill] sm:$0xff] }
 0xa20   :  { %6474 = vmatprep.subr.bf16.mxu0 %v11219_v8  ;;  %6506 = vmatprep.subr.bf16.mxu1 %v11220_v48  ;;  %v11230_v8 = vld [vmem:[#allocation43_spill] sm:$0xff]  ;;  %v11231_v48 = vld [vmem:[#allocation44_spill] sm:$0xff] }
 0xa23   :  { %6476 = vmatpush1.bf16.msra.mxu0 %v11221_v18  ;;  %6508 = vmatpush1.bf16.msra.mxu1 %v11222_v40  ;;  %v11232_v18 = vld [vmem:[#allocation45_spill] sm:$0xff]  ;;  %v11233_v40 = vld [vmem:[#allocation50_spill] sm:$0xff] }
 0xa24   :  { %6478 = vmatprep.subr.bf16.mxu0 %v11223_v37  ;;  %6510 = vmatprep.subr.bf16.mxu1 %v11224_v57  ;;  %v11234_v37 = vld [vmem:[#allocation74_spill] sm:$0xff]  ;;  %v11235_v57 = vld [vmem:[#allocation75_spill] sm:$0xff] }
 0xa25   :  { %v3038_v50 = vadd.f32 %v11234_v37, %v11233_v40  ;;  %v3041_v37 = vadd.f32 %v11242_v14, %v10657_v16 }
 0xa27   :  { %6480 = vmatpush1.bf16.msra.mxu0 %v11225_v23  ;;  %6512 = vmatpush1.bf16.msra.mxu1 %v11226_v42  ;;  %v3042_v23 = vadd.f32 %v11235_v57, %v11233_v40  ;;  %v11237_v42 = vld [vmem:[#allocation94_spill] sm:$0xff]  ;;  %v3045_v57 = vadd.f32 %v11243_v49, %v10657_v16 }
 0xa28   :  { %6482 = vmatprep.subr.bf16.mxu0 %v11227_v1  ;;  %6514 = vmatprep.subr.bf16.mxu1 %v11228_v32  ;;  %v3040_v30 = vadd.f32 %v11237_v42, %v11236_v25  ;;  %v11238_v1 = vld [vmem:[#allocation114_spill] sm:$0xff] }
 0xa29   :  { %v3044_v32 = vadd.f32 %v11238_v1, %v11236_v25 }
 0xa2b   :  { %6484 = vmatpush1.bf16.msra.mxu0 %v11229_v21  ;;  %6516 = vmatpush1.bf16.msra.mxu1 %v11230_v8  ;;  %v11240_v8 = vld [vmem:[#allocation115_spill] sm:$0xff] }
 0xa2c   :  { %6518 = vmatprep.subr.bf16.mxu0 %v11231_v48  ;;  %6582 = vmatprep.subr.bf16.mxu1 %v11232_v18  ;;  %v3039_v36 = vadd.f32 %v11240_v8, %v11239_v63  ;;  %v11241_v48 = vld [vmem:[#allocation116_spill] sm:$0xff] }
 0xa2d   :  { %v3043_v18 = vadd.f32 %v11241_v48, %v11239_v63 }
 0xaa1   :  { %v3112_v0 = vpop.f32.mrb[18].mxu0  ;;  %v3183_v21 = vpop.f32.mrb[18].mxu1 }
 0xaa2   :  { %v3334_v40 = vrot.slane %v3112_v0, 1  ;;  %v3346_v26 = vadd.f32 %v3112_v0, %v3038_v50  ;;  %v3336_v42 = vrot.slane %v3183_v21, 1  ;;  %v3348_v41 = vadd.f32 %v3183_v21, %v3040_v30  ;;  %v3114_v45 = vpop.f32.mrb[19].mxu0  ;;  %v3185_v1 = vpop.f32.mrb[19].mxu1 }
 0xaa3   :  { %v3335_v25 = vrot.slane %v3114_v45, 1  ;;  %v3347_v9 = vadd.f32 %v3114_v45, %v3039_v36  ;;  %v3337_v34 = vrot.slane %v3185_v1, 1  ;;  %v3349_v59 = vadd.f32 %v3185_v1, %v3041_v37 }
 0xaa4   :  { %v3350_v8 = vadd.f32 %v3334_v40, %v3042_v23  ;;  %v3354_v28 = vmul.f32 0.5, %v3346_v26  ;;  %v3352_v56 = vadd.f32 %v3336_v42, %v3044_v32  ;;  %v3356_v32 = vmul.f32 0.5, %v3348_v41 }
 0xaa5   :  { %v3351_v48 = vadd.f32 %v3335_v25, %v3043_v18  ;;  %v3353_v63 = vadd.f32 %v3337_v34, %v3045_v57  ;;  %v3355_v14 = vmul.f32 0.5, %v3347_v9 }
 0xaa6   :  { %v3357_v39 = vmul.f32 0.5, %v3350_v8  ;;  %7379 = vtanh.f32 %v3354_v28  ;;  %v3359_v45 = vmul.f32 0.5, %v3352_v56 }
 0xaa7   :  { %v3358_v38 = vmul.f32 0.5, %v3351_v48 }
 0xaa8   :  { %7381 = vtanh.f32 %v3357_v39 }
 0xaa9   :  { %7383 = vtanh.f32 %v3349_v59 }
 0xaaa   :  { %7385 = vtanh.f32 %v3355_v14 }
 0xaab   :  { %7387 = vtanh.f32 %v3358_v38 }
 0xaac   :  { %7389 = vtanh.f32 %v3353_v63 }
 0xaad   :  { %7391 = vtanh.f32 %v3359_v45  ;;  %v11244_v45 = vld [vmem:[#allocation123_spill] sm:$0xff] }
 0xaae   :  { %7393 = vtanh.f32 %v3356_v32  ;;  %v11249_v32 = vld [vmem:[#allocation128_spill] sm:$0xff] }
 0xab0   :  { %v7380_v49 = vpop.eup %7379 }
 0xab1   :  { %v3366_v0 = vmul.f32 0.5, %v7380_v49 }
 0xab2   :  { %v7382_v30 = vpop.eup %7381 }
 0xab3   :  { %v7384_v36 = vpop.eup %7383  ;;  %v3369_v21 = vmul.f32 0.5, %v7382_v30  ;;  %v3372_v50 = vadd.f32 0.5, %v3366_v0 }
 0xab4   :  { %v7386_v26 = vpop.eup %7385 }
 0xab5   :  { %v7388_v25 = vpop.eup %7387  ;;  %v3375_v34 = vadd.f32 0.5, %v3369_v21  ;;  %v3367_v23 = vmul.f32 0.5, %v7386_v26  ;;  %v3382_v28 = vmul.f32 %v7384_v36, %v3372_v50  ;;  %v11245_v36 = vld [vmem:[#allocation124_spill] sm:$0xff]  ;;  %v11246_v21 = vld [vmem:[#allocation125_spill] sm:$0xff]  ;;  %v11247_v50 = vld [vmem:[#allocation126_spill] sm:$0xff] }
 0xab6   :  { %v7390_v9 = vpop.eup %7389  ;;  %v3370_v39 = vmul.f32 0.5, %v7388_v25  ;;  %v11248_v26 = vld [vmem:[#allocation127_spill] sm:$0xff]  ;;  %v11250_v25 = vld [vmem:[#allocation129_spill] sm:$0xff] }
 0xab7   :  { %v3373_v59 = vadd.f32 0.5, %v3367_v23  ;;  %v3383_v18 = vmul.f32 %v7390_v9, %v3375_v34  ;;  %v7392_v41 = vpop.eup %7391  ;;  %v11251_v34 = vld [vmem:[#allocation130_spill] sm:$0xff]  ;;  %v11252_v23 = vld [vmem:[#allocation131_spill] sm:$0xff]  ;;  %v11254_v9 = vld [vmem:[#allocation133_spill] sm:$0xff] }
 0xab8   :  { %v3376_v38 = vadd.f32 0.5, %v3370_v39  ;;  %v7394_v57 = vpop.eup %7393  ;;  %v3371_v42 = vmul.f32 0.5, %v7392_v41  ;;  %v11255_v39 = vld [vmem:[#allocation134_spill] sm:$0xff]  ;;  %v11261_v41 = vld [vmem:[#allocation140_spill] sm:$0xff] }
 0xab9   :  { %v3380_v63 = vmul.f32 %v3373_v59, %v9391_v46  ;;  %v3368_v1 = vmul.f32 0.5, %v7394_v57  ;;  %v11256_v59 = vld [vmem:[#allocation135_spill] sm:$0xff]  ;;  %v11262_v57 = vld [vmem:[#allocation141_spill] sm:$0xff] }
 0xaba   :  { %v3381_v56 = vmul.f32 %v3376_v38, %v9393_v6  ;;  %v3377_v48 = vadd.f32 0.5, %v3371_v42  ;;  %v11258_v38 = vld [vmem:[#allocation137_spill] sm:$0xff]  ;;  %v11263_v42 = vld [vmem:[#allocation142_spill] sm:$0xff] }
 0xabb   :  { %v9594_v40 = vadd.f32 %v3382_v28, %v3380_v63  ;;  %v3374_v49 = vadd.f32 0.5, %v3368_v1  ;;  %v11253_v28 = vld [vmem:[#allocation132_spill] sm:$0xff]  ;;  %v11259_v63 = vld [vmem:[#allocation138_spill] sm:$0xff]  ;;  %v11264_v1 = vld [vmem:[#allocation143_spill] sm:$0xff] }
 0xabc   :  { %v9596_v37 = vadd.f32 %v3383_v18, %v3381_v56  ;;  %v11257_v18 = vld [vmem:[#allocation136_spill] sm:$0xff]  ;;  %v11260_v56 = vld [vmem:[#allocation139_spill] sm:$0xff] }
 0xabd   :  { %7395 = vtanh.f32 %v9594_v40 }
 0xabe   :  { %7397 = vtanh.f32 %v9596_v37 }
 0xac7   :  { %v7396_v8 = vpop.eup %7395 }
 0xac8   :  { %v7398_v14 = vpop.eup %7397  ;;  %v3388_v46 = vmul.f32 %v7396_v8, %v3374_v49  ;;  %v11265_v8 = vld [vmem:[#allocation144_spill] sm:$0xff]  ;;  %v11268_v49 = vld [vmem:[#allocation147_spill] sm:$0xff] }
 0xac9   :  { %v3389_v0 = vmul.f32 %v7398_v14, %v3377_v48  ;;  %v11266_v48 = vld [vmem:[#allocation145_spill] sm:$0xff]  ;;  %v11267_v14 = vld [vmem:[#allocation146_spill] sm:$0xff] }
 0xacb   :  { %v3392_v30 = vrot.slane %v3389_v0, 7  ;;  %v11269_v0 = vld [vmem:[#allocation148_spill] sm:$0xff] }
 0xacd   :  { %v9601_v6 = vsel %vm315_vm0, %v3392_v30, %v3388_v46  ;;  %v11270_v46 = vld [vmem:[#allocation149_spill] sm:$0xff]  ;;  %v11271_v30 = vld [vmem:[#allocation150_spill] sm:$0xff] }
 0xace   :  { %3460 = vmatmul.mubr.f32.vlgmr.msra.gmra.mrb[20].mxu0 %v9601_v6  ;;  %3531 = vmatmul.mubr.f32.vlgmr.msra.gmra.mrb[20].mxu1 %v9601_v6 }
 0xacf   :  { %6520 = vmatpush1.bf16.msra.mxu0 %v10662_v60  ;;  %6584 = vmatpush1.bf16.msra.mxu1 %v10663_v35 }
 0xad0   :  { %6522 = vmatprep.subr.bf16.mxu0 %v10664_v3  ;;  %6586 = vmatprep.subr.bf16.mxu1 %v7930_v15 }
 0xad3   :  { %6524 = vmatpush1.bf16.msra.mxu0 %v10665_v52  ;;  %6588 = vmatpush1.bf16.msra.mxu1 %v10666_v17 }
 0xad4   :  { %6526 = vmatprep.subr.bf16.mxu0 %v10667_v22  ;;  %6590 = vmatprep.subr.bf16.mxu1 %v10668_v10 }
 0xad7   :  { %6528 = vmatpush1.bf16.msra.mxu0 %v10669_v19  ;;  %6592 = vmatpush1.bf16.msra.mxu1 %v10670_v58 }
 0xad8   :  { %6530 = vmatprep.subr.bf16.mxu0 %v10671_v53  ;;  %6594 = vmatprep.subr.bf16.mxu1 %v10672_v2 }
 0xadb   :  { %6532 = vmatpush1.bf16.msra.mxu0 %v10475_v54  ;;  %6596 = vmatpush1.bf16.msra.mxu1 %v10476_v61 }
 0xadc   :  { %6534 = vmatprep.subr.bf16.mxu0 %v10477_v24  ;;  %6598 = vmatprep.subr.bf16.mxu1 %v10479_v20 }
 0xadf   :  { %6536 = vmatpush1.bf16.msra.mxu0 %v10488_v12  ;;  %6600 = vmatpush1.bf16.msra.mxu1 %v10489_v51 }
 0xae0   :  { %6538 = vmatprep.subr.bf16.mxu0 %v10490_v44  ;;  %6602 = vmatprep.subr.bf16.mxu1 %v10491_v4 }
 0xae3   :  { %6540 = vmatpush1.bf16.msra.mxu0 %v10500_v47  ;;  %6604 = vmatpush1.bf16.msra.mxu1 %v10501_v33 }
 0xae4   :  { %6542 = vmatprep.subr.bf16.mxu0 %v10502_v11  ;;  %6606 = vmatprep.subr.bf16.mxu1 %v10503_v55 }
 0xae7   :  { %6544 = vmatpush1.bf16.msra.mxu0 %v8375_v29  ;;  %6608 = vmatpush1.bf16.msra.mxu1 %v8383_v27 }
 0xae8   :  { %6546 = vmatprep.subr.bf16.mxu0 %v8402_v62  ;;  %6610 = vmatprep.subr.bf16.mxu1 %v8404_v31 }
 0xaeb   :  { %6548 = vmatpush1.bf16.msra.mxu0 %v8406_v13  ;;  %6612 = vmatpush1.bf16.msra.mxu1 %v8409_v5 }
 0xaec   :  { %6550 = vmatprep.subr.bf16.mxu0 %v8414_v43  ;;  %6614 = vmatprep.subr.bf16.mxu1 %v8416_v7 }
 0xaef   :  { %6552 = vmatpush1.bf16.msra.mxu0 %v11244_v45  ;;  %6616 = vmatpush1.bf16.msra.mxu1 %v11245_v36 }
 0xaf0   :  { %6554 = vmatprep.subr.bf16.mxu0 %v11246_v21  ;;  %6618 = vmatprep.subr.bf16.mxu1 %v11247_v50 }
 0xaf3   :  { %6556 = vmatpush1.bf16.msra.mxu0 %v11248_v26  ;;  %6620 = vmatpush1.bf16.msra.mxu1 %v11249_v32 }
 0xaf4   :  { %6558 = vmatprep.subr.bf16.mxu0 %v11250_v25  ;;  %6622 = vmatprep.subr.bf16.mxu1 %v11251_v34 }
 0xaf7   :  { %6560 = vmatpush1.bf16.msra.mxu0 %v11252_v23  ;;  %6624 = vmatpush1.bf16.msra.mxu1 %v11253_v28 }
 0xaf8   :  { %6562 = vmatprep.subr.bf16.mxu0 %v11254_v9  ;;  %6626 = vmatprep.subr.bf16.mxu1 %v11255_v39 }
 0xafb   :  { %6564 = vmatpush1.bf16.msra.mxu0 %v11256_v59  ;;  %6628 = vmatpush1.bf16.msra.mxu1 %v11257_v18 }
 0xafc   :  { %6566 = vmatprep.subr.bf16.mxu0 %v11258_v38  ;;  %6630 = vmatprep.subr.bf16.mxu1 %v11259_v63  ;;  %v11277_v38 = vld [vmem:[#allocation47_spill] sm:$0xff] }
 0xaff   :  { %6568 = vmatpush1.bf16.msra.mxu0 %v11260_v56  ;;  %6632 = vmatpush1.bf16.msra.mxu1 %v11261_v41  ;;  %v11272_v41 = vld [vmem:[#allocation151_spill] sm:$0xff]  ;;  %v11276_v56 = vld [vmem:[#allocation46_spill] sm:$0xff] }
 0xb00   :  { %6570 = vmatprep.subr.bf16.mxu0 %v11262_v57  ;;  %6634 = vmatprep.subr.bf16.mxu1 %v11263_v42  ;;  %v11273_v57 = vld [vmem:[#allocation152_spill] sm:$0xff]  ;;  %v11274_v42 = vld [vmem:[#allocation153_spill] sm:$0xff] }
 0xb03   :  { %6572 = vmatpush1.bf16.msra.mxu0 %v11264_v1  ;;  %6636 = vmatpush1.bf16.msra.mxu1 %v11265_v8  ;;  %v11275_v1 = vld [vmem:[#allocation154_spill] sm:$0xff] }
 0xb04   :  { %6574 = vmatprep.subr.bf16.mxu0 %v11266_v48  ;;  %6638 = vmatprep.subr.bf16.mxu1 %v11267_v14 }
 0xb07   :  { %6576 = vmatpush1.bf16.msra.mxu0 %v11268_v49  ;;  %6640 = vmatpush1.bf16.msra.mxu1 %v11269_v0 }
 0xb08   :  { %6578 = vmatprep.subr.bf16.mxu0 %v11270_v46  ;;  %6642 = vmatprep.subr.bf16.mxu1 %v11271_v30  ;;  %v11278_v30 = vld [vmem:[#allocation48_spill] sm:$0xff] }
 0xb0b   :  { %6580 = vmatpush1.bf16.msra.mxu0 %v11272_v41  ;;  %6644 = vmatpush1.bf16.msra.mxu1 %v11273_v57  ;;  %v11279_v57 = vld [vmem:[#allocation49_spill] sm:$0xff] }
 0xb0c   :  { %6646 = vmatprep.subr.bf16.mxu0 %v11274_v42  ;;  %6710 = vmatprep.subr.bf16.mxu1 %v11275_v1 }
 0xba1   :  { %v3461_v8 = vpop.f32.mrb[20].mxu0  ;;  %v3532_v48 = vpop.f32.mrb[20].mxu1 }
 0xba2   :  { %v3537_v14 = vadd.f32 %v3461_v8, %v11276_v56  ;;  %v3463_v63 = vpop.f32.mrb[21].mxu0  ;;  %v3534_v49 = vpop.f32.mrb[21].mxu1  ;;  %v3539_v41 = vadd.f32 %v3532_v48, %v11279_v57 }
 0xba3   :  { %v3538_v0 = vadd.f32 %v3463_v63, %v11277_v38  ;;  %v3540_v59 = vadd.f32 %v3534_v49, %v11278_v30  ;;  %v11280_v63 = vld [vmem:[#allocation62_spill] sm:$0xff] }
 0xba4   :  { %v3541_v18 = vmul.f32 0.5, %v3537_v14  ;;  %v3543_v42 = vmul.f32 0.5, %v3539_v41 }
 0xba5   :  { %v3542_v46 = vmul.f32 0.5, %v3538_v0 }
 0xba6   :  { %7399 = vtanh.f32 %v3541_v18 }
 0xba7   :  { %7401 = vtanh.f32 %v3542_v46  ;;  %v11290_v46 = vld [vmem:[#allocation164_spill] sm:$0xff] }
 0xba8   :  { %7403 = vtanh.f32 %v3540_v59 }
 0xba9   :  { %7405 = vtanh.f32 %v3543_v42  ;;  %v11288_v42 = vld [vmem:[#allocation162_spill] sm:$0xff] }
 0xbb0   :  { %v7400_v39 = vpop.eup %7399 }
 0xbb1   :  { %v3547_v1 = vmul.f32 0.5, %v7400_v39  ;;  %v7402_v9 = vpop.eup %7401  ;;  %v11286_v39 = vld [vmem:[#allocation160_spill] sm:$0xff] }
 0xbb2   :  { %v3548_v8 = vmul.f32 0.5, %v7402_v9  ;;  %v7404_v56 = vpop.eup %7403  ;;  %v11282_v9 = vld [vmem:[#allocation156_spill] sm:$0xff] }
 0xbb3   :  { %v3550_v28 = vadd.f32 0.5, %v3547_v1  ;;  %v7406_v18 = vpop.eup %7405  ;;  %v11289_v1 = vld [vmem:[#allocation163_spill] sm:$0xff] }
 0xbb4   :  { %v3551_v23 = vadd.f32 0.5, %v3548_v8  ;;  %v3549_v59 = vmul.f32 0.5, %v7406_v18  ;;  %v11291_v8 = vld [vmem:[#allocation165_spill] sm:$0xff]  ;;  %v11294_v18 = vld [vmem:[#allocation168_spill] sm:$0xff] }
 0xbb5   :  { %v3555_v34 = vmul.f32 %v7404_v56, %v3550_v28  ;;  %v11283_v28 = vld [vmem:[#allocation157_spill] sm:$0xff] }
 0xbb6   :  { %v3554_v14 = vmul.f32 %v3551_v23, %v11280_v63  ;;  %v3552_v49 = vadd.f32 0.5, %v3549_v59  ;;  %v11285_v23 = vld [vmem:[#allocation159_spill] sm:$0xff]  ;;  %v11287_v56 = vld [vmem:[#allocation161_spill] sm:$0xff]  ;;  %v11292_v63 = vld [vmem:[#allocation166_spill] sm:$0xff] }
 0xbb7   :  { %v11295_v59 = vld [vmem:[#allocation169_spill] sm:$0xff] }
 0xbb8   :  { %v9674_v0 = vadd.f32 %v3555_v34, %v3554_v14  ;;  %v11284_v34 = vld [vmem:[#allocation158_spill] sm:$0xff]  ;;  %v11293_v14 = vld [vmem:[#allocation167_spill] sm:$0xff] }
 0xbba   :  { %11281 = vst [vmem:[#allocation63_spill] sm:$0xff] %v9674_v0  ;;  %7407 = vtanh.f32 %v9674_v0  ;;  %v11389_v0 = vld [vmem:[#allocation82_spill] sm:$0xff] }
 0xbc4   :  { %v7408_v48 = vpop.eup %7407 }
 0xbc5   :  { %v3558_v41 = vmul.f32 %v7408_v48, %v3552_v49  ;;  %v11296_v49 = vld [vmem:[#allocation170_spill] sm:$0xff]  ;;  %v11297_v48 = vld [vmem:[#allocation171_spill] sm:$0xff] }
 0xbc7   :  { %3675 = vmatprep.mubr.f32.mxu0 %v3558_v41  ;;  %3746 = vmatprep.mubr.f32.mxu1 %v3558_v41 }
 0xbc8   :  { %3676 = vmatmul.mubr.f32.vlgmr.msra.gmra.mrb[22].mxu0 %v9601_v6  ;;  %3747 = vmatmul.mubr.f32.vlgmr.msra.gmra.mrb[22].mxu1 %v9601_v6 }
 0xbc9   :  { %6648 = vmatpush1.bf16.msra.mxu0 %v11282_v9  ;;  %6712 = vmatpush1.bf16.msra.mxu1 %v11283_v28  ;;  %v11388_v9 = vld [vmem:[#allocation81_spill] sm:$0xff] }
 0xbca   :  { %3817 = vmatprep.mubr.f32.mxu0 %v3558_v41  ;;  %3888 = vmatprep.mubr.f32.mxu1 %v3558_v41  ;;  %v11298_v41 = vld [vmem:[#allocation172_spill] sm:$0xff] }
 0xbcb   :  { %6650 = vmatprep.subr.bf16.mxu0 %v11284_v34  ;;  %6714 = vmatprep.subr.bf16.mxu1 %v11285_v23  ;;  %v11385_v34 = vld [vmem:[#allocation51_spill] sm:$0xff] }
 0xbcd   :  { %6652 = vmatpush1.bf16.msra.mxu0 %v11286_v39  ;;  %6716 = vmatpush1.bf16.msra.mxu1 %v11287_v56  ;;  %v11382_v56 = vld [vmem:[#allocation53_spill] sm:$0xff] }
 0xbce   :  { %6654 = vmatprep.subr.bf16.mxu0 %v11288_v42  ;;  %6718 = vmatprep.subr.bf16.mxu1 %v11289_v1  ;;  %v11299_v42 = vld [vmem:[#allocation173_spill] sm:$0xff]  ;;  %v11300_v1 = vld [vmem:[#allocation174_spill] sm:$0xff] }
 0xbd1   :  { %6656 = vmatpush1.bf16.msra.mxu0 %v11290_v46  ;;  %6720 = vmatpush1.bf16.msra.mxu1 %v11291_v8  ;;  %v11301_v46 = vld [vmem:[#allocation175_spill] sm:$0xff]  ;;  %v11302_v8 = vld [vmem:[#allocation176_spill] sm:$0xff] }
 0xbd2   :  { %6658 = vmatprep.subr.bf16.mxu0 %v11292_v63  ;;  %6722 = vmatprep.subr.bf16.mxu1 %v11293_v14  ;;  %v11303_v63 = vld [vmem:[#allocation177_spill] sm:$0xff]  ;;  %v11304_v14 = vld [vmem:[#allocation178_spill] sm:$0xff] }
 0xbd5   :  { %6660 = vmatpush1.bf16.msra.mxu0 %v11294_v18  ;;  %6724 = vmatpush1.bf16.msra.mxu1 %v11295_v59  ;;  %v11305_v18 = vld [vmem:[#allocation179_spill] sm:$0xff]  ;;  %v11306_v59 = vld [vmem:[#allocation180_spill] sm:$0xff] }
 0xbd6   :  { %6662 = vmatprep.subr.bf16.mxu0 %v11296_v49  ;;  %6726 = vmatprep.subr.bf16.mxu1 %v11297_v48  ;;  %v11307_v49 = vld [vmem:[#allocation181_spill] sm:$0xff]  ;;  %v11308_v48 = vld [vmem:[#allocation182_spill] sm:$0xff] }
 0xbd9   :  { %6664 = vmatpush1.bf16.msra.mxu0 %v11298_v41  ;;  %6728 = vmatpush1.bf16.msra.mxu1 %v11299_v42  ;;  %v11309_v41 = vld [vmem:[#allocation183_spill] sm:$0xff]  ;;  %v11310_v42 = vld [vmem:[#allocation184_spill] sm:$0xff] }
 0xbda   :  { %6666 = vmatprep.subr.bf16.mxu0 %v11300_v1  ;;  %6730 = vmatprep.subr.bf16.mxu1 %v11301_v46  ;;  %v11311_v1 = vld [vmem:[#allocation185_spill] sm:$0xff]  ;;  %v11312_v46 = vld [vmem:[#allocation186_spill] sm:$0xff] }
 0xbdd   :  { %6668 = vmatpush1.bf16.msra.mxu0 %v11302_v8  ;;  %6732 = vmatpush1.bf16.msra.mxu1 %v11303_v63  ;;  %v11313_v8 = vld [vmem:[#allocation187_spill] sm:$0xff]  ;;  %v11314_v63 = vld [vmem:[#allocation188_spill] sm:$0xff] }
 0xbde   :  { %6670 = vmatprep.subr.bf16.mxu0 %v11304_v14  ;;  %6734 = vmatprep.subr.bf16.mxu1 %v11305_v18  ;;  %v11315_v14 = vld [vmem:[#allocation189_spill] sm:$0xff]  ;;  %v11316_v18 = vld [vmem:[#allocation190_spill] sm:$0xff] }
 0xbe1   :  { %6672 = vmatpush1.bf16.msra.mxu0 %v11306_v59  ;;  %6736 = vmatpush1.bf16.msra.mxu1 %v11307_v49  ;;  %v11317_v59 = vld [vmem:[#allocation191_spill] sm:$0xff]  ;;  %v11318_v49 = vld [vmem:[#allocation192_spill] sm:$0xff] }
 0xbe2   :  { %6674 = vmatprep.subr.bf16.mxu0 %v11308_v48  ;;  %6738 = vmatprep.subr.bf16.mxu1 %v11309_v41  ;;  %v11319_v48 = vld [vmem:[#allocation193_spill] sm:$0xff]  ;;  %v11320_v41 = vld [vmem:[#allocation194_spill] sm:$0xff] }
 0xbe5   :  { %6676 = vmatpush1.bf16.msra.mxu0 %v11310_v42  ;;  %6740 = vmatpush1.bf16.msra.mxu1 %v11311_v1  ;;  %v11321_v42 = vld [vmem:[#allocation195_spill] sm:$0xff]  ;;  %v11322_v1 = vld [vmem:[#allocation196_spill] sm:$0xff] }
 0xbe6   :  { %6678 = vmatprep.subr.bf16.mxu0 %v11312_v46  ;;  %6742 = vmatprep.subr.bf16.mxu1 %v11313_v8  ;;  %v11323_v46 = vld [vmem:[#allocation197_spill] sm:$0xff]  ;;  %v11324_v8 = vld [vmem:[#allocation198_spill] sm:$0xff] }
 0xbe9   :  { %6680 = vmatpush1.bf16.msra.mxu0 %v11314_v63  ;;  %6744 = vmatpush1.bf16.msra.mxu1 %v11315_v14  ;;  %v11325_v63 = vld [vmem:[#allocation199_spill] sm:$0xff]  ;;  %v11326_v14 = vld [vmem:[#allocation200_spill] sm:$0xff] }
 0xbea   :  { %6682 = vmatprep.subr.bf16.mxu0 %v11316_v18  ;;  %6746 = vmatprep.subr.bf16.mxu1 %v11317_v59  ;;  %v11327_v18 = vld [vmem:[#allocation201_spill] sm:$0xff]  ;;  %v11328_v59 = vld [vmem:[#allocation202_spill] sm:$0xff] }
 0xbed   :  { %6684 = vmatpush1.bf16.msra.mxu0 %v11318_v49  ;;  %6748 = vmatpush1.bf16.msra.mxu1 %v11319_v48  ;;  %v11329_v49 = vld [vmem:[#allocation203_spill] sm:$0xff]  ;;  %v11330_v48 = vld [vmem:[#allocation204_spill] sm:$0xff] }
 0xbee   :  { %6686 = vmatprep.subr.bf16.mxu0 %v11320_v41  ;;  %6750 = vmatprep.subr.bf16.mxu1 %v11321_v42  ;;  %v11331_v41 = vld [vmem:[#allocation205_spill] sm:$0xff]  ;;  %v11332_v42 = vld [vmem:[#allocation206_spill] sm:$0xff] }
 0xbf1   :  { %6688 = vmatpush1.bf16.msra.mxu0 %v11322_v1  ;;  %6752 = vmatpush1.bf16.msra.mxu1 %v11323_v46  ;;  %v11333_v1 = vld [vmem:[#allocation207_spill] sm:$0xff]  ;;  %v11334_v46 = vld [vmem:[#allocation208_spill] sm:$0xff] }
 0xbf2   :  { %6690 = vmatprep.subr.bf16.mxu0 %v11324_v8  ;;  %6754 = vmatprep.subr.bf16.mxu1 %v11325_v63  ;;  %v11335_v8 = vld [vmem:[#allocation209_spill] sm:$0xff]  ;;  %v11336_v63 = vld [vmem:[#allocation210_spill] sm:$0xff] }
 0xbf5   :  { %6692 = vmatpush1.bf16.msra.mxu0 %v11326_v14  ;;  %6756 = vmatpush1.bf16.msra.mxu1 %v11327_v18  ;;  %v11337_v14 = vld [vmem:[#allocation211_spill] sm:$0xff]  ;;  %v11338_v18 = vld [vmem:[#allocation212_spill] sm:$0xff] }
 0xbf6   :  { %6694 = vmatprep.subr.bf16.mxu0 %v11328_v59  ;;  %6758 = vmatprep.subr.bf16.mxu1 %v11329_v49  ;;  %v11339_v59 = vld [vmem:[#allocation213_spill] sm:$0xff]  ;;  %v11340_v49 = vld [vmem:[#allocation214_spill] sm:$0xff] }
 0xbf9   :  { %6696 = vmatpush1.bf16.msra.mxu0 %v11330_v48  ;;  %6760 = vmatpush1.bf16.msra.mxu1 %v11331_v41  ;;  %v11341_v48 = vld [vmem:[#allocation215_spill] sm:$0xff]  ;;  %v11342_v41 = vld [vmem:[#allocation216_spill] sm:$0xff] }
 0xbfa   :  { %6698 = vmatprep.subr.bf16.mxu0 %v11332_v42  ;;  %6762 = vmatprep.subr.bf16.mxu1 %v11333_v1  ;;  %v11343_v42 = vld [vmem:[#allocation217_spill] sm:$0xff]  ;;  %v11344_v1 = vld [vmem:[#allocation12_spill] sm:$0xff] }
 0xbfd   :  { %6700 = vmatpush1.bf16.msra.mxu0 %v11334_v46  ;;  %6764 = vmatpush1.bf16.msra.mxu1 %v11335_v8  ;;  %v11345_v46 = vld [vmem:[#allocation13_spill] sm:$0xff] }
 0xbfe   :  { %6702 = vmatprep.subr.bf16.mxu0 %v11336_v63  ;;  %6766 = vmatprep.subr.bf16.mxu1 %v11337_v14  ;;  %v11346_v14 = vld [vmem:[#allocation14_spill] sm:$0xff]  ;;  %v11360_v63 = vld [vmem:[#allocation27_spill] sm:$0xff] }
 0xc01   :  { %6704 = vmatpush1.bf16.msra.mxu0 %v11338_v18  ;;  %6768 = vmatpush1.bf16.msra.mxu1 %v11339_v59  ;;  %v11347_v18 = vld [vmem:[#allocation15_spill] sm:$0xff]  ;;  %v11348_v59 = vld [vmem:[#allocation16_spill] sm:$0xff] }
 0xc02   :  { %6706 = vmatprep.subr.bf16.mxu0 %v11340_v49  ;;  %6770 = vmatprep.subr.bf16.mxu1 %v11341_v48  ;;  %v11349_v49 = vld [vmem:[#allocation17_spill] sm:$0xff]  ;;  %v11350_v48 = vmov 0.0  }
 0xc05   :  { %6708 = vmatpush1.bf16.msra.mxu0 %v11342_v41  ;;  %6772 = vmatpush1.bf16.msra.mxu1 %v11343_v42  ;;  %v11351_v42 = vld [vmem:[#allocation18_spill] sm:$0xff]  ;;  %v11354_v41 = vld [vmem:[#allocation21_spill] sm:$0xff] }
 0xc06   :  { %6774 = vmatprep.subr.bf16.mxu0 %v11344_v1  ;;  %6806 = vmatprep.subr.bf16.mxu1 %v11345_v46  ;;  %v11352_v1 = vld [vmem:[#allocation19_spill] sm:$0xff]  ;;  %v11353_v46 = vld [vmem:[#allocation20_spill] sm:$0xff] }
 0xc08   :  { %3818 = vmatmul.mubr.f32.vlgmr.msra.gmra.mrb[24].mxu0 %v9601_v6  ;;  %3889 = vmatmul.mubr.f32.vlgmr.msra.gmra.mrb[24].mxu1 %v9601_v6  ;;  %v11355_v6 = vld [vmem:[#allocation22_spill] sm:$0xff] }
 0xc09   :  { %6776 = vmatpush1.bf16.msra.mxu0 %v11346_v14  ;;  %6808 = vmatpush1.bf16.msra.mxu1 %v11347_v18  ;;  %v11356_v14 = vld [vmem:[#allocation23_spill] sm:$0xff]  ;;  %v11357_v18 = vld [vmem:[#allocation24_spill] sm:$0xff] }
 0xc0a   :  { %6778 = vmatprep.subr.bf16.mxu0 %v11348_v59  ;;  %6810 = vmatprep.subr.bf16.mxu1 %v11349_v49  ;;  %v11358_v59 = vld [vmem:[#allocation25_spill] sm:$0xff]  ;;  %v11359_v49 = vld [vmem:[#allocation26_spill] sm:$0xff] }
 0xc0b   :  { %4024 = vmatprep.mubr.f32.mxu0 %v11350_v48  ;;  %4095 = vmatprep.mubr.f32.mxu1 %v11350_v48  ;;  %v11361_v48 = vld [vmem:[#allocation28_spill] sm:$0xff] }
 0xc0d   :  { %6780 = vmatpush1.bf16.msra.mxu0 %v11351_v42  ;;  %6812 = vmatpush1.bf16.msra.mxu1 %v11352_v1  ;;  %v11362_v42 = vld [vmem:[#allocation29_spill] sm:$0xff]  ;;  %v11363_v1 = vld [vmem:[#allocation30_spill] sm:$0xff] }
 0xc0e   :  { %6782 = vmatprep.subr.bf16.mxu0 %v11353_v46  ;;  %6814 = vmatprep.subr.bf16.mxu1 %v11354_v41  ;;  %v11364_v46 = vld [vmem:[#allocation31_spill] sm:$0xff]  ;;  %v11365_v41 = vld [vmem:[#allocation32_spill] sm:$0xff] }
 0xc11   :  { %6784 = vmatpush1.bf16.msra.mxu0 %v11355_v6  ;;  %6816 = vmatpush1.bf16.msra.mxu1 %v11356_v14  ;;  %v11366_v6 = vld [vmem:[#allocation33_spill] sm:$0xff]  ;;  %v11367_v14 = vld [vmem:[#allocation34_spill] sm:$0xff] }
 0xc12   :  { %6786 = vmatprep.subr.bf16.mxu0 %v11357_v18  ;;  %6818 = vmatprep.subr.bf16.mxu1 %v11358_v59  ;;  %v11368_v18 = vld [vmem:[#allocation35_spill] sm:$0xff]  ;;  %v11369_v59 = vld [vmem:[#allocation36_spill] sm:$0xff] }
 0xc15   :  { %6788 = vmatpush1.bf16.msra.mxu0 %v11359_v49  ;;  %6820 = vmatpush1.bf16.msra.mxu1 %v11360_v63  ;;  %v11370_v49 = vld [vmem:[#allocation37_spill] sm:$0xff]  ;;  %v11371_v63 = vld [vmem:[#allocation38_spill] sm:$0xff] }
 0xc16   :  { %6790 = vmatprep.subr.bf16.mxu0 %v11361_v48  ;;  %6822 = vmatprep.subr.bf16.mxu1 %v11362_v42  ;;  %v11372_v48 = vld [vmem:[#allocation39_spill] sm:$0xff]  ;;  %v11373_v42 = vld [vmem:[#allocation40_spill] sm:$0xff] }
 0xc19   :  { %6792 = vmatpush1.bf16.msra.mxu0 %v11363_v1  ;;  %6824 = vmatpush1.bf16.msra.mxu1 %v11364_v46  ;;  %v11374_v1 = vld [vmem:[#allocation41_spill] sm:$0xff]  ;;  %v11375_v46 = vld [vmem:[#allocation42_spill] sm:$0xff] }
 0xc1a   :  { %6794 = vmatprep.subr.bf16.mxu0 %v11365_v41  ;;  %6826 = vmatprep.subr.bf16.mxu1 %v11366_v6  ;;  %v11376_v41 = vld [vmem:[#allocation43_spill] sm:$0xff]  ;;  %v11377_v6 = vld [vmem:[#allocation44_spill] sm:$0xff] }
 0xc1d   :  { %6796 = vmatpush1.bf16.msra.mxu0 %v11367_v14  ;;  %6828 = vmatpush1.bf16.msra.mxu1 %v11368_v18  ;;  %v11378_v14 = vld [vmem:[#allocation45_spill] sm:$0xff]  ;;  %v11379_v18 = vld [vmem:[#allocation50_spill] sm:$0xff] }
 0xc1e   :  { %6798 = vmatprep.subr.bf16.mxu0 %v11369_v59  ;;  %6830 = vmatprep.subr.bf16.mxu1 %v11370_v49  ;;  %v11380_v59 = vld [vmem:[#allocation78_spill] sm:$0xff]  ;;  %v11381_v49 = vld [vmem:[#allocation80_spill] sm:$0xff] }
 0xc1f   :  { %v3603_v8 = vadd.f32 %v11380_v59, %v11379_v18  ;;  %v3606_v59 = vadd.f32 %v11388_v9, %v10657_v16 }
 0xc21   :  { %6800 = vmatpush1.bf16.msra.mxu0 %v11371_v63  ;;  %6832 = vmatpush1.bf16.msra.mxu1 %v11372_v48  ;;  %v3607_v63 = vadd.f32 %v11381_v49, %v11379_v18  ;;  %v11383_v48 = vld [vmem:[#allocation117_spill] sm:$0xff]  ;;  %v3610_v49 = vadd.f32 %v11389_v0, %v10657_v16 }
 0xc22   :  { %6802 = vmatprep.subr.bf16.mxu0 %v11373_v42  ;;  %6834 = vmatprep.subr.bf16.mxu1 %v11374_v1  ;;  %v3605_v39 = vadd.f32 %v11383_v48, %v11382_v56  ;;  %v11384_v42 = vld [vmem:[#allocation118_spill] sm:$0xff] }
 0xc23   :  { %v3609_v1 = vadd.f32 %v11384_v42, %v11382_v56 }
 0xc25   :  { %6804 = vmatpush1.bf16.msra.mxu0 %v11375_v46  ;;  %6836 = vmatpush1.bf16.msra.mxu1 %v11376_v41  ;;  %v11386_v41 = vld [vmem:[#allocation119_spill] sm:$0xff] }
 0xc26   :  { %6838 = vmatprep.subr.bf16.mxu0 %v11377_v6  ;;  %6902 = vmatprep.subr.bf16.mxu1 %v11378_v14  ;;  %v3604_v28 = vadd.f32 %v11386_v41, %v11385_v34  ;;  %v11387_v6 = vld [vmem:[#allocation120_spill] sm:$0xff] }
 0xc27   :  { %v3608_v14 = vadd.f32 %v11387_v6, %v11385_v34 }
 0xc9b   :  { %v3677_v23 = vpop.f32.mrb[22].mxu0  ;;  %v3748_v46 = vpop.f32.mrb[22].mxu1 }
 0xc9c   :  { %v3899_v18 = vrot.slane %v3677_v23, 1  ;;  %v3911_v57 = vadd.f32 %v3677_v23, %v3603_v8  ;;  %v3901_v48 = vrot.slane %v3748_v46, 1  ;;  %v3913_v30 = vadd.f32 %v3748_v46, %v3605_v39  ;;  %v3679_v38 = vpop.f32.mrb[23].mxu0  ;;  %v3750_v42 = vpop.f32.mrb[23].mxu1 }
 0xc9d   :  { %v3900_v56 = vrot.slane %v3679_v38, 1  ;;  %v3912_v25 = vadd.f32 %v3679_v38, %v3604_v28  ;;  %v3902_v32 = vrot.slane %v3750_v42, 1  ;;  %v3914_v26 = vadd.f32 %v3750_v42, %v3606_v59 }
 0xc9e   :  { %v3915_v41 = vadd.f32 %v3899_v18, %v3607_v63  ;;  %v3919_v50 = vmul.f32 0.5, %v3911_v57  ;;  %v3917_v21 = vadd.f32 %v3901_v48, %v3609_v1  ;;  %v3921_v1 = vmul.f32 0.5, %v3913_v30 }
 0xc9f   :  { %v3916_v6 = vadd.f32 %v3900_v56, %v3608_v14  ;;  %v3918_v34 = vadd.f32 %v3902_v32, %v3610_v49  ;;  %v3920_v9 = vmul.f32 0.5, %v3912_v25 }
 0xca0   :  { %v3922_v36 = vmul.f32 0.5, %v3915_v41  ;;  %7409 = vtanh.f32 %v3919_v50  ;;  %v3924_v38 = vmul.f32 0.5, %v3917_v21 }
 0xca1   :  { %v3923_v45 = vmul.f32 0.5, %v3916_v6 }
 0xca2   :  { %7411 = vtanh.f32 %v3922_v36 }
 0xca3   :  { %7413 = vtanh.f32 %v3914_v26 }
 0xca4   :  { %7415 = vtanh.f32 %v3920_v9 }
 0xca5   :  { %7417 = vtanh.f32 %v3923_v45 }
 0xca6   :  { %7419 = vtanh.f32 %v3918_v34 }
 0xca7   :  { %7421 = vtanh.f32 %v3924_v38 }
 0xca8   :  { %7423 = vtanh.f32 %v3921_v1 }
 0xcaa   :  { %v7410_v0 = vpop.eup %7409 }
 0xcab   :  { %v3931_v23 = vmul.f32 0.5, %v7410_v0 }
 0xcac   :  { %v7412_v39 = vpop.eup %7411 }
 0xcad   :  { %v7414_v28 = vpop.eup %7413  ;;  %v3934_v46 = vmul.f32 0.5, %v7412_v39  ;;  %v3937_v8 = vadd.f32 0.5, %v3931_v23 }
 0xcae   :  { %v7416_v57 = vpop.eup %7415 }
 0xcaf   :  { %v7418_v56 = vpop.eup %7417  ;;  %v3940_v32 = vadd.f32 0.5, %v3934_v46  ;;  %v3932_v63 = vmul.f32 0.5, %v7416_v57  ;;  %v3947_v50 = vmul.f32 %v7414_v28, %v3937_v8  ;;  %v11422_v46 = vld [vmem:[#allocation46_spill] sm:$0xff] }
 0xcb0   :  { %v7420_v25 = vpop.eup %7419  ;;  %v3935_v36 = vmul.f32 0.5, %v7418_v56  ;;  %v11423_v56 = vld [vmem:[#allocation47_spill] sm:$0xff] }
 0xcb1   :  { %v3938_v26 = vadd.f32 0.5, %v3932_v63  ;;  %v3948_v18 = vmul.f32 %v7420_v25, %v3940_v32  ;;  %v7422_v30 = vpop.eup %7421  ;;  %v11424_v25 = vld [vmem:[#allocation48_spill] sm:$0xff] }
 0xcb2   :  { %v3941_v45 = vadd.f32 0.5, %v3935_v36  ;;  %v7424_v49 = vpop.eup %7423  ;;  %v3936_v48 = vmul.f32 0.5, %v7422_v30 }
 0xcb3   :  { %v3945_v34 = vmul.f32 %v3938_v26, %v9594_v40  ;;  %v3933_v42 = vmul.f32 0.5, %v7424_v49  ;;  %v11425_v26 = vld [vmem:[#allocation49_spill] sm:$0xff] }
 0xcb4   :  { %v3946_v21 = vmul.f32 %v3941_v45, %v9596_v37  ;;  %v3942_v6 = vadd.f32 0.5, %v3936_v48 }
 0xcb5   :  { %v9797_v14 = vadd.f32 %v3947_v50, %v3945_v34  ;;  %v3939_v0 = vadd.f32 0.5, %v3933_v42 }
 0xcb6   :  { %v9799_v59 = vadd.f32 %v3948_v18, %v3946_v21 }
 0xcb7   :  { %7425 = vtanh.f32 %v9797_v14 }
 0xcb8   :  { %7427 = vtanh.f32 %v9799_v59 }
 0xcc1   :  { %v7426_v41 = vpop.eup %7425 }
 0xcc2   :  { %v7428_v9 = vpop.eup %7427  ;;  %v3953_v40 = vmul.f32 %v7426_v41, %v3939_v0 }
 0xcc3   :  { %v3954_v23 = vmul.f32 %v7428_v9, %v3942_v6  ;;  %v11426_v9 = vld [vmem:[#allocation63_spill] sm:$0xff] }
 0xcc5   :  { %v3957_v39 = vrot.slane %v3954_v23, 7 }
 0xcc7   :  { %v9804_v37 = vsel %vm315_vm0, %v3957_v39, %v3953_v40 }
 0xcc8   :  { %4025 = vmatmul.mubr.f32.vlgmr.msra.gmra.mrb[24].mxu0 %v9804_v37  ;;  %4096 = vmatmul.mubr.f32.vlgmr.msra.gmra.mrb[24].mxu1 %v9804_v37 }
 0xcc9   :  { %6840 = vmatpush1.bf16.msra.mxu0 %v10662_v60  ;;  %6904 = vmatpush1.bf16.msra.mxu1 %v10663_v35  ;;  %v11411_v60 = vld [vmem:[#allocation144_spill] sm:$0xff]  ;;  %v11412_v35 = vld [vmem:[#allocation145_spill] sm:$0xff] }
 0xcca   :  { %6842 = vmatprep.subr.bf16.mxu0 %v10664_v3  ;;  %6906 = vmatprep.subr.bf16.mxu1 %v7930_v15  ;;  %v11390_v15 = vld [vmem:[#allocation123_spill] sm:$0xff]  ;;  %v11413_v3 = vld [vmem:[#allocation146_spill] sm:$0xff] }
 0xccd   :  { %6844 = vmatpush1.bf16.msra.mxu0 %v10665_v52  ;;  %6908 = vmatpush1.bf16.msra.mxu1 %v10666_v17  ;;  %v11414_v52 = vld [vmem:[#allocation147_spill] sm:$0xff]  ;;  %v11415_v17 = vld [vmem:[#allocation148_spill] sm:$0xff] }
 0xcce   :  { %6846 = vmatprep.subr.bf16.mxu0 %v10667_v22  ;;  %6910 = vmatprep.subr.bf16.mxu1 %v10668_v10  ;;  %v11416_v22 = vld [vmem:[#allocation149_spill] sm:$0xff]  ;;  %v11417_v10 = vld [vmem:[#allocation150_spill] sm:$0xff] }
 0xcd1   :  { %6848 = vmatpush1.bf16.msra.mxu0 %v10669_v19  ;;  %6912 = vmatpush1.bf16.msra.mxu1 %v10670_v58  ;;  %v11418_v19 = vld [vmem:[#allocation151_spill] sm:$0xff]  ;;  %v11419_v58 = vld [vmem:[#allocation152_spill] sm:$0xff] }
 0xcd2   :  { %6850 = vmatprep.subr.bf16.mxu0 %v10671_v53  ;;  %6914 = vmatprep.subr.bf16.mxu1 %v10672_v2  ;;  %v11420_v53 = vld [vmem:[#allocation153_spill] sm:$0xff]  ;;  %v11421_v2 = vld [vmem:[#allocation154_spill] sm:$0xff] }
 0xcd5   :  { %6852 = vmatpush1.bf16.msra.mxu0 %v10475_v54  ;;  %6916 = vmatpush1.bf16.msra.mxu1 %v10476_v61  ;;  %v11391_v54 = vld [vmem:[#allocation124_spill] sm:$0xff]  ;;  %v11392_v61 = vld [vmem:[#allocation125_spill] sm:$0xff] }
 0xcd6   :  { %6854 = vmatprep.subr.bf16.mxu0 %v10477_v24  ;;  %6918 = vmatprep.subr.bf16.mxu1 %v10479_v20  ;;  %v11393_v24 = vld [vmem:[#allocation126_spill] sm:$0xff]  ;;  %v11394_v20 = vld [vmem:[#allocation127_spill] sm:$0xff] }
 0xcd9   :  { %6856 = vmatpush1.bf16.msra.mxu0 %v10488_v12  ;;  %6920 = vmatpush1.bf16.msra.mxu1 %v10489_v51  ;;  %v11395_v12 = vld [vmem:[#allocation128_spill] sm:$0xff]  ;;  %v11396_v51 = vld [vmem:[#allocation129_spill] sm:$0xff] }
 0xcda   :  { %6858 = vmatprep.subr.bf16.mxu0 %v10490_v44  ;;  %6922 = vmatprep.subr.bf16.mxu1 %v10491_v4  ;;  %v11397_v44 = vld [vmem:[#allocation130_spill] sm:$0xff]  ;;  %v11398_v4 = vld [vmem:[#allocation131_spill] sm:$0xff] }
 0xcdd   :  { %6860 = vmatpush1.bf16.msra.mxu0 %v10500_v47  ;;  %6924 = vmatpush1.bf16.msra.mxu1 %v10501_v33  ;;  %v11399_v47 = vld [vmem:[#allocation132_spill] sm:$0xff]  ;;  %v11401_v33 = vld [vmem:[#allocation134_spill] sm:$0xff] }
 0xcde   :  { %6862 = vmatprep.subr.bf16.mxu0 %v10502_v11  ;;  %6926 = vmatprep.subr.bf16.mxu1 %v10503_v55  ;;  %v11402_v11 = vld [vmem:[#allocation135_spill] sm:$0xff]  ;;  %v11404_v55 = vld [vmem:[#allocation137_spill] sm:$0xff] }
 0xce1   :  { %6864 = vmatpush1.bf16.msra.mxu0 %v8375_v29  ;;  %6928 = vmatpush1.bf16.msra.mxu1 %v8383_v27  ;;  %v11400_v29 = vld [vmem:[#allocation133_spill] sm:$0xff]  ;;  %v11403_v27 = vld [vmem:[#allocation136_spill] sm:$0xff] }
 0xce2   :  { %6866 = vmatprep.subr.bf16.mxu0 %v8402_v62  ;;  %6930 = vmatprep.subr.bf16.mxu1 %v8404_v31  ;;  %v11405_v62 = vld [vmem:[#allocation138_spill] sm:$0xff]  ;;  %v11406_v31 = vld [vmem:[#allocation139_spill] sm:$0xff] }
 0xce5   :  { %6868 = vmatpush1.bf16.msra.mxu0 %v8406_v13  ;;  %6932 = vmatpush1.bf16.msra.mxu1 %v8409_v5  ;;  %v11407_v13 = vld [vmem:[#allocation140_spill] sm:$0xff]  ;;  %v11408_v5 = vld [vmem:[#allocation141_spill] sm:$0xff] }
 0xce6   :  { %6870 = vmatprep.subr.bf16.mxu0 %v8414_v43  ;;  %6934 = vmatprep.subr.bf16.mxu1 %v8416_v7  ;;  %v11409_v43 = vld [vmem:[#allocation142_spill] sm:$0xff]  ;;  %v11410_v7 = vld [vmem:[#allocation143_spill] sm:$0xff] }
 0xce9   :  { %6872 = vmatpush1.bf16.msra.mxu0 %v11390_v15  ;;  %6936 = vmatpush1.bf16.msra.mxu1 %v11391_v54 }
 0xcea   :  { %6874 = vmatprep.subr.bf16.mxu0 %v11392_v61  ;;  %6938 = vmatprep.subr.bf16.mxu1 %v11393_v24  ;;  %v11427_v24 = vld [vmem:[#allocation156_spill] sm:$0xff] }
 0xced   :  { %6876 = vmatpush1.bf16.msra.mxu0 %v11394_v20  ;;  %6940 = vmatpush1.bf16.msra.mxu1 %v11395_v12  ;;  %v11428_v20 = vld [vmem:[#allocation157_spill] sm:$0xff]  ;;  %v11429_v12 = vld [vmem:[#allocation158_spill] sm:$0xff] }
 0xcee   :  { %6878 = vmatprep.subr.bf16.mxu0 %v11396_v51  ;;  %6942 = vmatprep.subr.bf16.mxu1 %v11397_v44  ;;  %v11430_v51 = vld [vmem:[#allocation159_spill] sm:$0xff]  ;;  %v11431_v44 = vld [vmem:[#allocation160_spill] sm:$0xff] }
 0xcf1   :  { %6880 = vmatpush1.bf16.msra.mxu0 %v11398_v4  ;;  %6944 = vmatpush1.bf16.msra.mxu1 %v11399_v47  ;;  %v11432_v4 = vld [vmem:[#allocation161_spill] sm:$0xff]  ;;  %v11433_v47 = vld [vmem:[#allocation162_spill] sm:$0xff] }
 0xcf2   :  { %6882 = vmatprep.subr.bf16.mxu0 %v11400_v29  ;;  %6946 = vmatprep.subr.bf16.mxu1 %v11401_v33  ;;  %v11434_v29 = vld [vmem:[#allocation163_spill] sm:$0xff]  ;;  %v11435_v33 = vld [vmem:[#allocation164_spill] sm:$0xff] }
 0xcf5   :  { %6884 = vmatpush1.bf16.msra.mxu0 %v11402_v11  ;;  %6948 = vmatpush1.bf16.msra.mxu1 %v11403_v27  ;;  %v11436_v11 = vld [vmem:[#allocation165_spill] sm:$0xff]  ;;  %v11437_v27 = vld [vmem:[#allocation166_spill] sm:$0xff] }
 0xcf6   :  { %6886 = vmatprep.subr.bf16.mxu0 %v11404_v55  ;;  %6950 = vmatprep.subr.bf16.mxu1 %v11405_v62  ;;  %v11438_v55 = vld [vmem:[#allocation167_spill] sm:$0xff]  ;;  %v11439_v62 = vld [vmem:[#allocation168_spill] sm:$0xff] }
 0xcf9   :  { %6888 = vmatpush1.bf16.msra.mxu0 %v11406_v31  ;;  %6952 = vmatpush1.bf16.msra.mxu1 %v11407_v13  ;;  %v11440_v31 = vld [vmem:[#allocation169_spill] sm:$0xff]  ;;  %v11441_v13 = vld [vmem:[#allocation170_spill] sm:$0xff] }
 0xcfa   :  { %6890 = vmatprep.subr.bf16.mxu0 %v11408_v5  ;;  %6954 = vmatprep.subr.bf16.mxu1 %v11409_v43  ;;  %v11442_v5 = vld [vmem:[#allocation171_spill] sm:$0xff]  ;;  %v11443_v43 = vld [vmem:[#allocation172_spill] sm:$0xff] }
 0xcfd   :  { %6892 = vmatpush1.bf16.msra.mxu0 %v11410_v7  ;;  %6956 = vmatpush1.bf16.msra.mxu1 %v11411_v60  ;;  %v11444_v7 = vld [vmem:[#allocation173_spill] sm:$0xff]  ;;  %v11445_v60 = vld [vmem:[#allocation174_spill] sm:$0xff] }
 0xcfe   :  { %6894 = vmatprep.subr.bf16.mxu0 %v11412_v35  ;;  %6958 = vmatprep.subr.bf16.mxu1 %v11413_v3  ;;  %v11446_v35 = vld [vmem:[#allocation175_spill] sm:$0xff]  ;;  %v11447_v3 = vld [vmem:[#allocation176_spill] sm:$0xff] }
 0xd01   :  { %6896 = vmatpush1.bf16.msra.mxu0 %v11414_v52  ;;  %6960 = vmatpush1.bf16.msra.mxu1 %v11415_v17  ;;  %v11448_v52 = vld [vmem:[#allocation177_spill] sm:$0xff]  ;;  %v11449_v17 = vld [vmem:[#allocation178_spill] sm:$0xff] }
 0xd02   :  { %6898 = vmatprep.subr.bf16.mxu0 %v11416_v22  ;;  %6962 = vmatprep.subr.bf16.mxu1 %v11417_v10  ;;  %v11450_v22 = vld [vmem:[#allocation179_spill] sm:$0xff]  ;;  %v11451_v10 = vld [vmem:[#allocation180_spill] sm:$0xff] }
 0xd05   :  { %6900 = vmatpush1.bf16.msra.mxu0 %v11418_v19  ;;  %6964 = vmatpush1.bf16.msra.mxu1 %v11419_v58  ;;  %v11452_v19 = vld [vmem:[#allocation181_spill] sm:$0xff]  ;;  %v11453_v58 = vld [vmem:[#allocation182_spill] sm:$0xff] }
 0xd06   :  { %6966 = vmatprep.subr.bf16.mxu0 %v11420_v53  ;;  %7030 = vmatprep.subr.bf16.mxu1 %v11421_v2  ;;  %v11454_v53 = vld [vmem:[#allocation183_spill] sm:$0xff]  ;;  %v11455_v2 = vld [vmem:[#allocation184_spill] sm:$0xff] }
 0xd9b   :  { %v4026_v38 = vpop.f32.mrb[24].mxu0  ;;  %v4097_v28 = vpop.f32.mrb[24].mxu1 }
 0xd9c   :  { %v4102_v8 = vadd.f32 %v4026_v38, %v11422_v46  ;;  %v4028_v57 = vpop.f32.mrb[25].mxu0  ;;  %v4099_v1 = vpop.f32.mrb[25].mxu1  ;;  %v4104_v18 = vadd.f32 %v4097_v28, %v11425_v26  ;;  %v11456_v38 = vld [vmem:[#allocation185_spill] sm:$0xff]  ;;  %v11457_v28 = vld [vmem:[#allocation186_spill] sm:$0xff] }
 0xd9d   :  { %v4103_v32 = vadd.f32 %v4028_v57, %v11423_v56  ;;  %v4105_v36 = vadd.f32 %v4099_v1, %v11424_v25  ;;  %v11459_v57 = vld [vmem:[#allocation188_spill] sm:$0xff]  ;;  %v11460_v1 = vld [vmem:[#allocation189_spill] sm:$0xff] }
 0xd9e   :  { %v4106_v63 = vmul.f32 0.5, %v4102_v8  ;;  %v4108_v45 = vmul.f32 0.5, %v4104_v18  ;;  %v11458_v8 = vld [vmem:[#allocation187_spill] sm:$0xff]  ;;  %v11465_v18 = vld [vmem:[#allocation194_spill] sm:$0xff] }
 0xd9f   :  { %v4107_v50 = vmul.f32 0.5, %v4103_v32  ;;  %v11461_v32 = vld [vmem:[#allocation190_spill] sm:$0xff] }
 0xda0   :  { %7429 = vtanh.f32 %v4106_v63  ;;  %v11462_v63 = vld [vmem:[#allocation191_spill] sm:$0xff] }
 0xda1   :  { %7431 = vtanh.f32 %v4107_v50  ;;  %v11463_v50 = vld [vmem:[#allocation192_spill] sm:$0xff] }
 0xda2   :  { %7433 = vtanh.f32 %v4105_v36  ;;  %v11464_v36 = vld [vmem:[#allocation193_spill] sm:$0xff] }
 0xda3   :  { %7435 = vtanh.f32 %v4108_v45  ;;  %v11466_v45 = vld [vmem:[#allocation195_spill] sm:$0xff] }
 0xdaa   :  { %v7430_v34 = vpop.eup %7429 }
 0xdab   :  { %v4112_v21 = vmul.f32 0.5, %v7430_v34  ;;  %v7432_v30 = vpop.eup %7431  ;;  %v11467_v34 = vld [vmem:[#allocation196_spill] sm:$0xff] }
 0xdac   :  { %v4113_v48 = vmul.f32 0.5, %v7432_v30  ;;  %v7434_v42 = vpop.eup %7433  ;;  %v11469_v30 = vld [vmem:[#allocation198_spill] sm:$0xff] }
 0xdad   :  { %v4115_v49 = vadd.f32 0.5, %v4112_v21  ;;  %v7436_v40 = vpop.eup %7435  ;;  %v11468_v21 = vld [vmem:[#allocation197_spill] sm:$0xff] }
 0xdae   :  { %v4116_v41 = vadd.f32 0.5, %v4113_v48  ;;  %v4114_v39 = vmul.f32 0.5, %v7436_v40  ;;  %v11471_v48 = vld [vmem:[#allocation200_spill] sm:$0xff]  ;;  %v11477_v40 = vld [vmem:[#allocation206_spill] sm:$0xff] }
 0xdaf   :  { %v4120_v6 = vmul.f32 %v7434_v42, %v4115_v49  ;;  %v11470_v49 = vld [vmem:[#allocation199_spill] sm:$0xff]  ;;  %v11472_v42 = vld [vmem:[#allocation201_spill] sm:$0xff] }
 0xdb0   :  { %v4119_v0 = vmul.f32 %v4116_v41, %v11426_v9  ;;  %v4117_v15 = vadd.f32 0.5, %v4114_v39  ;;  %v11473_v41 = vld [vmem:[#allocation202_spill] sm:$0xff]  ;;  %v11475_v9 = vld [vmem:[#allocation204_spill] sm:$0xff]  ;;  %v11478_v39 = vld [vmem:[#allocation207_spill] sm:$0xff] }
 0xdb2   :  { %v9877_v23 = vadd.f32 %v4120_v6, %v4119_v0  ;;  %v11474_v6 = vld [vmem:[#allocation203_spill] sm:$0xff]  ;;  %v11476_v0 = vld [vmem:[#allocation205_spill] sm:$0xff] }
 0xdb4   :  { %7437 = vtanh.f32 %v9877_v23 }
 0xdbe   :  { %v7438_v54 = vpop.eup %7437 }
 0xdbf   :  { %v4123_v61 = vmul.f32 %v7438_v54, %v4117_v15  ;;  %v11479_v15 = vld [vmem:[#allocation208_spill] sm:$0xff]  ;;  %v11480_v54 = vld [vmem:[#allocation209_spill] sm:$0xff] }
 0xdc1   :  { %4240 = vmatprep.mubr.f32.mxu0 %v4123_v61  ;;  %4311 = vmatprep.mubr.f32.mxu1 %v4123_v61 }
 0xdc2   :  { %4241 = vmatmul.mubr.f32.vlgmr.msra.gmra.mrb[26].mxu0 %v9804_v37  ;;  %4312 = vmatmul.mubr.f32.vlgmr.msra.gmra.mrb[26].mxu1 %v9804_v37 }
 0xdc3   :  { %6968 = vmatpush1.bf16.msra.mxu0 %v11427_v24  ;;  %7032 = vmatpush1.bf16.msra.mxu1 %v11428_v20  ;;  %v11482_v24 = vld [vmem:[#allocation211_spill] sm:$0xff]  ;;  %v11483_v20 = vld [vmem:[#allocation212_spill] sm:$0xff] }
 0xdc4   :  { %4382 = vmatprep.mubr.f32.mxu0 %v4123_v61  ;;  %4453 = vmatprep.mubr.f32.mxu1 %v4123_v61  ;;  %v11481_v61 = vld [vmem:[#allocation210_spill] sm:$0xff] }
 0xdc5   :  { %6970 = vmatprep.subr.bf16.mxu0 %v11429_v12  ;;  %7034 = vmatprep.subr.bf16.mxu1 %v11430_v51  ;;  %v11484_v12 = vld [vmem:[#allocation213_spill] sm:$0xff]  ;;  %v11485_v51 = vld [vmem:[#allocation214_spill] sm:$0xff] }
 0xdc7   :  { %6972 = vmatpush1.bf16.msra.mxu0 %v11431_v44  ;;  %7036 = vmatpush1.bf16.msra.mxu1 %v11432_v4  ;;  %v11486_v44 = vld [vmem:[#allocation215_spill] sm:$0xff]  ;;  %v11487_v4 = vld [vmem:[#allocation216_spill] sm:$0xff] }
 0xdc8   :  { %6974 = vmatprep.subr.bf16.mxu0 %v11433_v47  ;;  %7038 = vmatprep.subr.bf16.mxu1 %v11434_v29  ;;  %v11488_v47 = vld [vmem:[#allocation217_spill] sm:$0xff]  ;;  %v11489_v29 = vld [vmem:[#allocation12_spill] sm:$0xff] }
 0xdcb   :  { %6976 = vmatpush1.bf16.msra.mxu0 %v11435_v33  ;;  %7040 = vmatpush1.bf16.msra.mxu1 %v11436_v11  ;;  %v11490_v33 = vld [vmem:[#allocation13_spill] sm:$0xff]  ;;  %v11491_v11 = vld [vmem:[#allocation14_spill] sm:$0xff] }
 0xdcc   :  { %6978 = vmatprep.subr.bf16.mxu0 %v11437_v27  ;;  %7042 = vmatprep.subr.bf16.mxu1 %v11438_v55  ;;  %v11492_v27 = vld [vmem:[#allocation15_spill] sm:$0xff]  ;;  %v11493_v55 = vld [vmem:[#allocation16_spill] sm:$0xff] }
 0xdcf   :  { %6980 = vmatpush1.bf16.msra.mxu0 %v11439_v62  ;;  %7044 = vmatpush1.bf16.msra.mxu1 %v11440_v31  ;;  %v11494_v62 = vld [vmem:[#allocation17_spill] sm:$0xff]  ;;  %v11495_v31 = vmov 0.0  }
 0xdd0   :  { %6982 = vmatprep.subr.bf16.mxu0 %v11441_v13  ;;  %7046 = vmatprep.subr.bf16.mxu1 %v11442_v5  ;;  %v11496_v13 = vld [vmem:[#allocation18_spill] sm:$0xff]  ;;  %v11497_v5 = vld [vmem:[#allocation19_spill] sm:$0xff] }
 0xdd3   :  { %6984 = vmatpush1.bf16.msra.mxu0 %v11443_v43  ;;  %7048 = vmatpush1.bf16.msra.mxu1 %v11444_v7  ;;  %v11498_v43 = vld [vmem:[#allocation20_spill] sm:$0xff]  ;;  %v11499_v7 = vld [vmem:[#allocation21_spill] sm:$0xff] }
 0xdd4   :  { %6986 = vmatprep.subr.bf16.mxu0 %v11445_v60  ;;  %7050 = vmatprep.subr.bf16.mxu1 %v11446_v35  ;;  %v11501_v60 = vld [vmem:[#allocation23_spill] sm:$0xff]  ;;  %v11502_v35 = vld [vmem:[#allocation24_spill] sm:$0xff] }
 0xdd7   :  { %6988 = vmatpush1.bf16.msra.mxu0 %v11447_v3  ;;  %7052 = vmatpush1.bf16.msra.mxu1 %v11448_v52  ;;  %v11503_v3 = vld [vmem:[#allocation25_spill] sm:$0xff]  ;;  %v11504_v52 = vld [vmem:[#allocation26_spill] sm:$0xff] }
 0xdd8   :  { %6990 = vmatprep.subr.bf16.mxu0 %v11449_v17  ;;  %7054 = vmatprep.subr.bf16.mxu1 %v11450_v22  ;;  %v11505_v17 = vld [vmem:[#allocation27_spill] sm:$0xff]  ;;  %v11506_v22 = vld [vmem:[#allocation28_spill] sm:$0xff] }
 0xddb   :  { %6992 = vmatpush1.bf16.msra.mxu0 %v11451_v10  ;;  %7056 = vmatpush1.bf16.msra.mxu1 %v11452_v19  ;;  %v11507_v10 = vld [vmem:[#allocation29_spill] sm:$0xff]  ;;  %v11508_v19 = vld [vmem:[#allocation30_spill] sm:$0xff] }
 0xddc   :  { %6994 = vmatprep.subr.bf16.mxu0 %v11453_v58  ;;  %7058 = vmatprep.subr.bf16.mxu1 %v11454_v53  ;;  %v11509_v58 = vld [vmem:[#allocation31_spill] sm:$0xff]  ;;  %v11510_v53 = vld [vmem:[#allocation32_spill] sm:$0xff] }
 0xddf   :  { %6996 = vmatpush1.bf16.msra.mxu0 %v11455_v2  ;;  %7060 = vmatpush1.bf16.msra.mxu1 %v11456_v38  ;;  %v11511_v2 = vld [vmem:[#allocation33_spill] sm:$0xff]  ;;  %v11512_v38 = vld [vmem:[#allocation34_spill] sm:$0xff] }
 0xde0   :  { %6998 = vmatprep.subr.bf16.mxu0 %v11457_v28  ;;  %7062 = vmatprep.subr.bf16.mxu1 %v11458_v8  ;;  %v11513_v28 = vld [vmem:[#allocation35_spill] sm:$0xff]  ;;  %v11514_v8 = vld [vmem:[#allocation36_spill] sm:$0xff] }
 0xde3   :  { %7000 = vmatpush1.bf16.msra.mxu0 %v11459_v57  ;;  %7064 = vmatpush1.bf16.msra.mxu1 %v11460_v1  ;;  %v11515_v57 = vld [vmem:[#allocation37_spill] sm:$0xff]  ;;  %v11516_v1 = vld [vmem:[#allocation38_spill] sm:$0xff] }
 0xde4   :  { %7002 = vmatprep.subr.bf16.mxu0 %v11461_v32  ;;  %7066 = vmatprep.subr.bf16.mxu1 %v11462_v63  ;;  %v11517_v32 = vld [vmem:[#allocation39_spill] sm:$0xff]  ;;  %v11518_v63 = vld [vmem:[#allocation40_spill] sm:$0xff] }
 0xde7   :  { %7004 = vmatpush1.bf16.msra.mxu0 %v11463_v50  ;;  %7068 = vmatpush1.bf16.msra.mxu1 %v11464_v36  ;;  %v11519_v50 = vld [vmem:[#allocation41_spill] sm:$0xff]  ;;  %v11520_v36 = vld [vmem:[#allocation42_spill] sm:$0xff] }
 0xde8   :  { %7006 = vmatprep.subr.bf16.mxu0 %v11465_v18  ;;  %7070 = vmatprep.subr.bf16.mxu1 %v11466_v45  ;;  %v11521_v18 = vld [vmem:[#allocation43_spill] sm:$0xff]  ;;  %v11522_v45 = vld [vmem:[#allocation50_spill] sm:$0xff] }
 0xdeb   :  { %7008 = vmatpush1.bf16.msra.mxu0 %v11467_v34  ;;  %7072 = vmatpush1.bf16.msra.mxu1 %v11468_v21  ;;  %v11523_v34 = vld [vmem:[#allocation110_spill] sm:$0xff] }
 0xdec   :  { %7010 = vmatprep.subr.bf16.mxu0 %v11469_v30  ;;  %7074 = vmatprep.subr.bf16.mxu1 %v11470_v49  ;;  %v4168_v21 = vadd.f32 %v11523_v34, %v11522_v45  ;;  %v11524_v30 = vld [vmem:[#allocation85_spill] sm:$0xff] }
 0xded   :  { %v4172_v49 = vadd.f32 %v11524_v30, %v11522_v45 }
 0xdef   :  { %7012 = vmatpush1.bf16.msra.mxu0 %v11471_v48  ;;  %7076 = vmatpush1.bf16.msra.mxu1 %v11472_v42  ;;  %v11525_v48 = vld [vmem:[#allocation53_spill] sm:$0xff]  ;;  %v11526_v42 = vld [vmem:[#allocation112_spill] sm:$0xff] }
 0xdf0   :  { %7014 = vmatprep.subr.bf16.mxu0 %v11473_v41  ;;  %7078 = vmatprep.subr.bf16.mxu1 %v11474_v6  ;;  %v4170_v41 = vadd.f32 %v11526_v42, %v11525_v48  ;;  %v11527_v6 = vld [vmem:[#allocation51_spill] sm:$0xff] }
 0xdf3   :  { %7016 = vmatpush1.bf16.msra.mxu0 %v11475_v9  ;;  %7080 = vmatpush1.bf16.msra.mxu1 %v11476_v0  ;;  %v11528_v9 = vld [vmem:[#allocation111_spill] sm:$0xff] }
 0xdf4   :  { %7018 = vmatprep.subr.bf16.mxu0 %v11477_v40  ;;  %7082 = vmatprep.subr.bf16.mxu1 %v11478_v39  ;;  %v4169_v0 = vadd.f32 %v11528_v9, %v11527_v6  ;;  %v11529_v39 = vld [vmem:[#allocation86_spill] sm:$0xff] }
 0xdf7   :  { %7020 = vmatpush1.bf16.msra.mxu0 %v11479_v15  ;;  %7084 = vmatpush1.bf16.msra.mxu1 %v11480_v54  ;;  %v4174_v15 = vadd.f32 %v11529_v39, %v11525_v48 }
 0xdf8   :  { %7022 = vmatprep.subr.bf16.mxu0 %v11481_v61  ;;  %7086 = vmatprep.subr.bf16.mxu1 %v11482_v24  ;;  %v11530_v61 = vld [vmem:[#allocation121_spill] sm:$0xff] }
 0xdf9   :  { %v4173_v24 = vadd.f32 %v11530_v61, %v11527_v6 }
 0xdfb   :  { %7024 = vmatpush1.bf16.msra.mxu0 %v11483_v20  ;;  %7088 = vmatpush1.bf16.msra.mxu1 %v11484_v12  ;;  %v11531_v20 = vld [vmem:[#allocation113_spill] sm:$0xff] }
 0xdfc   :  { %7026 = vmatprep.subr.bf16.mxu0 %v11485_v51  ;;  %7090 = vmatprep.subr.bf16.mxu1 %v11486_v44  ;;  %v4171_v12 = vadd.f32 %v11531_v20, %v10657_v16  ;;  %v11532_v51 = vld [vmem:[#allocation122_spill] sm:$0xff] }
 0xdfd   :  { %v4175_v44 = vadd.f32 %v11532_v51, %v10657_v16  ;;  %v4691_v51 = vld [vmem:[#allocation7 + $0x10] sm:$0xff] }
 0xdff   :  { %7028 = vmatpush1.bf16.msra.mxu0 %v11487_v4  ;;  %7092 = vmatpush1.bf16.msra.mxu1 %v11488_v47 }
 0xe00   :  { %7094 = vmatprep.subr.bf16.mxu0 %v11489_v29  ;;  %7126 = vmatprep.subr.bf16.mxu1 %v11490_v33 }
 0xe02   :  { %4383 = vmatmul.mubr.f32.vlgmr.msra.gmra.mrb[28].mxu0 %v9804_v37  ;;  %4454 = vmatmul.mubr.f32.vlgmr.msra.gmra.mrb[28].mxu1 %v9804_v37  ;;  %v11500_v37 = vld [vmem:[#allocation22_spill] sm:$0xff] }
 0xe03   :  { %7096 = vmatpush1.bf16.msra.mxu0 %v11491_v11  ;;  %7128 = vmatpush1.bf16.msra.mxu1 %v11492_v27 }
 0xe04   :  { %7098 = vmatprep.subr.bf16.mxu0 %v11493_v55  ;;  %7130 = vmatprep.subr.bf16.mxu1 %v11494_v62 }
 0xe05   :  { %4589 = vmatprep.mubr.f32.mxu0 %v11495_v31  ;;  %4660 = vmatprep.mubr.f32.mxu1 %v11495_v31 }
 0xe07   :  { %7100 = vmatpush1.bf16.msra.mxu0 %v11496_v13  ;;  %7132 = vmatpush1.bf16.msra.mxu1 %v11497_v5 }
 0xe08   :  { %7102 = vmatprep.subr.bf16.mxu0 %v11498_v43  ;;  %7134 = vmatprep.subr.bf16.mxu1 %v11499_v7 }
 0xe0b   :  { %7104 = vmatpush1.bf16.msra.mxu0 %v11500_v37  ;;  %7136 = vmatpush1.bf16.msra.mxu1 %v11501_v60 }
 0xe0c   :  { %7106 = vmatprep.subr.bf16.mxu0 %v11502_v35  ;;  %7138 = vmatprep.subr.bf16.mxu1 %v11503_v3 }
 0xe0f   :  { %7108 = vmatpush1.bf16.msra.mxu0 %v11504_v52  ;;  %7140 = vmatpush1.bf16.msra.mxu1 %v11505_v17 }
 0xe10   :  { %7110 = vmatprep.subr.bf16.mxu0 %v11506_v22  ;;  %7142 = vmatprep.subr.bf16.mxu1 %v11507_v10 }
 0xe13   :  { %7112 = vmatpush1.bf16.msra.mxu0 %v11508_v19  ;;  %7144 = vmatpush1.bf16.msra.mxu1 %v11509_v58 }
 0xe14   :  { %7114 = vmatprep.subr.bf16.mxu0 %v11510_v53  ;;  %7146 = vmatprep.subr.bf16.mxu1 %v11511_v2 }
 0xe17   :  { %7116 = vmatpush1.bf16.msra.mxu0 %v11512_v38  ;;  %7148 = vmatpush1.bf16.msra.mxu1 %v11513_v28 }
 0xe18   :  { %7118 = vmatprep.subr.bf16.mxu0 %v11514_v8  ;;  %7150 = vmatprep.subr.bf16.mxu1 %v11515_v57 }
 0xe1b   :  { %7120 = vmatpush1.bf16.msra.mxu0 %v11516_v1  ;;  %7152 = vmatpush1.bf16.msra.mxu1 %v11517_v32 }
 0xe1c   :  { %7122 = vmatprep.subr.bf16.mxu0 %v11518_v63  ;;  %7154 = vmatprep.subr.bf16.mxu1 %v11519_v50 }
 0xe1f   :  { %7124 = vmatpush1.bf16.msra.mxu0 %v11520_v36  ;;  %7156 = vmatpush1.bf16.msra.mxu1 %v11521_v18 }
 0xe95   :  { %v4242_v40 = vpop.f32.mrb[26].mxu0  ;;  %v4313_v54 = vpop.f32.mrb[26].mxu1 }
 0xe96   :  { %v4464_v4 = vrot.slane %v4242_v40, 1  ;;  %v4476_v47 = vadd.f32 %v4242_v40, %v4168_v21  ;;  %v4466_v29 = vrot.slane %v4313_v54, 1  ;;  %v4478_v33 = vadd.f32 %v4313_v54, %v4170_v41  ;;  %v4244_v11 = vpop.f32.mrb[27].mxu0  ;;  %v4315_v27 = vpop.f32.mrb[27].mxu1 }
 0xe97   :  { %v4465_v55 = vrot.slane %v4244_v11, 1  ;;  %v4477_v62 = vadd.f32 %v4244_v11, %v4169_v0  ;;  %v4467_v13 = vrot.slane %v4315_v27, 1  ;;  %v4479_v5 = vadd.f32 %v4315_v27, %v4171_v12  ;;  %v4695_v11 = vld [vmem:[#allocation7 + $0x30] sm:$0xff]  ;;  %v4696_v27 = vld [vmem:[#allocation7 + $0x38] sm:$0xff] }
 0xe98   :  { %v4480_v43 = vadd.f32 %v4464_v4, %v4172_v49  ;;  %v4484_v7 = vmul.f32 0.5, %v4476_v47  ;;  %v4482_v37 = vadd.f32 %v4466_v29, %v4174_v15  ;;  %v4486_v10 = vmul.f32 0.5, %v4478_v33  ;;  %v4693_v47 = vld [vmem:[#allocation7 + $0x20] sm:$0xff]  ;;  %v4694_v29 = vld [vmem:[#allocation7 + $0x28] sm:$0xff] }
 0xe99   :  { %v4481_v60 = vadd.f32 %v4465_v55, %v4173_v24  ;;  %v4483_v35 = vadd.f32 %v4467_v13, %v4175_v44  ;;  %v4485_v52 = vmul.f32 0.5, %v4477_v62  ;;  %v7575_v12 = vmov 0.0|0.0   ;;  %v4692_v44 = vld [vmem:[#allocation7 + $0x18] sm:$0xff]  ;;  %v4697_v62 = vld [vmem:[#allocation7 + $0x40] sm:$0xff]  ;;  %v4698_v13 = vld [vmem:[#allocation7 + $0x48] sm:$0xff] }
 0xe9a   :  { %v4487_v3 = vmul.f32 0.5, %v4480_v43  ;;  %7439 = vtanh.f32 %v4484_v7  ;;  %v4489_v58 = vmul.f32 0.5, %v4482_v37  ;;  %7157 = vmatprep.subr.bf16.mxu0 %v7575_v12  ;;  %v7161_v4 = vpack.c.bf16 %v4692_v44, %v4691_v51  ;;  %v4700_v7 = vld [vmem:[#allocation7 + $0x58] sm:$0xff] }
 0xe9b   :  { %v4488_v17 = vmul.f32 0.5, %v4481_v60  ;;  %v7164_v33 = vpack.c.bf16 %v4694_v29, %v4693_v47  ;;  %v7167_v55 = vpack.c.bf16 %v4696_v27, %v4695_v11  ;;  %v7170_v43 = vpack.c.bf16 %v4698_v13, %v4697_v62  ;;  %v4701_v60 = vld [vmem:[#allocation7 + $0x60] sm:$0xff] }
 0xe9c   :  { %7441 = vtanh.f32 %v4487_v3 }
 0xe9d   :  { %7443 = vtanh.f32 %v4479_v5  ;;  %v4699_v5 = vld [vmem:[#allocation7 + $0x50] sm:$0xff] }
 0xe9e   :  { %7445 = vtanh.f32 %v4485_v52  ;;  %v7173_v37 = vpack.c.bf16 %v4700_v7, %v4699_v5  ;;  %v4703_v52 = vld [vmem:[#allocation7 + $0x70] sm:$0xff] }
 0xe9f   :  { %7447 = vtanh.f32 %v4488_v17  ;;  %v4704_v17 = vld [vmem:[#allocation7 + $0x78] sm:$0xff] }
 0xea0   :  { %7449 = vtanh.f32 %v4483_v35  ;;  %v4702_v35 = vld [vmem:[#allocation7 + $0x68] sm:$0xff] }
 0xea1   :  { %7451 = vtanh.f32 %v4486_v10  ;;  %v7176_v3 = vpack.c.bf16 %v4702_v35, %v4701_v60 }
 0xea2   :  { %7453 = vtanh.f32 %v4489_v58 }
 0xea4   :  { %v7440_v16 = vpop.eup %7439 }
 0xea5   :  { %v4496_v22 = vmul.f32 0.5, %v7440_v16  ;;  %v7179_v16 = vpack.c.bf16 %v4704_v17, %v4703_v52 }
 0xea6   :  { %v7442_v19 = vpop.eup %7441 }
 0xea7   :  { %v7444_v53 = vpop.eup %7443  ;;  %v4499_v2 = vmul.f32 0.5, %v7442_v19  ;;  %v4502_v38 = vadd.f32 0.5, %v4496_v22 }
 0xea8   :  { %v7446_v28 = vpop.eup %7445 }
 0xea9   :  { %v7448_v8 = vpop.eup %7447  ;;  %v4505_v57 = vadd.f32 0.5, %v4499_v2  ;;  %v4497_v1 = vmul.f32 0.5, %v7446_v28  ;;  %v4512_v32 = vmul.f32 %v7444_v53, %v4502_v38 }
 0xeaa   :  { %v7450_v63 = vpop.eup %7449  ;;  %v4500_v50 = vmul.f32 0.5, %v7448_v8 }
 0xeab   :  { %v4503_v36 = vadd.f32 0.5, %v4497_v1  ;;  %v4513_v18 = vmul.f32 %v7450_v63, %v4505_v57  ;;  %v7452_v48 = vpop.eup %7451 }
 0xeac   :  { %v4506_v45 = vadd.f32 0.5, %v4500_v50  ;;  %v7454_v42 = vpop.eup %7453  ;;  %v4498_v41 = vmul.f32 0.5, %v7452_v48 }
 0xead   :  { %v4510_v34 = vmul.f32 %v4503_v36, %v9797_v14  ;;  %v4501_v6 = vmul.f32 0.5, %v7454_v42  ;;  %v4689_v14 = vld [vmem:[#allocation7] sm:$0xff] }
 0xeae   :  { %v4511_v21 = vmul.f32 %v4506_v45, %v9799_v59  ;;  %v4504_v9 = vadd.f32 0.5, %v4498_v41  ;;  %v4690_v59 = vld [vmem:[#allocation7 + $0x8] sm:$0xff] }
 0xeaf   :  { %v4514_v30 = vadd.f32 %v4512_v32, %v4510_v34  ;;  %v4507_v40 = vadd.f32 0.5, %v4501_v6  ;;  %v7158_v20 = vpack.c.bf16 %v4690_v59, %v4689_v14 }
 0xeb0   :  { %v4515_v49 = vadd.f32 %v4513_v18, %v4511_v21 }
 0xeb1   :  { %7455 = vtanh.f32 %v4514_v30 }
 0xeb2   :  { %7457 = vtanh.f32 %v4515_v49 }
 0xebb   :  { %v7456_v0 = vpop.eup %7455 }
 0xebc   :  { %v7458_v39 = vpop.eup %7457  ;;  %v4518_v15 = vmul.f32 %v7456_v0, %v4504_v9 }
 0xebd   :  { %v4519_v54 = vmul.f32 %v7458_v39, %v4507_v40 }
 0xebf   :  { %v4522_v61 = vrot.slane %v4519_v54, 7 }
 0xec1   :  { %v4523_v24 = vsel %vm315_vm0, %v4522_v61, %v4518_v15 }
 0xec2   :  { %4590 = vmatmul.mubr.f32.vlgmr.msra.gmra.mrb[28].mxu0 %v4523_v24  ;;  %4661 = vmatmul.mubr.f32.vlgmr.msra.gmra.mrb[28].mxu1 %v4523_v24 }
 0xec3   :  { %7159 = vmatpush3.bf16.msra.mxu0 %v7158_v20  ;;  %4850 = vmatprep.mubr.msk.f32.mxu0 %vm7576_vm1, %v11495_v31 }
 0xec4   :  { %7160 = vmatprep.subr.bf16.mxu0 %v7575_v12 }
 0xec7   :  { %7162 = vmatpush3.bf16.msra.mxu0 %v7161_v4 }
 0xec8   :  { %7163 = vmatprep.subr.bf16.mxu0 %v7575_v12 }
 0xecb   :  { %7165 = vmatpush3.bf16.msra.mxu0 %v7164_v33 }
 0xecc   :  { %7166 = vmatprep.subr.bf16.mxu0 %v7575_v12 }
 0xecf   :  { %7168 = vmatpush3.bf16.msra.mxu0 %v7167_v55 }
 0xed0   :  { %7169 = vmatprep.subr.bf16.mxu0 %v7575_v12 }
 0xed3   :  { %7171 = vmatpush3.bf16.msra.mxu0 %v7170_v43 }
 0xed4   :  { %7172 = vmatprep.subr.bf16.mxu0 %v7575_v12 }
 0xed7   :  { %7174 = vmatpush3.bf16.msra.mxu0 %v7173_v37 }
 0xed8   :  { %7175 = vmatprep.subr.bf16.mxu0 %v7575_v12 }
 0xedb   :  { %7177 = vmatpush3.bf16.msra.mxu0 %v7176_v3 }
 0xedc   :  { %7178 = vmatprep.subr.bf16.mxu0 %v7575_v12 }
 0xedf   :  { %7180 = vmatpush3.bf16.msra.mxu0 %v7179_v16 }
 0xf95   :  { %v4591_v22 = vpop.f32.mrb[28].mxu0  ;;  %v4662_v10 = vpop.f32.mrb[28].mxu1 }
 0xf96   :  { %v4667_v19 = vadd.f32 %v4591_v22, %v11422_v46  ;;  %v4593_v58 = vpop.f32.mrb[29].mxu0  ;;  %v4664_v31 = vpop.f32.mrb[29].mxu1  ;;  %v4669_v8 = vadd.f32 %v4662_v10, %v11425_v26  ;;  %v4800_v26 = vld [vmem:[%s10027_s7] ss:$0 sm:$0xff] }
 0xf97   :  { %v4668_v53 = vadd.f32 %v4593_v58, %v11423_v56  ;;  %v4670_v28 = vadd.f32 %v4664_v31, %v11424_v25 }
 0xf98   :  { %v4671_v2 = vmul.f32 0.5, %v4667_v19  ;;  %v4673_v57 = vmul.f32 0.5, %v4669_v8 }
 0xf99   :  { %v4672_v38 = vmul.f32 0.5, %v4668_v53 }
 0xf9a   :  { %7459 = vtanh.f32 %v4671_v2 }
 0xf9b   :  { %7461 = vtanh.f32 %v4672_v38 }
 0xf9c   :  { %7463 = vtanh.f32 %v4670_v28 }
 0xf9d   :  { %7465 = vtanh.f32 %v4673_v57 }
 0xfa4   :  { %v7460_v1 = vpop.eup %7459 }
 0xfa5   :  { %v4677_v32 = vmul.f32 0.5, %v7460_v1  ;;  %v7462_v63 = vpop.eup %7461 }
 0xfa6   :  { %v4678_v46 = vmul.f32 0.5, %v7462_v63  ;;  %v7464_v36 = vpop.eup %7463 }
 0xfa7   :  { %v4680_v50 = vadd.f32 0.5, %v4677_v32  ;;  %v7466_v21 = vpop.eup %7465 }
 0xfa8   :  { %v4681_v18 = vadd.f32 0.5, %v4678_v46  ;;  %v4679_v25 = vmul.f32 0.5, %v7466_v21 }
 0xfa9   :  { %v4685_v45 = vmul.f32 %v7464_v36, %v4680_v50 }
 0xfaa   :  { %v4684_v56 = vmul.f32 %v4681_v18, %v9877_v23  ;;  %v4682_v30 = vadd.f32 0.5, %v4679_v25 }
 0xfac   :  { %v4686_v34 = vadd.f32 %v4685_v45, %v4684_v56 }
 0xfae   :  { %7467 = vtanh.f32 %v4686_v34 }
 0xfb8   :  { %v7468_v49 = vpop.eup %7467 }
 0xfb9   :  { %v4688_v48 = vmul.f32 %v7468_v49, %v4682_v30 }
 0xfbb   :  { %4851 = vmatmul.mubr.f32.vlgmr.msra.gmra.mrb[30].mxu0 %v4688_v48 }
0x108e   :  { %v4778_v42 = vpop.f32.mrb[30].mxu0 }
0x108f   :  { %v4779_v41 = vadd.f32 %v4800_v26, %v4778_v42  ;;  %v4852_v6 = vpop.f32.mrb[31].mxu0 }
0x1091   :  { %4782 = vst [vmem:[#allocation8] sm:$0x3] %v4779_v41 }
0x1092   :  { %7546 = shalt.err (!%p7543_p0)
}
0x1093   :  { %s7547_s17 = scalar_lea.hbm %s10028_s8, 32 }
0x1094   :  { %p7548_p1 = scmp.ne.s32.totalorder %s10028_s8, %s7547_s17  ;;  %p7551_p2 = scmp.lt.u32.totalorder %s7547_s17, %s10028_s8 }
0x1096   :  { %p7553_p3 = pnand %p7551_p2, %p7548_p1 }
0x1098   :  { %7556 = shalt.err (!%p7553_p3)
}
0x1099   :  { %4792 = dma.vmem_to_hbm [thread:$0]  %s4790_s13, 32, %s10028_s8, [#allocation4]  }
0x109a   :  { %7561 = dma.done.wait [#allocation4], 32  }
0x109b   :  { %7562 = vsyncadd [#allocation4], 4294967264 }
0x109c   :  { %4796 = vsyncpa [#allocation3], 1 }
0x109d   :  { %4797 = vsyncpa [#allocation6], 1 }
0x109e   :  { %4798 = vsyncpa [#allocation4], 1 }

</bundles_post_ra>
